<compile_context>
chip_gen: v7x
topology: tpu7x:2x2x1
jax: 0.10.0
libtpu: 0.0.40
codegen_flags: <defaults>
</compile_context>

<pallas_src>
import functools

import jax
import jax.numpy as jnp
from jax import lax
from jax.experimental import pallas as pl
from jax.experimental.pallas import tpu as pltpu

N_HEADS = 8          # reference hard-codes n_heads = 8 inside MultiHeadAttention
LN_EPS = 1e-5        # torch.nn.LayerNorm default eps


def _choose_batch_tile(B, S):
    """Pick the per-grid-step batch tile Bt (must divide B).

    Only split the batch when every tile still feeds the MXU >= 256 rows AND
    there are >= 2 tiles (so v7x's two TensorCores both get real work).
    Otherwise keep the whole batch in one grid step: splitting tiny work only
    duplicates per-step overhead and resident-weight DMA.
    """
    for bt in sorted((d for d in range(1, B + 1) if B % d == 0), reverse=True):
        if bt * S >= 256 and B // bt >= 2:
            return bt
    return B


def _decoder_kernel(x_ref, wqkv_ref, wo_ref, rowp_ref, w1_ref, b1_ref, w2_ref,
                    out_ref, attn_ref, *, n_layers, bt, seq, d_model, d_k):
    """All n_layers decoder layers for one batch tile.  grid = (batch_tiles,)."""
    rows = bt * seq

    # Hoist all parameter loads out of the layer loop (grid-invariant blocks,
    # DMA'd once and resident in VMEM).
    wqkv = wqkv_ref[...]                     # (D, 3*d_k), 1/temperature folded into W_Q cols
    wo = wo_ref[...]                         # (d_k, D)   pre-reduced W_O
    w1 = w1_ref[...]                         # (D, d_ff)
    b1 = b1_ref[0:1]                         # (1, d_ff)
    w2 = w2_ref[...]                         # (d_ff, D)
    g1, be1, bf2, g2, be2 = (rowp_ref[i:i + 1] for i in range(5))   # (1, D) each

    def layer_norm(y, g, b):
        mu = jnp.mean(y, axis=-1, keepdims=True)
        var = jnp.mean((y - mu) ** 2, axis=-1, keepdims=True)
        return (y - mu) * lax.rsqrt(var + LN_EPS) * g + b

    # Running activation carried as a 2-D (rows, D) value; never round-trips
    # through HBM between layers.
    x = x_ref[...].reshape(rows, d_model)

    for li in range(n_layers):               # static unroll: n_layers is small
        # --- multi-head attention (all 8 heads identical -> compute one head,
        #     project with the pre-reduced W_O) -------------------------------
        qkv = jnp.dot(x, wqkv, preferred_element_type=jnp.float32)   # (rows, 3*d_k)
        q3 = qkv[:, 0 * d_k:1 * d_k].reshape(bt, seq, d_k)
        k3 = qkv[:, 1 * d_k:2 * d_k].reshape(bt, seq, d_k)
        v3 = qkv[:, 2 * d_k:3 * d_k].reshape(bt, seq, d_k)

        scores = jnp.einsum("bsd,btd->bst", q3, k3,
                            preferred_element_type=jnp.float32)      # (bt, S, S)
        m = jnp.max(scores, axis=-1, keepdims=True)
        e = jnp.exp(scores - m)
        denom = jnp.sum(e, axis=-1, keepdims=True)
        attn = e * pl.reciprocal(denom)   # exact: preserves 1e-4 parity with f32 ref
        # TODO(synk): attention dropout (p=0.1) skipped -> eval/inference semantics.

        head = jnp.einsum("bst,btd->bsd", attn, v3,
                          preferred_element_type=jnp.float32)        # (bt, S, d_k)
        mha = jnp.dot(head.reshape(rows, d_k), wo,
                      preferred_element_type=jnp.float32)            # (rows, D)

        # --- residual + LayerNorm 1 ------------------------------------------
        xn1 = layer_norm(x + mha, g1, be1)

        # --- position-wise feed-forward ---------------------------------------
        h = jnp.maximum(
            jnp.dot(xn1, w1, preferred_element_type=jnp.float32) + b1, 0.0)
        ff = jnp.dot(h, w2, preferred_element_type=jnp.float32) + bf2

        # --- residual + LayerNorm 2 --------------------------------------------
        x = layer_norm(xn1 + ff, g2, be2)

        # Resident (n_layers, bt, S, S) output block: one HBM writeback per tile.
        attn_ref[li] = attn

    out_ref[...] = x.reshape(bt, seq, d_model)


def decoder_forward(x, self_attn_mask, params, n_layers=6):
    """Full Decoder forward (all n_layers) in a single fused Pallas call."""
    # self_attn_mask accepted but unused, matching the reference Decoder.
    del self_attn_mask
    B, S, D = x.shape
    d_k = D // N_HEADS
    d_ff = params["w1_t"].shape[1]
    temperature = float(d_k) ** 0.5

    # Host-side one-off algebra (outside the kernel):
    #  * fold 1/temperature into W_Q and fuse Q/K/V into one (D, 3*d_k) weight
    #  * collapse the identical-head concat: concat([h]*8) @ W_O == h @ sum(row blocks)
    #  * pack the five D-wide row params into one (5, D) array (one DMA, not five)
    wqkv = jnp.concatenate(
        [params["wq_t"] * (1.0 / temperature), params["wk_t"], params["wv_t"]],
        axis=1)                                                     # (D, 3*d_k)
    wo_red = params["wo_t"].reshape(N_HEADS, d_k, D).sum(axis=0)    # (d_k, D)
    rowp = jnp.concatenate(
        [params["g1"], params["be1"], params["bf2"], params["g2"], params["be2"]],
        axis=0)                                                     # (5, D)

    bt = _choose_batch_tile(B, S)
    nb = B // bt

    kernel = functools.partial(_decoder_kernel, n_layers=n_layers, bt=bt,
                               seq=S, d_model=D, d_k=d_k)

    def const(shape):
        # grid-invariant block: fetched once, stays resident in VMEM
        return pl.BlockSpec(shape, lambda b, _n=len(shape): (0,) * _n)

    out, attn_stack = pl.pallas_call(
        kernel,
        out_shape=(jax.ShapeDtypeStruct((B, S, D), jnp.float32),
                   jax.ShapeDtypeStruct((n_layers, B, S, S), jnp.float32)),
        grid_spec=pltpu.PrefetchScalarGridSpec(
            num_scalar_prefetch=0,
            grid=(nb,),                                   # batch tiles only
            in_specs=[
                pl.BlockSpec((bt, S, D), lambda b: (b, 0, 0)),   # x
                const((D, 3 * d_k)),                             # fused W_QKV (W_Q scaled)
                const((d_k, D)),                                 # reduced W_O
                const((5, D)),                                   # g1, be1, bf2, g2, be2
                const((D, d_ff)),                                # W1^T
                const((1, d_ff)),                                # b1
                const((d_ff, D)),                                # W2^T
            ],
            out_specs=[
                pl.BlockSpec((bt, S, D), lambda b: (b, 0, 0)),             # final x
                pl.BlockSpec((n_layers, bt, S, S), lambda b: (0, b, 0, 0)),  # all attn
            ],
        ),
        compiler_params=pltpu.CompilerParams(
            # Only use the megacore split when there really are >=2 batch tiles.
            dimension_semantics=("parallel" if nb > 1 else "arbitrary",)),
    )(x, wqkv, wo_red, rowp, params["w1_t"], params["bf1"], params["w2_t"])

    return out, [attn_stack[i] for i in range(n_layers)]


# ----------------------- pure-JAX reference (for checking) -----------------------
def _ref_layer(x, p):
    d_k = x.shape[-1] // N_HEADS
    q = x @ p["wq_t"]; k = x @ p["wk_t"]; v = x @ p["wv_t"]
    scores = jnp.einsum("bsd,btd->bst", q, k) / (d_k ** 0.5)
    attn = jax.nn.softmax(scores, axis=-1)
    head = jnp.einsum("bst,btd->bsd", attn, v)
    concat = jnp.concatenate([head] * N_HEADS, axis=-1)
    x1 = x + concat @ p["wo_t"]

    def ln(y, g, b):
        mu = y.mean(-1, keepdims=True)
        var = ((y - mu) ** 2).mean(-1, keepdims=True)
        return (y - mu) / jnp.sqrt(var + LN_EPS) * g[0] + b[0]

    xn1 = ln(x1, p["g1"], p["be1"])
    h = jnp.maximum(xn1 @ p["w1_t"] + p["bf1"][0], 0.0)
    x2 = xn1 + h @ p["w2_t"] + p["bf2"][0]
    return ln(x2, p["g2"], p["be2"]), attn


def _ref_forward(x, params, n_layers):
    attns = []
    for _ in range(n_layers):
        x, a = _ref_layer(x, params)
        attns.append(a)
    return x, attns


def init_params(key, d_model, d_ff=2048):
    d_k = d_model // N_HEADS
    ks = jax.random.split(key, 8)
    s = 0.05
    f32 = jnp.float32
    return dict(
        wq_t=jax.random.normal(ks[0], (d_model, d_k), f32) * s,
        wk_t=jax.random.normal(ks[1], (d_model, d_k), f32) * s,
        wv_t=jax.random.normal(ks[2], (d_model, d_k), f32) * s,
        wo_t=jax.random.normal(ks[3], (N_HEADS * d_k, d_model), f32) * s,
        g1=jnp.ones((1, d_model), f32),
        be1=jnp.zeros((1, d_model), f32),
        w1_t=jax.random.normal(ks[4], (d_model, d_ff), f32) * s,
        bf1=jax.random.normal(ks[5], (1, d_ff), f32) * s,
        w2_t=jax.random.normal(ks[6], (d_ff, d_model), f32) * s,
        bf2=jax.random.normal(ks[7], (1, d_model), f32) * s,
        g2=jnp.ones((1, d_model), f32),
        be2=jnp.zeros((1, d_model), f32),
    )


if __name__ == "__main__":
    B, S, D = 2, 8, 32        # batch, seq, d_model (d_model divisible by 8 heads)
    D_FF = 2048               # PositionwiseFeedForward default
    N_LAYERS = 6              # Decoder default

    key = jax.random.PRNGKey(0)
    kx, kp = jax.random.split(key)
    x = jax.random.normal(kx, (B, S, D), jnp.float32)
    self_attn_mask = jnp.ones((B, S, S), jnp.float32)   # accepted but unused
    params = init_params(kp, D, D_FF)

    out, all_attn = decoder_forward(x, self_attn_mask, params, n_layers=N_LAYERS)
    out = jax.block_until_ready(out)
    all_attn = [jax.block_until_ready(a) for a in all_attn]

    # correctness check against a pure-JAX reference
    ref_out, ref_attn = _ref_forward(x, params, N_LAYERS)
    assert out.shape == (B, S, D)
    assert len(all_attn) == N_LAYERS and all_attn[0].shape == (B, S, S)
    assert jnp.allclose(out, ref_out, rtol=1e-4, atol=1e-4)
    for a, ra in zip(all_attn, ref_attn):
        assert jnp.allclose(a, ra, rtol=1e-4, atol=1e-5)

    print("KERNEL_OK")
</pallas_src>

<mosaic_0001>
module attributes {stable_mosaic.version = 11 : i64} {
  func.func @_decoder_kernel(%arg0: i32, %arg1: memref<2x8x32xf32, #tpu.memory_space<vmem>>, %arg2: memref<32x12xf32, #tpu.memory_space<vmem>>, %arg3: memref<4x32xf32, #tpu.memory_space<vmem>>, %arg4: memref<5x32xf32, #tpu.memory_space<vmem>>, %arg5: memref<32x2048xf32, #tpu.memory_space<vmem>>, %arg6: memref<1x2048xf32, #tpu.memory_space<vmem>>, %arg7: memref<2048x32xf32, #tpu.memory_space<vmem>>, %arg8: memref<2x8x32xf32, #tpu.memory_space<vmem>>, %arg9: memref<6x2x8x8xf32, #tpu.memory_space<vmem>>) attributes {dimension_semantics = [#tpu.dimension_semantics<arbitrary>], iteration_bounds = array<i64: 1>, scalar_prefetch = 0 : i64, scratch_operands = 0 : i64, tpu.core_type = #tpu.core_type<tc>, window_params = [{transform_indices = @transform_0, window_bounds = array<i64: 2, 8, 32>}, {pipeline_mode = #tpu.pipeline_mode<synchronous>, transform_indices = @transform_1, window_bounds = array<i64: 32, 12>}, {pipeline_mode = #tpu.pipeline_mode<synchronous>, transform_indices = @transform_2, window_bounds = array<i64: 4, 32>}, {pipeline_mode = #tpu.pipeline_mode<synchronous>, transform_indices = @transform_3, window_bounds = array<i64: 5, 32>}, {pipeline_mode = #tpu.pipeline_mode<synchronous>, transform_indices = @transform_4, window_bounds = array<i64: 32, 2048>}, {pipeline_mode = #tpu.pipeline_mode<synchronous>, transform_indices = @transform_5, window_bounds = array<i64: 1, 2048>}, {pipeline_mode = #tpu.pipeline_mode<synchronous>, transform_indices = @transform_6, window_bounds = array<i64: 2048, 32>}, {transform_indices = @transform_7, window_bounds = array<i64: 2, 8, 32>}, {transform_indices = @transform_8, window_bounds = array<i64: 6, 2, 8, 8>}]} {
    %c0 = arith.constant 0 : index
    %c0_0 = arith.constant 0 : index
    %0 = vector.load %arg2[%c0, %c0_0] : memref<32x12xf32, #tpu.memory_space<vmem>>, vector<32x12xf32>
    %c0_1 = arith.constant 0 : index
    %c0_2 = arith.constant 0 : index
    %1 = vector.load %arg3[%c0_1, %c0_2] : memref<4x32xf32, #tpu.memory_space<vmem>>, vector<4x32xf32>
    %c0_3 = arith.constant 0 : index
    %c0_4 = arith.constant 0 : index
    %2 = vector.load %arg5[%c0_3, %c0_4] : memref<32x2048xf32, #tpu.memory_space<vmem>>, vector<32x2048xf32>
    %c0_5 = arith.constant 0 : index
    %c0_6 = arith.constant 0 : index
    %3 = vector.load %arg6[%c0_5, %c0_6] : memref<1x2048xf32, #tpu.memory_space<vmem>>, vector<1x2048xf32>
    %c0_7 = arith.constant 0 : index
    %c0_8 = arith.constant 0 : index
    %4 = vector.load %arg7[%c0_7, %c0_8] : memref<2048x32xf32, #tpu.memory_space<vmem>>, vector<2048x32xf32>
    %c0_9 = arith.constant 0 : index
    %c0_10 = arith.constant 0 : index
    %5 = vector.load %arg4[%c0_9, %c0_10] : memref<5x32xf32, #tpu.memory_space<vmem>>, vector<1x32xf32>
    %c1 = arith.constant 1 : index
    %c0_11 = arith.constant 0 : index
    %6 = vector.load %arg4[%c1, %c0_11] : memref<5x32xf32, #tpu.memory_space<vmem>>, vector<1x32xf32>
    %c2 = arith.constant 2 : index
    %c0_12 = arith.constant 0 : index
    %7 = vector.load %arg4[%c2, %c0_12] : memref<5x32xf32, #tpu.memory_space<vmem>>, vector<1x32xf32>
    %c3 = arith.constant 3 : index
    %c0_13 = arith.constant 0 : index
    %8 = vector.load %arg4[%c3, %c0_13] : memref<5x32xf32, #tpu.memory_space<vmem>>, vector<1x32xf32>
    %c4 = arith.constant 4 : index
    %c0_14 = arith.constant 0 : index
    %9 = vector.load %arg4[%c4, %c0_14] : memref<5x32xf32, #tpu.memory_space<vmem>>, vector<1x32xf32>
    %c0_15 = arith.constant 0 : index
    %c0_16 = arith.constant 0 : index
    %c0_17 = arith.constant 0 : index
    %10 = vector.load %arg1[%c0_15, %c0_16, %c0_17] : memref<2x8x32xf32, #tpu.memory_space<vmem>>, vector<2x8x32xf32>
    %11 = vector.shape_cast %10 : vector<2x8x32xf32> to vector<16x32xf32>
    %cst = arith.constant dense<0.000000e+00> : vector<16x12xf32>
    %12 = tpu.matmul %11, %0, %cst {dimension_numbers = #tpu.dot_dimension_numbers<[1], [0], [0], [1], [0, 0, 1, 1], [], []>} : vector<16x32xf32>, vector<32x12xf32>, vector<16x12xf32> -> vector<16x12xf32>
    %13 = vector.extract_strided_slice %12 {offsets = [0, 0], sizes = [16, 4], strides = [1, 1]} : vector<16x12xf32> to vector<16x4xf32>
    %14 = vector.shape_cast %13 : vector<16x4xf32> to vector<2x8x4xf32>
    %15 = vector.extract_strided_slice %12 {offsets = [0, 4], sizes = [16, 4], strides = [1, 1]} : vector<16x12xf32> to vector<16x4xf32>
    %16 = vector.shape_cast %15 : vector<16x4xf32> to vector<2x8x4xf32>
    %17 = vector.extract_strided_slice %12 {offsets = [0, 8], sizes = [16, 4], strides = [1, 1]} : vector<16x12xf32> to vector<16x4xf32>
    %18 = vector.shape_cast %17 : vector<16x4xf32> to vector<2x8x4xf32>
    "tpu.trace_start"() <{level = 10 : i32, message = "bsd,btd->bst"}> : () -> ()
    %cst_18 = arith.constant dense<0.000000e+00> : vector<2x8x8xf32>
    %19 = tpu.matmul %14, %16, %cst_18 {dimension_numbers = #tpu.dot_dimension_numbers<[2], [2], [1], [1], [0, 0, 0, 1, 1, 1], [0], [0]>} : vector<2x8x4xf32>, vector<2x8x4xf32>, vector<2x8x8xf32> -> vector<2x8x8xf32>
    "tpu.trace_stop"() : () -> ()
    %cst_19 = arith.constant dense<0xFF800000> : vector<2x8xf32>
    %20 = vector.multi_reduction <maximumf>, %19, %cst_19 [2] : vector<2x8x8xf32> to vector<2x8xf32>
    %21 = vector.shape_cast %20 : vector<2x8xf32> to vector<2x8x1xf32>
    %22 = vector.broadcast %21 : vector<2x8x1xf32> to vector<2x8x8xf32>
    %23 = arith.subf %19, %22 : vector<2x8x8xf32>
    %24 = math.exp %23 : vector<2x8x8xf32>
    %cst_20 = arith.constant dense<0.000000e+00> : vector<2x8xf32>
    %25 = vector.multi_reduction <add>, %24, %cst_20 [2] : vector<2x8x8xf32> to vector<2x8xf32>
    %26 = vector.shape_cast %25 : vector<2x8xf32> to vector<2x8x1xf32>
    %27 = tpu.reciprocal %26 : vector<2x8x1xf32> -> vector<2x8x1xf32>
    %28 = vector.broadcast %27 : vector<2x8x1xf32> to vector<2x8x8xf32>
    %29 = arith.mulf %24, %28 : vector<2x8x8xf32>
    "tpu.trace_start"() <{level = 10 : i32, message = "bst,btd->bsd"}> : () -> ()
    %cst_21 = arith.constant dense<0.000000e+00> : vector<2x8x4xf32>
    %30 = tpu.matmul %29, %18, %cst_21 {dimension_numbers = #tpu.dot_dimension_numbers<[2], [1], [1], [2], [0, 0, 0, 1, 1, 2], [0], [0]>} : vector<2x8x8xf32>, vector<2x8x4xf32>, vector<2x8x4xf32> -> vector<2x8x4xf32>
    "tpu.trace_stop"() : () -> ()
    %31 = vector.shape_cast %30 : vector<2x8x4xf32> to vector<16x4xf32>
    %cst_22 = arith.constant dense<0.000000e+00> : vector<16x32xf32>
    %32 = tpu.matmul %31, %1, %cst_22 {dimension_numbers = #tpu.dot_dimension_numbers<[1], [0], [0], [1], [0, 0, 1, 1], [], []>} : vector<16x4xf32>, vector<4x32xf32>, vector<16x32xf32> -> vector<16x32xf32>
    %33 = arith.addf %11, %32 : vector<16x32xf32>
    %cst_23 = arith.constant dense<0.000000e+00> : vector<16xf32>
    %34 = vector.multi_reduction <add>, %33, %cst_23 [1] : vector<16x32xf32> to vector<16xf32>
    %35 = vector.shape_cast %34 : vector<16xf32> to vector<16x1xf32>
    %cst_24 = arith.constant 3.200000e+01 : f32
    %36 = vector.broadcast %cst_24 : f32 to vector<16x1xf32>
    %37 = arith.divf %35, %36 : vector<16x1xf32>
    %38 = vector.broadcast %37 : vector<16x1xf32> to vector<16x32xf32>
    %39 = arith.subf %33, %38 : vector<16x32xf32>
    %40 = arith.mulf %39, %39 : vector<16x32xf32>
    %cst_25 = arith.constant dense<0.000000e+00> : vector<16xf32>
    %41 = vector.multi_reduction <add>, %40, %cst_25 [1] : vector<16x32xf32> to vector<16xf32>
    %42 = vector.shape_cast %41 : vector<16xf32> to vector<16x1xf32>
    %cst_26 = arith.constant 3.200000e+01 : f32
    %43 = vector.broadcast %cst_26 : f32 to vector<16x1xf32>
    %44 = arith.divf %42, %43 : vector<16x1xf32>
    %45 = vector.broadcast %37 : vector<16x1xf32> to vector<16x32xf32>
    %46 = arith.subf %33, %45 : vector<16x32xf32>
    %cst_27 = arith.constant 9.99999974E-6 : f32
    %47 = vector.broadcast %cst_27 : f32 to vector<16x1xf32>
    %48 = arith.addf %44, %47 : vector<16x1xf32>
    %49 = math.rsqrt %48 : vector<16x1xf32>
    %50 = vector.broadcast %49 : vector<16x1xf32> to vector<16x32xf32>
    %51 = arith.mulf %46, %50 : vector<16x32xf32>
    %52 = vector.broadcast %5 : vector<1x32xf32> to vector<16x32xf32>
    %53 = arith.mulf %51, %52 : vector<16x32xf32>
    %54 = vector.broadcast %6 : vector<1x32xf32> to vector<16x32xf32>
    %55 = arith.addf %53, %54 : vector<16x32xf32>
    %cst_28 = arith.constant dense<0.000000e+00> : vector<16x2048xf32>
    %56 = tpu.matmul %55, %2, %cst_28 {dimension_numbers = #tpu.dot_dimension_numbers<[1], [0], [0], [1], [0, 0, 1, 1], [], []>} : vector<16x32xf32>, vector<32x2048xf32>, vector<16x2048xf32> -> vector<16x2048xf32>
    %57 = vector.broadcast %3 : vector<1x2048xf32> to vector<16x2048xf32>
    %58 = arith.addf %56, %57 : vector<16x2048xf32>
    %cst_29 = arith.constant 0.000000e+00 : f32
    %59 = vector.broadcast %cst_29 : f32 to vector<16x2048xf32>
    %60 = arith.maximumf %58, %59 : vector<16x2048xf32>
    %cst_30 = arith.constant dense<0.000000e+00> : vector<16x32xf32>
    %61 = tpu.matmul %60, %4, %cst_30 {dimension_numbers = #tpu.dot_dimension_numbers<[1], [0], [0], [1], [0, 0, 1, 1], [], []>} : vector<16x2048xf32>, vector<2048x32xf32>, vector<16x32xf32> -> vector<16x32xf32>
    %62 = vector.broadcast %7 : vector<1x32xf32> to vector<16x32xf32>
    %63 = arith.addf %61, %62 : vector<16x32xf32>
    %64 = arith.addf %55, %63 : vector<16x32xf32>
    %cst_31 = arith.constant dense<0.000000e+00> : vector<16xf32>
    %65 = vector.multi_reduction <add>, %64, %cst_31 [1] : vector<16x32xf32> to vector<16xf32>
    %66 = vector.shape_cast %65 : vector<16xf32> to vector<16x1xf32>
    %cst_32 = arith.constant 3.200000e+01 : f32
    %67 = vector.broadcast %cst_32 : f32 to vector<16x1xf32>
    %68 = arith.divf %66, %67 : vector<16x1xf32>
    %69 = vector.broadcast %68 : vector<16x1xf32> to vector<16x32xf32>
    %70 = arith.subf %64, %69 : vector<16x32xf32>
    %71 = arith.mulf %70, %70 : vector<16x32xf32>
    %cst_33 = arith.constant dense<0.000000e+00> : vector<16xf32>
    %72 = vector.multi_reduction <add>, %71, %cst_33 [1] : vector<16x32xf32> to vector<16xf32>
    %73 = vector.shape_cast %72 : vector<16xf32> to vector<16x1xf32>
    %cst_34 = arith.constant 3.200000e+01 : f32
    %74 = vector.broadcast %cst_34 : f32 to vector<16x1xf32>
    %75 = arith.divf %73, %74 : vector<16x1xf32>
    %76 = vector.broadcast %68 : vector<16x1xf32> to vector<16x32xf32>
    %77 = arith.subf %64, %76 : vector<16x32xf32>
    %cst_35 = arith.constant 9.99999974E-6 : f32
    %78 = vector.broadcast %cst_35 : f32 to vector<16x1xf32>
    %79 = arith.addf %75, %78 : vector<16x1xf32>
    %80 = math.rsqrt %79 : vector<16x1xf32>
    %81 = vector.broadcast %80 : vector<16x1xf32> to vector<16x32xf32>
    %82 = arith.mulf %77, %81 : vector<16x32xf32>
    %83 = vector.broadcast %8 : vector<1x32xf32> to vector<16x32xf32>
    %84 = arith.mulf %82, %83 : vector<16x32xf32>
    %85 = vector.broadcast %9 : vector<1x32xf32> to vector<16x32xf32>
    %86 = arith.addf %84, %85 : vector<16x32xf32>
    %c0_36 = arith.constant 0 : index
    %c0_37 = arith.constant 0 : index
    %c0_38 = arith.constant 0 : index
    %c0_39 = arith.constant 0 : index
    %87 = vector.load %arg9[%c0_36, %c0_37, %c0_38, %c0_39] : memref<6x2x8x8xf32, #tpu.memory_space<vmem>>, vector<1x2x8x8xf32>
    %88 = vector.shape_cast %87 : vector<1x2x8x8xf32> to vector<2x8x8xf32>
    %89 = vector.shape_cast %29 : vector<2x8x8xf32> to vector<1x2x8x8xf32>
    tpu.vector_store %arg9[%c0_36, %c0_37, %c0_38, %c0_39], %89 {strides = array<i32>} : memref<6x2x8x8xf32, #tpu.memory_space<vmem>>, vector<1x2x8x8xf32>,
    %cst_40 = arith.constant dense<0.000000e+00> : vector<16x12xf32>
    %90 = tpu.matmul %86, %0, %cst_40 {dimension_numbers = #tpu.dot_dimension_numbers<[1], [0], [0], [1], [0, 0, 1, 1], [], []>} : vector<16x32xf32>, vector<32x12xf32>, vector<16x12xf32> -> vector<16x12xf32>
    %91 = vector.extract_strided_slice %90 {offsets = [0, 0], sizes = [16, 4], strides = [1, 1]} : vector<16x12xf32> to vector<16x4xf32>
    %92 = vector.shape_cast %91 : vector<16x4xf32> to vector<2x8x4xf32>
    %93 = vector.extract_strided_slice %90 {offsets = [0, 4], sizes = [16, 4], strides = [1, 1]} : vector<16x12xf32> to vector<16x4xf32>
    %94 = vector.shape_cast %93 : vector<16x4xf32> to vector<2x8x4xf32>
    %95 = vector.extract_strided_slice %90 {offsets = [0, 8], sizes = [16, 4], strides = [1, 1]} : vector<16x12xf32> to vector<16x4xf32>
    %96 = vector.shape_cast %95 : vector<16x4xf32> to vector<2x8x4xf32>
    "tpu.trace_start"() <{level = 10 : i32, message = "bsd,btd->bst"}> : () -> ()
    %cst_41 = arith.constant dense<0.000000e+00> : vector<2x8x8xf32>
    %97 = tpu.matmul %92, %94, %cst_41 {dimension_numbers = #tpu.dot_dimension_numbers<[2], [2], [1], [1], [0, 0, 0, 1, 1, 1], [0], [0]>} : vector<2x8x4xf32>, vector<2x8x4xf32>, vector<2x8x8xf32> -> vector<2x8x8xf32>
    "tpu.trace_stop"() : () -> ()
    %cst_42 = arith.constant dense<0xFF800000> : vector<2x8xf32>
    %98 = vector.multi_reduction <maximumf>, %97, %cst_42 [2] : vector<2x8x8xf32> to vector<2x8xf32>
    %99 = vector.shape_cast %98 : vector<2x8xf32> to vector<2x8x1xf32>
    %100 = vector.broadcast %99 : vector<2x8x1xf32> to vector<2x8x8xf32>
    %101 = arith.subf %97, %100 : vector<2x8x8xf32>
    %102 = math.exp %101 : vector<2x8x8xf32>
    %cst_43 = arith.constant dense<0.000000e+00> : vector<2x8xf32>
    %103 = vector.multi_reduction <add>, %102, %cst_43 [2] : vector<2x8x8xf32> to vector<2x8xf32>
    %104 = vector.shape_cast %103 : vector<2x8xf32> to vector<2x8x1xf32>
    %105 = tpu.reciprocal %104 : vector<2x8x1xf32> -> vector<2x8x1xf32>
    %106 = vector.broadcast %105 : vector<2x8x1xf32> to vector<2x8x8xf32>
    %107 = arith.mulf %102, %106 : vector<2x8x8xf32>
    "tpu.trace_start"() <{level = 10 : i32, message = "bst,btd->bsd"}> : () -> ()
    %cst_44 = arith.constant dense<0.000000e+00> : vector<2x8x4xf32>
    %108 = tpu.matmul %107, %96, %cst_44 {dimension_numbers = #tpu.dot_dimension_numbers<[2], [1], [1], [2], [0, 0, 0, 1, 1, 2], [0], [0]>} : vector<2x8x8xf32>, vector<2x8x4xf32>, vector<2x8x4xf32> -> vector<2x8x4xf32>
    "tpu.trace_stop"() : () -> ()
    %109 = vector.shape_cast %108 : vector<2x8x4xf32> to vector<16x4xf32>
    %cst_45 = arith.constant dense<0.000000e+00> : vector<16x32xf32>
    %110 = tpu.matmul %109, %1, %cst_45 {dimension_numbers = #tpu.dot_dimension_numbers<[1], [0], [0], [1], [0, 0, 1, 1], [], []>} : vector<16x4xf32>, vector<4x32xf32>, vector<16x32xf32> -> vector<16x32xf32>
    %111 = arith.addf %86, %110 : vector<16x32xf32>
    %cst_46 = arith.constant dense<0.000000e+00> : vector<16xf32>
    %112 = vector.multi_reduction <add>, %111, %cst_46 [1] : vector<16x32xf32> to vector<16xf32>
    %113 = vector.shape_cast %112 : vector<16xf32> to vector<16x1xf32>
    %cst_47 = arith.constant 3.200000e+01 : f32
    %114 = vector.broadcast %cst_47 : f32 to vector<16x1xf32>
    %115 = arith.divf %113, %114 : vector<16x1xf32>
    %116 = vector.broadcast %115 : vector<16x1xf32> to vector<16x32xf32>
    %117 = arith.subf %111, %116 : vector<16x32xf32>
    %118 = arith.mulf %117, %117 : vector<16x32xf32>
    %cst_48 = arith.constant dense<0.000000e+00> : vector<16xf32>
    %119 = vector.multi_reduction <add>, %118, %cst_48 [1] : vector<16x32xf32> to vector<16xf32>
    %120 = vector.shape_cast %119 : vector<16xf32> to vector<16x1xf32>
    %cst_49 = arith.constant 3.200000e+01 : f32
    %121 = vector.broadcast %cst_49 : f32 to vector<16x1xf32>
    %122 = arith.divf %120, %121 : vector<16x1xf32>
    %123 = vector.broadcast %115 : vector<16x1xf32> to vector<16x32xf32>
    %124 = arith.subf %111, %123 : vector<16x32xf32>
    %cst_50 = arith.constant 9.99999974E-6 : f32
    %125 = vector.broadcast %cst_50 : f32 to vector<16x1xf32>
    %126 = arith.addf %122, %125 : vector<16x1xf32>
    %127 = math.rsqrt %126 : vector<16x1xf32>
    %128 = vector.broadcast %127 : vector<16x1xf32> to vector<16x32xf32>
    %129 = arith.mulf %124, %128 : vector<16x32xf32>
    %130 = vector.broadcast %5 : vector<1x32xf32> to vector<16x32xf32>
    %131 = arith.mulf %129, %130 : vector<16x32xf32>
    %132 = vector.broadcast %6 : vector<1x32xf32> to vector<16x32xf32>
    %133 = arith.addf %131, %132 : vector<16x32xf32>
    %cst_51 = arith.constant dense<0.000000e+00> : vector<16x2048xf32>
    %134 = tpu.matmul %133, %2, %cst_51 {dimension_numbers = #tpu.dot_dimension_numbers<[1], [0], [0], [1], [0, 0, 1, 1], [], []>} : vector<16x32xf32>, vector<32x2048xf32>, vector<16x2048xf32> -> vector<16x2048xf32>
    %135 = vector.broadcast %3 : vector<1x2048xf32> to vector<16x2048xf32>
    %136 = arith.addf %134, %135 : vector<16x2048xf32>
    %cst_52 = arith.constant 0.000000e+00 : f32
    %137 = vector.broadcast %cst_52 : f32 to vector<16x2048xf32>
    %138 = arith.maximumf %136, %137 : vector<16x2048xf32>
    %cst_53 = arith.constant dense<0.000000e+00> : vector<16x32xf32>
    %139 = tpu.matmul %138, %4, %cst_53 {dimension_numbers = #tpu.dot_dimension_numbers<[1], [0], [0], [1], [0, 0, 1, 1], [], []>} : vector<16x2048xf32>, vector<2048x32xf32>, vector<16x32xf32> -> vector<16x32xf32>
    %140 = vector.broadcast %7 : vector<1x32xf32> to vector<16x32xf32>
    %141 = arith.addf %139, %140 : vector<16x32xf32>
    %142 = arith.addf %133, %141 : vector<16x32xf32>
    %cst_54 = arith.constant dense<0.000000e+00> : vector<16xf32>
    %143 = vector.multi_reduction <add>, %142, %cst_54 [1] : vector<16x32xf32> to vector<16xf32>
    %144 = vector.shape_cast %143 : vector<16xf32> to vector<16x1xf32>
    %cst_55 = arith.constant 3.200000e+01 : f32
    %145 = vector.broadcast %cst_55 : f32 to vector<16x1xf32>
    %146 = arith.divf %144, %145 : vector<16x1xf32>
    %147 = vector.broadcast %146 : vector<16x1xf32> to vector<16x32xf32>
    %148 = arith.subf %142, %147 : vector<16x32xf32>
    %149 = arith.mulf %148, %148 : vector<16x32xf32>
    %cst_56 = arith.constant dense<0.000000e+00> : vector<16xf32>
    %150 = vector.multi_reduction <add>, %149, %cst_56 [1] : vector<16x32xf32> to vector<16xf32>
    %151 = vector.shape_cast %150 : vector<16xf32> to vector<16x1xf32>
    %cst_57 = arith.constant 3.200000e+01 : f32
    %152 = vector.broadcast %cst_57 : f32 to vector<16x1xf32>
    %153 = arith.divf %151, %152 : vector<16x1xf32>
    %154 = vector.broadcast %146 : vector<16x1xf32> to vector<16x32xf32>
    %155 = arith.subf %142, %154 : vector<16x32xf32>
    %cst_58 = arith.constant 9.99999974E-6 : f32
    %156 = vector.broadcast %cst_58 : f32 to vector<16x1xf32>
    %157 = arith.addf %153, %156 : vector<16x1xf32>
    %158 = math.rsqrt %157 : vector<16x1xf32>
    %159 = vector.broadcast %158 : vector<16x1xf32> to vector<16x32xf32>
    %160 = arith.mulf %155, %159 : vector<16x32xf32>
    %161 = vector.broadcast %8 : vector<1x32xf32> to vector<16x32xf32>
    %162 = arith.mulf %160, %161 : vector<16x32xf32>
    %163 = vector.broadcast %9 : vector<1x32xf32> to vector<16x32xf32>
    %164 = arith.addf %162, %163 : vector<16x32xf32>
    %c1_59 = arith.constant 1 : index
    %c0_60 = arith.constant 0 : index
    %c0_61 = arith.constant 0 : index
    %c0_62 = arith.constant 0 : index
    %165 = vector.load %arg9[%c1_59, %c0_60, %c0_61, %c0_62] : memref<6x2x8x8xf32, #tpu.memory_space<vmem>>, vector<1x2x8x8xf32>
    %166 = vector.shape_cast %165 : vector<1x2x8x8xf32> to vector<2x8x8xf32>
    %167 = vector.shape_cast %107 : vector<2x8x8xf32> to vector<1x2x8x8xf32>
    tpu.vector_store %arg9[%c1_59, %c0_60, %c0_61, %c0_62], %167 {strides = array<i32>} : memref<6x2x8x8xf32, #tpu.memory_space<vmem>>, vector<1x2x8x8xf32>,
    %cst_63 = arith.constant dense<0.000000e+00> : vector<16x12xf32>
    %168 = tpu.matmul %164, %0, %cst_63 {dimension_numbers = #tpu.dot_dimension_numbers<[1], [0], [0], [1], [0, 0, 1, 1], [], []>} : vector<16x32xf32>, vector<32x12xf32>, vector<16x12xf32> -> vector<16x12xf32>
    %169 = vector.extract_strided_slice %168 {offsets = [0, 0], sizes = [16, 4], strides = [1, 1]} : vector<16x12xf32> to vector<16x4xf32>
    %170 = vector.shape_cast %169 : vector<16x4xf32> to vector<2x8x4xf32>
    %171 = vector.extract_strided_slice %168 {offsets = [0, 4], sizes = [16, 4], strides = [1, 1]} : vector<16x12xf32> to vector<16x4xf32>
    %172 = vector.shape_cast %171 : vector<16x4xf32> to vector<2x8x4xf32>
    %173 = vector.extract_strided_slice %168 {offsets = [0, 8], sizes = [16, 4], strides = [1, 1]} : vector<16x12xf32> to vector<16x4xf32>
    %174 = vector.shape_cast %173 : vector<16x4xf32> to vector<2x8x4xf32>
    "tpu.trace_start"() <{level = 10 : i32, message = "bsd,btd->bst"}> : () -> ()
    %cst_64 = arith.constant dense<0.000000e+00> : vector<2x8x8xf32>
    %175 = tpu.matmul %170, %172, %cst_64 {dimension_numbers = #tpu.dot_dimension_numbers<[2], [2], [1], [1], [0, 0, 0, 1, 1, 1], [0], [0]>} : vector<2x8x4xf32>, vector<2x8x4xf32>, vector<2x8x8xf32> -> vector<2x8x8xf32>
    "tpu.trace_stop"() : () -> ()
    %cst_65 = arith.constant dense<0xFF800000> : vector<2x8xf32>
    %176 = vector.multi_reduction <maximumf>, %175, %cst_65 [2] : vector<2x8x8xf32> to vector<2x8xf32>
    %177 = vector.shape_cast %176 : vector<2x8xf32> to vector<2x8x1xf32>
    %178 = vector.broadcast %177 : vector<2x8x1xf32> to vector<2x8x8xf32>
    %179 = arith.subf %175, %178 : vector<2x8x8xf32>
    %180 = math.exp %179 : vector<2x8x8xf32>
    %cst_66 = arith.constant dense<0.000000e+00> : vector<2x8xf32>
    %181 = vector.multi_reduction <add>, %180, %cst_66 [2] : vector<2x8x8xf32> to vector<2x8xf32>
    %182 = vector.shape_cast %181 : vector<2x8xf32> to vector<2x8x1xf32>
    %183 = tpu.reciprocal %182 : vector<2x8x1xf32> -> vector<2x8x1xf32>
    %184 = vector.broadcast %183 : vector<2x8x1xf32> to vector<2x8x8xf32>
    %185 = arith.mulf %180, %184 : vector<2x8x8xf32>
    "tpu.trace_start"() <{level = 10 : i32, message = "bst,btd->bsd"}> : () -> ()
    %cst_67 = arith.constant dense<0.000000e+00> : vector<2x8x4xf32>
    %186 = tpu.matmul %185, %174, %cst_67 {dimension_numbers = #tpu.dot_dimension_numbers<[2], [1], [1], [2], [0, 0, 0, 1, 1, 2], [0], [0]>} : vector<2x8x8xf32>, vector<2x8x4xf32>, vector<2x8x4xf32> -> vector<2x8x4xf32>
    "tpu.trace_stop"() : () -> ()
    %187 = vector.shape_cast %186 : vector<2x8x4xf32> to vector<16x4xf32>
    %cst_68 = arith.constant dense<0.000000e+00> : vector<16x32xf32>
    %188 = tpu.matmul %187, %1, %cst_68 {dimension_numbers = #tpu.dot_dimension_numbers<[1], [0], [0], [1], [0, 0, 1, 1], [], []>} : vector<16x4xf32>, vector<4x32xf32>, vector<16x32xf32> -> vector<16x32xf32>
    %189 = arith.addf %164, %188 : vector<16x32xf32>
    %cst_69 = arith.constant dense<0.000000e+00> : vector<16xf32>
    %190 = vector.multi_reduction <add>, %189, %cst_69 [1] : vector<16x32xf32> to vector<16xf32>
    %191 = vector.shape_cast %190 : vector<16xf32> to vector<16x1xf32>
    %cst_70 = arith.constant 3.200000e+01 : f32
    %192 = vector.broadcast %cst_70 : f32 to vector<16x1xf32>
    %193 = arith.divf %191, %192 : vector<16x1xf32>
    %194 = vector.broadcast %193 : vector<16x1xf32> to vector<16x32xf32>
    %195 = arith.subf %189, %194 : vector<16x32xf32>
    %196 = arith.mulf %195, %195 : vector<16x32xf32>
    %cst_71 = arith.constant dense<0.000000e+00> : vector<16xf32>
    %197 = vector.multi_reduction <add>, %196, %cst_71 [1] : vector<16x32xf32> to vector<16xf32>
    %198 = vector.shape_cast %197 : vector<16xf32> to vector<16x1xf32>
    %cst_72 = arith.constant 3.200000e+01 : f32
    %199 = vector.broadcast %cst_72 : f32 to vector<16x1xf32>
    %200 = arith.divf %198, %199 : vector<16x1xf32>
    %201 = vector.broadcast %193 : vector<16x1xf32> to vector<16x32xf32>
    %202 = arith.subf %189, %201 : vector<16x32xf32>
    %cst_73 = arith.constant 9.99999974E-6 : f32
    %203 = vector.broadcast %cst_73 : f32 to vector<16x1xf32>
    %204 = arith.addf %200, %203 : vector<16x1xf32>
    %205 = math.rsqrt %204 : vector<16x1xf32>
    %206 = vector.broadcast %205 : vector<16x1xf32> to vector<16x32xf32>
    %207 = arith.mulf %202, %206 : vector<16x32xf32>
    %208 = vector.broadcast %5 : vector<1x32xf32> to vector<16x32xf32>
    %209 = arith.mulf %207, %208 : vector<16x32xf32>
    %210 = vector.broadcast %6 : vector<1x32xf32> to vector<16x32xf32>
    %211 = arith.addf %209, %210 : vector<16x32xf32>
    %cst_74 = arith.constant dense<0.000000e+00> : vector<16x2048xf32>
    %212 = tpu.matmul %211, %2, %cst_74 {dimension_numbers = #tpu.dot_dimension_numbers<[1], [0], [0], [1], [0, 0, 1, 1], [], []>} : vector<16x32xf32>, vector<32x2048xf32>, vector<16x2048xf32> -> vector<16x2048xf32>
    %213 = vector.broadcast %3 : vector<1x2048xf32> to vector<16x2048xf32>
    %214 = arith.addf %212, %213 : vector<16x2048xf32>
    %cst_75 = arith.constant 0.000000e+00 : f32
    %215 = vector.broadcast %cst_75 : f32 to vector<16x2048xf32>
    %216 = arith.maximumf %214, %215 : vector<16x2048xf32>
    %cst_76 = arith.constant dense<0.000000e+00> : vector<16x32xf32>
    %217 = tpu.matmul %216, %4, %cst_76 {dimension_numbers = #tpu.dot_dimension_numbers<[1], [0], [0], [1], [0, 0, 1, 1], [], []>} : vector<16x2048xf32>, vector<2048x32xf32>, vector<16x32xf32> -> vector<16x32xf32>
    %218 = vector.broadcast %7 : vector<1x32xf32> to vector<16x32xf32>
    %219 = arith.addf %217, %218 : vector<16x32xf32>
    %220 = arith.addf %211, %219 : vector<16x32xf32>
    %cst_77 = arith.constant dense<0.000000e+00> : vector<16xf32>
    %221 = vector.multi_reduction <add>, %220, %cst_77 [1] : vector<16x32xf32> to vector<16xf32>
    %222 = vector.shape_cast %221 : vector<16xf32> to vector<16x1xf32>
    %cst_78 = arith.constant 3.200000e+01 : f32
    %223 = vector.broadcast %cst_78 : f32 to vector<16x1xf32>
    %224 = arith.divf %222, %223 : vector<16x1xf32>
    %225 = vector.broadcast %224 : vector<16x1xf32> to vector<16x32xf32>
    %226 = arith.subf %220, %225 : vector<16x32xf32>
    %227 = arith.mulf %226, %226 : vector<16x32xf32>
    %cst_79 = arith.constant dense<0.000000e+00> : vector<16xf32>
    %228 = vector.multi_reduction <add>, %227, %cst_79 [1] : vector<16x32xf32> to vector<16xf32>
    %229 = vector.shape_cast %228 : vector<16xf32> to vector<16x1xf32>
    %cst_80 = arith.constant 3.200000e+01 : f32
    %230 = vector.broadcast %cst_80 : f32 to vector<16x1xf32>
    %231 = arith.divf %229, %230 : vector<16x1xf32>
    %232 = vector.broadcast %224 : vector<16x1xf32> to vector<16x32xf32>
    %233 = arith.subf %220, %232 : vector<16x32xf32>
    %cst_81 = arith.constant 9.99999974E-6 : f32
    %234 = vector.broadcast %cst_81 : f32 to vector<16x1xf32>
    %235 = arith.addf %231, %234 : vector<16x1xf32>
    %236 = math.rsqrt %235 : vector<16x1xf32>
    %237 = vector.broadcast %236 : vector<16x1xf32> to vector<16x32xf32>
    %238 = arith.mulf %233, %237 : vector<16x32xf32>
    %239 = vector.broadcast %8 : vector<1x32xf32> to vector<16x32xf32>
    %240 = arith.mulf %238, %239 : vector<16x32xf32>
    %241 = vector.broadcast %9 : vector<1x32xf32> to vector<16x32xf32>
    %242 = arith.addf %240, %241 : vector<16x32xf32>
    %c2_82 = arith.constant 2 : index
    %c0_83 = arith.constant 0 : index
    %c0_84 = arith.constant 0 : index
    %c0_85 = arith.constant 0 : index
    %243 = vector.load %arg9[%c2_82, %c0_83, %c0_84, %c0_85] : memref<6x2x8x8xf32, #tpu.memory_space<vmem>>, vector<1x2x8x8xf32>
    %244 = vector.shape_cast %243 : vector<1x2x8x8xf32> to vector<2x8x8xf32>
    %245 = vector.shape_cast %185 : vector<2x8x8xf32> to vector<1x2x8x8xf32>
    tpu.vector_store %arg9[%c2_82, %c0_83, %c0_84, %c0_85], %245 {strides = array<i32>} : memref<6x2x8x8xf32, #tpu.memory_space<vmem>>, vector<1x2x8x8xf32>,
    %cst_86 = arith.constant dense<0.000000e+00> : vector<16x12xf32>
    %246 = tpu.matmul %242, %0, %cst_86 {dimension_numbers = #tpu.dot_dimension_numbers<[1], [0], [0], [1], [0, 0, 1, 1], [], []>} : vector<16x32xf32>, vector<32x12xf32>, vector<16x12xf32> -> vector<16x12xf32>
    %247 = vector.extract_strided_slice %246 {offsets = [0, 0], sizes = [16, 4], strides = [1, 1]} : vector<16x12xf32> to vector<16x4xf32>
    %248 = vector.shape_cast %247 : vector<16x4xf32> to vector<2x8x4xf32>
    %249 = vector.extract_strided_slice %246 {offsets = [0, 4], sizes = [16, 4], strides = [1, 1]} : vector<16x12xf32> to vector<16x4xf32>
    %250 = vector.shape_cast %249 : vector<16x4xf32> to vector<2x8x4xf32>
    %251 = vector.extract_strided_slice %246 {offsets = [0, 8], sizes = [16, 4], strides = [1, 1]} : vector<16x12xf32> to vector<16x4xf32>
    %252 = vector.shape_cast %251 : vector<16x4xf32> to vector<2x8x4xf32>
    "tpu.trace_start"() <{level = 10 : i32, message = "bsd,btd->bst"}> : () -> ()
    %cst_87 = arith.constant dense<0.000000e+00> : vector<2x8x8xf32>
    %253 = tpu.matmul %248, %250, %cst_87 {dimension_numbers = #tpu.dot_dimension_numbers<[2], [2], [1], [1], [0, 0, 0, 1, 1, 1], [0], [0]>} : vector<2x8x4xf32>, vector<2x8x4xf32>, vector<2x8x8xf32> -> vector<2x8x8xf32>
    "tpu.trace_stop"() : () -> ()
    %cst_88 = arith.constant dense<0xFF800000> : vector<2x8xf32>
    %254 = vector.multi_reduction <maximumf>, %253, %cst_88 [2] : vector<2x8x8xf32> to vector<2x8xf32>
    %255 = vector.shape_cast %254 : vector<2x8xf32> to vector<2x8x1xf32>
    %256 = vector.broadcast %255 : vector<2x8x1xf32> to vector<2x8x8xf32>
    %257 = arith.subf %253, %256 : vector<2x8x8xf32>
    %258 = math.exp %257 : vector<2x8x8xf32>
    %cst_89 = arith.constant dense<0.000000e+00> : vector<2x8xf32>
    %259 = vector.multi_reduction <add>, %258, %cst_89 [2] : vector<2x8x8xf32> to vector<2x8xf32>
    %260 = vector.shape_cast %259 : vector<2x8xf32> to vector<2x8x1xf32>
    %261 = tpu.reciprocal %260 : vector<2x8x1xf32> -> vector<2x8x1xf32>
    %262 = vector.broadcast %261 : vector<2x8x1xf32> to vector<2x8x8xf32>
    %263 = arith.mulf %258, %262 : vector<2x8x8xf32>
    "tpu.trace_start"() <{level = 10 : i32, message = "bst,btd->bsd"}> : () -> ()
    %cst_90 = arith.constant dense<0.000000e+00> : vector<2x8x4xf32>
    %264 = tpu.matmul %263, %252, %cst_90 {dimension_numbers = #tpu.dot_dimension_numbers<[2], [1], [1], [2], [0, 0, 0, 1, 1, 2], [0], [0]>} : vector<2x8x8xf32>, vector<2x8x4xf32>, vector<2x8x4xf32> -> vector<2x8x4xf32>
    "tpu.trace_stop"() : () -> ()
    %265 = vector.shape_cast %264 : vector<2x8x4xf32> to vector<16x4xf32>
    %cst_91 = arith.constant dense<0.000000e+00> : vector<16x32xf32>
    %266 = tpu.matmul %265, %1, %cst_91 {dimension_numbers = #tpu.dot_dimension_numbers<[1], [0], [0], [1], [0, 0, 1, 1], [], []>} : vector<16x4xf32>, vector<4x32xf32>, vector<16x32xf32> -> vector<16x32xf32>
    %267 = arith.addf %242, %266 : vector<16x32xf32>
    %cst_92 = arith.constant dense<0.000000e+00> : vector<16xf32>
    %268 = vector.multi_reduction <add>, %267, %cst_92 [1] : vector<16x32xf32> to vector<16xf32>
    %269 = vector.shape_cast %268 : vector<16xf32> to vector<16x1xf32>
    %cst_93 = arith.constant 3.200000e+01 : f32
    %270 = vector.broadcast %cst_93 : f32 to vector<16x1xf32>
    %271 = arith.divf %269, %270 : vector<16x1xf32>
    %272 = vector.broadcast %271 : vector<16x1xf32> to vector<16x32xf32>
    %273 = arith.subf %267, %272 : vector<16x32xf32>
    %274 = arith.mulf %273, %273 : vector<16x32xf32>
    %cst_94 = arith.constant dense<0.000000e+00> : vector<16xf32>
    %275 = vector.multi_reduction <add>, %274, %cst_94 [1] : vector<16x32xf32> to vector<16xf32>
    %276 = vector.shape_cast %275 : vector<16xf32> to vector<16x1xf32>
    %cst_95 = arith.constant 3.200000e+01 : f32
    %277 = vector.broadcast %cst_95 : f32 to vector<16x1xf32>
    %278 = arith.divf %276, %277 : vector<16x1xf32>
    %279 = vector.broadcast %271 : vector<16x1xf32> to vector<16x32xf32>
    %280 = arith.subf %267, %279 : vector<16x32xf32>
    %cst_96 = arith.constant 9.99999974E-6 : f32
    %281 = vector.broadcast %cst_96 : f32 to vector<16x1xf32>
    %282 = arith.addf %278, %281 : vector<16x1xf32>
    %283 = math.rsqrt %282 : vector<16x1xf32>
    %284 = vector.broadcast %283 : vector<16x1xf32> to vector<16x32xf32>
    %285 = arith.mulf %280, %284 : vector<16x32xf32>
    %286 = vector.broadcast %5 : vector<1x32xf32> to vector<16x32xf32>
    %287 = arith.mulf %285, %286 : vector<16x32xf32>
    %288 = vector.broadcast %6 : vector<1x32xf32> to vector<16x32xf32>
    %289 = arith.addf %287, %288 : vector<16x32xf32>
    %cst_97 = arith.constant dense<0.000000e+00> : vector<16x2048xf32>
    %290 = tpu.matmul %289, %2, %cst_97 {dimension_numbers = #tpu.dot_dimension_numbers<[1], [0], [0], [1], [0, 0, 1, 1], [], []>} : vector<16x32xf32>, vector<32x2048xf32>, vector<16x2048xf32> -> vector<16x2048xf32>
    %291 = vector.broadcast %3 : vector<1x2048xf32> to vector<16x2048xf32>
    %292 = arith.addf %290, %291 : vector<16x2048xf32>
    %cst_98 = arith.constant 0.000000e+00 : f32
    %293 = vector.broadcast %cst_98 : f32 to vector<16x2048xf32>
    %294 = arith.maximumf %292, %293 : vector<16x2048xf32>
    %cst_99 = arith.constant dense<0.000000e+00> : vector<16x32xf32>
    %295 = tpu.matmul %294, %4, %cst_99 {dimension_numbers = #tpu.dot_dimension_numbers<[1], [0], [0], [1], [0, 0, 1, 1], [], []>} : vector<16x2048xf32>, vector<2048x32xf32>, vector<16x32xf32> -> vector<16x32xf32>
    %296 = vector.broadcast %7 : vector<1x32xf32> to vector<16x32xf32>
    %297 = arith.addf %295, %296 : vector<16x32xf32>
    %298 = arith.addf %289, %297 : vector<16x32xf32>
    %cst_100 = arith.constant dense<0.000000e+00> : vector<16xf32>
    %299 = vector.multi_reduction <add>, %298, %cst_100 [1] : vector<16x32xf32> to vector<16xf32>
    %300 = vector.shape_cast %299 : vector<16xf32> to vector<16x1xf32>
    %cst_101 = arith.constant 3.200000e+01 : f32
    %301 = vector.broadcast %cst_101 : f32 to vector<16x1xf32>
    %302 = arith.divf %300, %301 : vector<16x1xf32>
    %303 = vector.broadcast %302 : vector<16x1xf32> to vector<16x32xf32>
    %304 = arith.subf %298, %303 : vector<16x32xf32>
    %305 = arith.mulf %304, %304 : vector<16x32xf32>
    %cst_102 = arith.constant dense<0.000000e+00> : vector<16xf32>
    %306 = vector.multi_reduction <add>, %305, %cst_102 [1] : vector<16x32xf32> to vector<16xf32>
    %307 = vector.shape_cast %306 : vector<16xf32> to vector<16x1xf32>
    %cst_103 = arith.constant 3.200000e+01 : f32
    %308 = vector.broadcast %cst_103 : f32 to vector<16x1xf32>
    %309 = arith.divf %307, %308 : vector<16x1xf32>
    %310 = vector.broadcast %302 : vector<16x1xf32> to vector<16x32xf32>
    %311 = arith.subf %298, %310 : vector<16x32xf32>
    %cst_104 = arith.constant 9.99999974E-6 : f32
    %312 = vector.broadcast %cst_104 : f32 to vector<16x1xf32>
    %313 = arith.addf %309, %312 : vector<16x1xf32>
    %314 = math.rsqrt %313 : vector<16x1xf32>
    %315 = vector.broadcast %314 : vector<16x1xf32> to vector<16x32xf32>
    %316 = arith.mulf %311, %315 : vector<16x32xf32>
    %317 = vector.broadcast %8 : vector<1x32xf32> to vector<16x32xf32>
    %318 = arith.mulf %316, %317 : vector<16x32xf32>
    %319 = vector.broadcast %9 : vector<1x32xf32> to vector<16x32xf32>
    %320 = arith.addf %318, %319 : vector<16x32xf32>
    %c3_105 = arith.constant 3 : index
    %c0_106 = arith.constant 0 : index
    %c0_107 = arith.constant 0 : index
    %c0_108 = arith.constant 0 : index
    %321 = vector.load %arg9[%c3_105, %c0_106, %c0_107, %c0_108] : memref<6x2x8x8xf32, #tpu.memory_space<vmem>>, vector<1x2x8x8xf32>
    %322 = vector.shape_cast %321 : vector<1x2x8x8xf32> to vector<2x8x8xf32>
    %323 = vector.shape_cast %263 : vector<2x8x8xf32> to vector<1x2x8x8xf32>
    tpu.vector_store %arg9[%c3_105, %c0_106, %c0_107, %c0_108], %323 {strides = array<i32>} : memref<6x2x8x8xf32, #tpu.memory_space<vmem>>, vector<1x2x8x8xf32>,
    %cst_109 = arith.constant dense<0.000000e+00> : vector<16x12xf32>
    %324 = tpu.matmul %320, %0, %cst_109 {dimension_numbers = #tpu.dot_dimension_numbers<[1], [0], [0], [1], [0, 0, 1, 1], [], []>} : vector<16x32xf32>, vector<32x12xf32>, vector<16x12xf32> -> vector<16x12xf32>
    %325 = vector.extract_strided_slice %324 {offsets = [0, 0], sizes = [16, 4], strides = [1, 1]} : vector<16x12xf32> to vector<16x4xf32>
    %326 = vector.shape_cast %325 : vector<16x4xf32> to vector<2x8x4xf32>
    %327 = vector.extract_strided_slice %324 {offsets = [0, 4], sizes = [16, 4], strides = [1, 1]} : vector<16x12xf32> to vector<16x4xf32>
    %328 = vector.shape_cast %327 : vector<16x4xf32> to vector<2x8x4xf32>
    %329 = vector.extract_strided_slice %324 {offsets = [0, 8], sizes = [16, 4], strides = [1, 1]} : vector<16x12xf32> to vector<16x4xf32>
    %330 = vector.shape_cast %329 : vector<16x4xf32> to vector<2x8x4xf32>
    "tpu.trace_start"() <{level = 10 : i32, message = "bsd,btd->bst"}> : () -> ()
    %cst_110 = arith.constant dense<0.000000e+00> : vector<2x8x8xf32>
    %331 = tpu.matmul %326, %328, %cst_110 {dimension_numbers = #tpu.dot_dimension_numbers<[2], [2], [1], [1], [0, 0, 0, 1, 1, 1], [0], [0]>} : vector<2x8x4xf32>, vector<2x8x4xf32>, vector<2x8x8xf32> -> vector<2x8x8xf32>
    "tpu.trace_stop"() : () -> ()
    %cst_111 = arith.constant dense<0xFF800000> : vector<2x8xf32>
    %332 = vector.multi_reduction <maximumf>, %331, %cst_111 [2] : vector<2x8x8xf32> to vector<2x8xf32>
    %333 = vector.shape_cast %332 : vector<2x8xf32> to vector<2x8x1xf32>
    %334 = vector.broadcast %333 : vector<2x8x1xf32> to vector<2x8x8xf32>
    %335 = arith.subf %331, %334 : vector<2x8x8xf32>
    %336 = math.exp %335 : vector<2x8x8xf32>
    %cst_112 = arith.constant dense<0.000000e+00> : vector<2x8xf32>
    %337 = vector.multi_reduction <add>, %336, %cst_112 [2] : vector<2x8x8xf32> to vector<2x8xf32>
    %338 = vector.shape_cast %337 : vector<2x8xf32> to vector<2x8x1xf32>
    %339 = tpu.reciprocal %338 : vector<2x8x1xf32> -> vector<2x8x1xf32>
    %340 = vector.broadcast %339 : vector<2x8x1xf32> to vector<2x8x8xf32>
    %341 = arith.mulf %336, %340 : vector<2x8x8xf32>
    "tpu.trace_start"() <{level = 10 : i32, message = "bst,btd->bsd"}> : () -> ()
    %cst_113 = arith.constant dense<0.000000e+00> : vector<2x8x4xf32>
    %342 = tpu.matmul %341, %330, %cst_113 {dimension_numbers = #tpu.dot_dimension_numbers<[2], [1], [1], [2], [0, 0, 0, 1, 1, 2], [0], [0]>} : vector<2x8x8xf32>, vector<2x8x4xf32>, vector<2x8x4xf32> -> vector<2x8x4xf32>
    "tpu.trace_stop"() : () -> ()
    %343 = vector.shape_cast %342 : vector<2x8x4xf32> to vector<16x4xf32>
    %cst_114 = arith.constant dense<0.000000e+00> : vector<16x32xf32>
    %344 = tpu.matmul %343, %1, %cst_114 {dimension_numbers = #tpu.dot_dimension_numbers<[1], [0], [0], [1], [0, 0, 1, 1], [], []>} : vector<16x4xf32>, vector<4x32xf32>, vector<16x32xf32> -> vector<16x32xf32>
    %345 = arith.addf %320, %344 : vector<16x32xf32>
    %cst_115 = arith.constant dense<0.000000e+00> : vector<16xf32>
    %346 = vector.multi_reduction <add>, %345, %cst_115 [1] : vector<16x32xf32> to vector<16xf32>
    %347 = vector.shape_cast %346 : vector<16xf32> to vector<16x1xf32>
    %cst_116 = arith.constant 3.200000e+01 : f32
    %348 = vector.broadcast %cst_116 : f32 to vector<16x1xf32>
    %349 = arith.divf %347, %348 : vector<16x1xf32>
    %350 = vector.broadcast %349 : vector<16x1xf32> to vector<16x32xf32>
    %351 = arith.subf %345, %350 : vector<16x32xf32>
    %352 = arith.mulf %351, %351 : vector<16x32xf32>
    %cst_117 = arith.constant dense<0.000000e+00> : vector<16xf32>
    %353 = vector.multi_reduction <add>, %352, %cst_117 [1] : vector<16x32xf32> to vector<16xf32>
    %354 = vector.shape_cast %353 : vector<16xf32> to vector<16x1xf32>
    %cst_118 = arith.constant 3.200000e+01 : f32
    %355 = vector.broadcast %cst_118 : f32 to vector<16x1xf32>
    %356 = arith.divf %354, %355 : vector<16x1xf32>
    %357 = vector.broadcast %349 : vector<16x1xf32> to vector<16x32xf32>
    %358 = arith.subf %345, %357 : vector<16x32xf32>
    %cst_119 = arith.constant 9.99999974E-6 : f32
    %359 = vector.broadcast %cst_119 : f32 to vector<16x1xf32>
    %360 = arith.addf %356, %359 : vector<16x1xf32>
    %361 = math.rsqrt %360 : vector<16x1xf32>
    %362 = vector.broadcast %361 : vector<16x1xf32> to vector<16x32xf32>
    %363 = arith.mulf %358, %362 : vector<16x32xf32>
    %364 = vector.broadcast %5 : vector<1x32xf32> to vector<16x32xf32>
    %365 = arith.mulf %363, %364 : vector<16x32xf32>
    %366 = vector.broadcast %6 : vector<1x32xf32> to vector<16x32xf32>
    %367 = arith.addf %365, %366 : vector<16x32xf32>
    %cst_120 = arith.constant dense<0.000000e+00> : vector<16x2048xf32>
    %368 = tpu.matmul %367, %2, %cst_120 {dimension_numbers = #tpu.dot_dimension_numbers<[1], [0], [0], [1], [0, 0, 1, 1], [], []>} : vector<16x32xf32>, vector<32x2048xf32>, vector<16x2048xf32> -> vector<16x2048xf32>
    %369 = vector.broadcast %3 : vector<1x2048xf32> to vector<16x2048xf32>
    %370 = arith.addf %368, %369 : vector<16x2048xf32>
    %cst_121 = arith.constant 0.000000e+00 : f32
    %371 = vector.broadcast %cst_121 : f32 to vector<16x2048xf32>
    %372 = arith.maximumf %370, %371 : vector<16x2048xf32>
    %cst_122 = arith.constant dense<0.000000e+00> : vector<16x32xf32>
    %373 = tpu.matmul %372, %4, %cst_122 {dimension_numbers = #tpu.dot_dimension_numbers<[1], [0], [0], [1], [0, 0, 1, 1], [], []>} : vector<16x2048xf32>, vector<2048x32xf32>, vector<16x32xf32> -> vector<16x32xf32>
    %374 = vector.broadcast %7 : vector<1x32xf32> to vector<16x32xf32>
    %375 = arith.addf %373, %374 : vector<16x32xf32>
    %376 = arith.addf %367, %375 : vector<16x32xf32>
    %cst_123 = arith.constant dense<0.000000e+00> : vector<16xf32>
    %377 = vector.multi_reduction <add>, %376, %cst_123 [1] : vector<16x32xf32> to vector<16xf32>
    %378 = vector.shape_cast %377 : vector<16xf32> to vector<16x1xf32>
    %cst_124 = arith.constant 3.200000e+01 : f32
    %379 = vector.broadcast %cst_124 : f32 to vector<16x1xf32>
    %380 = arith.divf %378, %379 : vector<16x1xf32>
    %381 = vector.broadcast %380 : vector<16x1xf32> to vector<16x32xf32>
    %382 = arith.subf %376, %381 : vector<16x32xf32>
    %383 = arith.mulf %382, %382 : vector<16x32xf32>
    %cst_125 = arith.constant dense<0.000000e+00> : vector<16xf32>
    %384 = vector.multi_reduction <add>, %383, %cst_125 [1] : vector<16x32xf32> to vector<16xf32>
    %385 = vector.shape_cast %384 : vector<16xf32> to vector<16x1xf32>
    %cst_126 = arith.constant 3.200000e+01 : f32
    %386 = vector.broadcast %cst_126 : f32 to vector<16x1xf32>
    %387 = arith.divf %385, %386 : vector<16x1xf32>
    %388 = vector.broadcast %380 : vector<16x1xf32> to vector<16x32xf32>
    %389 = arith.subf %376, %388 : vector<16x32xf32>
    %cst_127 = arith.constant 9.99999974E-6 : f32
    %390 = vector.broadcast %cst_127 : f32 to vector<16x1xf32>
    %391 = arith.addf %387, %390 : vector<16x1xf32>
    %392 = math.rsqrt %391 : vector<16x1xf32>
    %393 = vector.broadcast %392 : vector<16x1xf32> to vector<16x32xf32>
    %394 = arith.mulf %389, %393 : vector<16x32xf32>
    %395 = vector.broadcast %8 : vector<1x32xf32> to vector<16x32xf32>
    %396 = arith.mulf %394, %395 : vector<16x32xf32>
    %397 = vector.broadcast %9 : vector<1x32xf32> to vector<16x32xf32>
    %398 = arith.addf %396, %397 : vector<16x32xf32>
    %c4_128 = arith.constant 4 : index
    %c0_129 = arith.constant 0 : index
    %c0_130 = arith.constant 0 : index
    %c0_131 = arith.constant 0 : index
    %399 = vector.load %arg9[%c4_128, %c0_129, %c0_130, %c0_131] : memref<6x2x8x8xf32, #tpu.memory_space<vmem>>, vector<1x2x8x8xf32>
    %400 = vector.shape_cast %399 : vector<1x2x8x8xf32> to vector<2x8x8xf32>
    %401 = vector.shape_cast %341 : vector<2x8x8xf32> to vector<1x2x8x8xf32>
    tpu.vector_store %arg9[%c4_128, %c0_129, %c0_130, %c0_131], %401 {strides = array<i32>} : memref<6x2x8x8xf32, #tpu.memory_space<vmem>>, vector<1x2x8x8xf32>,
    %cst_132 = arith.constant dense<0.000000e+00> : vector<16x12xf32>
    %402 = tpu.matmul %398, %0, %cst_132 {dimension_numbers = #tpu.dot_dimension_numbers<[1], [0], [0], [1], [0, 0, 1, 1], [], []>} : vector<16x32xf32>, vector<32x12xf32>, vector<16x12xf32> -> vector<16x12xf32>
    %403 = vector.extract_strided_slice %402 {offsets = [0, 0], sizes = [16, 4], strides = [1, 1]} : vector<16x12xf32> to vector<16x4xf32>
    %404 = vector.shape_cast %403 : vector<16x4xf32> to vector<2x8x4xf32>
    %405 = vector.extract_strided_slice %402 {offsets = [0, 4], sizes = [16, 4], strides = [1, 1]} : vector<16x12xf32> to vector<16x4xf32>
    %406 = vector.shape_cast %405 : vector<16x4xf32> to vector<2x8x4xf32>
    %407 = vector.extract_strided_slice %402 {offsets = [0, 8], sizes = [16, 4], strides = [1, 1]} : vector<16x12xf32> to vector<16x4xf32>
    %408 = vector.shape_cast %407 : vector<16x4xf32> to vector<2x8x4xf32>
    "tpu.trace_start"() <{level = 10 : i32, message = "bsd,btd->bst"}> : () -> ()
    %cst_133 = arith.constant dense<0.000000e+00> : vector<2x8x8xf32>
    %409 = tpu.matmul %404, %406, %cst_133 {dimension_numbers = #tpu.dot_dimension_numbers<[2], [2], [1], [1], [0, 0, 0, 1, 1, 1], [0], [0]>} : vector<2x8x4xf32>, vector<2x8x4xf32>, vector<2x8x8xf32> -> vector<2x8x8xf32>
    "tpu.trace_stop"() : () -> ()
    %cst_134 = arith.constant dense<0xFF800000> : vector<2x8xf32>
    %410 = vector.multi_reduction <maximumf>, %409, %cst_134 [2] : vector<2x8x8xf32> to vector<2x8xf32>
    %411 = vector.shape_cast %410 : vector<2x8xf32> to vector<2x8x1xf32>
    %412 = vector.broadcast %411 : vector<2x8x1xf32> to vector<2x8x8xf32>
    %413 = arith.subf %409, %412 : vector<2x8x8xf32>
    %414 = math.exp %413 : vector<2x8x8xf32>
    %cst_135 = arith.constant dense<0.000000e+00> : vector<2x8xf32>
    %415 = vector.multi_reduction <add>, %414, %cst_135 [2] : vector<2x8x8xf32> to vector<2x8xf32>
    %416 = vector.shape_cast %415 : vector<2x8xf32> to vector<2x8x1xf32>
    %417 = tpu.reciprocal %416 : vector<2x8x1xf32> -> vector<2x8x1xf32>
    %418 = vector.broadcast %417 : vector<2x8x1xf32> to vector<2x8x8xf32>
    %419 = arith.mulf %414, %418 : vector<2x8x8xf32>
    "tpu.trace_start"() <{level = 10 : i32, message = "bst,btd->bsd"}> : () -> ()
    %cst_136 = arith.constant dense<0.000000e+00> : vector<2x8x4xf32>
    %420 = tpu.matmul %419, %408, %cst_136 {dimension_numbers = #tpu.dot_dimension_numbers<[2], [1], [1], [2], [0, 0, 0, 1, 1, 2], [0], [0]>} : vector<2x8x8xf32>, vector<2x8x4xf32>, vector<2x8x4xf32> -> vector<2x8x4xf32>
    "tpu.trace_stop"() : () -> ()
    %421 = vector.shape_cast %420 : vector<2x8x4xf32> to vector<16x4xf32>
    %cst_137 = arith.constant dense<0.000000e+00> : vector<16x32xf32>
    %422 = tpu.matmul %421, %1, %cst_137 {dimension_numbers = #tpu.dot_dimension_numbers<[1], [0], [0], [1], [0, 0, 1, 1], [], []>} : vector<16x4xf32>, vector<4x32xf32>, vector<16x32xf32> -> vector<16x32xf32>
    %423 = arith.addf %398, %422 : vector<16x32xf32>
    %cst_138 = arith.constant dense<0.000000e+00> : vector<16xf32>
    %424 = vector.multi_reduction <add>, %423, %cst_138 [1] : vector<16x32xf32> to vector<16xf32>
    %425 = vector.shape_cast %424 : vector<16xf32> to vector<16x1xf32>
    %cst_139 = arith.constant 3.200000e+01 : f32
    %426 = vector.broadcast %cst_139 : f32 to vector<16x1xf32>
    %427 = arith.divf %425, %426 : vector<16x1xf32>
    %428 = vector.broadcast %427 : vector<16x1xf32> to vector<16x32xf32>
    %429 = arith.subf %423, %428 : vector<16x32xf32>
    %430 = arith.mulf %429, %429 : vector<16x32xf32>
    %cst_140 = arith.constant dense<0.000000e+00> : vector<16xf32>
    %431 = vector.multi_reduction <add>, %430, %cst_140 [1] : vector<16x32xf32> to vector<16xf32>
    %432 = vector.shape_cast %431 : vector<16xf32> to vector<16x1xf32>
    %cst_141 = arith.constant 3.200000e+01 : f32
    %433 = vector.broadcast %cst_141 : f32 to vector<16x1xf32>
    %434 = arith.divf %432, %433 : vector<16x1xf32>
    %435 = vector.broadcast %427 : vector<16x1xf32> to vector<16x32xf32>
    %436 = arith.subf %423, %435 : vector<16x32xf32>
    %cst_142 = arith.constant 9.99999974E-6 : f32
    %437 = vector.broadcast %cst_142 : f32 to vector<16x1xf32>
    %438 = arith.addf %434, %437 : vector<16x1xf32>
    %439 = math.rsqrt %438 : vector<16x1xf32>
    %440 = vector.broadcast %439 : vector<16x1xf32> to vector<16x32xf32>
    %441 = arith.mulf %436, %440 : vector<16x32xf32>
    %442 = vector.broadcast %5 : vector<1x32xf32> to vector<16x32xf32>
    %443 = arith.mulf %441, %442 : vector<16x32xf32>
    %444 = vector.broadcast %6 : vector<1x32xf32> to vector<16x32xf32>
    %445 = arith.addf %443, %444 : vector<16x32xf32>
    %cst_143 = arith.constant dense<0.000000e+00> : vector<16x2048xf32>
    %446 = tpu.matmul %445, %2, %cst_143 {dimension_numbers = #tpu.dot_dimension_numbers<[1], [0], [0], [1], [0, 0, 1, 1], [], []>} : vector<16x32xf32>, vector<32x2048xf32>, vector<16x2048xf32> -> vector<16x2048xf32>
    %447 = vector.broadcast %3 : vector<1x2048xf32> to vector<16x2048xf32>
    %448 = arith.addf %446, %447 : vector<16x2048xf32>
    %cst_144 = arith.constant 0.000000e+00 : f32
    %449 = vector.broadcast %cst_144 : f32 to vector<16x2048xf32>
    %450 = arith.maximumf %448, %449 : vector<16x2048xf32>
    %cst_145 = arith.constant dense<0.000000e+00> : vector<16x32xf32>
    %451 = tpu.matmul %450, %4, %cst_145 {dimension_numbers = #tpu.dot_dimension_numbers<[1], [0], [0], [1], [0, 0, 1, 1], [], []>} : vector<16x2048xf32>, vector<2048x32xf32>, vector<16x32xf32> -> vector<16x32xf32>
    %452 = vector.broadcast %7 : vector<1x32xf32> to vector<16x32xf32>
    %453 = arith.addf %451, %452 : vector<16x32xf32>
    %454 = arith.addf %445, %453 : vector<16x32xf32>
    %cst_146 = arith.constant dense<0.000000e+00> : vector<16xf32>
    %455 = vector.multi_reduction <add>, %454, %cst_146 [1] : vector<16x32xf32> to vector<16xf32>
    %456 = vector.shape_cast %455 : vector<16xf32> to vector<16x1xf32>
    %cst_147 = arith.constant 3.200000e+01 : f32
    %457 = vector.broadcast %cst_147 : f32 to vector<16x1xf32>
    %458 = arith.divf %456, %457 : vector<16x1xf32>
    %459 = vector.broadcast %458 : vector<16x1xf32> to vector<16x32xf32>
    %460 = arith.subf %454, %459 : vector<16x32xf32>
    %461 = arith.mulf %460, %460 : vector<16x32xf32>
    %cst_148 = arith.constant dense<0.000000e+00> : vector<16xf32>
    %462 = vector.multi_reduction <add>, %461, %cst_148 [1] : vector<16x32xf32> to vector<16xf32>
    %463 = vector.shape_cast %462 : vector<16xf32> to vector<16x1xf32>
    %cst_149 = arith.constant 3.200000e+01 : f32
    %464 = vector.broadcast %cst_149 : f32 to vector<16x1xf32>
    %465 = arith.divf %463, %464 : vector<16x1xf32>
    %466 = vector.broadcast %458 : vector<16x1xf32> to vector<16x32xf32>
    %467 = arith.subf %454, %466 : vector<16x32xf32>
    %cst_150 = arith.constant 9.99999974E-6 : f32
    %468 = vector.broadcast %cst_150 : f32 to vector<16x1xf32>
    %469 = arith.addf %465, %468 : vector<16x1xf32>
    %470 = math.rsqrt %469 : vector<16x1xf32>
    %471 = vector.broadcast %470 : vector<16x1xf32> to vector<16x32xf32>
    %472 = arith.mulf %467, %471 : vector<16x32xf32>
    %473 = vector.broadcast %8 : vector<1x32xf32> to vector<16x32xf32>
    %474 = arith.mulf %472, %473 : vector<16x32xf32>
    %475 = vector.broadcast %9 : vector<1x32xf32> to vector<16x32xf32>
    %476 = arith.addf %474, %475 : vector<16x32xf32>
    %c5 = arith.constant 5 : index
    %c0_151 = arith.constant 0 : index
    %c0_152 = arith.constant 0 : index
    %c0_153 = arith.constant 0 : index
    %477 = vector.load %arg9[%c5, %c0_151, %c0_152, %c0_153] : memref<6x2x8x8xf32, #tpu.memory_space<vmem>>, vector<1x2x8x8xf32>
    %478 = vector.shape_cast %477 : vector<1x2x8x8xf32> to vector<2x8x8xf32>
    %479 = vector.shape_cast %419 : vector<2x8x8xf32> to vector<1x2x8x8xf32>
    tpu.vector_store %arg9[%c5, %c0_151, %c0_152, %c0_153], %479 {strides = array<i32>} : memref<6x2x8x8xf32, #tpu.memory_space<vmem>>, vector<1x2x8x8xf32>,
    %480 = vector.shape_cast %476 : vector<16x32xf32> to vector<2x8x32xf32>
    %c0_154 = arith.constant 0 : index
    %c0_155 = arith.constant 0 : index
    %c0_156 = arith.constant 0 : index
    %481 = vector.load %arg8[%c0_154, %c0_155, %c0_156] : memref<2x8x32xf32, #tpu.memory_space<vmem>>, vector<2x8x32xf32>
    tpu.vector_store %arg8[%c0_154, %c0_155, %c0_156], %480 {strides = array<i32>} : memref<2x8x32xf32, #tpu.memory_space<vmem>>, vector<2x8x32xf32>,
    return
  }
  func.func @transform_0(%arg0: i32) -> (i32, i32, i32) {
    %c0_i32 = arith.constant 0 : i32
    %c0_i32_0 = arith.constant 0 : i32
    %c0_i32_1 = arith.constant 0 : i32
    return %arg0, %c0_i32, %c0_i32_0 : i32, i32, i32
  }
  func.func @transform_1(%arg0: i32) -> (i32, i32) {
    %c0_i32 = arith.constant 0 : i32
    %c0_i32_0 = arith.constant 0 : i32
    %c0_i32_1 = arith.constant 0 : i32
    return %c0_i32, %c0_i32_0 : i32, i32
  }
  func.func @transform_2(%arg0: i32) -> (i32, i32) {
    %c0_i32 = arith.constant 0 : i32
    %c0_i32_0 = arith.constant 0 : i32
    %c0_i32_1 = arith.constant 0 : i32
    return %c0_i32, %c0_i32_0 : i32, i32
  }
  func.func @transform_3(%arg0: i32) -> (i32, i32) {
    %c0_i32 = arith.constant 0 : i32
    %c0_i32_0 = arith.constant 0 : i32
    %c0_i32_1 = arith.constant 0 : i32
    return %c0_i32, %c0_i32_0 : i32, i32
  }
  func.func @transform_4(%arg0: i32) -> (i32, i32) {
    %c0_i32 = arith.constant 0 : i32
    %c0_i32_0 = arith.constant 0 : i32
    %c0_i32_1 = arith.constant 0 : i32
    return %c0_i32, %c0_i32_0 : i32, i32
  }
  func.func @transform_5(%arg0: i32) -> (i32, i32) {
    %c0_i32 = arith.constant 0 : i32
    %c0_i32_0 = arith.constant 0 : i32
    %c0_i32_1 = arith.constant 0 : i32
    return %c0_i32, %c0_i32_0 : i32, i32
  }
  func.func @transform_6(%arg0: i32) -> (i32, i32) {
    %c0_i32 = arith.constant 0 : i32
    %c0_i32_0 = arith.constant 0 : i32
    %c0_i32_1 = arith.constant 0 : i32
    return %c0_i32, %c0_i32_0 : i32, i32
  }
  func.func @transform_7(%arg0: i32) -> (i32, i32, i32) {
    %c0_i32 = arith.constant 0 : i32
    %c0_i32_0 = arith.constant 0 : i32
    %c0_i32_1 = arith.constant 0 : i32
    return %arg0, %c0_i32, %c0_i32_0 : i32, i32, i32
  }
  func.func @transform_8(%arg0: i32) -> (i32, i32, i32, i32) {
    %c0_i32 = arith.constant 0 : i32
    %c0_i32_0 = arith.constant 0 : i32
    %c0_i32_1 = arith.constant 0 : i32
    %c0_i32_2 = arith.constant 0 : i32
    return %c0_i32, %arg0, %c0_i32_0, %c0_i32_1 : i32, i32, i32, i32
  }
}

</mosaic_0001>

<bundles_post_ra>
// kernel: tpu_custom_call.1
= control target key start
LH: loop header
LB: loop body
LE: loop exit
PB: predicated region body
PF: predicated region fallthrough
CT: control target
= control target key end

     0   :  { %14 = vsyncpa [#allocation3], 0  ;;  %vm364_vm0 = vcmask 261120   ;;  %s19508_s0 = inlined_call_operand.vmem [shape: f32[2,8,32], index: 0, kind: input, shape index: {}]   ;;  %s19509_s1 = inlined_call_operand.vmem [shape: f32[32,12], index: 1, kind: input, shape index: {}]   ;;  %s19510_s2 = inlined_call_operand.vmem [shape: f32[4,32], index: 2, kind: input, shape index: {}]   ;;  %s19511_s3 = inlined_call_operand.vmem [shape: f32[5,32], index: 3, kind: input, shape index: {}]   ;;  %s19512_s4 = inlined_call_operand.vmem [shape: f32[32,2048], index: 4, kind: input, shape index: {}]   ;;  %s19513_s5 = inlined_call_operand.vmem [shape: f32[1,2048], index: 5, kind: input, shape index: {}]   ;;  %s19514_s6 = inlined_call_operand.vmem [shape: f32[2048,32], index: 6, kind: input, shape index: {}]   ;;  %s19515_s7 = inlined_call_operand.hbm [shape: f32[2,8,32], index: 7, kind: output, shape index: {0}]   ;;  %s19516_s8 = inlined_call_operand.hbm [shape: f32[6,2,8,8], index: 8, kind: output, shape index: {1}]  }
   0x1   :  { %v30_v0 = vld [vmem:[%s19509_s1] sm:$0xff]  ;;  %v31_v1 = vld [vmem:[%s19509_s1 + $0x8] sm:$0xff]  ;;  %v32_v2 = vld [vmem:[%s19509_s1 + $0x10] sm:$0xff] }
   0x2   :  { %v15894_v3 = vpack.c.bf16 %v31_v1, %v30_v0  ;;  %v33_v4 = vld [vmem:[%s19509_s1 + $0x18] sm:$0xff]  ;;  %v15902_v5 = vld [vmem:[%s19508_s0] sm:$0xff] }
   0x3   :  { %v15904_v6 = vpack.c.bf16 %v33_v4, %v32_v2  ;;  %13474 = vmatprep.mubr.msk.f32.mxu0 %vm364_vm0, %v15902_v5 }
   0x4   :  { %19916 = vst [vmem:[#allocation8_spill] sm:$0xff] %v15894_v3 }
   0x5   :  { %19917 = vst [vmem:[#allocation9_spill] sm:$0xff] %v15904_v6 }
   0x6   :  { %15 = vsyncpa [#allocation5], 0  ;;  %13683 = vmatprep.subr.bf16.mxu0 %v15894_v3  ;;  %v15915_v7 = vld [vmem:[%s19508_s0 + $0x8] sm:$0xff]  ;;  %v19517_v8 = vmov 0.0   ;;  %vm15833_vm1 = vmmov 0   ;;  %s15834_s16 = smov 124  }
   0x7   :  { %13685 = vmatpush3.bf16.msra.mxu0 %v15894_v3  ;;  %13477 = vmatprep.subr.mxu1 %v19517_v8  ;;  %vm449_vm2 = vcmask 31744   ;;  %vm601_vm3 = vcmask 64512   ;;  %s15835_s0 = smov 120   ;;  %v34_v37 = vld [vmem:[%s19510_s2] sm:$0xf]  ;;  %vm782_vm4 = vcmask 1043456  }
   0x8   :  { %13687 = vmatprep.subr.bf16.mxu0 %v15904_v6  ;;  %13479 = vmatprep.mubr.msk.f32.mxu1 %vm15833_vm1, %v19517_v8  ;;  %v36_v58 = vld [vmem:[%s19512_s4 + $0x8] sm:$0xff]  ;;  %v38_v60 = vld [vmem:[%s19512_s4 + $0x18] sm:$0xff]  ;;  %v35_v63 = vld [vmem:[%s19512_s4] sm:$0xff]  ;;  %s15836_s25 = smov [#allocation4]  }
   0x9   :  { %v52_v59 = vld [vmem:[%s19512_s4 + $0x88] sm:$0xff]  ;;  %v54_v62 = vld [vmem:[%s19512_s4 + $0x98] sm:$0xff]  ;;  %v51_v0 = vld [vmem:[%s19512_s4 + $0x80] sm:$0xff]  ;;  %s11358_s26 = sshll.u32 %s15836_s25, 4  ;;  %s11359_s26 = int_to_ptr.vmem [resolvable:$true] %s11358_s26 }
   0xa   :  { %v15975_v61 = vpack.c.bf16 %v52_v59, %v36_v58  ;;  %v15986_v1 = vpack.c.bf16 %v54_v62, %v38_v60  ;;  %v15988_v2 = vpack.c.bf16 %v51_v0, %v35_v63  ;;  %v37_v4 = vld [vmem:[%s19512_s4 + $0x10] sm:$0xff]  ;;  %v60_v59 = vld [vmem:[%s19512_s4 + $0xc8] sm:$0xff]  ;;  %v46_v60 = vld [vmem:[%s19512_s4 + $0x58] sm:$0xff]  ;;  %s15784_s27 = scalar_lea.vmem %s11359_s26, 1536  ;;  %p15789_p1 = scmp.lt.s32.totalorder %s11359_s26, %s11359_s26 }
   0xb   :  { %13689 = vmatpush3.bf16.msra.mxu0 %v15904_v6  ;;  %v62_v62 = vld [vmem:[%s19512_s4 + $0xd8] sm:$0xff]  ;;  %p15785_p0 = scmp.ne.s32.totalorder %s11359_s26, %s15784_s27  ;;  %p15790_p2 = scmp.lt.s32.totalorder %s15784_s27, %s15784_s27 }
   0xc   :  { %13487 = vmatprep.subr.mxu0 %v19517_v8  ;;  %19918 = vst [vmem:[#allocation10_spill] sm:$0xff] %v15975_v61  ;;  %19919 = vst [vmem:[#allocation11_spill] sm:$0xff] %v15986_v1 }
   0xd   :  { %19920 = vst [vmem:[#allocation12_spill] sm:$0xff] %v15988_v2  ;;  %p15791_p3 = por %p15790_p2, %p15789_p1 }
   0xe   :  { %13475 = vmatmul.mubr.msk.f32.vlgmr.msra.gmra.mrb[0].mxu0 %vm364_vm0, %v15915_v7 }
   0xf   :  { %13489 = vmatprep.mubr.msk.f32.mxu0 %vm15833_vm1, %v19517_v8  ;;  %p15792_p4 = pnand %p15791_p3, %p15785_p0 }
  0xe1   :  { %v13476_v9 = vpop.f32.mrb[0].mxu0 }
  0xe2   :  { %v437_v10 = vpop.f32.mrb[1].mxu0 }
  0xe3   :  { %447 = vrot.lane.b32.xlu0 %v437_v10, %s15834_s16 }
  0xe7   :  { %525 = vrot.lane.b32.xlu0 %v13476_v9, %s15834_s16 }
 0x155   :  { %v448_v11 = vpop.permute.xlu0 %447 }
 0x156   :  { %13478 = vmatpush3.xpose.msk.msra.mxu1 %vm449_vm2, %v448_v11  ;;  %v70_v11 = vld [vmem:[%s19512_s4 + $0x118] sm:$0xff] }
 0x157   :  { %13482 = vmatprep.subr.mxu1 %v19517_v8 }
 0x159   :  { %13480 = vmatmul.mubr.msk.f32.vlgmr.msra.gmra.mrb[0].mxu1 %vm449_vm2, %v437_v10  ;;  %v526_v12 = vpop.permute.xlu0 %525 }
 0x15a   :  { %13483 = vmatpush3.xpose.msk.msra.mxu1 %vm449_vm2, %v526_v12  ;;  %13484 = vmatprep.mubr.msk.f32.mxu1 %vm15833_vm1, %v19517_v8 }
 0x15b   :  { %13492 = vmatprep.subr.mxu1 %v19517_v8 }
 0x15d   :  { %13485 = vmatmul.mubr.msk.f32.vlgmr.msra.gmra.mrb[2].mxu1 %vm449_vm2, %v13476_v9 }
 0x15e   :  { %13494 = vmatprep.mubr.msk.f32.mxu1 %vm15833_vm1, %v19517_v8 }
 0x22c   :  { %v520_v13 = vpop.f32.mrb[0].mxu1 }
 0x22d   :  { %v13481_v14 = vpop.f32.mrb[1].mxu1  ;;  %v602_v15 = vsel %vm601_vm3, %v520_v13, -inf }
 0x22e   :  { %603 = vmax.xlane.f32.xlu1 %v602_v15  ;;  %v67_v14 = vld [vmem:[%s19512_s4 + $0x100] sm:$0xff] }
 0x22f   :  { %v83_v15 = vld [vmem:[%s19512_s4 + $0x180] sm:$0xff] }
 0x230   :  { %v597_v16 = vpop.f32.mrb[2].mxu1 }
 0x231   :  { %v13486_v17 = vpop.f32.mrb[3].mxu1  ;;  %v605_v18 = vsel %vm601_vm3, %v597_v16, -inf }
 0x232   :  { %606 = vmax.xlane.f32.xlu1 %v605_v18  ;;  %v16024_v17 = vpack.c.bf16 %v83_v15, %v67_v14  ;;  %v69_v18 = vld [vmem:[%s19512_s4 + $0x110] sm:$0xff]  ;;  %v16151_v14 = vpack.c.bf16 %v62_v62, %v46_v60  ;;  %v76_v15 = vld [vmem:[%s19512_s4 + $0x148] sm:$0xff]  ;;  %v117_v62 = vld [vmem:[%s19514_s6 + $0x80] sm:$0xff] }
 0x234   :  { %19924 = vst [vmem:[#allocation16_spill] sm:$0xff] %v16024_v17  ;;  %19935 = vst [vmem:[#allocation27_spill] sm:$0xff] %v16151_v14 }
 0x243   :  { %624 = vrot.lane.b32.xlu1 %v437_v10, %s15835_s0  ;;  %v84_v10 = vld [vmem:[%s19512_s4 + $0x188] sm:$0xff] }
 0x2bb   :  { %v604_v19 = vpop.xlane.xlu1 %603 }
 0x2bc   :  { %v608_v20 = vsub.f32 %v520_v13, %v604_v19  ;;  %v86_v13 = vld [vmem:[%s19512_s4 + $0x198] sm:$0xff]  ;;  %v85_v19 = vld [vmem:[%s19512_s4 + $0x190] sm:$0xff] }
 0x2be   :  { %v610_v21 = vmul.f32 1.442695, %v608_v20  ;;  %v16033_v20 = vpack.c.bf16 %v85_v19, %v69_v18  ;;  %v92_v18 = vld [vmem:[%s19512_s4 + $0x1c8] sm:$0xff]  ;;  %v78_v19 = vld [vmem:[%s19512_s4 + $0x158] sm:$0xff] }
 0x2bf   :  { %v607_v22 = vpop.xlane.xlu1 %606 }
 0x2c0   :  { %15658 = vpow2.f32 %v610_v21  ;;  %v609_v23 = vsub.f32 %v597_v16, %v607_v22  ;;  %v16022_v16 = vpack.c.bf16 %v86_v13, %v70_v11  ;;  %19925 = vst [vmem:[#allocation17_spill] sm:$0xff] %v16033_v20  ;;  %v40_v21 = vld [vmem:[%s19512_s4 + $0x28] sm:$0xff]  ;;  %v61_v11 = vld [vmem:[%s19512_s4 + $0xd0] sm:$0xff] }
 0x2c1   :  { %v56_v22 = vld [vmem:[%s19512_s4 + $0xa8] sm:$0xff] }
 0x2c2   :  { %v612_v24 = vmul.f32 1.442695, %v609_v23  ;;  %19923 = vst [vmem:[#allocation15_spill] sm:$0xff] %v16022_v16  ;;  %v42_v23 = vld [vmem:[%s19512_s4 + $0x38] sm:$0xff] }
 0x2c3   :  { %v625_v25 = vpop.permute.xlu1 %624 }
 0x2c4   :  { %15660 = vpow2.f32 %v612_v24  ;;  %13488 = vmatpush3.msra.mxu0 %v625_v25  ;;  %v16047_v24 = vpack.c.bf16 %v56_v22, %v40_v21  ;;  %v58_v25 = vld [vmem:[%s19512_s4 + $0xb8] sm:$0xff] }
 0x2c5   :  { %13497 = vmatprep.subr.msk.mxu0 %vm782_vm4, %v34_v37  ;;  %v94_v21 = vld [vmem:[%s19512_s4 + $0x1d8] sm:$0xff] }
 0x2c6   :  { %19926 = vst [vmem:[#allocation18_spill] sm:$0xff] %v16047_v24 }
 0x2ca   :  { %v15659_v26 = vpop.eup %15658 }
 0x2cb   :  { %v614_v27 = vsel %vm601_vm3, %v15659_v26, 0.0 }
 0x2cc   :  { %615 = vadd.xlane.f32.xlu0 %v614_v27 }
 0x2ce   :  { %v15661_v28 = vpop.eup %15660 }
 0x2cf   :  { %v617_v29 = vsel %vm601_vm3, %v15661_v28, 0.0 }
 0x2d0   :  { %618 = vadd.xlane.f32.xlu1 %v617_v29 }
 0x2e1   :  { %700 = vrot.lane.b32.xlu1 %v13476_v9, %s15835_s0  ;;  %v68_v9 = vld [vmem:[%s19512_s4 + $0x108] sm:$0xff] }
 0x2e2   :  { %v16011_v12 = vpack.c.bf16 %v84_v10, %v68_v9  ;;  %v59_v9 = vld [vmem:[%s19512_s4 + $0xc0] sm:$0xff]  ;;  %v45_v10 = vld [vmem:[%s19512_s4 + $0x50] sm:$0xff] }
 0x2e4   :  { %19922 = vst [vmem:[#allocation14_spill] sm:$0xff] %v16011_v12 }
 0x359   :  { %v616_v30 = vpop.xlane.xlu0 %615 }
 0x35a   :  { %15662 = vrcp.f32 %v616_v30 }
 0x35d   :  { %v619_v31 = vpop.xlane.xlu1 %618 }
 0x35e   :  { %15664 = vrcp.f32 %v619_v31 }
 0x361   :  { %v701_v32 = vpop.permute.xlu1 %700 }
 0x362   :  { %13493 = vmatpush3.msra.mxu1 %v701_v32 }
 0x363   :  { %13691 = vmatprep.subr.bf16.mxu1 %v15975_v61 }
 0x364   :  { %v15663_v33 = vpop.eup %15662 }
 0x365   :  { %v622_v34 = vmul.f32 %v15663_v33, %v15659_v26  ;;  %v16052_v26 = vpack.c.bf16 %v58_v25, %v42_v23  ;;  %v16173_v23 = vpack.c.bf16 %v61_v11, %v45_v10  ;;  %v75_v25 = vld [vmem:[%s19512_s4 + $0x140] sm:$0xff]  ;;  %v150_v10 = vld [vmem:[%s19514_s6 + $0x188] sm:$0xff] }
 0x367   :  { %2282 = vst.msk [vmem:[#allocation4] sm:$0xff] %vm601_vm3, %v622_v34  ;;  %13490 = vmatmul.mubr.msk.f32.vlgmr.msra.gmra.mrb[2].mxu0 %vm601_vm3, %v622_v34  ;;  %19927 = vst [vmem:[#allocation19_spill] sm:$0xff] %v16052_v26  ;;  %v11384_v34 = vld [vmem:[%s19511_s3] ss:$0 sm:$0xff] }
 0x368   :  { %v15665_v35 = vpop.eup %15664  ;;  %13498 = vmatpush3.msk.msra.mxu0 %vm782_vm4, %v34_v37  ;;  %v55_v37 = vld [vmem:[%s19512_s4 + $0xa0] sm:$0xff]  ;;  %19937 = vst [vmem:[#allocation29_spill] sm:$0xff] %v16173_v23 }
 0x369   :  { %v623_v36 = vmul.f32 %v15665_v35, %v15661_v28  ;;  %13699 = vmatprep.subr.bf16.mxu0 %v15986_v1  ;;  %v39_v35 = vld [vmem:[%s19512_s4 + $0x20] sm:$0xff] }
 0x36b   :  { %2283 = vst.msk [vmem:[#allocation4 + $0x8] sm:$0xff] %vm601_vm3, %v623_v36  ;;  %13495 = vmatmul.mubr.msk.f32.vlgmr.msra.gmra.mrb[4].mxu1 %vm601_vm3, %v623_v36 }
 0x36c   :  { %1054 = vmatprep.mubr.f32.mxu1 %v19517_v8  ;;  %13693 = vmatpush1.bf16.msra.mxu1 %v15988_v2 }
 0x36d   :  { %13695 = vmatprep.subr.bf16.mxu1 %v16011_v12 }
 0x370   :  { %13697 = vmatpush1.bf16.msra.mxu1 %v16024_v17 }
 0x371   :  { %13707 = vmatprep.subr.bf16.mxu1 %v16047_v24 }
 0x43a   :  { %v696_v38 = vpop.f32.mrb[2].mxu0 }
 0x43b   :  { %v13491_v39 = vpop.f32.mrb[3].mxu0  ;;  %13499 = vmatprep.mubr.msk.f32.mxu0 %vm449_vm2, %v696_v38  ;;  %v41_v38 = vld [vmem:[%s19512_s4 + $0x30] sm:$0xff] }
 0x43c   :  { %v57_v39 = vld [vmem:[%s19512_s4 + $0xb0] sm:$0xff] }
 0x43e   :  { %v772_v40 = vpop.f32.mrb[4].mxu1 }
 0x43f   :  { %v13496_v41 = vpop.f32.mrb[5].mxu1  ;;  %13500 = vmatmul.mubr.msk.f32.vlgmr.msra.gmra.mrb[4].mxu0 %vm449_vm2, %v772_v40  ;;  %v11385_v40 = vld [vmem:[%s19511_s3 + $0x1] ss:$0 sm:$0xff] }
 0x440   :  { %1131 = vmatprep.mubr.f32.mxu0 %v19517_v8  ;;  %v72_v41 = vld [vmem:[%s19512_s4 + $0x128] sm:$0xff] }
 0x512   :  { %v13501_v42 = vpop.f32.mrb[4].mxu0 }
 0x513   :  { %v862_v43 = vadd.f32 %v13501_v42, %v15915_v7  ;;  %v852_v44 = vpop.f32.mrb[5].mxu0 }
 0x514   :  { %v861_v45 = vadd.f32 %v852_v44, %v15902_v5  ;;  %v53_v5 = vld [vmem:[%s19512_s4 + $0x90] sm:$0xff]  ;;  %v74_v44 = vld [vmem:[%s19512_s4 + $0x138] sm:$0xff] }
 0x515   :  { %v866_v46 = vsel %vm364_vm0, %v862_v43, 0.0  ;;  %v15997_v7 = vpack.c.bf16 %v53_v5, %v37_v4  ;;  %v43_v4 = vld [vmem:[%s19512_s4 + $0x40] sm:$0xff] }
 0x516   :  { %867 = vadd.xlane.f32.xlu0 %v866_v46  ;;  %v863_v47 = vsel %vm364_vm0, %v861_v45, 0.0  ;;  %v16171_v22 = vpack.c.bf16 %v59_v9, %v43_v4  ;;  %v118_v4 = vld [vmem:[%s19514_s6 + $0x88] sm:$0xff]  ;;  %v149_v9 = vld [vmem:[%s19514_s6 + $0x180] sm:$0xff] }
 0x517   :  { %864 = vadd.xlane.f32.xlu1 %v863_v47  ;;  %19921 = vst [vmem:[#allocation13_spill] sm:$0xff] %v15997_v7  ;;  %13701 = vmatpush1.bf16.msra.mxu0 %v15997_v7  ;;  %v16086_v47 = vpack.c.bf16 %v55_v37, %v39_v35  ;;  %v66_v35 = vld [vmem:[%s19512_s4 + $0xf8] sm:$0xff] }
 0x518   :  { %13703 = vmatprep.subr.bf16.mxu0 %v16022_v16  ;;  %19936 = vst [vmem:[#allocation28_spill] sm:$0xff] %v16171_v22 }
 0x519   :  { %19928 = vst [vmem:[#allocation20_spill] sm:$0xff] %v16086_v47 }
 0x51b   :  { %13705 = vmatpush1.bf16.msra.mxu0 %v16033_v20 }
 0x51c   :  { %13715 = vmatprep.subr.bf16.mxu0 %v16052_v26 }
 0x5a3   :  { %v868_v48 = vpop.xlane.xlu0 %867 }
 0x5a4   :  { %v871_v49 = vmul.f32 0.03125, %v868_v48  ;;  %v865_v50 = vpop.xlane.xlu1 %864  ;;  %v16088_v48 = vpack.c.bf16 %v57_v39, %v41_v38  ;;  %v47_v38 = vld [vmem:[%s19512_s4 + $0x60] sm:$0xff] }
 0x5a5   :  { %v870_v51 = vmul.f32 0.03125, %v865_v50  ;;  %v63_v39 = vld [vmem:[%s19512_s4 + $0xe0] sm:$0xff] }
 0x5a6   :  { %v15960_v52 = vsub.f32 %v862_v43, %v871_v49  ;;  %v88_v43 = vld [vmem:[%s19512_s4 + $0x1a8] sm:$0xff]  ;;  %19929 = vst [vmem:[#allocation21_spill] sm:$0xff] %v16088_v48  ;;  %v71_v49 = vld [vmem:[%s19512_s4 + $0x120] sm:$0xff] }
 0x5a7   :  { %v872_v53 = vsub.f32 %v861_v45, %v870_v51  ;;  %v90_v45 = vld [vmem:[%s19512_s4 + $0x1b8] sm:$0xff] }
 0x5a8   :  { %v875_v56 = vmul.f32 %v15960_v52, %v15960_v52 }
 0x5a9   :  { %v874_v54 = vmul.f32 %v872_v53, %v872_v53 }
 0x5aa   :  { %v879_v57 = vsel %vm364_vm0, %v875_v56, 0.0  ;;  %v16105_v56 = vpack.c.bf16 %v88_v43, %v72_v41  ;;  %v65_v41 = vld [vmem:[%s19512_s4 + $0xf0] sm:$0xff] }
 0x5ab   :  { %v876_v55 = vsel %vm364_vm0, %v874_v54, 0.0  ;;  %v73_v54 = vld [vmem:[%s19512_s4 + $0x130] sm:$0xff] }
 0x5ac   :  { %877 = vadd.xlane.f32.xlu0 %v876_v55  ;;  %v89_v55 = vld [vmem:[%s19512_s4 + $0x1b0] sm:$0xff]  ;;  %19930 = vst [vmem:[#allocation22_spill] sm:$0xff] %v16105_v56 }
 0x5ad   :  { %v16129_v0 = vpack.c.bf16 %v89_v55, %v73_v54  ;;  %v79_v54 = vld [vmem:[%s19512_s4 + $0x160] sm:$0xff] }
 0x5ae   :  { %v95_v55 = vld [vmem:[%s19512_s4 + $0x1e0] sm:$0xff] }
 0x5af   :  { %19933 = vst [vmem:[#allocation25_spill] sm:$0xff] %v16129_v0  ;;  %v16297_v11 = vpack.c.bf16 %v95_v55, %v79_v54  ;;  %v122_v54 = vld [vmem:[%s19514_s6 + $0xa8] sm:$0xff]  ;;  %v153_v55 = vld [vmem:[%s19514_s6 + $0x1a0] sm:$0xff] }
 0x5b0   :  { %880 = vadd.xlane.f32.xlu0 %v879_v57  ;;  %v16107_v57 = vpack.c.bf16 %v90_v45, %v74_v44  ;;  %v80_v44 = vld [vmem:[%s19512_s4 + $0x168] sm:$0xff] }
 0x5b1   :  { %v96_v45 = vld [vmem:[%s19512_s4 + $0x1e8] sm:$0xff]  ;;  %19948 = vst [vmem:[#allocation40_spill] sm:$0xff] %v16297_v11 }
 0x5b2   :  { %19931 = vst [vmem:[#allocation23_spill] sm:$0xff] %v16107_v57 }
 0x639   :  { %v878_v27 = vpop.xlane.xlu0 %877 }
 0x63a   :  { %v882_v28 = vmul.f32 0.03125, %v878_v27  ;;  %v91_v27 = vld [vmem:[%s19512_s4 + $0x1c0] sm:$0xff] }
 0x63c   :  { %v884_v29 = vadd.f32 1e-05, %v882_v28  ;;  %v77_v28 = vld [vmem:[%s19512_s4 + $0x150] sm:$0xff] }
 0x63d   :  { %v881_v30 = vpop.xlane.xlu0 %880 }
 0x63e   :  { %15666 = vrsqrt.f32 %v884_v29  ;;  %v883_v31 = vmul.f32 0.03125, %v881_v30  ;;  %v93_v29 = vld [vmem:[%s19512_s4 + $0x1d0] sm:$0xff]  ;;  %v16191_v30 = vpack.c.bf16 %v92_v18, %v76_v15  ;;  %v101_v18 = vld [vmem:[%s19514_s6] sm:$0xff] }
 0x63f   :  { %v16215_v37 = vpack.c.bf16 %v93_v29, %v77_v28  ;;  %v134_v28 = vld [vmem:[%s19514_s6 + $0x108] sm:$0xff]  ;;  %v119_v29 = vld [vmem:[%s19514_s6 + $0x90] sm:$0xff] }
 0x640   :  { %v885_v32 = vadd.f32 1e-05, %v883_v31  ;;  %19938 = vst [vmem:[#allocation30_spill] sm:$0xff] %v16191_v30  ;;  %v16193_v31 = vpack.c.bf16 %v94_v21, %v78_v19  ;;  %v102_v19 = vld [vmem:[%s19514_s6 + $0x8] sm:$0xff]  ;;  %v16311_v21 = vpack.c.bf16 %v118_v4, %v117_v62  ;;  %v105_v4 = vld [vmem:[%s19514_s6 + $0x20] sm:$0xff] }
 0x641   :  { %19941 = vst [vmem:[#allocation33_spill] sm:$0xff] %v16215_v37 }
 0x642   :  { %15668 = vrsqrt.f32 %v885_v32  ;;  %19939 = vst [vmem:[#allocation31_spill] sm:$0xff] %v16193_v31  ;;  %v48_v32 = vld [vmem:[%s19512_s4 + $0x68] sm:$0xff]  ;;  %19950 = vst [vmem:[#allocation42_spill] sm:$0xff] %v16311_v21 }
 0x648   :  { %v15667_v33 = vpop.eup %15666 }
 0x649   :  { %v888_v36 = vmul.f32 %v15667_v33, %v872_v53  ;;  %v87_v53 = vld [vmem:[%s19512_s4 + $0x1a0] sm:$0xff]  ;;  %v64_v33 = vld [vmem:[%s19512_s4 + $0xe8] sm:$0xff] }
 0x64a   :  { %v16127_v63 = vpack.c.bf16 %v87_v53, %v71_v49  ;;  %v98_v49 = vld [vmem:[%s19512_s4 + $0x1f8] sm:$0xff] }
 0x64b   :  { %v894_v42 = vmul.f32 %v11384_v34, %v888_v36  ;;  %v16213_v36 = vpack.c.bf16 %v91_v27, %v75_v25  ;;  %v16313_v25 = vpack.c.bf16 %v150_v10, %v149_v9  ;;  %v133_v27 = vld [vmem:[%s19514_s6 + $0x100] sm:$0xff]  ;;  %v106_v9 = vld [vmem:[%s19514_s6 + $0x28] sm:$0xff] }
 0x64c   :  { %v15669_v46 = vpop.eup %15668  ;;  %19932 = vst [vmem:[#allocation24_spill] sm:$0xff] %v16127_v63 }
 0x64d   :  { %v16093_v50 = vadd.f32 %v11385_v40, %v894_v42  ;;  %v889_v51 = vmul.f32 %v15669_v46, %v15960_v52  ;;  %v44_v52 = vld [vmem:[%s19512_s4 + $0x48] sm:$0xff]  ;;  %19940 = vst [vmem:[#allocation32_spill] sm:$0xff] %v16213_v36  ;;  %v16233_v42 = vpack.c.bf16 %v64_v33, %v48_v32  ;;  %v82_v46 = vld [vmem:[%s19512_s4 + $0x178] sm:$0xff]  ;;  %19951 = vst [vmem:[#allocation43_spill] sm:$0xff] %v16313_v25 }
 0x64e   :  { %v16149_v13 = vpack.c.bf16 %v60_v59, %v44_v52  ;;  %v81_v52 = vld [vmem:[%s19512_s4 + $0x170] sm:$0xff]  ;;  %v16275_v59 = vpack.c.bf16 %v96_v45, %v80_v44  ;;  %v16277_v60 = vpack.c.bf16 %v98_v49, %v82_v46  ;;  %v120_v32 = vld [vmem:[%s19514_s6 + $0x98] sm:$0xff]  ;;  %v121_v49 = vld [vmem:[%s19514_s6 + $0xa0] sm:$0xff] }
 0x64f   :  { %v895_v58 = vmul.f32 %v11384_v34, %v889_v51  ;;  %11386 = vmatmul.mubr.msk.f32.vlgmr.msra.gmra.mrb[6].mxu1 %vm364_vm0, %v16093_v50  ;;  %11388 = vmatmul.mubr.msk.f32.vlgmr.msra.gmra.mrb[6].mxu0 %vm364_vm0, %v16093_v50  ;;  %v50_v34 = vld [vmem:[%s19512_s4 + $0x78] sm:$0xff]  ;;  %19942 = vst [vmem:[#allocation34_spill] sm:$0xff] %v16233_v42  ;;  %v16255_v51 = vpack.c.bf16 %v63_v39, %v47_v38  ;;  %v151_v33 = vld [vmem:[%s19514_s6 + $0x190] sm:$0xff] }
 0x650   :  { %13709 = vmatpush1.bf16.msra.mxu1 %v16086_v47  ;;  %13717 = vmatpush1.bf16.msra.mxu0 %v16088_v48  ;;  %19934 = vst [vmem:[#allocation26_spill] sm:$0xff] %v16149_v13  ;;  %v16235_v43 = vpack.c.bf16 %v66_v35, %v50_v34  ;;  %19946 = vst [vmem:[#allocation38_spill] sm:$0xff] %v16275_v59  ;;  %v152_v34 = vld [vmem:[%s19514_s6 + $0x198] sm:$0xff]  ;;  %v16341_v35 = vpack.c.bf16 %v102_v19, %v101_v18  ;;  %v103_v39 = vld [vmem:[%s19514_s6 + $0x10] sm:$0xff] }
 0x651   :  { %v16134_v5 = vadd.f32 %v11385_v40, %v895_v58  ;;  %1060 = vmatprep.mubr.f32.mxu1 %v19517_v8  ;;  %1137 = vmatprep.mubr.f32.mxu0 %v19517_v8  ;;  %v49_v40 = vld [vmem:[%s19512_s4 + $0x70] sm:$0xff]  ;;  %19944 = vst [vmem:[#allocation36_spill] sm:$0xff] %v16255_v51  ;;  %19947 = vst [vmem:[#allocation39_spill] sm:$0xff] %v16277_v60  ;;  %v16343_v38 = vpack.c.bf16 %v134_v28, %v133_v27  ;;  %v136_v46 = vld [vmem:[%s19514_s6 + $0x118] sm:$0xff] }
 0x652   :  { %13711 = vmatprep.subr.bf16.mxu1 %v16105_v56  ;;  %13719 = vmatprep.subr.bf16.mxu0 %v16107_v57  ;;  %19943 = vst [vmem:[#allocation35_spill] sm:$0xff] %v16235_v43  ;;  %v16257_v53 = vpack.c.bf16 %v65_v41, %v49_v40  ;;  %v97_v58 = vld [vmem:[%s19512_s4 + $0x1f0] sm:$0xff]  ;;  %19952 = vst [vmem:[#allocation44_spill] sm:$0xff] %v16341_v35  ;;  %v104_v40 = vld [vmem:[%s19514_s6 + $0x18] sm:$0xff]  ;;  %v16353_v41 = vpack.c.bf16 %v120_v32, %v119_v29 }
 0x653   :  { %11387 = vmatmul.mubr.msk.f32.gmra.mrb[8].mxu1 %vm364_vm0, %v16134_v5  ;;  %11389 = vmatmul.mubr.msk.f32.gmra.mrb[8].mxu0 %vm364_vm0, %v16134_v5  ;;  %v16299_v15 = vpack.c.bf16 %v97_v58, %v81_v52  ;;  %19953 = vst [vmem:[#allocation45_spill] sm:$0xff] %v16343_v38  ;;  %v16355_v44 = vpack.c.bf16 %v152_v34, %v151_v33  ;;  %v135_v45 = vld [vmem:[%s19514_s6 + $0x110] sm:$0xff]  ;;  %v154_v52 = vld [vmem:[%s19514_s6 + $0x1a8] sm:$0xff]  ;;  %v137_v19 = vld [vmem:[%s19514_s6 + $0x120] sm:$0xff] }
 0x654   :  { %13713 = vmatpush1.bf16.msra.mxu1 %v16127_v63  ;;  %13721 = vmatpush1.bf16.msra.mxu0 %v16129_v0  ;;  %19945 = vst [vmem:[#allocation37_spill] sm:$0xff] %v16257_v53  ;;  %19954 = vst [vmem:[#allocation46_spill] sm:$0xff] %v16353_v41  ;;  %v16383_v58 = vpack.c.bf16 %v104_v40, %v103_v39  ;;  %v16385_v62 = vpack.c.bf16 %v136_v46, %v135_v45  ;;  %v138_v27 = vld [vmem:[%s19514_s6 + $0x128] sm:$0xff]  ;;  %v123_v28 = vld [vmem:[%s19514_s6 + $0xb0] sm:$0xff] }
 0x655   :  { %1208 = vmatprep.mubr.f32.mxu1 %v19517_v8  ;;  %1285 = vmatprep.mubr.f32.mxu0 %v19517_v8  ;;  %19949 = vst [vmem:[#allocation41_spill] sm:$0xff] %v16299_v15  ;;  %19955 = vst [vmem:[#allocation47_spill] sm:$0xff] %v16355_v44  ;;  %v16395_v10 = vpack.c.bf16 %v122_v54, %v121_v49  ;;  %v16397_v18 = vpack.c.bf16 %v154_v52, %v153_v55  ;;  %v124_v29 = vld [vmem:[%s19514_s6 + $0xb8] sm:$0xff]  ;;  %v155_v32 = vld [vmem:[%s19514_s6 + $0x1b0] sm:$0xff] }
 0x656   :  { %13723 = vmatprep.subr.bf16.mxu1 %v16149_v13  ;;  %13731 = vmatprep.subr.bf16.mxu0 %v16151_v14  ;;  %19956 = vst [vmem:[#allocation48_spill] sm:$0xff] %v16383_v58  ;;  %19957 = vst [vmem:[#allocation49_spill] sm:$0xff] %v16385_v62  ;;  %v156_v33 = vld [vmem:[%s19514_s6 + $0x1b8] sm:$0xff]  ;;  %v16423_v34 = vpack.c.bf16 %v106_v9, %v105_v4  ;;  %v16425_v39 = vpack.c.bf16 %v138_v27, %v137_v19  ;;  %v107_v40 = vld [vmem:[%s19514_s6 + $0x30] sm:$0xff] }
 0x657   :  { %11390 = vmatmul.mubr.msk.f32.vlgmr.msra.gmra.mrb[10].mxu1 %vm364_vm0, %v16093_v50  ;;  %11392 = vmatmul.mubr.msk.f32.vlgmr.msra.gmra.mrb[10].mxu0 %vm364_vm0, %v16093_v50  ;;  %19958 = vst [vmem:[#allocation50_spill] sm:$0xff] %v16395_v10  ;;  %19959 = vst [vmem:[#allocation51_spill] sm:$0xff] %v16397_v18  ;;  %v108_v45 = vld [vmem:[%s19514_s6 + $0x38] sm:$0xff]  ;;  %v16435_v46 = vpack.c.bf16 %v124_v29, %v123_v28  ;;  %v16437_v49 = vpack.c.bf16 %v156_v33, %v155_v32  ;;  %v139_v54 = vld [vmem:[%s19514_s6 + $0x130] sm:$0xff] }
 0x658   :  { %13725 = vmatpush1.bf16.msra.mxu1 %v16171_v22  ;;  %13733 = vmatpush1.bf16.msra.mxu0 %v16173_v23  ;;  %19960 = vst [vmem:[#allocation52_spill] sm:$0xff] %v16423_v34  ;;  %19961 = vst [vmem:[#allocation53_spill] sm:$0xff] %v16425_v39  ;;  %v140_v55 = vld [vmem:[%s19514_s6 + $0x138] sm:$0xff]  ;;  %v125_v52 = vld [vmem:[%s19514_s6 + $0xc0] sm:$0xff]  ;;  %v16459_v27 = vpack.c.bf16 %v108_v45, %v107_v40 }
 0x659   :  { %1214 = vmatprep.mubr.f32.mxu1 %v19517_v8  ;;  %1291 = vmatprep.mubr.f32.mxu0 %v19517_v8  ;;  %19962 = vst [vmem:[#allocation54_spill] sm:$0xff] %v16435_v46  ;;  %19963 = vst [vmem:[#allocation55_spill] sm:$0xff] %v16437_v49  ;;  %v126_v4 = vld [vmem:[%s19514_s6 + $0xc8] sm:$0xff]  ;;  %v157_v9 = vld [vmem:[%s19514_s6 + $0x1c0] sm:$0xff]  ;;  %v16461_v28 = vpack.c.bf16 %v140_v55, %v139_v54 }
 0x65a   :  { %13727 = vmatprep.subr.bf16.mxu1 %v16191_v30  ;;  %13735 = vmatprep.subr.bf16.mxu0 %v16193_v31  ;;  %v158_v19 = vld [vmem:[%s19514_s6 + $0x1c8] sm:$0xff]  ;;  %19964 = vst [vmem:[#allocation56_spill] sm:$0xff] %v16459_v27  ;;  %v109_v29 = vld [vmem:[%s19514_s6 + $0x40] sm:$0xff]  ;;  %v16471_v33 = vpack.c.bf16 %v126_v4, %v125_v52  ;;  %v127_v54 = vld [vmem:[%s19514_s6 + $0xd0] sm:$0xff] }
 0x65b   :  { %11391 = vmatmul.mubr.msk.f32.gmra.mrb[12].mxu1 %vm364_vm0, %v16134_v5  ;;  %11393 = vmatmul.mubr.msk.f32.gmra.mrb[12].mxu0 %vm364_vm0, %v16134_v5  ;;  %19965 = vst [vmem:[#allocation57_spill] sm:$0xff] %v16461_v28  ;;  %v110_v32 = vld [vmem:[%s19514_s6 + $0x48] sm:$0xff]  ;;  %v141_v40 = vld [vmem:[%s19514_s6 + $0x140] sm:$0xff]  ;;  %v128_v55 = vld [vmem:[%s19514_s6 + $0xd8] sm:$0xff] }
 0x65c   :  { %13729 = vmatpush1.bf16.msra.mxu1 %v16213_v36  ;;  %13737 = vmatpush1.bf16.msra.mxu0 %v16215_v37  ;;  %19966 = vst [vmem:[#allocation58_spill] sm:$0xff] %v16471_v33  ;;  %v142_v45 = vld [vmem:[%s19514_s6 + $0x148] sm:$0xff]  ;;  %v159_v52 = vld [vmem:[%s19514_s6 + $0x1d0] sm:$0xff]  ;;  %v160_v4 = vld [vmem:[%s19514_s6 + $0x1d8] sm:$0xff] }
 0x65d   :  { %1362 = vmatprep.mubr.f32.mxu1 %v19517_v8  ;;  %1439 = vmatprep.mubr.f32.mxu0 %v19517_v8  ;;  %v179_v23 = vld [vmem:[%s19514_s6 + $0x270] sm:$0xff]  ;;  %v212_v14 = vld [vmem:[%s19514_s6 + $0x378] sm:$0xff]  ;;  %v261_v63 = vld [vmem:[%s19514_s6 + $0x500] sm:$0xff] }
 0x65e   :  { %13739 = vmatprep.subr.bf16.mxu1 %v16233_v42  ;;  %13747 = vmatprep.subr.bf16.mxu0 %v16235_v43  ;;  %v177_v42 = vld [vmem:[%s19514_s6 + $0x260] sm:$0xff]  ;;  %v262_v57 = vld [vmem:[%s19514_s6 + $0x508] sm:$0xff] }
 0x65f   :  { %11394 = vmatmul.mubr.msk.f32.vlgmr.msra.gmra.mrb[14].mxu1 %vm364_vm0, %v16093_v50  ;;  %11396 = vmatmul.mubr.msk.f32.vlgmr.msra.gmra.mrb[14].mxu0 %vm364_vm0, %v16093_v50 }
 0x660   :  { %13741 = vmatpush1.bf16.msra.mxu1 %v16255_v51  ;;  %13749 = vmatpush1.bf16.msra.mxu0 %v16257_v53 }
 0x661   :  { %1368 = vmatprep.mubr.f32.mxu1 %v19517_v8  ;;  %1445 = vmatprep.mubr.f32.mxu0 %v19517_v8 }
 0x662   :  { %13743 = vmatprep.subr.bf16.mxu1 %v16275_v59  ;;  %13751 = vmatprep.subr.bf16.mxu0 %v16277_v60  ;;  %v175_v60 = vld [vmem:[%s19514_s6 + $0x250] sm:$0xff]  ;;  %v176_v59 = vld [vmem:[%s19514_s6 + $0x258] sm:$0xff] }
 0x663   :  { %11395 = vmatmul.mubr.msk.f32.gmra.mrb[16].mxu1 %vm364_vm0, %v16134_v5  ;;  %11397 = vmatmul.mubr.msk.f32.gmra.mrb[16].mxu0 %vm364_vm0, %v16134_v5  ;;  %v16905_v51 = vpack.c.bf16 %v176_v59, %v175_v60 }
 0x664   :  { %13745 = vmatpush1.bf16.msra.mxu1 %v16297_v11  ;;  %13753 = vmatpush1.bf16.msra.mxu0 %v16299_v15 }
 0x665   :  { %1516 = vmatprep.mubr.f32.mxu1 %v19517_v8  ;;  %1593 = vmatprep.mubr.f32.mxu0 %v19517_v8  ;;  %20012 = vst [vmem:[#allocation102_spill] sm:$0xff] %v16905_v51 }
 0x666   :  { %13755 = vmatprep.subr.bf16.mxu1 %v16311_v21  ;;  %13787 = vmatprep.subr.bf16.mxu0 %v16313_v25 }
 0x667   :  { %11398 = vmatmul.mubr.msk.f32.vlgmr.msra.gmra.mrb[18].mxu1 %vm364_vm0, %v16093_v50  ;;  %11400 = vmatmul.mubr.msk.f32.vlgmr.msra.gmra.mrb[18].mxu0 %vm364_vm0, %v16093_v50 }
 0x668   :  { %1522 = vmatprep.mubr.f32.mxu1 %v19517_v8  ;;  %1599 = vmatprep.mubr.f32.mxu0 %v19517_v8  ;;  %v16473_v8 = vpack.c.bf16 %v158_v19, %v157_v9  ;;  %v16495_v9 = vpack.c.bf16 %v110_v32, %v109_v29  ;;  %v16497_v19 = vpack.c.bf16 %v142_v45, %v141_v40  ;;  %v143_v29 = vld [vmem:[%s19514_s6 + $0x150] sm:$0xff]  ;;  %v144_v32 = vld [vmem:[%s19514_s6 + $0x158] sm:$0xff]  ;;  %v129_v40 = vld [vmem:[%s19514_s6 + $0xe0] sm:$0xff] }
 0x669   :  { %13757 = vmatpush3.bf16.msra.mxu1 %v16341_v35  ;;  %13789 = vmatpush3.bf16.msra.mxu0 %v16343_v38  ;;  %v130_v45 = vld [vmem:[%s19514_s6 + $0xe8] sm:$0xff]  ;;  %v167_v35 = vld [vmem:[%s19514_s6 + $0x210] sm:$0xff] }
 0x66a   :  { %13759 = vmatprep.subr.bf16.mxu1 %v16353_v41  ;;  %13791 = vmatprep.subr.bf16.mxu0 %v16355_v44  ;;  %19967 = vst [vmem:[#allocation59_spill] sm:$0xff] %v16473_v8  ;;  %19968 = vst [vmem:[#allocation60_spill] sm:$0xff] %v16495_v9 }
 0x66b   :  { %11399 = vmatmul.mubr.msk.f32.gmra.mrb[20].mxu1 %vm364_vm0, %v16134_v5  ;;  %11401 = vmatmul.mubr.msk.f32.gmra.mrb[20].mxu0 %vm364_vm0, %v16134_v5  ;;  %19969 = vst [vmem:[#allocation61_spill] sm:$0xff] %v16497_v19 }
 0x66d   :  { %13761 = vmatpush3.bf16.msra.mxu1 %v16383_v58  ;;  %13793 = vmatpush3.bf16.msra.mxu0 %v16385_v62 }
 0x66e   :  { %13763 = vmatprep.subr.bf16.mxu1 %v16395_v10  ;;  %13795 = vmatprep.subr.bf16.mxu0 %v16397_v18  ;;  %v215_v18 = vld [vmem:[%s19514_s6 + $0x390] sm:$0xff]  ;;  %v216_v10 = vld [vmem:[%s19514_s6 + $0x398] sm:$0xff] }
 0x671   :  { %13765 = vmatpush3.bf16.msra.mxu1 %v16423_v34  ;;  %13797 = vmatpush3.bf16.msra.mxu0 %v16425_v39  ;;  %v16507_v39 = vpack.c.bf16 %v128_v55, %v127_v54  ;;  %v161_v54 = vld [vmem:[%s19514_s6 + $0x1e0] sm:$0xff]  ;;  %v162_v55 = vld [vmem:[%s19514_s6 + $0x1e8] sm:$0xff]  ;;  %v184_v34 = vld [vmem:[%s19514_s6 + $0x298] sm:$0xff] }
 0x672   :  { %13767 = vmatprep.subr.bf16.mxu1 %v16435_v46  ;;  %13799 = vmatprep.subr.bf16.mxu0 %v16437_v49  ;;  %v111_v49 = vld [vmem:[%s19514_s6 + $0x50] sm:$0xff]  ;;  %v112_v46 = vld [vmem:[%s19514_s6 + $0x58] sm:$0xff] }
 0x673   :  { %19970 = vst [vmem:[#allocation62_spill] sm:$0xff] %v16507_v39 }
 0x675   :  { %13769 = vmatpush3.bf16.msra.mxu1 %v16459_v27  ;;  %13801 = vmatpush3.bf16.msra.mxu0 %v16461_v28  ;;  %v16509_v27 = vpack.c.bf16 %v160_v4, %v159_v52  ;;  %v16531_v52 = vpack.c.bf16 %v112_v46, %v111_v49  ;;  %v16533_v4 = vpack.c.bf16 %v144_v32, %v143_v29  ;;  %v145_v46 = vld [vmem:[%s19514_s6 + $0x160] sm:$0xff]  ;;  %v146_v49 = vld [vmem:[%s19514_s6 + $0x168] sm:$0xff] }
 0x676   :  { %13771 = vmatprep.subr.bf16.mxu1 %v16471_v33  ;;  %13803 = vmatprep.subr.bf16.mxu0 %v16473_v8  ;;  %v113_v8 = vld [vmem:[%s19514_s6 + $0x60] sm:$0xff]  ;;  %v16540_v33 = vpack.c.bf16 %v130_v45, %v129_v40  ;;  %v16542_v28 = vpack.c.bf16 %v162_v55, %v161_v54  ;;  %v16557_v32 = vpack.c.bf16 %v146_v49, %v145_v46  ;;  %v131_v40 = vld [vmem:[%s19514_s6 + $0xf0] sm:$0xff]  ;;  %v132_v45 = vld [vmem:[%s19514_s6 + $0xf8] sm:$0xff] }
 0x677   :  { %19971 = vst [vmem:[#allocation63_spill] sm:$0xff] %v16509_v27  ;;  %19972 = vst [vmem:[#allocation64_spill] sm:$0xff] %v16531_v52  ;;  %v164_v54 = vld [vmem:[%s19514_s6 + $0x1f8] sm:$0xff]  ;;  %v115_v55 = vld [vmem:[%s19514_s6 + $0x70] sm:$0xff] }
 0x678   :  { %19973 = vst [vmem:[#allocation65_spill] sm:$0xff] %v16533_v4  ;;  %19974 = vst [vmem:[#allocation66_spill] sm:$0xff] %v16540_v33  ;;  %v116_v46 = vld [vmem:[%s19514_s6 + $0x78] sm:$0xff] }
 0x679   :  { %13773 = vmatpush3.bf16.msra.mxu1 %v16495_v9  ;;  %13805 = vmatpush3.bf16.msra.mxu0 %v16497_v19  ;;  %19975 = vst [vmem:[#allocation67_spill] sm:$0xff] %v16542_v28  ;;  %v114_v19 = vld [vmem:[%s19514_s6 + $0x68] sm:$0xff]  ;;  %19977 = vst [vmem:[#allocation69_spill] sm:$0xff] %v16557_v32 }
 0x67a   :  { %13775 = vmatprep.subr.bf16.mxu1 %v16507_v39  ;;  %13807 = vmatprep.subr.bf16.mxu0 %v16509_v27  ;;  %v16555_v29 = vpack.c.bf16 %v114_v19, %v113_v8  ;;  %v163_v8 = vld [vmem:[%s19514_s6 + $0x1f0] sm:$0xff]  ;;  %v16572_v19 = vpack.c.bf16 %v132_v45, %v131_v40  ;;  %v148_v45 = vld [vmem:[%s19514_s6 + $0x178] sm:$0xff] }
 0x67b   :  { %v16583_v49 = vpack.c.bf16 %v164_v54, %v163_v8  ;;  %v147_v40 = vld [vmem:[%s19514_s6 + $0x170] sm:$0xff]  ;;  %v181_v8 = vld [vmem:[%s19514_s6 + $0x280] sm:$0xff]  ;;  %v182_v54 = vld [vmem:[%s19514_s6 + $0x288] sm:$0xff] }
 0x67c   :  { %19976 = vst [vmem:[#allocation68_spill] sm:$0xff] %v16555_v29  ;;  %19978 = vst [vmem:[#allocation70_spill] sm:$0xff] %v16572_v19 }
 0x67d   :  { %13777 = vmatpush3.bf16.msra.mxu1 %v16531_v52  ;;  %13809 = vmatpush3.bf16.msra.mxu0 %v16533_v4  ;;  %19979 = vst [vmem:[#allocation71_spill] sm:$0xff] %v16583_v49  ;;  %v183_v52 = vld [vmem:[%s19514_s6 + $0x290] sm:$0xff] }
 0x67e   :  { %13779 = vmatprep.subr.bf16.mxu1 %v16540_v33  ;;  %13811 = vmatprep.subr.bf16.mxu0 %v16542_v28 }
 0x681   :  { %13781 = vmatpush3.bf16.msra.mxu1 %v16555_v29  ;;  %13813 = vmatpush3.bf16.msra.mxu0 %v16557_v32  ;;  %v16585_v32 = vpack.c.bf16 %v116_v46, %v115_v55  ;;  %v16594_v29 = vpack.c.bf16 %v148_v45, %v147_v40  ;;  %v213_v55 = vld [vmem:[%s19514_s6 + $0x380] sm:$0xff]  ;;  %v16608_v46 = vpack.c.bf16 %v182_v54, %v181_v8  ;;  %v214_v40 = vld [vmem:[%s19514_s6 + $0x388] sm:$0xff] }
 0x682   :  { %13783 = vmatprep.subr.bf16.mxu1 %v16572_v19  ;;  %13815 = vmatprep.subr.bf16.mxu0 %v16583_v49  ;;  %v16613_v45 = vpack.c.bf16 %v214_v40, %v213_v55  ;;  %v16624_v8 = vld [vmem:[%s19513_s5] sm:$0xff] }
 0x683   :  { %19980 = vst [vmem:[#allocation72_spill] sm:$0xff] %v16585_v32  ;;  %19981 = vst [vmem:[#allocation73_spill] sm:$0xff] %v16594_v29 }
 0x684   :  { %19982 = vst [vmem:[#allocation74_spill] sm:$0xff] %v16608_v46  ;;  %19983 = vst [vmem:[#allocation75_spill] sm:$0xff] %v16613_v45 }
 0x685   :  { %13785 = vmatpush3.bf16.msra.mxu1 %v16585_v32  ;;  %13817 = vmatpush3.bf16.msra.mxu0 %v16594_v29  ;;  %v904_v32 = vlaneseq  ;;  %v166_v29 = vld [vmem:[%s19514_s6 + $0x208] sm:$0xff] }
 0x686   :  { %13819 = vmatprep.subr.bf16.mxu1 %v16608_v46  ;;  %13851 = vmatprep.subr.bf16.mxu0 %v16613_v45 }
 0x687   :  { %v16617_v49 = vshrl.u32 %v904_v32, 7 }
 0x689   :  { %v19551_v19 = vsub.s32 0, %v16617_v49  ;;  %v19554_v28 = vsub.s32 2, %v16617_v49  ;;  %v19559_v54 = vsub.s32 1, %v16617_v49  ;;  %v19560_v55 = vsub.s32 3, %v16617_v49 }
 0x68a   :  { %v19990_v41 = vsub.s32 5, %v16617_v49 }
 0x68b   :  { %v16631_v40 = vrot.slane %v16624_v8, %v19551_v19  ;;  %v16636_v32 = vrot.slane %v16624_v8, %v19554_v28  ;;  %v16641_v45 = vrot.slane %v16624_v8, %v19559_v54  ;;  %v16646_v46 = vrot.slane %v16624_v8, %v19560_v55  ;;  %v165_v19 = vld [vmem:[%s19514_s6 + $0x200] sm:$0xff]  ;;  %v198_v55 = vld [vmem:[%s19514_s6 + $0x308] sm:$0xff] }
 0x68c   :  { %v197_v54 = vld [vmem:[%s19514_s6 + $0x300] sm:$0xff]  ;;  %v16678_v58 = vpack.c.bf16 %v166_v29, %v165_v19  ;;  %v16685_v38 = vrot.slane %v16624_v8, %v19990_v41  ;;  %v168_v29 = vld [vmem:[%s19514_s6 + $0x218] sm:$0xff]  ;;  %v199_v41 = vld [vmem:[%s19514_s6 + $0x310] sm:$0xff] }
 0x68d   :  { %19984 = vst [vmem:[#allocation76_spill] sm:$0xff] %v16631_v40  ;;  %19985 = vst [vmem:[#allocation77_spill] sm:$0xff] %v16636_v32  ;;  %v16680_v44 = vpack.c.bf16 %v198_v55, %v197_v54 }
 0x68e   :  { %19986 = vst [vmem:[#allocation78_spill] sm:$0xff] %v16641_v45  ;;  %19987 = vst [vmem:[#allocation79_spill] sm:$0xff] %v16646_v46 }
 0x68f   :  { %19988 = vst [vmem:[#allocation80_spill] sm:$0xff] %v16678_v58  ;;  %19989 = vst [vmem:[#allocation81_spill] sm:$0xff] %v16680_v44 }
 0x690   :  { %19991 = vst [vmem:[#allocation82_spill] sm:$0xff] %v16685_v38 }
 0x722   :  { %v1056_v33 = vpop.f32.mrb[6].mxu1  ;;  %v1133_v4 = vpop.f32.mrb[6].mxu0 }
 0x723   :  { %v1057_v27 = vadd.f32 %v1056_v33, %v16631_v40  ;;  %v1134_v39 = vadd.f32 %v1133_v4, %v16636_v32  ;;  %v1058_v9 = vpop.f32.mrb[7].mxu1  ;;  %v1135_v28 = vpop.f32.mrb[7].mxu0  ;;  %v16692_v4 = vpack.c.bf16 %v216_v10, %v215_v18  ;;  %v200_v10 = vld [vmem:[%s19514_s6 + $0x318] sm:$0xff]  ;;  %v185_v18 = vld [vmem:[%s19514_s6 + $0x2a0] sm:$0xff] }
 0x724   :  { %v1059_v62 = vadd.f32 %v1058_v9, %v16641_v45  ;;  %v1136_v33 = vadd.f32 %v1135_v28, %v16646_v46  ;;  %v16690_v28 = vpack.c.bf16 %v184_v34, %v183_v52 }
 0x725   :  { %19993 = vst [vmem:[#allocation84_spill] sm:$0xff] %v16692_v4  ;;  %v1606_v19 = vmax.f32 %v1057_v27, 0.0  ;;  %v1608_v54 = vmax.f32 %v1134_v39, 0.0  ;;  %v19994_v39 = vsub.s32 7, %v16617_v49  ;;  %v186_v27 = vld [vmem:[%s19514_s6 + $0x2a8] sm:$0xff] }
 0x726   :  { %v1607_v25 = vmax.f32 %v1059_v62, 0.0  ;;  %v1609_v21 = vmax.f32 %v1136_v33, 0.0  ;;  %v1062_v9 = vpop.f32.mrb[8].mxu1  ;;  %v1139_v15 = vpop.f32.mrb[8].mxu0  ;;  %19992 = vst [vmem:[#allocation83_spill] sm:$0xff] %v16690_v28 }
 0x727   :  { %v1063_v55 = vadd.f32 %v1062_v9, %v16631_v40  ;;  %v1140_v62 = vadd.f32 %v1139_v15, %v16636_v32  ;;  %v1064_v33 = vpop.f32.mrb[9].mxu1  ;;  %v1141_v11 = vpop.f32.mrb[9].mxu0  ;;  %v16713_v15 = vrot.slane %v16624_v8, %v19994_v39  ;;  %v217_v9 = vld [vmem:[%s19514_s6 + $0x3a0] sm:$0xff]  ;;  %v16735_v32 = vpack.c.bf16 %v200_v10, %v199_v41  ;;  %v202_v41 = vld [vmem:[%s19514_s6 + $0x328] sm:$0xff]  ;;  %v187_v10 = vld [vmem:[%s19514_s6 + $0x2b0] sm:$0xff] }
 0x728   :  { %v1065_v34 = vadd.f32 %v1064_v33, %v16641_v45  ;;  %v1142_v52 = vadd.f32 %v1141_v11, %v16646_v46  ;;  %1706 = vmatprep.mubr.f32.mxu1 %v1607_v25  ;;  %1781 = vmatprep.mubr.f32.mxu0 %v1609_v21  ;;  %v218_v33 = vld [vmem:[%s19514_s6 + $0x3a8] sm:$0xff]  ;;  %v169_v11 = vld [vmem:[%s19514_s6 + $0x220] sm:$0xff]  ;;  %v16733_v45 = vpack.c.bf16 %v168_v29, %v167_v35 }
 0x729   :  { %19995 = vst [vmem:[#allocation85_spill] sm:$0xff] %v16713_v15  ;;  %1707 = vmatmul.mubr.f32.vlgmr.msra.gmra.mrb[22].mxu1 %v1606_v19  ;;  %1782 = vmatmul.mubr.f32.vlgmr.msra.gmra.mrb[22].mxu0 %v1608_v54  ;;  %19997 = vst [vmem:[#allocation87_spill] sm:$0xff] %v16735_v32  ;;  %v170_v19 = vld [vmem:[%s19514_s6 + $0x228] sm:$0xff]  ;;  %v201_v54 = vld [vmem:[%s19514_s6 + $0x320] sm:$0xff]  ;;  %v16745_v35 = vpack.c.bf16 %v186_v27, %v185_v18  ;;  %v16747_v29 = vpack.c.bf16 %v218_v33, %v217_v9 }
 0x72a   :  { %v1623_v21 = vmax.f32 %v1065_v34, 0.0  ;;  %v1625_v25 = vmax.f32 %v1142_v52, 0.0  ;;  %13821 = vmatpush3.bf16.msra.mxu1 %v16678_v58  ;;  %13853 = vmatpush3.bf16.msra.mxu0 %v16680_v44  ;;  %v16729_v39 = vpop.f32.mrb[10].mxu1  ;;  %v16731_v46 = vpop.f32.mrb[10].mxu0  ;;  %19996 = vst [vmem:[#allocation86_spill] sm:$0xff] %v16733_v45  ;;  %v1622_v34 = vmax.f32 %v1063_v55, 0.0 }
 0x72b   :  { %v1624_v52 = vmax.f32 %v1140_v62, 0.0  ;;  %v1212_v58 = vpop.f32.mrb[11].mxu1  ;;  %v1289_v44 = vpop.f32.mrb[11].mxu0  ;;  %13823 = vmatprep.subr.bf16.mxu1 %v16690_v28  ;;  %13855 = vmatprep.subr.bf16.mxu0 %v16692_v4  ;;  %19998 = vst [vmem:[#allocation88_spill] sm:$0xff] %v16745_v35  ;;  %19999 = vst [vmem:[#allocation89_spill] sm:$0xff] %v16747_v29  ;;  %v188_v18 = vld [vmem:[%s19514_s6 + $0x2b8] sm:$0xff]  ;;  %v16774_v4 = vpack.c.bf16 %v202_v41, %v201_v54 }
 0x72c   :  { %v1213_v55 = vadd.f32 %v1212_v58, %v16685_v38  ;;  %v1290_v62 = vadd.f32 %v1289_v44, %v16713_v15  ;;  %1711 = vmatprep.mubr.f32.mxu1 %v1623_v21  ;;  %1786 = vmatprep.mubr.f32.mxu0 %v1625_v25  ;;  %v219_v27 = vld [vmem:[%s19514_s6 + $0x3b0] sm:$0xff]  ;;  %v220_v9 = vld [vmem:[%s19514_s6 + $0x3b8] sm:$0xff]  ;;  %v16772_v25 = vpack.c.bf16 %v170_v19, %v169_v11 }
 0x72d   :  { %1712 = vmatmul.mubr.f32.gmra.mrb[24].mxu1 %v1622_v34  ;;  %1787 = vmatmul.mubr.f32.gmra.mrb[24].mxu0 %v1624_v52  ;;  %20001 = vst [vmem:[#allocation91_spill] sm:$0xff] %v16774_v4  ;;  %v171_v28 = vld [vmem:[%s19514_s6 + $0x230] sm:$0xff]  ;;  %v172_v34 = vld [vmem:[%s19514_s6 + $0x238] sm:$0xff]  ;;  %v16788_v11 = vpack.c.bf16 %v188_v18, %v187_v10  ;;  %v16790_v19 = vpack.c.bf16 %v220_v9, %v219_v27  ;;  %v190_v10 = vld [vmem:[%s19514_s6 + $0x2c8] sm:$0xff] }
 0x72e   :  { %v1611_v33 = vmax.f32 %v1213_v55, 0.0  ;;  %v1613_v58 = vmax.f32 %v1290_v62, 0.0  ;;  %13825 = vmatpush3.bf16.msra.mxu1 %v16733_v45  ;;  %13857 = vmatpush3.bf16.msra.mxu0 %v16735_v32  ;;  %v16768_v44 = vpop.f32.mrb[12].mxu1  ;;  %v16770_v21 = vpop.f32.mrb[12].mxu0  ;;  %20000 = vst [vmem:[#allocation90_spill] sm:$0xff] %v16772_v25  ;;  %v203_v54 = vld [vmem:[%s19514_s6 + $0x330] sm:$0xff] }
 0x72f   :  { %v16782_v52 = vpop.f32.mrb[13].mxu1  ;;  %v16784_v55 = vpop.f32.mrb[13].mxu0  ;;  %13827 = vmatprep.subr.bf16.mxu1 %v16745_v35  ;;  %13859 = vmatprep.subr.bf16.mxu0 %v16747_v29  ;;  %20002 = vst [vmem:[#allocation92_spill] sm:$0xff] %v16788_v11  ;;  %20003 = vst [vmem:[#allocation93_spill] sm:$0xff] %v16790_v19  ;;  %v204_v41 = vld [vmem:[%s19514_s6 + $0x338] sm:$0xff]  ;;  %v189_v62 = vld [vmem:[%s19514_s6 + $0x2c0] sm:$0xff] }
 0x730   :  { %1856 = vmatprep.mubr.f32.mxu1 %v1611_v33  ;;  %1931 = vmatprep.mubr.f32.mxu0 %v1613_v58  ;;  %v221_v18 = vld [vmem:[%s19514_s6 + $0x3c0] sm:$0xff]  ;;  %v222_v27 = vld [vmem:[%s19514_s6 + $0x3c8] sm:$0xff]  ;;  %v16816_v58 = vpack.c.bf16 %v172_v34, %v171_v28  ;;  %v16818_v29 = vpack.c.bf16 %v204_v41, %v203_v54  ;;  %v16832_v28 = vpack.c.bf16 %v190_v10, %v189_v62  ;;  %v223_v62 = vld [vmem:[%s19514_s6 + $0x3d0] sm:$0xff] }
 0x731   :  { %v173_v35 = vld [vmem:[%s19514_s6 + $0x240] sm:$0xff]  ;;  %v174_v32 = vld [vmem:[%s19514_s6 + $0x248] sm:$0xff]  ;;  %v16834_v34 = vpack.c.bf16 %v222_v27, %v221_v18  ;;  %v224_v10 = vld [vmem:[%s19514_s6 + $0x3d8] sm:$0xff] }
 0x732   :  { %13829 = vmatpush3.bf16.msra.mxu1 %v16772_v25  ;;  %13861 = vmatpush3.bf16.msra.mxu0 %v16774_v4  ;;  %v16812_v9 = vpop.f32.mrb[14].mxu1  ;;  %v16814_v33 = vpop.f32.mrb[14].mxu0  ;;  %20004 = vst [vmem:[#allocation94_spill] sm:$0xff] %v16816_v58  ;;  %20005 = vst [vmem:[#allocation95_spill] sm:$0xff] %v16818_v29  ;;  %v205_v54 = vld [vmem:[%s19514_s6 + $0x340] sm:$0xff]  ;;  %v206_v41 = vld [vmem:[%s19514_s6 + $0x348] sm:$0xff] }
 0x733   :  { %v16826_v45 = vpop.f32.mrb[15].mxu1  ;;  %v16828_v25 = vpop.f32.mrb[15].mxu0  ;;  %13831 = vmatprep.subr.bf16.mxu1 %v16788_v11  ;;  %13863 = vmatprep.subr.bf16.mxu0 %v16790_v19  ;;  %20006 = vst [vmem:[#allocation96_spill] sm:$0xff] %v16832_v28  ;;  %20007 = vst [vmem:[#allocation97_spill] sm:$0xff] %v16834_v34  ;;  %v191_v4 = vld [vmem:[%s19514_s6 + $0x2d0] sm:$0xff]  ;;  %v192_v19 = vld [vmem:[%s19514_s6 + $0x2d8] sm:$0xff]  ;;  %v16860_v11 = vpack.c.bf16 %v174_v32, %v173_v35  ;;  %v16862_v40 = vpack.c.bf16 %v206_v41, %v205_v54 }
 0x734   :  { %v16876_v32 = vpack.c.bf16 %v192_v19, %v191_v4  ;;  %v16878_v35 = vpack.c.bf16 %v224_v10, %v223_v62  ;;  %v207_v54 = vld [vmem:[%s19514_s6 + $0x350] sm:$0xff]  ;;  %v208_v41 = vld [vmem:[%s19514_s6 + $0x358] sm:$0xff]  ;;  %v225_v4 = vld [vmem:[%s19514_s6 + $0x3e0] sm:$0xff] }
 0x735   :  { %20008 = vst [vmem:[#allocation98_spill] sm:$0xff] %v16860_v11  ;;  %20009 = vst [vmem:[#allocation99_spill] sm:$0xff] %v16862_v40  ;;  %v226_v19 = vld [vmem:[%s19514_s6 + $0x3e8] sm:$0xff]  ;;  %v16907_v43 = vpack.c.bf16 %v208_v41, %v207_v54  ;;  %v209_v54 = vld [vmem:[%s19514_s6 + $0x360] sm:$0xff] }
 0x736   :  { %13833 = vmatpush3.bf16.msra.mxu1 %v16816_v58  ;;  %13865 = vmatpush3.bf16.msra.mxu0 %v16818_v29  ;;  %v16856_v18 = vpop.f32.mrb[16].mxu1  ;;  %v16858_v27 = vpop.f32.mrb[16].mxu0  ;;  %20010 = vst [vmem:[#allocation100_spill] sm:$0xff] %v16876_v32  ;;  %20011 = vst [vmem:[#allocation101_spill] sm:$0xff] %v16878_v35  ;;  %v193_v29 = vld [vmem:[%s19514_s6 + $0x2e0] sm:$0xff]  ;;  %v178_v62 = vld [vmem:[%s19514_s6 + $0x268] sm:$0xff]  ;;  %v16924_v60 = vpack.c.bf16 %v226_v19, %v225_v4 }
 0x737   :  { %v16870_v53 = vpop.f32.mrb[17].mxu1  ;;  %v16872_v58 = vpop.f32.mrb[17].mxu0  ;;  %13835 = vmatprep.subr.bf16.mxu1 %v16832_v28  ;;  %13867 = vmatprep.subr.bf16.mxu0 %v16834_v34  ;;  %v194_v34 = vld [vmem:[%s19514_s6 + $0x2e8] sm:$0xff]  ;;  %20013 = vst [vmem:[#allocation103_spill] sm:$0xff] %v16907_v43  ;;  %v20016_v4 = vsub.s32 4, %v16617_v49  ;;  %v16955_v31 = vpack.c.bf16 %v178_v62, %v177_v42 }
 0x738   :  { %v16922_v59 = vpack.c.bf16 %v194_v34, %v193_v29  ;;  %20015 = vst [vmem:[#allocation105_spill] sm:$0xff] %v16924_v60  ;;  %v210_v41 = vld [vmem:[%s19514_s6 + $0x368] sm:$0xff]  ;;  %v227_v29 = vld [vmem:[%s19514_s6 + $0x3f0] sm:$0xff]  ;;  %v228_v34 = vld [vmem:[%s19514_s6 + $0x3f8] sm:$0xff] }
 0x739   :  { %v16947_v19 = vrot.slane %v16624_v8, %v20016_v4  ;;  %20017 = vst [vmem:[#allocation106_spill] sm:$0xff] %v16955_v31  ;;  %v16957_v30 = vpack.c.bf16 %v210_v41, %v209_v54  ;;  %v180_v4 = vld [vmem:[%s19514_s6 + $0x278] sm:$0xff]  ;;  %v16981_v41 = vpack.c.bf16 %v228_v34, %v227_v29  ;;  %v229_v29 = vld [vmem:[%s19514_s6 + $0x400] sm:$0xff]  ;;  %v230_v34 = vld [vmem:[%s19514_s6 + $0x408] sm:$0xff] }
 0x73a   :  { %13837 = vmatpush3.bf16.msra.mxu1 %v16860_v11  ;;  %13869 = vmatpush3.bf16.msra.mxu0 %v16862_v40  ;;  %v16901_v10 = vpop.f32.mrb[18].mxu1  ;;  %v16903_v28 = vpop.f32.mrb[18].mxu0  ;;  %20014 = vst [vmem:[#allocation104_spill] sm:$0xff] %v16922_v59  ;;  %v195_v11 = vld [vmem:[%s19514_s6 + $0x2f0] sm:$0xff] }
 0x73b   :  { %v16916_v37 = vpop.f32.mrb[19].mxu1  ;;  %v16918_v40 = vpop.f32.mrb[19].mxu0  ;;  %13839 = vmatprep.subr.bf16.mxu1 %v16876_v32  ;;  %13871 = vmatprep.subr.bf16.mxu0 %v16878_v35  ;;  %v196_v35 = vld [vmem:[%s19514_s6 + $0x2f8] sm:$0xff]  ;;  %20018 = vst [vmem:[#allocation107_spill] sm:$0xff] %v16957_v30  ;;  %20021 = vst [vmem:[#allocation109_spill] sm:$0xff] %v16981_v41  ;;  %v1217_v56 = vadd.f32 %v16768_v44, %v16947_v19 }
 0x73c   :  { %v16979_v54 = vpack.c.bf16 %v196_v35, %v195_v11  ;;  %v278_v11 = vld [vmem:[%s19514_s6 + $0x588] sm:$0xff] }
 0x73d   :  { %v17001_v35 = vld [vmem:[%s19513_s5 + $0x8] sm:$0xff] }
 0x73e   :  { %13841 = vmatpush3.bf16.msra.mxu1 %v16905_v51  ;;  %13873 = vmatpush3.bf16.msra.mxu0 %v16907_v43  ;;  %v16951_v32 = vpop.f32.mrb[20].mxu1  ;;  %v16953_v36 = vpop.f32.mrb[20].mxu0  ;;  %v211_v43 = vld [vmem:[%s19514_s6 + $0x370] sm:$0xff]  ;;  %v20019_v51 = vsub.s32 6, %v16617_v49  ;;  %20020 = vst [vmem:[#allocation108_spill] sm:$0xff] %v16979_v54 }
 0x73f   :  { %v16973_v42 = vpop.f32.mrb[21].mxu1  ;;  %v16975_v62 = vpop.f32.mrb[21].mxu0  ;;  %13843 = vmatprep.subr.bf16.mxu1 %v16922_v59  ;;  %13875 = vmatprep.subr.bf16.mxu0 %v16924_v60  ;;  %v277_v60 = vld [vmem:[%s19514_s6 + $0x580] sm:$0xff]  ;;  %v17011_v59 = vpack.c.bf16 %v180_v4, %v179_v23  ;;  %v17013_v13 = vpack.c.bf16 %v212_v14, %v211_v43  ;;  %v1211_v23 = vadd.f32 %v16729_v39, %v16947_v19  ;;  %v248_v4 = vld [vmem:[%s19514_s6 + $0x498] sm:$0xff] }
 0x740   :  { %v16971_v22 = vrot.slane %v16624_v8, %v20019_v51  ;;  %v245_v51 = vld [vmem:[%s19514_s6 + $0x480] sm:$0xff]  ;;  %v246_v8 = vld [vmem:[%s19514_s6 + $0x488] sm:$0xff]  ;;  %v17032_v43 = vpack.c.bf16 %v278_v11, %v277_v60  ;;  %v280_v39 = vld [vmem:[%s19514_s6 + $0x598] sm:$0xff]  ;;  %v20025_v60 = vsub.s32 1, %v16617_v49 }
 0x741   :  { %20022 = vst [vmem:[#allocation110_spill] sm:$0xff] %v17011_v59  ;;  %20023 = vst [vmem:[#allocation111_spill] sm:$0xff] %v17013_v13  ;;  %v17015_v0 = vpack.c.bf16 %v246_v8, %v245_v51  ;;  %v279_v51 = vld [vmem:[%s19514_s6 + $0x590] sm:$0xff]  ;;  %v1296_v8 = vadd.f32 %v16784_v55, %v16713_v15  ;;  %v1610_v15 = vmax.f32 %v1211_v23, 0.0  ;;  %v264_v23 = vld [vmem:[%s19514_s6 + $0x518] sm:$0xff] }
 0x742   :  { %13845 = vmatpush3.bf16.msra.mxu1 %v16955_v31  ;;  %13877 = vmatpush3.bf16.msra.mxu0 %v16957_v30  ;;  %v247_v31 = vld [vmem:[%s19514_s6 + $0x490] sm:$0xff]  ;;  %v1288_v14 = vadd.f32 %v16731_v46, %v16971_v22  ;;  %v1219_v46 = vadd.f32 %v16782_v52, %v16685_v38  ;;  %v17050_v11 = vrot.slane %v17001_v35, %v20025_v60 }
 0x743   :  { %20024 = vst [vmem:[#allocation112_spill] sm:$0xff] %v17015_v0  ;;  %13847 = vmatprep.subr.bf16.mxu1 %v16979_v54  ;;  %13879 = vmatprep.subr.bf16.mxu0 %v16981_v41  ;;  %v20026_v41 = vsub.s32 3, %v16617_v49  ;;  %v17057_v30 = vpack.c.bf16 %v230_v34, %v229_v29  ;;  %v17061_v52 = vpack.c.bf16 %v262_v57, %v261_v63  ;;  %v231_v57 = vld [vmem:[%s19514_s6 + $0x410] sm:$0xff]  ;;  %v232_v63 = vld [vmem:[%s19514_s6 + $0x418] sm:$0xff]  ;;  %v1629_v29 = vmax.f32 %v1296_v8, 0.0  ;;  %v233_v8 = vld [vmem:[%s19514_s6 + $0x420] sm:$0xff] }
 0x744   :  { %v17063_v38 = vpack.c.bf16 %v248_v4, %v247_v31  ;;  %v17065_v55 = vpack.c.bf16 %v280_v39, %v279_v51  ;;  %v1612_v60 = vmax.f32 %v1288_v14, 0.0  ;;  %v1627_v31 = vmax.f32 %v1219_v46, 0.0  ;;  %v263_v34 = vld [vmem:[%s19514_s6 + $0x510] sm:$0xff]  ;;  %v249_v14 = vld [vmem:[%s19514_s6 + $0x4a0] sm:$0xff]  ;;  %v282_v4 = vld [vmem:[%s19514_s6 + $0x5a8] sm:$0xff] }
 0x745   :  { %v17055_v54 = vrot.slane %v17001_v35, %v20026_v41  ;;  %20027 = vst [vmem:[#allocation113_spill] sm:$0xff] %v17057_v30  ;;  %20028 = vst [vmem:[#allocation114_spill] sm:$0xff] %v17061_v52  ;;  %v1294_v41 = vadd.f32 %v16770_v21, %v16971_v22  ;;  %v1367_v44 = vadd.f32 %v16826_v45, %v17050_v11  ;;  %v250_v45 = vld [vmem:[%s19514_s6 + $0x4a8] sm:$0xff]  ;;  %v1626_v51 = vmax.f32 %v1217_v56, 0.0 }
 0x746   :  { %13849 = vmatpush3.bf16.msra.mxu1 %v17011_v59  ;;  %13881 = vmatpush3.bf16.msra.mxu0 %v17013_v13  ;;  %20029 = vst [vmem:[#allocation115_spill] sm:$0xff] %v17063_v38  ;;  %20030 = vst [vmem:[#allocation116_spill] sm:$0xff] %v17065_v55  ;;  %v17105_v46 = vpack.c.bf16 %v264_v23, %v263_v34  ;;  %v17115_v56 = vpack.c.bf16 %v250_v45, %v249_v14  ;;  %v283_v34 = vld [vmem:[%s19514_s6 + $0x5b0] sm:$0xff]  ;;  %v284_v23 = vld [vmem:[%s19514_s6 + $0x5b8] sm:$0xff] }
 0x747   :  { %13883 = vmatprep.subr.bf16.mxu1 %v17015_v0  ;;  %13915 = vmatprep.subr.bf16.mxu0 %v17032_v43  ;;  %v1444_v21 = vadd.f32 %v16828_v25, %v17055_v54  ;;  %v281_v25 = vld [vmem:[%s19514_s6 + $0x5a0] sm:$0xff]  ;;  %v1628_v39 = vmax.f32 %v1294_v41, 0.0 }
 0x748   :  { %20032 = vst [vmem:[#allocation118_spill] sm:$0xff] %v17105_v46  ;;  %20033 = vst [vmem:[#allocation119_spill] sm:$0xff] %v17115_v56  ;;  %v17117_v41 = vpack.c.bf16 %v282_v4, %v281_v25  ;;  %v235_v25 = vld [vmem:[%s19514_s6 + $0x430] sm:$0xff]  ;;  %v236_v4 = vld [vmem:[%s19514_s6 + $0x438] sm:$0xff] }
 0x749   :  { %1857 = vmatmul.mubr.f32.vlgmr.msra.gmra.mrb[26].mxu1 %v1610_v15  ;;  %1932 = vmatmul.mubr.f32.vlgmr.msra.gmra.mrb[26].mxu0 %v1612_v60  ;;  %v17103_v15 = vpack.c.bf16 %v232_v63, %v231_v57  ;;  %v234_v60 = vld [vmem:[%s19514_s6 + $0x428] sm:$0xff]  ;;  %v265_v57 = vld [vmem:[%s19514_s6 + $0x520] sm:$0xff] }
 0x74a   :  { %1861 = vmatprep.mubr.f32.mxu1 %v1627_v31  ;;  %1936 = vmatprep.mubr.f32.mxu0 %v1629_v29  ;;  %v1615_v31 = vmax.f32 %v1367_v44, 0.0  ;;  %v1617_v29 = vmax.f32 %v1444_v21, 0.0  ;;  %20034 = vst [vmem:[#allocation120_spill] sm:$0xff] %v17117_v41  ;;  %v266_v63 = vld [vmem:[%s19514_s6 + $0x528] sm:$0xff]  ;;  %v251_v44 = vld [vmem:[%s19514_s6 + $0x4b0] sm:$0xff]  ;;  %v252_v21 = vld [vmem:[%s19514_s6 + $0x4b8] sm:$0xff]  ;;  %v17139_v14 = vpack.c.bf16 %v234_v60, %v233_v8 }
 0x74b   :  { %13885 = vmatpush3.bf16.msra.mxu1 %v17057_v30  ;;  %13917 = vmatpush3.bf16.msra.mxu0 %v17061_v52  ;;  %20031 = vst [vmem:[#allocation117_spill] sm:$0xff] %v17103_v15  ;;  %v17141_v45 = vpack.c.bf16 %v266_v63, %v265_v57  ;;  %v267_v8 = vld [vmem:[%s19514_s6 + $0x530] sm:$0xff]  ;;  %v268_v60 = vld [vmem:[%s19514_s6 + $0x538] sm:$0xff]  ;;  %v285_v57 = vld [vmem:[%s19514_s6 + $0x5c0] sm:$0xff] }
 0x74c   :  { %13887 = vmatprep.subr.bf16.mxu1 %v17063_v38  ;;  %13919 = vmatprep.subr.bf16.mxu0 %v17065_v55  ;;  %20035 = vst [vmem:[#allocation121_spill] sm:$0xff] %v17139_v14  ;;  %v286_v63 = vld [vmem:[%s19514_s6 + $0x5c8] sm:$0xff] }
 0x74d   :  { %1862 = vmatmul.mubr.f32.gmra.mrb[28].mxu1 %v1626_v51  ;;  %1937 = vmatmul.mubr.f32.gmra.mrb[28].mxu0 %v1628_v39  ;;  %20036 = vst [vmem:[#allocation122_spill] sm:$0xff] %v17141_v45  ;;  %v17151_v51 = vpack.c.bf16 %v252_v21, %v251_v44  ;;  %v17153_v39 = vpack.c.bf16 %v284_v23, %v283_v34  ;;  %v237_v34 = vld [vmem:[%s19514_s6 + $0x440] sm:$0xff]  ;;  %v238_v23 = vld [vmem:[%s19514_s6 + $0x448] sm:$0xff] }
 0x74e   :  { %2006 = vmatprep.mubr.f32.mxu1 %v1615_v31  ;;  %2081 = vmatprep.mubr.f32.mxu0 %v1617_v29  ;;  %v253_v31 = vld [vmem:[%s19514_s6 + $0x4c0] sm:$0xff]  ;;  %v254_v29 = vld [vmem:[%s19514_s6 + $0x4c8] sm:$0xff]  ;;  %v17175_v44 = vpack.c.bf16 %v236_v4, %v235_v25  ;;  %v17177_v21 = vpack.c.bf16 %v268_v60, %v267_v8  ;;  %v255_v8 = vld [vmem:[%s19514_s6 + $0x4d0] sm:$0xff] }
 0x74f   :  { %13889 = vmatpush3.bf16.msra.mxu1 %v17103_v15  ;;  %13921 = vmatpush3.bf16.msra.mxu0 %v17105_v46  ;;  %20037 = vst [vmem:[#allocation123_spill] sm:$0xff] %v17151_v51  ;;  %20038 = vst [vmem:[#allocation124_spill] sm:$0xff] %v17153_v39  ;;  %v269_v25 = vld [vmem:[%s19514_s6 + $0x540] sm:$0xff]  ;;  %v270_v4 = vld [vmem:[%s19514_s6 + $0x548] sm:$0xff] }
 0x750   :  { %13891 = vmatprep.subr.bf16.mxu1 %v17115_v56  ;;  %13923 = vmatprep.subr.bf16.mxu0 %v17117_v41  ;;  %20039 = vst [vmem:[#allocation125_spill] sm:$0xff] %v17175_v44  ;;  %20040 = vst [vmem:[#allocation126_spill] sm:$0xff] %v17177_v21  ;;  %v17187_v41 = vpack.c.bf16 %v254_v29, %v253_v31  ;;  %v256_v60 = vld [vmem:[%s19514_s6 + $0x4d8] sm:$0xff]  ;;  %v287_v31 = vld [vmem:[%s19514_s6 + $0x5d0] sm:$0xff] }
 0x751   :  { %v288_v29 = vld [vmem:[%s19514_s6 + $0x5d8] sm:$0xff]  ;;  %v325_v15 = vld [vmem:[%s19514_s6 + $0x700] sm:$0xff]  ;;  %v326_v55 = vld [vmem:[%s19514_s6 + $0x708] sm:$0xff] }
 0x752   :  { %20041 = vst [vmem:[#allocation127_spill] sm:$0xff] %v17187_v41  ;;  %v244_v56 = vld [vmem:[%s19514_s6 + $0x478] sm:$0xff] }
 0x753   :  { %13893 = vmatpush3.bf16.msra.mxu1 %v17139_v14  ;;  %13925 = vmatpush3.bf16.msra.mxu0 %v17141_v45  ;;  %v17189_v14 = vpack.c.bf16 %v286_v63, %v285_v57  ;;  %v17211_v57 = vpack.c.bf16 %v238_v23, %v237_v34  ;;  %v17213_v63 = vpack.c.bf16 %v270_v4, %v269_v25  ;;  %v271_v34 = vld [vmem:[%s19514_s6 + $0x550] sm:$0xff]  ;;  %v272_v23 = vld [vmem:[%s19514_s6 + $0x558] sm:$0xff]  ;;  %v257_v25 = vld [vmem:[%s19514_s6 + $0x4e0] sm:$0xff] }
 0x754   :  { %13895 = vmatprep.subr.bf16.mxu1 %v17151_v51  ;;  %13927 = vmatprep.subr.bf16.mxu0 %v17153_v39  ;;  %v239_v39 = vld [vmem:[%s19514_s6 + $0x450] sm:$0xff]  ;;  %v240_v51 = vld [vmem:[%s19514_s6 + $0x458] sm:$0xff]  ;;  %v17223_v45 = vpack.c.bf16 %v256_v60, %v255_v8  ;;  %v258_v4 = vld [vmem:[%s19514_s6 + $0x4e8] sm:$0xff] }
 0x755   :  { %20042 = vst [vmem:[#allocation128_spill] sm:$0xff] %v17189_v14  ;;  %20043 = vst [vmem:[#allocation129_spill] sm:$0xff] %v17211_v57  ;;  %v289_v8 = vld [vmem:[%s19514_s6 + $0x5e0] sm:$0xff]  ;;  %v290_v60 = vld [vmem:[%s19514_s6 + $0x5e8] sm:$0xff] }
 0x756   :  { %20044 = vst [vmem:[#allocation130_spill] sm:$0xff] %v17213_v63  ;;  %20045 = vst [vmem:[#allocation131_spill] sm:$0xff] %v17223_v45 }
 0x757   :  { %13897 = vmatpush3.bf16.msra.mxu1 %v17175_v44  ;;  %13929 = vmatpush3.bf16.msra.mxu0 %v17177_v21  ;;  %v17225_v44 = vpack.c.bf16 %v288_v29, %v287_v31  ;;  %v17247_v31 = vpack.c.bf16 %v240_v51, %v239_v39  ;;  %v17249_v29 = vpack.c.bf16 %v272_v23, %v271_v34  ;;  %v273_v51 = vld [vmem:[%s19514_s6 + $0x560] sm:$0xff]  ;;  %v274_v39 = vld [vmem:[%s19514_s6 + $0x568] sm:$0xff]  ;;  %v259_v34 = vld [vmem:[%s19514_s6 + $0x4f0] sm:$0xff] }
 0x758   :  { %13899 = vmatprep.subr.bf16.mxu1 %v17187_v41  ;;  %13931 = vmatprep.subr.bf16.mxu0 %v17189_v14  ;;  %v241_v14 = vld [vmem:[%s19514_s6 + $0x460] sm:$0xff]  ;;  %v242_v41 = vld [vmem:[%s19514_s6 + $0x468] sm:$0xff]  ;;  %v17259_v21 = vpack.c.bf16 %v258_v4, %v257_v25  ;;  %v260_v23 = vld [vmem:[%s19514_s6 + $0x4f8] sm:$0xff] }
 0x759   :  { %20046 = vst [vmem:[#allocation132_spill] sm:$0xff] %v17225_v44  ;;  %20047 = vst [vmem:[#allocation133_spill] sm:$0xff] %v17247_v31  ;;  %v291_v25 = vld [vmem:[%s19514_s6 + $0x5f0] sm:$0xff]  ;;  %v292_v4 = vld [vmem:[%s19514_s6 + $0x5f8] sm:$0xff] }
 0x75a   :  { %20048 = vst [vmem:[#allocation134_spill] sm:$0xff] %v17249_v29  ;;  %20049 = vst [vmem:[#allocation135_spill] sm:$0xff] %v17259_v21 }
 0x75b   :  { %13901 = vmatpush3.bf16.msra.mxu1 %v17211_v57  ;;  %13933 = vmatpush3.bf16.msra.mxu0 %v17213_v63  ;;  %v17261_v57 = vpack.c.bf16 %v290_v60, %v289_v8  ;;  %v20051_v8 = vsub.s32 0, %v16617_v49  ;;  %v243_v63 = vld [vmem:[%s19514_s6 + $0x470] sm:$0xff] }
 0x75c   :  { %13903 = vmatprep.subr.bf16.mxu1 %v17223_v45  ;;  %13935 = vmatprep.subr.bf16.mxu0 %v17225_v44  ;;  %v17288_v44 = vpack.c.bf16 %v242_v41, %v241_v14  ;;  %v17290_v45 = vpack.c.bf16 %v274_v39, %v273_v51  ;;  %v17308_v41 = vpack.c.bf16 %v260_v23, %v259_v34  ;;  %v276_v51 = vld [vmem:[%s19514_s6 + $0x578] sm:$0xff]  ;;  %v309_v39 = vld [vmem:[%s19514_s6 + $0x680] sm:$0xff]  ;;  %v342_v34 = vld [vmem:[%s19514_s6 + $0x788] sm:$0xff] }
 0x75d   :  { %20050 = vst [vmem:[#allocation136_spill] sm:$0xff] %v17261_v57  ;;  %v17284_v60 = vrot.slane %v17001_v35, %v20051_v8  ;;  %v275_v8 = vld [vmem:[%s19514_s6 + $0x570] sm:$0xff]  ;;  %v17310_v14 = vpack.c.bf16 %v292_v4, %v291_v25  ;;  %v293_v23 = vld [vmem:[%s19514_s6 + $0x600] sm:$0xff]  ;;  %v294_v25 = vld [vmem:[%s19514_s6 + $0x608] sm:$0xff]  ;;  %v17335_v4 = vpack.c.bf16 %v244_v56, %v243_v63 }
 0x75e   :  { %20053 = vst [vmem:[#allocation138_spill] sm:$0xff] %v17288_v44  ;;  %20054 = vst [vmem:[#allocation139_spill] sm:$0xff] %v17290_v45 }
 0x75f   :  { %20052 = vst [vmem:[#allocation137_spill] sm:$0xff] %v17284_v60  ;;  %13905 = vmatpush3.bf16.msra.mxu1 %v17247_v31  ;;  %13937 = vmatpush3.bf16.msra.mxu0 %v17249_v29  ;;  %v20055_v31 = vsub.s32 2, %v16617_v49  ;;  %20057 = vst [vmem:[#allocation141_spill] sm:$0xff] %v17308_v41  ;;  %v1365_v56 = vadd.f32 %v16812_v9, %v17284_v60  ;;  %v344_v9 = vld [vmem:[%s19514_s6 + $0x798] sm:$0xff]  ;;  %v1371_v30 = vadd.f32 %v16856_v18, %v17284_v60 }
 0x760   :  { %13907 = vmatprep.subr.bf16.mxu1 %v17259_v21  ;;  %13939 = vmatprep.subr.bf16.mxu0 %v17261_v57  ;;  %20058 = vst [vmem:[#allocation142_spill] sm:$0xff] %v17310_v14  ;;  %v341_v57 = vld [vmem:[%s19514_s6 + $0x780] sm:$0xff]  ;;  %20059 = vst [vmem:[#allocation143_spill] sm:$0xff] %v17335_v4  ;;  %v17337_v21 = vpack.c.bf16 %v276_v51, %v275_v8  ;;  %v312_v51 = vld [vmem:[%s19514_s6 + $0x698] sm:$0xff] }
 0x761   :  { %v17304_v29 = vrot.slane %v17001_v35, %v20055_v31  ;;  %v310_v31 = vld [vmem:[%s19514_s6 + $0x688] sm:$0xff]  ;;  %v17356_v8 = vpack.c.bf16 %v342_v34, %v341_v57  ;;  %v20063_v57 = vsub.s32 5, %v16617_v49  ;;  %v1614_v52 = vmax.f32 %v1365_v56, 0.0  ;;  %v328_v56 = vld [vmem:[%s19514_s6 + $0x718] sm:$0xff] }
 0x762   :  { %20060 = vst [vmem:[#allocation144_spill] sm:$0xff] %v17337_v21  ;;  %v17339_v46 = vpack.c.bf16 %v310_v31, %v309_v39  ;;  %v343_v39 = vld [vmem:[%s19514_s6 + $0x790] sm:$0xff]  ;;  %v1450_v31 = vadd.f32 %v16872_v58, %v17055_v54 }
 0x763   :  { %20056 = vst [vmem:[#allocation140_spill] sm:$0xff] %v17304_v29  ;;  %13909 = vmatpush3.bf16.msra.mxu1 %v17288_v44  ;;  %13941 = vmatpush3.bf16.msra.mxu0 %v17290_v45  ;;  %v311_v44 = vld [vmem:[%s19514_s6 + $0x690] sm:$0xff]  ;;  %v1442_v63 = vadd.f32 %v16814_v33, %v17304_v29  ;;  %20062 = vst [vmem:[#allocation146_spill] sm:$0xff] %v17356_v8  ;;  %v1373_v33 = vadd.f32 %v16870_v53, %v17050_v11 }
 0x764   :  { %20061 = vst [vmem:[#allocation145_spill] sm:$0xff] %v17339_v46  ;;  %13911 = vmatprep.subr.bf16.mxu1 %v17308_v41  ;;  %13943 = vmatprep.subr.bf16.mxu0 %v17310_v14  ;;  %v17374_v34 = vrot.slane %v17001_v35, %v20063_v57  ;;  %v20065_v14 = vsub.s32 7, %v16617_v49  ;;  %v17381_v45 = vpack.c.bf16 %v294_v25, %v293_v23  ;;  %v1633_v23 = vmax.f32 %v1450_v31, 0.0  ;;  %v327_v25 = vld [vmem:[%s19514_s6 + $0x710] sm:$0xff]  ;;  %v297_v31 = vld [vmem:[%s19514_s6 + $0x620] sm:$0xff] }
 0x765   :  { %v17385_v53 = vpack.c.bf16 %v326_v55, %v325_v15  ;;  %v17387_v38 = vpack.c.bf16 %v312_v51, %v311_v44  ;;  %v17389_v58 = vpack.c.bf16 %v344_v9, %v343_v39  ;;  %v1616_v57 = vmax.f32 %v1442_v63, 0.0  ;;  %v295_v55 = vld [vmem:[%s19514_s6 + $0x610] sm:$0xff]  ;;  %v296_v15 = vld [vmem:[%s19514_s6 + $0x618] sm:$0xff]  ;;  %v313_v63 = vld [vmem:[%s19514_s6 + $0x6a0] sm:$0xff] }
 0x766   :  { %20064 = vst [vmem:[#allocation147_spill] sm:$0xff] %v17374_v34  ;;  %v17379_v41 = vrot.slane %v17001_v35, %v20065_v14  ;;  %20067 = vst [vmem:[#allocation149_spill] sm:$0xff] %v17381_v45  ;;  %v1448_v14 = vadd.f32 %v16858_v27, %v17304_v29  ;;  %v1631_v44 = vmax.f32 %v1373_v33, 0.0  ;;  %v1521_v18 = vadd.f32 %v16916_v37, %v17374_v34  ;;  %v314_v37 = vld [vmem:[%s19514_s6 + $0x6a8] sm:$0xff] }
 0x767   :  { %13913 = vmatpush3.bf16.msra.mxu1 %v17335_v4  ;;  %13945 = vmatpush3.bf16.msra.mxu0 %v17337_v21  ;;  %20068 = vst [vmem:[#allocation150_spill] sm:$0xff] %v17385_v53  ;;  %20069 = vst [vmem:[#allocation151_spill] sm:$0xff] %v17387_v38  ;;  %v346_v51 = vld [vmem:[%s19514_s6 + $0x7a8] sm:$0xff]  ;;  %v1630_v39 = vmax.f32 %v1371_v30, 0.0  ;;  %v17429_v33 = vpack.c.bf16 %v328_v56, %v327_v25  ;;  %v17439_v30 = vpack.c.bf16 %v314_v37, %v313_v63  ;;  %v347_v25 = vld [vmem:[%s19514_s6 + $0x7b0] sm:$0xff] }
 0x768   :  { %20066 = vst [vmem:[#allocation148_spill] sm:$0xff] %v17379_v41  ;;  %20070 = vst [vmem:[#allocation152_spill] sm:$0xff] %v17389_v58  ;;  %13947 = vmatprep.subr.bf16.mxu1 %v17339_v46  ;;  %13979 = vmatprep.subr.bf16.mxu0 %v17356_v8  ;;  %v1598_v27 = vadd.f32 %v16918_v40, %v17379_v41  ;;  %v345_v40 = vld [vmem:[%s19514_s6 + $0x7a0] sm:$0xff]  ;;  %v1632_v9 = vmax.f32 %v1448_v14, 0.0  ;;  %v348_v56 = vld [vmem:[%s19514_s6 + $0x7b8] sm:$0xff] }
 0x769   :  { %20072 = vst [vmem:[#allocation154_spill] sm:$0xff] %v17429_v33  ;;  %20073 = vst [vmem:[#allocation155_spill] sm:$0xff] %v17439_v30  ;;  %v17441_v14 = vpack.c.bf16 %v346_v51, %v345_v40  ;;  %v299_v40 = vld [vmem:[%s19514_s6 + $0x630] sm:$0xff]  ;;  %v300_v51 = vld [vmem:[%s19514_s6 + $0x638] sm:$0xff] }
 0x76a   :  { %2007 = vmatmul.mubr.f32.vlgmr.msra.gmra.mrb[30].mxu1 %v1614_v52  ;;  %2082 = vmatmul.mubr.f32.vlgmr.msra.gmra.mrb[30].mxu0 %v1616_v57  ;;  %v17427_v52 = vpack.c.bf16 %v296_v15, %v295_v55  ;;  %v298_v57 = vld [vmem:[%s19514_s6 + $0x628] sm:$0xff]  ;;  %v329_v55 = vld [vmem:[%s19514_s6 + $0x720] sm:$0xff] }
 0x76b   :  { %2011 = vmatprep.mubr.f32.mxu1 %v1631_v44  ;;  %2086 = vmatprep.mubr.f32.mxu0 %v1633_v23  ;;  %v1619_v44 = vmax.f32 %v1521_v18, 0.0  ;;  %v1621_v23 = vmax.f32 %v1598_v27, 0.0  ;;  %20074 = vst [vmem:[#allocation156_spill] sm:$0xff] %v17441_v14  ;;  %v330_v15 = vld [vmem:[%s19514_s6 + $0x728] sm:$0xff]  ;;  %v315_v18 = vld [vmem:[%s19514_s6 + $0x6b0] sm:$0xff]  ;;  %v316_v27 = vld [vmem:[%s19514_s6 + $0x6b8] sm:$0xff]  ;;  %v17463_v63 = vpack.c.bf16 %v298_v57, %v297_v31 }
 0x76c   :  { %13949 = vmatpush3.bf16.msra.mxu1 %v17381_v45  ;;  %13981 = vmatpush3.bf16.msra.mxu0 %v17385_v53  ;;  %20071 = vst [vmem:[#allocation153_spill] sm:$0xff] %v17427_v52  ;;  %v17465_v37 = vpack.c.bf16 %v330_v15, %v329_v55  ;;  %v331_v31 = vld [vmem:[%s19514_s6 + $0x730] sm:$0xff]  ;;  %v332_v57 = vld [vmem:[%s19514_s6 + $0x738] sm:$0xff]  ;;  %v349_v55 = vld [vmem:[%s19514_s6 + $0x7c0] sm:$0xff] }
 0x76d   :  { %13951 = vmatprep.subr.bf16.mxu1 %v17387_v38  ;;  %13983 = vmatprep.subr.bf16.mxu0 %v17389_v58  ;;  %20075 = vst [vmem:[#allocation157_spill] sm:$0xff] %v17463_v63  ;;  %v350_v15 = vld [vmem:[%s19514_s6 + $0x7c8] sm:$0xff] }
 0x76e   :  { %2012 = vmatmul.mubr.f32.gmra.mrb[32].mxu1 %v1630_v39  ;;  %2087 = vmatmul.mubr.f32.gmra.mrb[32].mxu0 %v1632_v9  ;;  %20076 = vst [vmem:[#allocation158_spill] sm:$0xff] %v17465_v37  ;;  %v17475_v39 = vpack.c.bf16 %v316_v27, %v315_v18  ;;  %v17477_v9 = vpack.c.bf16 %v348_v56, %v347_v25  ;;  %v301_v25 = vld [vmem:[%s19514_s6 + $0x640] sm:$0xff]  ;;  %v302_v56 = vld [vmem:[%s19514_s6 + $0x648] sm:$0xff] }
 0x76f   :  { %2156 = vmatprep.mubr.f32.mxu1 %v1619_v44  ;;  %2231 = vmatprep.mubr.f32.mxu0 %v1621_v23  ;;  %v317_v44 = vld [vmem:[%s19514_s6 + $0x6c0] sm:$0xff]  ;;  %v318_v23 = vld [vmem:[%s19514_s6 + $0x6c8] sm:$0xff]  ;;  %v17499_v18 = vpack.c.bf16 %v300_v51, %v299_v40  ;;  %v17501_v27 = vpack.c.bf16 %v332_v57, %v331_v31  ;;  %v319_v31 = vld [vmem:[%s19514_s6 + $0x6d0] sm:$0xff] }
 0x770   :  { %13953 = vmatpush3.bf16.msra.mxu1 %v17427_v52  ;;  %13985 = vmatpush3.bf16.msra.mxu0 %v17429_v33  ;;  %20077 = vst [vmem:[#allocation159_spill] sm:$0xff] %v17475_v39  ;;  %20078 = vst [vmem:[#allocation160_spill] sm:$0xff] %v17477_v9  ;;  %v333_v40 = vld [vmem:[%s19514_s6 + $0x740] sm:$0xff]  ;;  %v334_v51 = vld [vmem:[%s19514_s6 + $0x748] sm:$0xff] }
 0x771   :  { %13955 = vmatprep.subr.bf16.mxu1 %v17439_v30  ;;  %13987 = vmatprep.subr.bf16.mxu0 %v17441_v14  ;;  %20079 = vst [vmem:[#allocation161_spill] sm:$0xff] %v17499_v18  ;;  %20080 = vst [vmem:[#allocation162_spill] sm:$0xff] %v17501_v27  ;;  %v17511_v14 = vpack.c.bf16 %v318_v23, %v317_v44  ;;  %v320_v57 = vld [vmem:[%s19514_s6 + $0x6d8] sm:$0xff]  ;;  %v351_v44 = vld [vmem:[%s19514_s6 + $0x7d0] sm:$0xff]  ;;  %v20095_v30 = vsub.s32 6, %v16617_v49 }
 0x772   :  { %v352_v23 = vld [vmem:[%s19514_s6 + $0x7d8] sm:$0xff] }
 0x773   :  { %20081 = vst [vmem:[#allocation163_spill] sm:$0xff] %v17511_v14  ;;  %v17622_v33 = vrot.slane %v17001_v35, %v20095_v30 }
 0x774   :  { %13957 = vmatpush3.bf16.msra.mxu1 %v17463_v63  ;;  %13989 = vmatpush3.bf16.msra.mxu0 %v17465_v37  ;;  %v17513_v63 = vpack.c.bf16 %v350_v15, %v349_v55  ;;  %v17535_v55 = vpack.c.bf16 %v302_v56, %v301_v25  ;;  %v17537_v15 = vpack.c.bf16 %v334_v51, %v333_v40  ;;  %v335_v25 = vld [vmem:[%s19514_s6 + $0x750] sm:$0xff]  ;;  %v336_v56 = vld [vmem:[%s19514_s6 + $0x758] sm:$0xff]  ;;  %v321_v40 = vld [vmem:[%s19514_s6 + $0x6e0] sm:$0xff] }
 0x775   :  { %13959 = vmatprep.subr.bf16.mxu1 %v17475_v39  ;;  %13991 = vmatprep.subr.bf16.mxu0 %v17477_v9  ;;  %v303_v9 = vld [vmem:[%s19514_s6 + $0x650] sm:$0xff]  ;;  %v304_v39 = vld [vmem:[%s19514_s6 + $0x658] sm:$0xff]  ;;  %v17547_v37 = vpack.c.bf16 %v320_v57, %v319_v31  ;;  %v322_v51 = vld [vmem:[%s19514_s6 + $0x6e8] sm:$0xff]  ;;  %20096 = vst [vmem:[#allocation176_spill] sm:$0xff] %v17622_v33 }
 0x776   :  { %20082 = vst [vmem:[#allocation164_spill] sm:$0xff] %v17513_v63  ;;  %20083 = vst [vmem:[#allocation165_spill] sm:$0xff] %v17535_v55  ;;  %v353_v31 = vld [vmem:[%s19514_s6 + $0x7e0] sm:$0xff]  ;;  %v354_v57 = vld [vmem:[%s19514_s6 + $0x7e8] sm:$0xff] }
 0x777   :  { %20084 = vst [vmem:[#allocation166_spill] sm:$0xff] %v17537_v15  ;;  %20085 = vst [vmem:[#allocation167_spill] sm:$0xff] %v17547_v37 }
 0x778   :  { %13961 = vmatpush3.bf16.msra.mxu1 %v17499_v18  ;;  %13993 = vmatpush3.bf16.msra.mxu0 %v17501_v27  ;;  %v17549_v18 = vpack.c.bf16 %v352_v23, %v351_v44  ;;  %v17571_v44 = vpack.c.bf16 %v304_v39, %v303_v9  ;;  %v17573_v23 = vpack.c.bf16 %v336_v56, %v335_v25  ;;  %v337_v39 = vld [vmem:[%s19514_s6 + $0x760] sm:$0xff]  ;;  %v338_v9 = vld [vmem:[%s19514_s6 + $0x768] sm:$0xff]  ;;  %v323_v25 = vld [vmem:[%s19514_s6 + $0x6f0] sm:$0xff] }
 0x779   :  { %13963 = vmatprep.subr.bf16.mxu1 %v17511_v14  ;;  %13995 = vmatprep.subr.bf16.mxu0 %v17513_v63  ;;  %v305_v63 = vld [vmem:[%s19514_s6 + $0x660] sm:$0xff]  ;;  %v306_v14 = vld [vmem:[%s19514_s6 + $0x668] sm:$0xff]  ;;  %v17583_v27 = vpack.c.bf16 %v322_v51, %v321_v40  ;;  %v324_v56 = vld [vmem:[%s19514_s6 + $0x6f8] sm:$0xff] }
 0x77a   :  { %20086 = vst [vmem:[#allocation168_spill] sm:$0xff] %v17549_v18  ;;  %20087 = vst [vmem:[#allocation169_spill] sm:$0xff] %v17571_v44  ;;  %v355_v40 = vld [vmem:[%s19514_s6 + $0x7f0] sm:$0xff]  ;;  %v356_v51 = vld [vmem:[%s19514_s6 + $0x7f8] sm:$0xff] }
 0x77b   :  { %20088 = vst [vmem:[#allocation170_spill] sm:$0xff] %v17573_v23  ;;  %20089 = vst [vmem:[#allocation171_spill] sm:$0xff] %v17583_v27 }
 0x77c   :  { %13965 = vmatpush3.bf16.msra.mxu1 %v17535_v55  ;;  %13997 = vmatpush3.bf16.msra.mxu0 %v17537_v15  ;;  %v17585_v55 = vpack.c.bf16 %v354_v57, %v353_v31  ;;  %v20091_v31 = vsub.s32 4, %v16617_v49  ;;  %v307_v15 = vld [vmem:[%s19514_s6 + $0x670] sm:$0xff]  ;;  %v340_v49 = vld [vmem:[%s19514_s6 + $0x778] sm:$0xff] }
 0x77d   :  { %13967 = vmatprep.subr.bf16.mxu1 %v17547_v37  ;;  %13999 = vmatprep.subr.bf16.mxu0 %v17549_v18  ;;  %v17612_v18 = vpack.c.bf16 %v306_v14, %v305_v63  ;;  %v17614_v37 = vpack.c.bf16 %v338_v9, %v337_v39  ;;  %v308_v14 = vld [vmem:[%s19514_s6 + $0x678] sm:$0xff]  ;;  %v339_v63 = vld [vmem:[%s19514_s6 + $0x770] sm:$0xff]  ;;  %v1596_v9 = vadd.f32 %v16903_v28, %v17622_v33 }
 0x77e   :  { %20090 = vst [vmem:[#allocation172_spill] sm:$0xff] %v17585_v55  ;;  %v17608_v57 = vrot.slane %v17001_v35, %v20091_v31  ;;  %v17626_v31 = vpack.c.bf16 %v324_v56, %v323_v25  ;;  %v17641_v35 = vpack.c.bf16 %v308_v14, %v307_v15  ;;  %v17643_v30 = vpack.c.bf16 %v340_v49, %v339_v63  ;;  %v11402_v49 = vld [vmem:[%s19511_s3 + $0x2] ss:$0 sm:$0xff] }
 0x77f   :  { %20093 = vst [vmem:[#allocation174_spill] sm:$0xff] %v17612_v18  ;;  %20094 = vst [vmem:[#allocation175_spill] sm:$0xff] %v17614_v37  ;;  %v1527_v25 = vadd.f32 %v16973_v42, %v17374_v34  ;;  %v1604_v56 = vadd.f32 %v16975_v62, %v17379_v41  ;;  %v1602_v28 = vadd.f32 %v16953_v36, %v17622_v33 }
 0x780   :  { %20092 = vst [vmem:[#allocation173_spill] sm:$0xff] %v17608_v57  ;;  %13969 = vmatpush3.bf16.msra.mxu1 %v17571_v44  ;;  %14001 = vmatpush3.bf16.msra.mxu0 %v17573_v23  ;;  %20097 = vst [vmem:[#allocation177_spill] sm:$0xff] %v17626_v31  ;;  %v17628_v23 = vpack.c.bf16 %v356_v51, %v355_v40  ;;  %v1519_v39 = vadd.f32 %v16901_v10, %v17608_v57  ;;  %v1620_v40 = vmax.f32 %v1596_v9, 0.0  ;;  %v20101_v51 = vmov 0.0  }
 0x781   :  { %13971 = vmatprep.subr.bf16.mxu1 %v17583_v27  ;;  %14003 = vmatprep.subr.bf16.mxu0 %v17585_v55  ;;  %20099 = vst [vmem:[#allocation179_spill] sm:$0xff] %v17641_v35  ;;  %20100 = vst [vmem:[#allocation180_spill] sm:$0xff] %v17643_v30  ;;  %v1525_v10 = vadd.f32 %v16951_v32, %v17608_v57  ;;  %v1635_v42 = vmax.f32 %v1527_v25, 0.0  ;;  %v1637_v14 = vmax.f32 %v1604_v56, 0.0  ;;  %v1636_v63 = vmax.f32 %v1602_v28, 0.0 }
 0x782   :  { %20098 = vst [vmem:[#allocation178_spill] sm:$0xff] %v17628_v23  ;;  %v1618_v15 = vmax.f32 %v1519_v39, 0.0 }
 0x783   :  { %v1634_v62 = vmax.f32 %v1525_v10, 0.0 }
 0x784   :  { %13973 = vmatpush3.bf16.msra.mxu1 %v17612_v18  ;;  %14005 = vmatpush3.bf16.msra.mxu0 %v17614_v37 }
 0x785   :  { %13975 = vmatprep.subr.bf16.mxu1 %v17626_v31  ;;  %14007 = vmatprep.subr.bf16.mxu0 %v17628_v23 }
 0x788   :  { %13977 = vmatpush3.bf16.msra.mxu1 %v17641_v35  ;;  %14009 = vmatpush3.bf16.msra.mxu0 %v17643_v30 }
 0x789   :  { %14011 = vmatprep.subr.bf16.mxu1 %v15894_v3  ;;  %13513 = vmatprep.subr.mxu0 %v20101_v51 }
 0x78b   :  { %2157 = vmatmul.mubr.f32.vlgmr.msra.gmra.mrb[34].mxu1 %v1618_v15  ;;  %2232 = vmatmul.mubr.f32.vlgmr.msra.gmra.mrb[34].mxu0 %v1620_v40 }
 0x78c   :  { %2161 = vmatprep.mubr.f32.mxu1 %v1635_v42  ;;  %2236 = vmatprep.mubr.f32.mxu0 %v1637_v14 }
 0x78d   :  { %14013 = vmatpush3.bf16.msra.mxu1 %v15894_v3 }
 0x78e   :  { %14015 = vmatprep.subr.bf16.mxu1 %v15904_v6 }
 0x78f   :  { %2162 = vmatmul.mubr.f32.gmra.mrb[36].mxu1 %v1634_v62  ;;  %2237 = vmatmul.mubr.f32.gmra.mrb[36].mxu0 %v1636_v63 }
 0x790   :  { %13515 = vmatprep.mubr.msk.f32.mxu0 %vm15833_vm1, %v20101_v51 }
 0x791   :  { %14017 = vmatpush3.bf16.msra.mxu1 %v15904_v6 }
 0x792   :  { %13518 = vmatprep.subr.mxu1 %v20101_v51 }
 0x7fc   :  { %v11589_v36 = vpop.f32.mrb[22].mxu1  ;;  %v11627_v32 = vpop.f32.mrb[22].mxu0 }
 0x7fd   :  { %v11590_v39 = vpop.f32.mrb[23].mxu1  ;;  %v11628_v9 = vpop.f32.mrb[23].mxu0 }
 0x7fe   :  { %v11591_v25 = vadd.f32 %v11590_v39, %v11589_v36  ;;  %v11629_v56 = vadd.f32 %v11628_v9, %v11627_v32 }
 0x800   :  { %v1709_v15 = vadd.f32 %v11591_v25, %v11402_v49  ;;  %v11592_v40 = vpop.f32.mrb[24].mxu1  ;;  %v11630_v10 = vpop.f32.mrb[24].mxu0 }
 0x801   :  { %v11593_v28 = vpop.f32.mrb[25].mxu1  ;;  %v11631_v42 = vpop.f32.mrb[25].mxu0 }
 0x802   :  { %v1784_v14 = vadd.f32 %v11629_v56, %v1709_v15  ;;  %v11594_v62 = vadd.f32 %v11593_v28, %v11592_v40  ;;  %v11632_v63 = vadd.f32 %v11631_v42, %v11630_v10 }
 0x804   :  { %v1714_v6 = vadd.f32 %v11594_v62, %v11402_v49 }
 0x806   :  { %v1789_v3 = vadd.f32 %v11632_v63, %v1714_v6 }
 0x81c   :  { %v11665_v30 = vpop.f32.mrb[26].mxu1  ;;  %v11703_v35 = vpop.f32.mrb[26].mxu0 }
 0x81d   :  { %v11666_v23 = vpop.f32.mrb[27].mxu1  ;;  %v11704_v31 = vpop.f32.mrb[27].mxu0 }
 0x81e   :  { %v11667_v33 = vadd.f32 %v11666_v23, %v11665_v30  ;;  %v11705_v57 = vadd.f32 %v11704_v31, %v11703_v35 }
 0x820   :  { %v1859_v37 = vadd.f32 %v11667_v33, %v1784_v14  ;;  %v11668_v18 = vpop.f32.mrb[28].mxu1  ;;  %v11706_v36 = vpop.f32.mrb[28].mxu0 }
 0x821   :  { %v11669_v32 = vpop.f32.mrb[29].mxu1  ;;  %v11707_v39 = vpop.f32.mrb[29].mxu0 }
 0x822   :  { %v1934_v9 = vadd.f32 %v11705_v57, %v1859_v37  ;;  %v11670_v25 = vadd.f32 %v11669_v32, %v11668_v18  ;;  %v11708_v55 = vadd.f32 %v11707_v39, %v11706_v36 }
 0x824   :  { %v1864_v27 = vadd.f32 %v11670_v25, %v1789_v3 }
 0x826   :  { %v1939_v56 = vadd.f32 %v11708_v55, %v1864_v27 }
 0x83d   :  { %v11741_v15 = vpop.f32.mrb[30].mxu1  ;;  %v11779_v40 = vpop.f32.mrb[30].mxu0 }
 0x83e   :  { %v11742_v49 = vpop.f32.mrb[31].mxu1  ;;  %v11780_v6 = vpop.f32.mrb[31].mxu0 }
 0x83f   :  { %v11743_v10 = vadd.f32 %v11742_v49, %v11741_v15  ;;  %v11781_v28 = vadd.f32 %v11780_v6, %v11779_v40 }
 0x841   :  { %v2009_v42 = vadd.f32 %v11743_v10, %v1934_v9  ;;  %v11744_v62 = vpop.f32.mrb[32].mxu1  ;;  %v11782_v23 = vpop.f32.mrb[32].mxu0 }
 0x842   :  { %v11745_v31 = vpop.f32.mrb[33].mxu1  ;;  %v11783_v33 = vpop.f32.mrb[33].mxu0 }
 0x843   :  { %v2084_v35 = vadd.f32 %v11781_v28, %v2009_v42  ;;  %v11746_v30 = vadd.f32 %v11745_v31, %v11744_v62  ;;  %v11784_v14 = vadd.f32 %v11783_v33, %v11782_v23 }
 0x845   :  { %v2014_v63 = vadd.f32 %v11746_v30, %v1939_v56 }
 0x847   :  { %v2089_v37 = vadd.f32 %v11784_v14, %v2014_v63 }
 0x85e   :  { %v11817_v18 = vpop.f32.mrb[34].mxu1  ;;  %v11855_v57 = vpop.f32.mrb[34].mxu0 }
 0x85f   :  { %v11818_v3 = vpop.f32.mrb[35].mxu1  ;;  %v11856_v27 = vpop.f32.mrb[35].mxu0 }
 0x860   :  { %v11819_v55 = vadd.f32 %v11818_v3, %v11817_v18  ;;  %v11857_v36 = vadd.f32 %v11856_v27, %v11855_v57 }
 0x862   :  { %v2159_v32 = vadd.f32 %v11819_v55, %v2084_v35  ;;  %v11820_v39 = vpop.f32.mrb[36].mxu1  ;;  %v11858_v25 = vpop.f32.mrb[36].mxu0 }
 0x863   :  { %v11821_v15 = vpop.f32.mrb[37].mxu1  ;;  %v11859_v9 = vpop.f32.mrb[37].mxu0 }
 0x864   :  { %v2234_v40 = vadd.f32 %v11857_v36, %v2159_v32  ;;  %v11822_v49 = vadd.f32 %v11821_v15, %v11820_v39  ;;  %v11860_v6 = vadd.f32 %v11859_v9, %v11858_v25  ;;  %v11403_v25 = vld [vmem:[%s19511_s3 + $0x3] ss:$0 sm:$0xff]  ;;  %v11404_v9 = vld [vmem:[%s19511_s3 + $0x4] ss:$0 sm:$0xff] }
 0x866   :  { %v2164_v10 = vadd.f32 %v11822_v49, %v2089_v37  ;;  %v2242_v28 = vadd.f32 %v2234_v40, %v16093_v50 }
 0x868   :  { %v2239_v42 = vadd.f32 %v11860_v6, %v2164_v10  ;;  %v2244_v56 = vsel %vm364_vm0, %v2242_v28, 0.0 }
 0x869   :  { %2245 = vadd.xlane.f32.xlu0 %v2244_v56 }
 0x86a   :  { %v2243_v62 = vadd.f32 %v2239_v42, %v16134_v5 }
 0x86c   :  { %v2247_v23 = vsel %vm364_vm0, %v2243_v62, 0.0 }
 0x86d   :  { %2248 = vadd.xlane.f32.xlu0 %v2247_v23 }
 0x8f6   :  { %v2246_v31 = vpop.xlane.xlu0 %2245 }
 0x8f7   :  { %v2250_v33 = vmul.f32 0.03125, %v2246_v31 }
 0x8f9   :  { %v2252_v35 = vsub.f32 %v2242_v28, %v2250_v33 }
 0x8fa   :  { %v2249_v30 = vpop.xlane.xlu0 %2248 }
 0x8fb   :  { %v2251_v14 = vmul.f32 0.03125, %v2249_v30  ;;  %v2254_v63 = vmul.f32 %v2252_v35, %v2252_v35 }
 0x8fd   :  { %v2253_v18 = vsub.f32 %v2243_v62, %v2251_v14  ;;  %v2256_v37 = vsel %vm364_vm0, %v2254_v63, 0.0 }
 0x8fe   :  { %2257 = vadd.xlane.f32.xlu0 %v2256_v37 }
 0x8ff   :  { %v2255_v50 = vmul.f32 %v2253_v18, %v2253_v18 }
 0x901   :  { %v2259_v57 = vsel %vm364_vm0, %v2255_v50, 0.0 }
 0x902   :  { %2260 = vadd.xlane.f32.xlu0 %v2259_v57 }
 0x98b   :  { %v2258_v3 = vpop.xlane.xlu0 %2257 }
 0x98c   :  { %v2262_v27 = vmul.f32 0.03125, %v2258_v3 }
 0x98e   :  { %v2264_v5 = vadd.f32 1e-05, %v2262_v27 }
 0x98f   :  { %v2261_v55 = vpop.xlane.xlu0 %2260 }
 0x990   :  { %15670 = vrsqrt.f32 %v2264_v5  ;;  %v2263_v36 = vmul.f32 0.03125, %v2261_v55 }
 0x992   :  { %v2265_v32 = vadd.f32 1e-05, %v2263_v36 }
 0x994   :  { %15672 = vrsqrt.f32 %v2265_v32 }
 0x99a   :  { %v15671_v39 = vpop.eup %15670 }
 0x99b   :  { %v2268_v15 = vmul.f32 %v15671_v39, %v2252_v35 }
 0x99d   :  { %v2274_v40 = vmul.f32 %v11403_v25, %v2268_v15 }
 0x99e   :  { %v15673_v49 = vpop.eup %15672 }
 0x99f   :  { %v2269_v6 = vmul.f32 %v15673_v49, %v2253_v18  ;;  %v17684_v10 = vadd.f32 %v11404_v9, %v2274_v40  ;;  %v15754_v49 = vld [vmem:[%s19510_s2] sm:$0xf] }
 0x9a1   :  { %v2275_v28 = vmul.f32 %v11403_v25, %v2269_v6  ;;  %13510 = vmatprep.mubr.msk.f32.mxu1 %vm364_vm0, %v17684_v10 }
 0x9a3   :  { %v17688_v42 = vadd.f32 %v11404_v9, %v2275_v28 }
 0x9a5   :  { %13511 = vmatmul.mubr.msk.f32.vlgmr.msra.gmra.mrb[38].mxu1 %vm364_vm0, %v17688_v42 }
 0x9a6   :  { %13520 = vmatprep.mubr.msk.f32.mxu1 %vm15833_vm1, %v20101_v51 }
 0xa78   :  { %v13512_v56 = vpop.f32.mrb[38].mxu1 }
 0xa79   :  { %2443 = vrot.lane.b32.xlu1 %v13512_v56, %s15834_s16  ;;  %v2356_v62 = vpop.f32.mrb[39].mxu1 }
 0xa7a   :  { %2366 = vrot.lane.b32.xlu0 %v2356_v62, %s15834_s16 }
 0xaeb   :  { %v2444_v23 = vpop.permute.xlu1 %2443 }
 0xaec   :  { %13519 = vmatpush3.xpose.msk.msra.mxu1 %vm449_vm2, %v2444_v23  ;;  %v2367_v31 = vpop.permute.xlu0 %2366 }
 0xaed   :  { %13514 = vmatpush3.xpose.msk.msra.mxu0 %vm449_vm2, %v2367_v31  ;;  %13528 = vmatprep.subr.mxu1 %v20101_v51 }
 0xaee   :  { %13523 = vmatprep.subr.mxu0 %v20101_v51 }
 0xaef   :  { %13521 = vmatmul.mubr.msk.f32.vlgmr.msra.gmra.mrb[40].mxu1 %vm449_vm2, %v13512_v56 }
 0xaf0   :  { %13516 = vmatmul.mubr.msk.f32.vlgmr.msra.gmra.mrb[38].mxu0 %vm449_vm2, %v2356_v62  ;;  %13530 = vmatprep.mubr.msk.f32.mxu1 %vm15833_vm1, %v20101_v51 }
 0xaf1   :  { %13525 = vmatprep.mubr.msk.f32.mxu0 %vm15833_vm1, %v20101_v51 }
 0xbc2   :  { %v2515_v33 = vpop.f32.mrb[40].mxu1 }
 0xbc3   :  { %v2438_v35 = vpop.f32.mrb[38].mxu0  ;;  %v13522_v30 = vpop.f32.mrb[41].mxu1  ;;  %v2522_v14 = vsel %vm601_vm3, %v2515_v33, -inf }
 0xbc4   :  { %v13517_v63 = vpop.f32.mrb[39].mxu0  ;;  %2523 = vmax.xlane.f32.xlu0 %v2522_v14  ;;  %v2519_v18 = vsel %vm601_vm3, %v2438_v35, -inf }
 0xbc5   :  { %2520 = vmax.xlane.f32.xlu1 %v2519_v18 }
 0xc51   :  { %v2524_v37 = vpop.xlane.xlu0 %2523 }
 0xc52   :  { %v2526_v50 = vsub.f32 %v2515_v33, %v2524_v37  ;;  %v2521_v57 = vpop.xlane.xlu1 %2520 }
 0xc53   :  { %v2525_v3 = vsub.f32 %v2438_v35, %v2521_v57 }
 0xc54   :  { %v2529_v27 = vmul.f32 1.442695, %v2526_v50 }
 0xc55   :  { %v2527_v5 = vmul.f32 1.442695, %v2525_v3 }
 0xc56   :  { %15674 = vpow2.f32 %v2529_v27 }
 0xc57   :  { %15676 = vpow2.f32 %v2527_v5 }
 0xc60   :  { %v15675_v55 = vpop.eup %15674 }
 0xc61   :  { %v15677_v36 = vpop.eup %15676  ;;  %v2534_v32 = vsel %vm601_vm3, %v15675_v55, 0.0 }
 0xc62   :  { %2535 = vadd.xlane.f32.xlu1 %v2534_v32  ;;  %v2531_v39 = vsel %vm601_vm3, %v15677_v36, 0.0 }
 0xc63   :  { %2532 = vadd.xlane.f32.xlu0 %v2531_v39 }
 0xc73   :  { %2617 = vrot.lane.b32.xlu1 %v13512_v56, %s15835_s0 }
 0xc79   :  { %2541 = vrot.lane.b32.xlu0 %v2356_v62, %s15835_s0 }
 0xcef   :  { %v2536_v25 = vpop.xlane.xlu1 %2535 }
 0xcf0   :  { %15678 = vrcp.f32 %v2536_v25  ;;  %v2533_v15 = vpop.xlane.xlu0 %2532 }
 0xcf1   :  { %15680 = vrcp.f32 %v2533_v15 }
 0xcf3   :  { %v2618_v9 = vpop.permute.xlu1 %2617 }
 0xcf4   :  { %13529 = vmatpush3.msra.mxu1 %v2618_v9  ;;  %v2542_v40 = vpop.permute.xlu0 %2541 }
 0xcf5   :  { %13524 = vmatpush3.msra.mxu0 %v2542_v40  ;;  %14019 = vmatprep.subr.bf16.mxu1 %v15975_v61 }
 0xcf6   :  { %13533 = vmatprep.subr.msk.mxu0 %vm782_vm4, %v15754_v49 }
 0xcfa   :  { %v15679_v6 = vpop.eup %15678 }
 0xcfb   :  { %v15681_v28 = vpop.eup %15680  ;;  %v2540_v56 = vmul.f32 %v15679_v6, %v15675_v55 }
 0xcfc   :  { %v2539_v62 = vmul.f32 %v15681_v28, %v15677_v36 }
 0xcfd   :  { %4094 = vst.msk [vmem:[#allocation4 + $0x18] sm:$0xff] %vm601_vm3, %v2540_v56  ;;  %13531 = vmatmul.mubr.msk.f32.vlgmr.msra.gmra.mrb[42].mxu1 %vm601_vm3, %v2540_v56 }
 0xcfe   :  { %4093 = vst.msk [vmem:[#allocation4 + $0x10] sm:$0xff] %vm601_vm3, %v2539_v62  ;;  %13526 = vmatmul.mubr.msk.f32.vlgmr.msra.gmra.mrb[40].mxu0 %vm601_vm3, %v2539_v62  ;;  %14021 = vmatpush1.bf16.msra.mxu1 %v15988_v2 }
 0xcff   :  { %13534 = vmatpush3.msk.msra.mxu0 %vm782_vm4, %v15754_v49  ;;  %14023 = vmatprep.subr.bf16.mxu1 %v16011_v12 }
 0xd00   :  { %14027 = vmatprep.subr.bf16.mxu0 %v15986_v1  ;;  %2876 = vmatprep.mubr.f32.mxu1 %v20101_v51 }
 0xd02   :  { %14025 = vmatpush1.bf16.msra.mxu1 %v16024_v17 }
 0xd03   :  { %14035 = vmatprep.subr.bf16.mxu1 %v16047_v24 }
 0xdd0   :  { %v2689_v23 = vpop.f32.mrb[42].mxu1 }
 0xdd1   :  { %v2613_v31 = vpop.f32.mrb[40].mxu0  ;;  %v13532_v33 = vpop.f32.mrb[43].mxu1 }
 0xdd2   :  { %v13527_v35 = vpop.f32.mrb[41].mxu0  ;;  %13535 = vmatprep.mubr.msk.f32.mxu0 %vm449_vm2, %v2613_v31  ;;  %v15755_v31 = vld [vmem:[%s19511_s3] ss:$0 sm:$0xff] }
 0xdd3   :  { %13536 = vmatmul.mubr.msk.f32.vlgmr.msra.gmra.mrb[42].mxu0 %vm449_vm2, %v2689_v23 }
 0xdd4   :  { %14029 = vmatpush1.bf16.msra.mxu0 %v15997_v7  ;;  %2953 = vmatprep.mubr.f32.mxu0 %v20101_v51 }
 0xdd5   :  { %14031 = vmatprep.subr.bf16.mxu0 %v16022_v16  ;;  %v20189_v16 = vld [vmem:[#allocation109_spill] sm:$0xff] }
 0xdd8   :  { %14033 = vmatpush1.bf16.msra.mxu0 %v16033_v20  ;;  %v20186_v20 = vld [vmem:[#allocation106_spill] sm:$0xff] }
 0xdd9   :  { %14043 = vmatprep.subr.bf16.mxu0 %v16052_v26  ;;  %v20185_v26 = vld [vmem:[#allocation105_spill] sm:$0xff] }
 0xea6   :  { %v13537_v30 = vpop.f32.mrb[42].mxu0 }
 0xea7   :  { %v2775_v14 = vadd.f32 %v13537_v30, %v17688_v42  ;;  %v2765_v63 = vpop.f32.mrb[43].mxu0  ;;  %v15756_v30 = vld [vmem:[%s19511_s3 + $0x1] ss:$0 sm:$0xff] }
 0xea8   :  { %v2774_v18 = vadd.f32 %v2765_v63, %v17684_v10 }
 0xea9   :  { %v2779_v37 = vsel %vm364_vm0, %v2775_v14, 0.0 }
 0xeaa   :  { %2780 = vadd.xlane.f32.xlu0 %v2779_v37  ;;  %v2776_v50 = vsel %vm364_vm0, %v2774_v18, 0.0  ;;  %v20103_v37 = vld [vmem:[#allocation23_spill] sm:$0xff] }
 0xeab   :  { %2777 = vadd.xlane.f32.xlu1 %v2776_v50  ;;  %v20104_v50 = vld [vmem:[#allocation24_spill] sm:$0xff] }
 0xf37   :  { %v2781_v57 = vpop.xlane.xlu0 %2780 }
 0xf38   :  { %v2783_v3 = vmul.f32 0.03125, %v2781_v57  ;;  %v2778_v27 = vpop.xlane.xlu1 %2777  ;;  %v20105_v57 = vld [vmem:[#allocation25_spill] sm:$0xff] }
 0xf39   :  { %v2782_v5 = vmul.f32 0.03125, %v2778_v27  ;;  %v20107_v27 = vld [vmem:[#allocation27_spill] sm:$0xff] }
 0xf3a   :  { %v2785_v55 = vsub.f32 %v2775_v14, %v2783_v3  ;;  %v20106_v3 = vld [vmem:[#allocation26_spill] sm:$0xff] }
 0xf3b   :  { %v2784_v36 = vsub.f32 %v2774_v18, %v2782_v5  ;;  %v20102_v18 = vld [vmem:[#allocation22_spill] sm:$0xff]  ;;  %v20108_v5 = vld [vmem:[#allocation28_spill] sm:$0xff] }
 0xf3c   :  { %v2787_v32 = vmul.f32 %v2785_v55, %v2785_v55 }
 0xf3d   :  { %v2786_v39 = vmul.f32 %v2784_v36, %v2784_v36 }
 0xf3e   :  { %v2791_v25 = vsel %vm364_vm0, %v2787_v32, 0.0  ;;  %v20111_v32 = vld [vmem:[#allocation31_spill] sm:$0xff] }
 0xf3f   :  { %2792 = vadd.xlane.f32.xlu1 %v2791_v25  ;;  %v2788_v42 = vsel %vm364_vm0, %v2786_v39, 0.0  ;;  %v20112_v39 = vld [vmem:[#allocation32_spill] sm:$0xff]  ;;  %v20113_v25 = vld [vmem:[#allocation33_spill] sm:$0xff] }
 0xf40   :  { %2789 = vadd.xlane.f32.xlu0 %v2788_v42  ;;  %v20114_v42 = vld [vmem:[#allocation34_spill] sm:$0xff] }
 0xfcc   :  { %v2793_v10 = vpop.xlane.xlu1 %2792 }
 0xfcd   :  { %v2795_v15 = vmul.f32 0.03125, %v2793_v10  ;;  %v2790_v9 = vpop.xlane.xlu0 %2789  ;;  %v20115_v10 = vld [vmem:[#allocation35_spill] sm:$0xff] }
 0xfce   :  { %v2794_v40 = vmul.f32 0.03125, %v2790_v9  ;;  %v20117_v9 = vld [vmem:[#allocation37_spill] sm:$0xff] }
 0xfcf   :  { %v2797_v49 = vadd.f32 1e-05, %v2795_v15  ;;  %v20116_v15 = vld [vmem:[#allocation36_spill] sm:$0xff] }
 0xfd0   :  { %v2796_v6 = vadd.f32 1e-05, %v2794_v40  ;;  %v20118_v40 = vld [vmem:[#allocation38_spill] sm:$0xff] }
 0xfd1   :  { %15682 = vrsqrt.f32 %v2797_v49  ;;  %v20119_v49 = vld [vmem:[#allocation39_spill] sm:$0xff] }
 0xfd2   :  { %15684 = vrsqrt.f32 %v2796_v6  ;;  %v20120_v6 = vld [vmem:[#allocation40_spill] sm:$0xff] }
 0xfdb   :  { %v15683_v28 = vpop.eup %15682 }
 0xfdc   :  { %v15685_v56 = vpop.eup %15684  ;;  %v2801_v62 = vmul.f32 %v15683_v28, %v2785_v55  ;;  %v20109_v55 = vld [vmem:[#allocation29_spill] sm:$0xff] }
 0xfdd   :  { %v2800_v23 = vmul.f32 %v15685_v56, %v2784_v36  ;;  %v20110_v36 = vld [vmem:[#allocation30_spill] sm:$0xff]  ;;  %v20121_v28 = vld [vmem:[#allocation41_spill] sm:$0xff] }
 0xfde   :  { %v2803_v35 = vmul.f32 %v15755_v31, %v2801_v62  ;;  %v20122_v56 = vld [vmem:[#allocation42_spill] sm:$0xff]  ;;  %v20123_v62 = vld [vmem:[#allocation43_spill] sm:$0xff] }
 0xfdf   :  { %v2802_v33 = vmul.f32 %v15755_v31, %v2800_v23  ;;  %v20124_v23 = vld [vmem:[#allocation44_spill] sm:$0xff]  ;;  %v20125_v31 = vld [vmem:[#allocation45_spill] sm:$0xff] }
 0xfe0   :  { %v17755_v63 = vadd.f32 %v15756_v30, %v2803_v35  ;;  %v20127_v35 = vld [vmem:[#allocation47_spill] sm:$0xff] }
 0xfe1   :  { %v17747_v14 = vadd.f32 %v15756_v30, %v2802_v33  ;;  %v20126_v33 = vld [vmem:[#allocation46_spill] sm:$0xff]  ;;  %v20128_v30 = vld [vmem:[#allocation48_spill] sm:$0xff] }
 0xfe3   :  { %11416 = vmatmul.mubr.msk.f32.vlgmr.msra.gmra.mrb[44].mxu1 %vm364_vm0, %v17747_v14  ;;  %11418 = vmatmul.mubr.msk.f32.vlgmr.msra.gmra.mrb[44].mxu0 %vm364_vm0, %v17747_v14 }
 0xfe4   :  { %14037 = vmatpush1.bf16.msra.mxu1 %v16086_v47  ;;  %14045 = vmatpush1.bf16.msra.mxu0 %v16088_v48  ;;  %v20184_v47 = vld [vmem:[#allocation104_spill] sm:$0xff] }
 0xfe5   :  { %2882 = vmatprep.mubr.f32.mxu1 %v20101_v51  ;;  %2959 = vmatprep.mubr.f32.mxu0 %v20101_v51 }
 0xfe6   :  { %14039 = vmatprep.subr.bf16.mxu1 %v20102_v18  ;;  %14047 = vmatprep.subr.bf16.mxu0 %v20103_v37  ;;  %v20181_v37 = vld [vmem:[#allocation101_spill] sm:$0xff]  ;;  %v20182_v18 = vld [vmem:[#allocation102_spill] sm:$0xff] }
 0xfe7   :  { %11417 = vmatmul.mubr.msk.f32.gmra.mrb[46].mxu1 %vm364_vm0, %v17755_v63  ;;  %11419 = vmatmul.mubr.msk.f32.gmra.mrb[46].mxu0 %vm364_vm0, %v17755_v63 }
 0xfe8   :  { %14041 = vmatpush1.bf16.msra.mxu1 %v20104_v50  ;;  %14049 = vmatpush1.bf16.msra.mxu0 %v20105_v57  ;;  %v20180_v50 = vld [vmem:[#allocation100_spill] sm:$0xff] }
 0xfe9   :  { %3030 = vmatprep.mubr.f32.mxu1 %v20101_v51  ;;  %3107 = vmatprep.mubr.f32.mxu0 %v20101_v51 }
 0xfea   :  { %14051 = vmatprep.subr.bf16.mxu1 %v20106_v3  ;;  %14059 = vmatprep.subr.bf16.mxu0 %v20107_v27  ;;  %v20162_v3 = vld [vmem:[#allocation83_spill] sm:$0xff] }
 0xfeb   :  { %11420 = vmatmul.mubr.msk.f32.vlgmr.msra.gmra.mrb[48].mxu1 %vm364_vm0, %v17747_v14  ;;  %11422 = vmatmul.mubr.msk.f32.vlgmr.msra.gmra.mrb[48].mxu0 %vm364_vm0, %v17747_v14 }
 0xfec   :  { %14053 = vmatpush1.bf16.msra.mxu1 %v20108_v5  ;;  %14061 = vmatpush1.bf16.msra.mxu0 %v20109_v55 }
 0xfed   :  { %3036 = vmatprep.mubr.f32.mxu1 %v20101_v51  ;;  %3113 = vmatprep.mubr.f32.mxu0 %v20101_v51 }
 0xfee   :  { %14055 = vmatprep.subr.bf16.mxu1 %v20110_v36  ;;  %14063 = vmatprep.subr.bf16.mxu0 %v20111_v32 }
 0xfef   :  { %11421 = vmatmul.mubr.msk.f32.gmra.mrb[50].mxu1 %vm364_vm0, %v17755_v63  ;;  %11423 = vmatmul.mubr.msk.f32.gmra.mrb[50].mxu0 %vm364_vm0, %v17755_v63 }
 0xff0   :  { %14057 = vmatpush1.bf16.msra.mxu1 %v20112_v39  ;;  %14065 = vmatpush1.bf16.msra.mxu0 %v20113_v25  ;;  %v20159_v25 = vld [vmem:[#allocation79_spill] sm:$0xff] }
 0xff1   :  { %3184 = vmatprep.mubr.f32.mxu1 %v20101_v51  ;;  %3261 = vmatprep.mubr.f32.mxu0 %v20101_v51 }
 0xff2   :  { %14067 = vmatprep.subr.bf16.mxu1 %v20114_v42  ;;  %14075 = vmatprep.subr.bf16.mxu0 %v20115_v10  ;;  %v20158_v42 = vld [vmem:[#allocation78_spill] sm:$0xff] }
 0xff3   :  { %11424 = vmatmul.mubr.msk.f32.vlgmr.msra.gmra.mrb[52].mxu1 %vm364_vm0, %v17747_v14  ;;  %11426 = vmatmul.mubr.msk.f32.vlgmr.msra.gmra.mrb[52].mxu0 %vm364_vm0, %v17747_v14 }
 0xff4   :  { %14069 = vmatpush1.bf16.msra.mxu1 %v20116_v15  ;;  %14077 = vmatpush1.bf16.msra.mxu0 %v20117_v9  ;;  %v20156_v9 = vld [vmem:[#allocation76_spill] sm:$0xff]  ;;  %v20157_v15 = vld [vmem:[#allocation77_spill] sm:$0xff] }
 0xff5   :  { %3190 = vmatprep.mubr.f32.mxu1 %v20101_v51  ;;  %3267 = vmatprep.mubr.f32.mxu0 %v20101_v51 }
 0xff6   :  { %14071 = vmatprep.subr.bf16.mxu1 %v20118_v40  ;;  %14079 = vmatprep.subr.bf16.mxu0 %v20119_v49  ;;  %v20137_v49 = vld [vmem:[#allocation57_spill] sm:$0xff]  ;;  %v20138_v40 = vld [vmem:[#allocation58_spill] sm:$0xff] }
 0xff7   :  { %11425 = vmatmul.mubr.msk.f32.gmra.mrb[54].mxu1 %vm364_vm0, %v17755_v63  ;;  %11427 = vmatmul.mubr.msk.f32.gmra.mrb[54].mxu0 %vm364_vm0, %v17755_v63 }
 0xff8   :  { %14073 = vmatpush1.bf16.msra.mxu1 %v20120_v6  ;;  %14081 = vmatpush1.bf16.msra.mxu0 %v20121_v28  ;;  %v20131_v28 = vld [vmem:[#allocation51_spill] sm:$0xff]  ;;  %v20136_v6 = vld [vmem:[#allocation56_spill] sm:$0xff] }
 0xff9   :  { %3338 = vmatprep.mubr.f32.mxu1 %v20101_v51  ;;  %3415 = vmatprep.mubr.f32.mxu0 %v20101_v51 }
 0xffa   :  { %14083 = vmatprep.subr.bf16.mxu1 %v20122_v56  ;;  %14115 = vmatprep.subr.bf16.mxu0 %v20123_v62  ;;  %v20129_v62 = vld [vmem:[#allocation49_spill] sm:$0xff]  ;;  %v20130_v56 = vld [vmem:[#allocation50_spill] sm:$0xff] }
 0xffb   :  { %11428 = vmatmul.mubr.msk.f32.vlgmr.msra.gmra.mrb[56].mxu1 %vm364_vm0, %v17747_v14  ;;  %11430 = vmatmul.mubr.msk.f32.vlgmr.msra.gmra.mrb[56].mxu0 %vm364_vm0, %v17747_v14 }
 0xffc   :  { %3344 = vmatprep.mubr.f32.mxu1 %v20101_v51  ;;  %3421 = vmatprep.mubr.f32.mxu0 %v20101_v51 }
 0xffd   :  { %14085 = vmatpush3.bf16.msra.mxu1 %v20124_v23  ;;  %14117 = vmatpush3.bf16.msra.mxu0 %v20125_v31  ;;  %v20132_v23 = vld [vmem:[#allocation52_spill] sm:$0xff]  ;;  %v20133_v31 = vld [vmem:[#allocation53_spill] sm:$0xff] }
 0xffe   :  { %14087 = vmatprep.subr.bf16.mxu1 %v20126_v33  ;;  %14119 = vmatprep.subr.bf16.mxu0 %v20127_v35  ;;  %v20134_v33 = vld [vmem:[#allocation54_spill] sm:$0xff]  ;;  %v20135_v35 = vld [vmem:[#allocation55_spill] sm:$0xff] }
 0xfff   :  { %11429 = vmatmul.mubr.msk.f32.gmra.mrb[58].mxu1 %vm364_vm0, %v17755_v63  ;;  %11431 = vmatmul.mubr.msk.f32.gmra.mrb[58].mxu0 %vm364_vm0, %v17755_v63 }
0x1001   :  { %14089 = vmatpush3.bf16.msra.mxu1 %v20128_v30  ;;  %14121 = vmatpush3.bf16.msra.mxu0 %v20129_v62  ;;  %v20139_v30 = vld [vmem:[#allocation59_spill] sm:$0xff]  ;;  %v20140_v62 = vld [vmem:[#allocation60_spill] sm:$0xff] }
0x1002   :  { %14091 = vmatprep.subr.bf16.mxu1 %v20130_v56  ;;  %14123 = vmatprep.subr.bf16.mxu0 %v20131_v28  ;;  %v20141_v56 = vld [vmem:[#allocation61_spill] sm:$0xff]  ;;  %v20142_v28 = vld [vmem:[#allocation62_spill] sm:$0xff] }
0x1005   :  { %14093 = vmatpush3.bf16.msra.mxu1 %v20132_v23  ;;  %14125 = vmatpush3.bf16.msra.mxu0 %v20133_v31  ;;  %v20143_v23 = vld [vmem:[#allocation63_spill] sm:$0xff]  ;;  %v20144_v31 = vld [vmem:[#allocation64_spill] sm:$0xff] }
0x1006   :  { %14095 = vmatprep.subr.bf16.mxu1 %v20134_v33  ;;  %14127 = vmatprep.subr.bf16.mxu0 %v20135_v35  ;;  %v20145_v33 = vld [vmem:[#allocation65_spill] sm:$0xff]  ;;  %v20146_v35 = vld [vmem:[#allocation66_spill] sm:$0xff] }
0x1009   :  { %14097 = vmatpush3.bf16.msra.mxu1 %v20136_v6  ;;  %14129 = vmatpush3.bf16.msra.mxu0 %v20137_v49  ;;  %v20147_v6 = vld [vmem:[#allocation67_spill] sm:$0xff]  ;;  %v20148_v49 = vld [vmem:[#allocation68_spill] sm:$0xff] }
0x100a   :  { %14099 = vmatprep.subr.bf16.mxu1 %v20138_v40  ;;  %14131 = vmatprep.subr.bf16.mxu0 %v20139_v30  ;;  %v20149_v40 = vld [vmem:[#allocation69_spill] sm:$0xff]  ;;  %v20150_v30 = vld [vmem:[#allocation70_spill] sm:$0xff] }
0x100d   :  { %14101 = vmatpush3.bf16.msra.mxu1 %v20140_v62  ;;  %14133 = vmatpush3.bf16.msra.mxu0 %v20141_v56  ;;  %v20151_v62 = vld [vmem:[#allocation71_spill] sm:$0xff]  ;;  %v20152_v56 = vld [vmem:[#allocation72_spill] sm:$0xff] }
0x100e   :  { %14103 = vmatprep.subr.bf16.mxu1 %v20142_v28  ;;  %14135 = vmatprep.subr.bf16.mxu0 %v20143_v23  ;;  %v20153_v28 = vld [vmem:[#allocation73_spill] sm:$0xff]  ;;  %v20154_v23 = vld [vmem:[#allocation74_spill] sm:$0xff] }
0x1011   :  { %14105 = vmatpush3.bf16.msra.mxu1 %v20144_v31  ;;  %14137 = vmatpush3.bf16.msra.mxu0 %v20145_v33  ;;  %v20155_v31 = vld [vmem:[#allocation75_spill] sm:$0xff] }
0x1012   :  { %14107 = vmatprep.subr.bf16.mxu1 %v20146_v35  ;;  %14139 = vmatprep.subr.bf16.mxu0 %v20147_v6 }
0x1015   :  { %14109 = vmatpush3.bf16.msra.mxu1 %v20148_v49  ;;  %14141 = vmatpush3.bf16.msra.mxu0 %v20149_v40 }
0x1016   :  { %14111 = vmatprep.subr.bf16.mxu1 %v20150_v30  ;;  %14143 = vmatprep.subr.bf16.mxu0 %v20151_v62 }
0x1019   :  { %14113 = vmatpush3.bf16.msra.mxu1 %v20152_v56  ;;  %14145 = vmatpush3.bf16.msra.mxu0 %v20153_v28 }
0x101a   :  { %14147 = vmatprep.subr.bf16.mxu1 %v20154_v23  ;;  %14179 = vmatprep.subr.bf16.mxu0 %v20155_v31 }
0x10b6   :  { %v2878_v33 = vpop.f32.mrb[44].mxu1  ;;  %v2955_v35 = vpop.f32.mrb[44].mxu0 }
0x10b7   :  { %v2879_v6 = vadd.f32 %v2878_v33, %v20156_v9  ;;  %v2956_v49 = vadd.f32 %v2955_v35, %v20157_v15  ;;  %v2880_v10 = vpop.f32.mrb[45].mxu1  ;;  %v2957_v40 = vpop.f32.mrb[45].mxu0 }
0x10b8   :  { %v2881_v30 = vadd.f32 %v2880_v10, %v20158_v42  ;;  %v2958_v62 = vadd.f32 %v2957_v40, %v20159_v25 }
0x10b9   :  { %v3428_v36 = vmax.f32 %v2879_v6, 0.0  ;;  %v3430_v23 = vmax.f32 %v2956_v49, 0.0  ;;  %v20161_v6 = vld [vmem:[#allocation81_spill] sm:$0xff] }
0x10ba   :  { %v3429_v39 = vmax.f32 %v2881_v30, 0.0  ;;  %v3431_v56 = vmax.f32 %v2958_v62, 0.0  ;;  %v2884_v32 = vpop.f32.mrb[46].mxu1  ;;  %v2961_v28 = vpop.f32.mrb[46].mxu0  ;;  %v20160_v62 = vld [vmem:[#allocation80_spill] sm:$0xff] }
0x10bb   :  { %v2885_v31 = vadd.f32 %v2884_v32, %v20156_v9  ;;  %v2962_v55 = vadd.f32 %v2961_v28, %v20157_v15  ;;  %v2886_v5 = vpop.f32.mrb[47].mxu1  ;;  %v2963_v33 = vpop.f32.mrb[47].mxu0 }
0x10bc   :  { %v2887_v35 = vadd.f32 %v2886_v5, %v20158_v42  ;;  %v2964_v27 = vadd.f32 %v2963_v33, %v20159_v25  ;;  %3524 = vmatprep.mubr.f32.mxu1 %v3429_v39  ;;  %3599 = vmatprep.mubr.f32.mxu0 %v3431_v56  ;;  %v20163_v5 = vld [vmem:[#allocation84_spill] sm:$0xff]  ;;  %v20164_v39 = vld [vmem:[#allocation82_spill] sm:$0xff] }
0x10bd   :  { %3525 = vmatmul.mubr.f32.vlgmr.msra.gmra.mrb[60].mxu1 %v3428_v36  ;;  %3600 = vmatmul.mubr.f32.vlgmr.msra.gmra.mrb[60].mxu0 %v3430_v23  ;;  %v3444_v30 = vmax.f32 %v2885_v31, 0.0  ;;  %v3446_v28 = vmax.f32 %v2962_v55, 0.0  ;;  %v20165_v36 = vld [vmem:[#allocation85_spill] sm:$0xff]  ;;  %v20167_v31 = vld [vmem:[#allocation87_spill] sm:$0xff]  ;;  %v20168_v25 = vld [vmem:[#allocation88_spill] sm:$0xff] }
0x10be   :  { %v3445_v10 = vmax.f32 %v2887_v35, 0.0  ;;  %v3447_v40 = vmax.f32 %v2964_v27, 0.0  ;;  %14149 = vmatpush3.bf16.msra.mxu1 %v20160_v62  ;;  %14181 = vmatpush3.bf16.msra.mxu0 %v20161_v6  ;;  %v3032_v49 = vpop.f32.mrb[48].mxu1  ;;  %v3109_v32 = vpop.f32.mrb[48].mxu0  ;;  %v20166_v35 = vld [vmem:[#allocation86_spill] sm:$0xff] }
0x10bf   :  { %v3034_v15 = vpop.f32.mrb[49].mxu1  ;;  %v3111_v9 = vpop.f32.mrb[49].mxu0  ;;  %14151 = vmatprep.subr.bf16.mxu1 %v20162_v3  ;;  %14183 = vmatprep.subr.bf16.mxu0 %v20163_v5  ;;  %v20169_v5 = vld [vmem:[#allocation89_spill] sm:$0xff]  ;;  %v20178_v42 = vld [vmem:[#allocation98_spill] sm:$0xff] }
0x10c0   :  { %v3035_v56 = vadd.f32 %v3034_v15, %v20164_v39  ;;  %v3112_v23 = vadd.f32 %v3111_v9, %v20165_v36  ;;  %3529 = vmatprep.mubr.f32.mxu1 %v3445_v10  ;;  %3604 = vmatprep.mubr.f32.mxu0 %v3447_v40  ;;  %v20170_v15 = vld [vmem:[#allocation90_spill] sm:$0xff]  ;;  %v20171_v9 = vld [vmem:[#allocation91_spill] sm:$0xff] }
0x10c1   :  { %3530 = vmatmul.mubr.f32.gmra.mrb[62].mxu1 %v3444_v30  ;;  %3605 = vmatmul.mubr.f32.gmra.mrb[62].mxu0 %v3446_v28 }
0x10c2   :  { %v3433_v27 = vmax.f32 %v3035_v56, 0.0  ;;  %v3435_v33 = vmax.f32 %v3112_v23, 0.0  ;;  %14153 = vmatpush3.bf16.msra.mxu1 %v20166_v35  ;;  %14185 = vmatpush3.bf16.msra.mxu0 %v20167_v31  ;;  %v3038_v55 = vpop.f32.mrb[50].mxu1  ;;  %v3115_v6 = vpop.f32.mrb[50].mxu0  ;;  %v20172_v56 = vld [vmem:[#allocation92_spill] sm:$0xff]  ;;  %v20173_v23 = vld [vmem:[#allocation93_spill] sm:$0xff] }
0x10c3   :  { %v3040_v62 = vpop.f32.mrb[51].mxu1  ;;  %v3117_v3 = vpop.f32.mrb[51].mxu0  ;;  %14155 = vmatprep.subr.bf16.mxu1 %v20168_v25  ;;  %14187 = vmatprep.subr.bf16.mxu0 %v20169_v5  ;;  %v20174_v31 = vld [vmem:[#allocation94_spill] sm:$0xff]  ;;  %v20175_v25 = vld [vmem:[#allocation95_spill] sm:$0xff]  ;;  %v20176_v5 = vld [vmem:[#allocation96_spill] sm:$0xff] }
0x10c4   :  { %3674 = vmatprep.mubr.f32.mxu1 %v3433_v27  ;;  %3749 = vmatprep.mubr.f32.mxu0 %v3435_v33  ;;  %v20177_v35 = vld [vmem:[#allocation97_spill] sm:$0xff]  ;;  %v3041_v7 = vadd.f32 %v3040_v62, %v20164_v39  ;;  %v3118_v24 = vadd.f32 %v3117_v3, %v20165_v36 }
0x10c6   :  { %14157 = vmatpush3.bf16.msra.mxu1 %v20170_v15  ;;  %14189 = vmatpush3.bf16.msra.mxu0 %v20171_v9  ;;  %v17873_v10 = vpop.f32.mrb[52].mxu1  ;;  %v17875_v40 = vpop.f32.mrb[52].mxu0 }
0x10c7   :  { %v3188_v30 = vpop.f32.mrb[53].mxu1  ;;  %v3265_v28 = vpop.f32.mrb[53].mxu0  ;;  %14159 = vmatprep.subr.bf16.mxu1 %v20172_v56  ;;  %14191 = vmatprep.subr.bf16.mxu0 %v20173_v23  ;;  %v20179_v56 = vld [vmem:[#allocation99_spill] sm:$0xff] }
0x10c8   :  { %v3189_v62 = vadd.f32 %v3188_v30, %v17050_v11  ;;  %v3266_v3 = vadd.f32 %v3265_v28, %v17055_v54  ;;  %v20199_v30 = vld [vmem:[#allocation122_spill] sm:$0xff]  ;;  %v20200_v28 = vld [vmem:[#allocation123_spill] sm:$0xff] }
0x10ca   :  { %14161 = vmatpush3.bf16.msra.mxu1 %v20174_v31  ;;  %14193 = vmatpush3.bf16.msra.mxu0 %v20175_v25  ;;  %v17881_v27 = vpop.f32.mrb[54].mxu1  ;;  %v17883_v33 = vpop.f32.mrb[54].mxu0 }
0x10cb   :  { %v17885_v15 = vpop.f32.mrb[55].mxu1  ;;  %v17887_v9 = vpop.f32.mrb[55].mxu0  ;;  %14163 = vmatprep.subr.bf16.mxu1 %v20176_v5  ;;  %14195 = vmatprep.subr.bf16.mxu0 %v20177_v35  ;;  %v20183_v5 = vld [vmem:[#allocation103_spill] sm:$0xff] }
0x10ce   :  { %14165 = vmatpush3.bf16.msra.mxu1 %v20178_v42  ;;  %14197 = vmatpush3.bf16.msra.mxu0 %v20179_v56  ;;  %v17893_v23 = vpop.f32.mrb[56].mxu1  ;;  %v17895_v31 = vpop.f32.mrb[56].mxu0 }
0x10cf   :  { %v17897_v25 = vpop.f32.mrb[57].mxu1  ;;  %v17899_v57 = vpop.f32.mrb[57].mxu0  ;;  %14167 = vmatprep.subr.bf16.mxu1 %v20180_v50  ;;  %14199 = vmatprep.subr.bf16.mxu0 %v20181_v37  ;;  %v20187_v50 = vld [vmem:[#allocation107_spill] sm:$0xff]  ;;  %v20188_v37 = vld [vmem:[#allocation108_spill] sm:$0xff] }
0x10d2   :  { %14169 = vmatpush3.bf16.msra.mxu1 %v20182_v18  ;;  %14201 = vmatpush3.bf16.msra.mxu0 %v20183_v5  ;;  %v17905_v35 = vpop.f32.mrb[58].mxu1  ;;  %v17907_v42 = vpop.f32.mrb[58].mxu0  ;;  %v3033_v18 = vadd.f32 %v3032_v49, %v16947_v19  ;;  %v3110_v5 = vadd.f32 %v3109_v32, %v16971_v22  ;;  %v3116_v49 = vadd.f32 %v3115_v6, %v16971_v22  ;;  %v3449_v32 = vmax.f32 %v3041_v7, 0.0  ;;  %v20193_v7 = vld [vmem:[#allocation116_spill] sm:$0xff] }
0x10d3   :  { %v17909_v56 = vpop.f32.mrb[59].mxu1  ;;  %v17911_v48 = vpop.f32.mrb[59].mxu0  ;;  %14171 = vmatprep.subr.bf16.mxu1 %v20184_v47  ;;  %14203 = vmatprep.subr.bf16.mxu0 %v20185_v26  ;;  %v3437_v6 = vmax.f32 %v3189_v62, 0.0  ;;  %v20203_v62 = vld [vmem:[#allocation126_spill] sm:$0xff] }
0x10d4   :  { %v3432_v26 = vmax.f32 %v3033_v18, 0.0 }
0x10d6   :  { %14173 = vmatpush3.bf16.msra.mxu1 %v20186_v20  ;;  %14205 = vmatpush3.bf16.msra.mxu0 %v20187_v50  ;;  %v3434_v20 = vmax.f32 %v3110_v5, 0.0  ;;  %v3039_v50 = vadd.f32 %v3038_v55, %v16947_v19  ;;  %v3450_v5 = vmax.f32 %v3116_v49, 0.0  ;;  %v20191_v55 = vld [vmem:[#allocation114_spill] sm:$0xff]  ;;  %v20201_v49 = vld [vmem:[#allocation124_spill] sm:$0xff] }
0x10d7   :  { %14175 = vmatprep.subr.bf16.mxu1 %v20188_v37  ;;  %14207 = vmatprep.subr.bf16.mxu0 %v20189_v16  ;;  %v3451_v16 = vmax.f32 %v3118_v24, 0.0  ;;  %v20194_v24 = vld [vmem:[#allocation117_spill] sm:$0xff] }
0x10d8   :  { %v3448_v18 = vmax.f32 %v3039_v50, 0.0  ;;  %v20198_v50 = vld [vmem:[#allocation121_spill] sm:$0xff] }
0x10da   :  { %14177 = vmatpush3.bf16.msra.mxu1 %v17011_v59  ;;  %14209 = vmatpush3.bf16.msra.mxu0 %v17013_v13  ;;  %v20190_v13 = vld [vmem:[#allocation113_spill] sm:$0xff]  ;;  %v20192_v59 = vld [vmem:[#allocation115_spill] sm:$0xff] }
0x10db   :  { %14211 = vmatprep.subr.bf16.mxu1 %v17015_v0  ;;  %14243 = vmatprep.subr.bf16.mxu0 %v17032_v43  ;;  %v3439_v0 = vmax.f32 %v3266_v3, 0.0  ;;  %v20205_v3 = vld [vmem:[#allocation128_spill] sm:$0xff] }
0x10dd   :  { %3675 = vmatmul.mubr.f32.vlgmr.msra.gmra.mrb[64].mxu1 %v3432_v26  ;;  %3750 = vmatmul.mubr.f32.vlgmr.msra.gmra.mrb[64].mxu0 %v3434_v20  ;;  %v20195_v20 = vld [vmem:[#allocation118_spill] sm:$0xff]  ;;  %v20197_v26 = vld [vmem:[#allocation120_spill] sm:$0xff] }
0x10de   :  { %3679 = vmatprep.mubr.f32.mxu1 %v3449_v32  ;;  %3754 = vmatprep.mubr.f32.mxu0 %v3451_v16  ;;  %v20196_v16 = vld [vmem:[#allocation119_spill] sm:$0xff]  ;;  %v20202_v32 = vld [vmem:[#allocation125_spill] sm:$0xff] }
0x10df   :  { %14213 = vmatpush3.bf16.msra.mxu1 %v20190_v13  ;;  %14245 = vmatpush3.bf16.msra.mxu0 %v20191_v55 }
0x10e0   :  { %14215 = vmatprep.subr.bf16.mxu1 %v20192_v59  ;;  %14247 = vmatprep.subr.bf16.mxu0 %v20193_v7 }
0x10e1   :  { %3680 = vmatmul.mubr.f32.gmra.mrb[66].mxu1 %v3448_v18  ;;  %3755 = vmatmul.mubr.f32.gmra.mrb[66].mxu0 %v3450_v5  ;;  %v20206_v18 = vld [vmem:[#allocation129_spill] sm:$0xff]  ;;  %v20207_v5 = vld [vmem:[#allocation130_spill] sm:$0xff] }
0x10e2   :  { %3824 = vmatprep.mubr.f32.mxu1 %v3437_v6  ;;  %3899 = vmatprep.mubr.f32.mxu0 %v3439_v0  ;;  %v20204_v0 = vld [vmem:[#allocation127_spill] sm:$0xff] }
0x10e3   :  { %14217 = vmatpush3.bf16.msra.mxu1 %v20194_v24  ;;  %14249 = vmatpush3.bf16.msra.mxu0 %v20195_v20  ;;  %v20208_v6 = vld [vmem:[#allocation131_spill] sm:$0xff] }
0x10e4   :  { %14219 = vmatprep.subr.bf16.mxu1 %v20196_v16  ;;  %14251 = vmatprep.subr.bf16.mxu0 %v20197_v26 }
0x10e7   :  { %14221 = vmatpush3.bf16.msra.mxu1 %v20198_v50  ;;  %14253 = vmatpush3.bf16.msra.mxu0 %v20199_v30  ;;  %v20209_v50 = vld [vmem:[#allocation132_spill] sm:$0xff]  ;;  %v20210_v30 = vld [vmem:[#allocation133_spill] sm:$0xff] }
0x10e8   :  { %14223 = vmatprep.subr.bf16.mxu1 %v20200_v28  ;;  %14255 = vmatprep.subr.bf16.mxu0 %v20201_v49  ;;  %v20211_v28 = vld [vmem:[#allocation134_spill] sm:$0xff]  ;;  %v20212_v49 = vld [vmem:[#allocation135_spill] sm:$0xff] }
0x10eb   :  { %14225 = vmatpush3.bf16.msra.mxu1 %v20202_v32  ;;  %14257 = vmatpush3.bf16.msra.mxu0 %v20203_v62  ;;  %v20213_v32 = vld [vmem:[#allocation136_spill] sm:$0xff]  ;;  %v20214_v62 = vld [vmem:[#allocation138_spill] sm:$0xff] }
0x10ec   :  { %14227 = vmatprep.subr.bf16.mxu1 %v20204_v0  ;;  %14259 = vmatprep.subr.bf16.mxu0 %v20205_v3  ;;  %v20215_v0 = vld [vmem:[#allocation139_spill] sm:$0xff] }
0x10ef   :  { %14229 = vmatpush3.bf16.msra.mxu1 %v20206_v18  ;;  %14261 = vmatpush3.bf16.msra.mxu0 %v20207_v5  ;;  %v3187_v18 = vadd.f32 %v17873_v10, %v17284_v60  ;;  %v20216_v5 = vld [vmem:[#allocation141_spill] sm:$0xff]  ;;  %v3193_v10 = vadd.f32 %v17881_v27, %v17284_v60 }
0x10f0   :  { %14231 = vmatprep.subr.bf16.mxu1 %v20208_v6  ;;  %14263 = vmatprep.subr.bf16.mxu0 %v20209_v50  ;;  %v3264_v6 = vadd.f32 %v17875_v40, %v17304_v29  ;;  %v20217_v50 = vld [vmem:[#allocation142_spill] sm:$0xff]  ;;  %v3270_v40 = vadd.f32 %v17883_v33, %v17304_v29 }
0x10f1   :  { %v3452_v27 = vmax.f32 %v3193_v10, 0.0  ;;  %v20226_v10 = vld [vmem:[#allocation162_spill] sm:$0xff] }
0x10f3   :  { %14233 = vmatpush3.bf16.msra.mxu1 %v20210_v30  ;;  %14265 = vmatpush3.bf16.msra.mxu0 %v20211_v28  ;;  %v3195_v28 = vadd.f32 %v17885_v15, %v17050_v11 }
0x10f4   :  { %14235 = vmatprep.subr.bf16.mxu1 %v20212_v49  ;;  %14267 = vmatprep.subr.bf16.mxu0 %v20213_v32  ;;  %v3272_v32 = vadd.f32 %v17887_v9, %v17055_v54  ;;  %v3343_v9 = vadd.f32 %v17897_v25, %v17374_v34  ;;  %v20219_v25 = vld [vmem:[#allocation155_spill] sm:$0xff] }
0x10f5   :  { %v3453_v15 = vmax.f32 %v3195_v28, 0.0  ;;  %v20221_v28 = vld [vmem:[#allocation157_spill] sm:$0xff] }
0x10f6   :  { %v3441_v33 = vmax.f32 %v3343_v9, 0.0  ;;  %v20229_v9 = vld [vmem:[#allocation165_spill] sm:$0xff] }
0x10f7   :  { %14237 = vmatpush3.bf16.msra.mxu1 %v20214_v62  ;;  %14269 = vmatpush3.bf16.msra.mxu0 %v20215_v0  ;;  %v3436_v0 = vmax.f32 %v3187_v18, 0.0  ;;  %v3438_v62 = vmax.f32 %v3264_v6, 0.0  ;;  %v3454_v18 = vmax.f32 %v3270_v40, 0.0  ;;  %v20227_v40 = vld [vmem:[#allocation163_spill] sm:$0xff] }
0x10f8   :  { %14239 = vmatprep.subr.bf16.mxu1 %v20216_v5  ;;  %14271 = vmatprep.subr.bf16.mxu0 %v20217_v50  ;;  %v3455_v50 = vmax.f32 %v3272_v32, 0.0  ;;  %v20222_v32 = vld [vmem:[#allocation158_spill] sm:$0xff] }
0x10fb   :  { %14241 = vmatpush3.bf16.msra.mxu1 %v17335_v4  ;;  %14273 = vmatpush3.bf16.msra.mxu0 %v17337_v21  ;;  %v3420_v21 = vadd.f32 %v17899_v57, %v17379_v41  ;;  %v20218_v57 = vld [vmem:[#allocation154_spill] sm:$0xff] }
0x10fc   :  { %14275 = vmatprep.subr.bf16.mxu1 %v17339_v46  ;;  %14307 = vmatprep.subr.bf16.mxu0 %v17356_v8 }
0x10fd   :  { %v3443_v6 = vmax.f32 %v3420_v21, 0.0  ;;  %v20223_v21 = vld [vmem:[#allocation159_spill] sm:$0xff] }
0x10fe   :  { %3825 = vmatmul.mubr.f32.vlgmr.msra.gmra.mrb[68].mxu1 %v3436_v0  ;;  %3900 = vmatmul.mubr.f32.vlgmr.msra.gmra.mrb[68].mxu0 %v3438_v62  ;;  %v20224_v62 = vld [vmem:[#allocation160_spill] sm:$0xff]  ;;  %v20225_v0 = vld [vmem:[#allocation161_spill] sm:$0xff] }
0x10ff   :  { %3829 = vmatprep.mubr.f32.mxu1 %v3453_v15  ;;  %3904 = vmatprep.mubr.f32.mxu0 %v3455_v50  ;;  %v20220_v50 = vld [vmem:[#allocation156_spill] sm:$0xff] }
0x1100   :  { %14277 = vmatpush3.bf16.msra.mxu1 %v17381_v45  ;;  %14309 = vmatpush3.bf16.msra.mxu0 %v17385_v53  ;;  %v20228_v15 = vld [vmem:[#allocation164_spill] sm:$0xff] }
0x1101   :  { %14279 = vmatprep.subr.bf16.mxu1 %v17387_v38  ;;  %14311 = vmatprep.subr.bf16.mxu0 %v17389_v58 }
0x1102   :  { %3830 = vmatmul.mubr.f32.gmra.mrb[70].mxu1 %v3452_v27  ;;  %3905 = vmatmul.mubr.f32.gmra.mrb[70].mxu0 %v3454_v18  ;;  %v20230_v27 = vld [vmem:[#allocation166_spill] sm:$0xff]  ;;  %v20231_v18 = vld [vmem:[#allocation167_spill] sm:$0xff] }
0x1103   :  { %3974 = vmatprep.mubr.f32.mxu1 %v3441_v33  ;;  %4049 = vmatprep.mubr.f32.mxu0 %v3443_v6  ;;  %v20232_v33 = vld [vmem:[#allocation168_spill] sm:$0xff]  ;;  %v20233_v6 = vld [vmem:[#allocation170_spill] sm:$0xff] }
0x1104   :  { %14281 = vmatpush3.bf16.msra.mxu1 %v17427_v52  ;;  %14313 = vmatpush3.bf16.msra.mxu0 %v20218_v57 }
0x1105   :  { %14283 = vmatprep.subr.bf16.mxu1 %v20219_v25  ;;  %14315 = vmatprep.subr.bf16.mxu0 %v20220_v50 }
0x1108   :  { %14285 = vmatpush3.bf16.msra.mxu1 %v20221_v28  ;;  %14317 = vmatpush3.bf16.msra.mxu0 %v20222_v32 }
0x1109   :  { %14287 = vmatprep.subr.bf16.mxu1 %v20223_v21  ;;  %14319 = vmatprep.subr.bf16.mxu0 %v20224_v62  ;;  %v20234_v62 = vld [vmem:[#allocation171_spill] sm:$0xff]  ;;  %v20240_v21 = vld [vmem:[#allocation177_spill] sm:$0xff] }
0x110c   :  { %14289 = vmatpush3.bf16.msra.mxu1 %v20225_v0  ;;  %14321 = vmatpush3.bf16.msra.mxu0 %v20226_v10  ;;  %v20235_v0 = vld [vmem:[#allocation172_spill] sm:$0xff]  ;;  %v20236_v10 = vld [vmem:[#allocation174_spill] sm:$0xff] }
0x110d   :  { %14291 = vmatprep.subr.bf16.mxu1 %v20227_v40  ;;  %14323 = vmatprep.subr.bf16.mxu0 %v20228_v15  ;;  %v20237_v40 = vld [vmem:[#allocation175_spill] sm:$0xff]  ;;  %v20238_v15 = vld [vmem:[#allocation173_spill] sm:$0xff] }
0x1110   :  { %14293 = vmatpush3.bf16.msra.mxu1 %v20229_v9  ;;  %14325 = vmatpush3.bf16.msra.mxu0 %v20230_v27  ;;  %v3341_v9 = vadd.f32 %v17893_v23, %v20238_v15  ;;  %v20239_v27 = vld [vmem:[#allocation176_spill] sm:$0xff]  ;;  %v3347_v23 = vadd.f32 %v17905_v35, %v20238_v15 }
0x1111   :  { %14295 = vmatprep.subr.bf16.mxu1 %v20231_v18  ;;  %14327 = vmatprep.subr.bf16.mxu0 %v20232_v33  ;;  %v3418_v18 = vadd.f32 %v17895_v31, %v20239_v27  ;;  %v20241_v33 = vld [vmem:[#allocation178_spill] sm:$0xff]  ;;  %v3424_v31 = vadd.f32 %v17907_v42, %v20239_v27 }
0x1114   :  { %14297 = vmatpush3.bf16.msra.mxu1 %v17571_v44  ;;  %14329 = vmatpush3.bf16.msra.mxu0 %v20233_v6  ;;  %v3349_v6 = vadd.f32 %v17909_v56, %v17374_v34  ;;  %v3442_v44 = vmax.f32 %v3418_v18, 0.0 }
0x1115   :  { %14299 = vmatprep.subr.bf16.mxu1 %v20234_v62  ;;  %14331 = vmatprep.subr.bf16.mxu0 %v20235_v0  ;;  %v3426_v0 = vadd.f32 %v17911_v48, %v17379_v41  ;;  %v20242_v62 = vld [vmem:[#allocation179_spill] sm:$0xff]  ;;  %v3456_v48 = vmax.f32 %v3347_v23, 0.0 }
0x1116   :  { %v3457_v56 = vmax.f32 %v3349_v6, 0.0 }
0x1118   :  { %14301 = vmatpush3.bf16.msra.mxu1 %v20236_v10  ;;  %14333 = vmatpush3.bf16.msra.mxu0 %v20237_v40  ;;  %v20243_v10 = vld [vmem:[#allocation180_spill] sm:$0xff]  ;;  %v3440_v40 = vmax.f32 %v3341_v9, 0.0  ;;  %v20245_v9 = vld [vmem:[#allocation9_spill] sm:$0xff] }
0x1119   :  { %14303 = vmatprep.subr.bf16.mxu1 %v20240_v21  ;;  %14335 = vmatprep.subr.bf16.mxu0 %v20241_v33  ;;  %v20244_v21 = vld [vmem:[#allocation8_spill] sm:$0xff]  ;;  %v3459_v33 = vmax.f32 %v3426_v0, 0.0 }
0x111c   :  { %14305 = vmatpush3.bf16.msra.mxu1 %v20242_v62  ;;  %14337 = vmatpush3.bf16.msra.mxu0 %v20243_v10  ;;  %v3458_v10 = vmax.f32 %v3424_v31, 0.0 }
0x111d   :  { %14339 = vmatprep.subr.bf16.mxu1 %v20244_v21  ;;  %13549 = vmatprep.subr.mxu0 %v20101_v51 }
0x111f   :  { %3975 = vmatmul.mubr.f32.vlgmr.msra.gmra.mrb[72].mxu1 %v3440_v40  ;;  %4050 = vmatmul.mubr.f32.vlgmr.msra.gmra.mrb[72].mxu0 %v3442_v44 }
0x1120   :  { %3979 = vmatprep.mubr.f32.mxu1 %v3457_v56  ;;  %4054 = vmatprep.mubr.f32.mxu0 %v3459_v33  ;;  %v15757_v33 = vld [vmem:[%s19511_s3 + $0x2] ss:$0 sm:$0xff] }
0x1121   :  { %14341 = vmatpush3.bf16.msra.mxu1 %v20244_v21 }
0x1122   :  { %14343 = vmatprep.subr.bf16.mxu1 %v20245_v9 }
0x1123   :  { %3980 = vmatmul.mubr.f32.gmra.mrb[74].mxu1 %v3456_v48  ;;  %4055 = vmatmul.mubr.f32.gmra.mrb[74].mxu0 %v3458_v10 }
0x1124   :  { %13551 = vmatprep.mubr.msk.f32.mxu0 %vm15833_vm1, %v20101_v51 }
0x1125   :  { %14345 = vmatpush3.bf16.msra.mxu1 %v20245_v9 }
0x1126   :  { %13554 = vmatprep.subr.mxu1 %v20101_v51 }
0x1190   :  { %v11910_v42 = vpop.f32.mrb[60].mxu1  ;;  %v11948_v35 = vpop.f32.mrb[60].mxu0 }
0x1191   :  { %v11911_v44 = vpop.f32.mrb[61].mxu1  ;;  %v11949_v0 = vpop.f32.mrb[61].mxu0 }
0x1192   :  { %v11912_v40 = vadd.f32 %v11911_v44, %v11910_v42  ;;  %v11950_v18 = vadd.f32 %v11949_v0, %v11948_v35 }
0x1194   :  { %v3527_v6 = vadd.f32 %v15757_v33, %v11912_v40  ;;  %v11913_v23 = vpop.f32.mrb[62].mxu1  ;;  %v11951_v10 = vpop.f32.mrb[62].mxu0 }
0x1195   :  { %v11914_v31 = vpop.f32.mrb[63].mxu1  ;;  %v11952_v56 = vpop.f32.mrb[63].mxu0 }
0x1196   :  { %v3602_v48 = vadd.f32 %v11950_v18, %v3527_v6  ;;  %v11915_v21 = vadd.f32 %v11914_v31, %v11913_v23  ;;  %v11953_v9 = vadd.f32 %v11952_v56, %v11951_v10 }
0x1198   :  { %v3532_v62 = vadd.f32 %v15757_v33, %v11915_v21 }
0x119a   :  { %v3607_v27 = vadd.f32 %v11953_v9, %v3532_v62 }
0x11b0   :  { %v11986_v15 = vpop.f32.mrb[64].mxu1  ;;  %v12024_v32 = vpop.f32.mrb[64].mxu0 }
0x11b1   :  { %v11987_v28 = vpop.f32.mrb[65].mxu1  ;;  %v12025_v50 = vpop.f32.mrb[65].mxu0 }
0x11b2   :  { %v11988_v42 = vadd.f32 %v11987_v28, %v11986_v15  ;;  %v12026_v35 = vadd.f32 %v12025_v50, %v12024_v32 }
0x11b4   :  { %v3677_v44 = vadd.f32 %v11988_v42, %v3602_v48  ;;  %v11989_v0 = vpop.f32.mrb[66].mxu1  ;;  %v12027_v25 = vpop.f32.mrb[66].mxu0 }
0x11b5   :  { %v11990_v57 = vpop.f32.mrb[67].mxu1  ;;  %v12028_v40 = vpop.f32.mrb[67].mxu0 }
0x11b6   :  { %v3752_v52 = vadd.f32 %v12026_v35, %v3677_v44  ;;  %v11991_v58 = vadd.f32 %v11990_v57, %v11989_v0  ;;  %v12029_v38 = vadd.f32 %v12028_v40, %v12027_v25 }
0x11b8   :  { %v3682_v53 = vadd.f32 %v11991_v58, %v3607_v27 }
0x11ba   :  { %v3757_v18 = vadd.f32 %v12029_v38, %v3682_v53 }
0x11d1   :  { %v12062_v6 = vpop.f32.mrb[68].mxu1  ;;  %v12100_v23 = vpop.f32.mrb[68].mxu0 }
0x11d2   :  { %v12063_v21 = vpop.f32.mrb[69].mxu1  ;;  %v12101_v62 = vpop.f32.mrb[69].mxu0 }
0x11d3   :  { %v12064_v9 = vadd.f32 %v12063_v21, %v12062_v6  ;;  %v12102_v33 = vadd.f32 %v12101_v62, %v12100_v23 }
0x11d5   :  { %v3827_v10 = vadd.f32 %v12064_v9, %v3752_v52  ;;  %v12065_v31 = vpop.f32.mrb[70].mxu1  ;;  %v12103_v28 = vpop.f32.mrb[70].mxu0 }
0x11d6   :  { %v12066_v50 = vpop.f32.mrb[71].mxu1  ;;  %v12104_v32 = vpop.f32.mrb[71].mxu0 }
0x11d7   :  { %v3902_v15 = vadd.f32 %v12102_v33, %v3827_v10  ;;  %v12067_v56 = vadd.f32 %v12066_v50, %v12065_v31  ;;  %v12105_v48 = vadd.f32 %v12104_v32, %v12103_v28 }
0x11d9   :  { %v3832_v42 = vadd.f32 %v12067_v56, %v3757_v18 }
0x11db   :  { %v3907_v35 = vadd.f32 %v12105_v48, %v3832_v42 }
0x11f2   :  { %v12138_v57 = vpop.f32.mrb[72].mxu1  ;;  %v12176_v25 = vpop.f32.mrb[72].mxu0 }
0x11f3   :  { %v12139_v58 = vpop.f32.mrb[73].mxu1  ;;  %v12177_v38 = vpop.f32.mrb[73].mxu0 }
0x11f4   :  { %v12140_v53 = vadd.f32 %v12139_v58, %v12138_v57  ;;  %v12178_v27 = vadd.f32 %v12177_v38, %v12176_v25 }
0x11f6   :  { %v3977_v44 = vadd.f32 %v12140_v53, %v3902_v15  ;;  %v12141_v0 = vpop.f32.mrb[74].mxu1  ;;  %v12179_v40 = vpop.f32.mrb[74].mxu0 }
0x11f7   :  { %v12142_v6 = vpop.f32.mrb[75].mxu1  ;;  %v12180_v52 = vpop.f32.mrb[75].mxu0 }
0x11f8   :  { %v4052_v23 = vadd.f32 %v12178_v27, %v3977_v44  ;;  %v12143_v21 = vadd.f32 %v12142_v6, %v12141_v0  ;;  %v12181_v62 = vadd.f32 %v12180_v52, %v12179_v40  ;;  %v15758_v6 = vld [vmem:[%s19511_s3 + $0x3] ss:$0 sm:$0xff] }
0x11fa   :  { %v3982_v9 = vadd.f32 %v12143_v21, %v3907_v35  ;;  %v4060_v33 = vadd.f32 %v4052_v23, %v17747_v14 }
0x11fc   :  { %v4057_v10 = vadd.f32 %v12181_v62, %v3982_v9  ;;  %v4062_v18 = vsel %vm364_vm0, %v4060_v33, 0.0  ;;  %v15759_v62 = vld [vmem:[%s19511_s3 + $0x4] ss:$0 sm:$0xff] }
0x11fd   :  { %4063 = vadd.xlane.f32.xlu0 %v4062_v18 }
0x11fe   :  { %v4061_v31 = vadd.f32 %v4057_v10, %v17755_v63 }
0x1200   :  { %v4065_v28 = vsel %vm364_vm0, %v4061_v31, 0.0 }
0x1201   :  { %4066 = vadd.xlane.f32.xlu1 %v4065_v28 }
0x128a   :  { %v4064_v50 = vpop.xlane.xlu0 %4063 }
0x128b   :  { %v4068_v32 = vmul.f32 0.03125, %v4064_v50 }
0x128d   :  { %v4070_v15 = vsub.f32 %v4060_v33, %v4068_v32 }
0x128e   :  { %v4067_v56 = vpop.xlane.xlu1 %4066 }
0x128f   :  { %v4069_v48 = vmul.f32 0.03125, %v4067_v56  ;;  %v4072_v42 = vmul.f32 %v4070_v15, %v4070_v15 }
0x1291   :  { %v4071_v57 = vsub.f32 %v4061_v31, %v4069_v48  ;;  %v4074_v35 = vsel %vm364_vm0, %v4072_v42, 0.0 }
0x1292   :  { %4075 = vadd.xlane.f32.xlu0 %v4074_v35 }
0x1293   :  { %v4073_v14 = vmul.f32 %v4071_v57, %v4071_v57 }
0x1295   :  { %v4077_v25 = vsel %vm364_vm0, %v4073_v14, 0.0 }
0x1296   :  { %4078 = vadd.xlane.f32.xlu1 %v4077_v25 }
0x131f   :  { %v4076_v58 = vpop.xlane.xlu0 %4075 }
0x1320   :  { %v4080_v38 = vmul.f32 0.03125, %v4076_v58 }
0x1322   :  { %v4082_v63 = vadd.f32 1e-05, %v4080_v38 }
0x1323   :  { %v4079_v53 = vpop.xlane.xlu1 %4078 }
0x1324   :  { %15686 = vrsqrt.f32 %v4082_v63  ;;  %v4081_v27 = vmul.f32 0.03125, %v4079_v53 }
0x1326   :  { %v4083_v44 = vadd.f32 1e-05, %v4081_v27 }
0x1328   :  { %15688 = vrsqrt.f32 %v4083_v44 }
0x132e   :  { %v15687_v0 = vpop.eup %15686 }
0x132f   :  { %v4086_v40 = vmul.f32 %v15687_v0, %v4070_v15 }
0x1331   :  { %v4088_v52 = vmul.f32 %v15758_v6, %v4086_v40 }
0x1332   :  { %v15689_v23 = vpop.eup %15688 }
0x1333   :  { %v4087_v21 = vmul.f32 %v15689_v23, %v4071_v57  ;;  %v18044_v9 = vadd.f32 %v15759_v62, %v4088_v52 }
0x1335   :  { %v4089_v33 = vmul.f32 %v15758_v6, %v4087_v21  ;;  %13546 = vmatprep.mubr.msk.f32.mxu1 %vm364_vm0, %v18044_v9  ;;  %v15760_v21 = vld [vmem:[%s19510_s2] sm:$0xf] }
0x1337   :  { %v18048_v10 = vadd.f32 %v15759_v62, %v4089_v33 }
0x1339   :  { %13547 = vmatmul.mubr.msk.f32.vlgmr.msra.gmra.mrb[76].mxu1 %vm364_vm0, %v18048_v10 }
0x133a   :  { %13556 = vmatprep.mubr.msk.f32.mxu1 %vm15833_vm1, %v20101_v51 }
0x140c   :  { %v13548_v18 = vpop.f32.mrb[76].mxu1 }
0x140d   :  { %4254 = vrot.lane.b32.xlu1 %v13548_v18, %s15834_s16  ;;  %v4167_v31 = vpop.f32.mrb[77].mxu1 }
0x140e   :  { %4177 = vrot.lane.b32.xlu0 %v4167_v31, %s15834_s16 }
0x147f   :  { %v4255_v28 = vpop.permute.xlu1 %4254 }
0x1480   :  { %13555 = vmatpush3.xpose.msk.msra.mxu1 %vm449_vm2, %v4255_v28  ;;  %v4178_v50 = vpop.permute.xlu0 %4177  ;;  %v20246_v28 = vld [vmem:[#allocation18_spill] sm:$0xff] }
0x1481   :  { %13550 = vmatpush3.xpose.msk.msra.mxu0 %vm449_vm2, %v4178_v50  ;;  %13564 = vmatprep.subr.mxu1 %v20101_v51 }
0x1482   :  { %13559 = vmatprep.subr.mxu0 %v20101_v51 }
0x1483   :  { %13557 = vmatmul.mubr.msk.f32.vlgmr.msra.gmra.mrb[78].mxu1 %vm449_vm2, %v13548_v18 }
0x1484   :  { %13552 = vmatmul.mubr.msk.f32.vlgmr.msra.gmra.mrb[76].mxu0 %vm449_vm2, %v4167_v31  ;;  %13566 = vmatprep.mubr.msk.f32.mxu1 %vm15833_vm1, %v20101_v51 }
0x1485   :  { %13561 = vmatprep.mubr.msk.f32.mxu0 %vm15833_vm1, %v20101_v51 }
0x1556   :  { %v4326_v32 = vpop.f32.mrb[78].mxu1 }
0x1557   :  { %v4249_v15 = vpop.f32.mrb[76].mxu0  ;;  %v13558_v56 = vpop.f32.mrb[79].mxu1  ;;  %v4333_v48 = vsel %vm601_vm3, %v4326_v32, -inf }
0x1558   :  { %v13553_v42 = vpop.f32.mrb[77].mxu0  ;;  %4334 = vmax.xlane.f32.xlu0 %v4333_v48  ;;  %v4330_v57 = vsel %vm601_vm3, %v4249_v15, -inf  ;;  %v20247_v48 = vld [vmem:[#allocation13_spill] sm:$0xff] }
0x1559   :  { %4331 = vmax.xlane.f32.xlu1 %v4330_v57  ;;  %v20248_v42 = vld [vmem:[#allocation15_spill] sm:$0xff]  ;;  %v20249_v57 = vld [vmem:[#allocation17_spill] sm:$0xff] }
0x15e5   :  { %v4335_v35 = vpop.xlane.xlu0 %4334 }
0x15e6   :  { %v4337_v14 = vsub.f32 %v4326_v32, %v4335_v35  ;;  %v4332_v25 = vpop.xlane.xlu1 %4331  ;;  %v20250_v35 = vld [vmem:[#allocation19_spill] sm:$0xff] }
0x15e7   :  { %v4336_v58 = vsub.f32 %v4249_v15, %v4332_v25 }
0x15e8   :  { %v4340_v38 = vmul.f32 1.442695, %v4337_v14 }
0x15e9   :  { %v4338_v63 = vmul.f32 1.442695, %v4336_v58 }
0x15ea   :  { %15690 = vpow2.f32 %v4340_v38 }
0x15eb   :  { %15692 = vpow2.f32 %v4338_v63 }
0x15f4   :  { %v15691_v53 = vpop.eup %15690 }
0x15f5   :  { %v15693_v27 = vpop.eup %15692  ;;  %v4345_v44 = vsel %vm601_vm3, %v15691_v53, 0.0 }
0x15f6   :  { %4346 = vadd.xlane.f32.xlu1 %v4345_v44  ;;  %v4342_v0 = vsel %vm601_vm3, %v15693_v27, 0.0 }
0x15f7   :  { %4343 = vadd.xlane.f32.xlu0 %v4342_v0 }
0x1607   :  { %4428 = vrot.lane.b32.xlu1 %v13548_v18, %s15835_s0 }
0x160d   :  { %4352 = vrot.lane.b32.xlu0 %v4167_v31, %s15835_s0 }
0x1683   :  { %v4347_v40 = vpop.xlane.xlu1 %4346 }
0x1684   :  { %15694 = vrcp.f32 %v4347_v40  ;;  %v4344_v6 = vpop.xlane.xlu0 %4343 }
0x1685   :  { %15696 = vrcp.f32 %v4344_v6 }
0x1687   :  { %v4429_v52 = vpop.permute.xlu1 %4428 }
0x1688   :  { %13565 = vmatpush3.msra.mxu1 %v4429_v52  ;;  %v4353_v23 = vpop.permute.xlu0 %4352 }
0x1689   :  { %13560 = vmatpush3.msra.mxu0 %v4353_v23  ;;  %14347 = vmatprep.subr.bf16.mxu1 %v15975_v61  ;;  %v20339_v61 = vld [vmem:[#allocation112_spill] sm:$0xff] }
0x168a   :  { %13569 = vmatprep.subr.msk.mxu0 %vm782_vm4, %v15760_v21 }
0x168e   :  { %v15695_v62 = vpop.eup %15694 }
0x168f   :  { %v15697_v33 = vpop.eup %15696  ;;  %v4351_v18 = vmul.f32 %v15695_v62, %v15691_v53 }
0x1690   :  { %v4350_v31 = vmul.f32 %v15697_v33, %v15693_v27 }
0x1691   :  { %5905 = vst.msk [vmem:[#allocation4 + $0x28] sm:$0xff] %vm601_vm3, %v4351_v18  ;;  %13567 = vmatmul.mubr.msk.f32.vlgmr.msra.gmra.mrb[80].mxu1 %vm601_vm3, %v4351_v18 }
0x1692   :  { %5904 = vst.msk [vmem:[#allocation4 + $0x20] sm:$0xff] %vm601_vm3, %v4350_v31  ;;  %13562 = vmatmul.mubr.msk.f32.vlgmr.msra.gmra.mrb[78].mxu0 %vm601_vm3, %v4350_v31  ;;  %14349 = vmatpush1.bf16.msra.mxu1 %v15988_v2  ;;  %v20337_v2 = vld [vmem:[#allocation110_spill] sm:$0xff] }
0x1693   :  { %13570 = vmatpush3.msk.msra.mxu0 %vm782_vm4, %v15760_v21  ;;  %14351 = vmatprep.subr.bf16.mxu1 %v16011_v12 }
0x1694   :  { %14355 = vmatprep.subr.bf16.mxu0 %v15986_v1  ;;  %4687 = vmatprep.mubr.f32.mxu1 %v20101_v51 }
0x1696   :  { %14353 = vmatpush1.bf16.msra.mxu1 %v16024_v17  ;;  %v20334_v17 = vld [vmem:[#allocation106_spill] sm:$0xff] }
0x1697   :  { %14363 = vmatprep.subr.bf16.mxu1 %v20246_v28  ;;  %v20333_v28 = vld [vmem:[#allocation105_spill] sm:$0xff] }
0x1764   :  { %v4500_v50 = vpop.f32.mrb[80].mxu1 }
0x1765   :  { %v4424_v32 = vpop.f32.mrb[78].mxu0  ;;  %v13568_v15 = vpop.f32.mrb[81].mxu1 }
0x1766   :  { %v13563_v56 = vpop.f32.mrb[79].mxu0  ;;  %13571 = vmatprep.mubr.msk.f32.mxu0 %vm449_vm2, %v4424_v32 }
0x1767   :  { %13572 = vmatmul.mubr.msk.f32.vlgmr.msra.gmra.mrb[80].mxu0 %vm449_vm2, %v4500_v50 }
0x1768   :  { %14357 = vmatpush1.bf16.msra.mxu0 %v20247_v48  ;;  %4764 = vmatprep.mubr.f32.mxu0 %v20101_v51 }
0x1769   :  { %14359 = vmatprep.subr.bf16.mxu0 %v20248_v42  ;;  %v20331_v42 = vld [vmem:[#allocation102_spill] sm:$0xff] }
0x176c   :  { %14361 = vmatpush1.bf16.msra.mxu0 %v20249_v57  ;;  %v20330_v57 = vld [vmem:[#allocation101_spill] sm:$0xff] }
0x176d   :  { %14371 = vmatprep.subr.bf16.mxu0 %v20250_v35  ;;  %v20313_v35 = vld [vmem:[#allocation83_spill] sm:$0xff] }
0x183a   :  { %v13573_v14 = vpop.f32.mrb[80].mxu0 }
0x183b   :  { %v4586_v25 = vadd.f32 %v13573_v14, %v18048_v10  ;;  %v4576_v58 = vpop.f32.mrb[81].mxu0 }
0x183c   :  { %v4585_v38 = vadd.f32 %v4576_v58, %v18044_v9  ;;  %v15761_v58 = vld [vmem:[%s19511_s3] ss:$0 sm:$0xff] }
0x183d   :  { %v4590_v63 = vsel %vm364_vm0, %v4586_v25, 0.0 }
0x183e   :  { %4591 = vadd.xlane.f32.xlu0 %v4590_v63  ;;  %v4587_v53 = vsel %vm364_vm0, %v4585_v38, 0.0 }
0x183f   :  { %4588 = vadd.xlane.f32.xlu1 %v4587_v53  ;;  %v15762_v53 = vld [vmem:[%s19511_s3 + $0x1] ss:$0 sm:$0xff] }
0x18cb   :  { %v4592_v27 = vpop.xlane.xlu0 %4591 }
0x18cc   :  { %v4594_v44 = vmul.f32 0.03125, %v4592_v27  ;;  %v4589_v0 = vpop.xlane.xlu1 %4588 }
0x18cd   :  { %v4593_v40 = vmul.f32 0.03125, %v4589_v0  ;;  %v20252_v0 = vld [vmem:[#allocation21_spill] sm:$0xff] }
0x18ce   :  { %v4596_v6 = vsub.f32 %v4586_v25, %v4594_v44  ;;  %v20251_v44 = vld [vmem:[#allocation20_spill] sm:$0xff] }
0x18cf   :  { %v4595_v52 = vsub.f32 %v4585_v38, %v4593_v40 }
0x18d0   :  { %v4598_v23 = vmul.f32 %v4596_v6, %v4596_v6 }
0x18d1   :  { %v4597_v21 = vmul.f32 %v4595_v52, %v4595_v52 }
0x18d2   :  { %v4602_v62 = vsel %vm364_vm0, %v4598_v23, 0.0  ;;  %v20255_v23 = vld [vmem:[#allocation24_spill] sm:$0xff] }
0x18d3   :  { %4603 = vadd.xlane.f32.xlu1 %v4602_v62  ;;  %v4599_v10 = vsel %vm364_vm0, %v4597_v21, 0.0  ;;  %v20256_v21 = vld [vmem:[#allocation25_spill] sm:$0xff]  ;;  %v20257_v62 = vld [vmem:[#allocation26_spill] sm:$0xff] }
0x18d4   :  { %4600 = vadd.xlane.f32.xlu0 %v4599_v10  ;;  %v20258_v10 = vld [vmem:[#allocation27_spill] sm:$0xff] }
0x1960   :  { %v4604_v9 = vpop.xlane.xlu1 %4603 }
0x1961   :  { %v4606_v33 = vmul.f32 0.03125, %v4604_v9  ;;  %v4601_v18 = vpop.xlane.xlu0 %4600  ;;  %v20259_v9 = vld [vmem:[#allocation28_spill] sm:$0xff] }
0x1962   :  { %v4605_v31 = vmul.f32 0.03125, %v4601_v18  ;;  %v20261_v18 = vld [vmem:[#allocation30_spill] sm:$0xff] }
0x1963   :  { %v4608_v50 = vadd.f32 1e-05, %v4606_v33  ;;  %v20260_v33 = vld [vmem:[#allocation29_spill] sm:$0xff] }
0x1964   :  { %v4607_v32 = vadd.f32 1e-05, %v4605_v31  ;;  %v20262_v31 = vld [vmem:[#allocation31_spill] sm:$0xff] }
0x1965   :  { %15698 = vrsqrt.f32 %v4608_v50  ;;  %v20263_v50 = vld [vmem:[#allocation32_spill] sm:$0xff] }
0x1966   :  { %15700 = vrsqrt.f32 %v4607_v32  ;;  %v20264_v32 = vld [vmem:[#allocation33_spill] sm:$0xff] }
0x196f   :  { %v15699_v15 = vpop.eup %15698 }
0x1970   :  { %v15701_v56 = vpop.eup %15700  ;;  %v4612_v14 = vmul.f32 %v15699_v15, %v4596_v6  ;;  %v20253_v6 = vld [vmem:[#allocation22_spill] sm:$0xff] }
0x1971   :  { %v4611_v25 = vmul.f32 %v15701_v56, %v4595_v52  ;;  %v20254_v52 = vld [vmem:[#allocation23_spill] sm:$0xff]  ;;  %v20265_v15 = vld [vmem:[#allocation34_spill] sm:$0xff] }
0x1972   :  { %v4614_v63 = vmul.f32 %v15761_v58, %v4612_v14  ;;  %v20266_v56 = vld [vmem:[#allocation35_spill] sm:$0xff]  ;;  %v20267_v14 = vld [vmem:[#allocation36_spill] sm:$0xff] }
0x1973   :  { %v4613_v38 = vmul.f32 %v15761_v58, %v4611_v25  ;;  %v20268_v25 = vld [vmem:[#allocation37_spill] sm:$0xff]  ;;  %v20269_v58 = vld [vmem:[#allocation38_spill] sm:$0xff] }
0x1974   :  { %v18115_v40 = vadd.f32 %v15762_v53, %v4614_v63  ;;  %v20271_v63 = vld [vmem:[#allocation40_spill] sm:$0xff] }
0x1975   :  { %v18107_v27 = vadd.f32 %v15762_v53, %v4613_v38  ;;  %v20270_v38 = vld [vmem:[#allocation39_spill] sm:$0xff]  ;;  %v20272_v53 = vld [vmem:[#allocation41_spill] sm:$0xff] }
0x1977   :  { %11443 = vmatmul.mubr.msk.f32.vlgmr.msra.gmra.mrb[82].mxu1 %vm364_vm0, %v18107_v27  ;;  %11445 = vmatmul.mubr.msk.f32.vlgmr.msra.gmra.mrb[82].mxu0 %vm364_vm0, %v18107_v27 }
0x1978   :  { %14365 = vmatpush1.bf16.msra.mxu1 %v20251_v44  ;;  %14373 = vmatpush1.bf16.msra.mxu0 %v20252_v0 }
0x1979   :  { %4693 = vmatprep.mubr.f32.mxu1 %v20101_v51  ;;  %4770 = vmatprep.mubr.f32.mxu0 %v20101_v51 }
0x197a   :  { %14367 = vmatprep.subr.bf16.mxu1 %v20253_v6  ;;  %14375 = vmatprep.subr.bf16.mxu0 %v20254_v52 }
0x197b   :  { %11444 = vmatmul.mubr.msk.f32.gmra.mrb[84].mxu1 %vm364_vm0, %v18115_v40  ;;  %11446 = vmatmul.mubr.msk.f32.gmra.mrb[84].mxu0 %vm364_vm0, %v18115_v40 }
0x197c   :  { %14369 = vmatpush1.bf16.msra.mxu1 %v20255_v23  ;;  %14377 = vmatpush1.bf16.msra.mxu0 %v20256_v21 }
0x197d   :  { %4841 = vmatprep.mubr.f32.mxu1 %v20101_v51  ;;  %4918 = vmatprep.mubr.f32.mxu0 %v20101_v51 }
0x197e   :  { %14379 = vmatprep.subr.bf16.mxu1 %v20257_v62  ;;  %14387 = vmatprep.subr.bf16.mxu0 %v20258_v10  ;;  %v20309_v10 = vld [vmem:[#allocation78_spill] sm:$0xff]  ;;  %v20310_v62 = vld [vmem:[#allocation79_spill] sm:$0xff] }
0x197f   :  { %11447 = vmatmul.mubr.msk.f32.vlgmr.msra.gmra.mrb[86].mxu1 %vm364_vm0, %v18107_v27  ;;  %11449 = vmatmul.mubr.msk.f32.vlgmr.msra.gmra.mrb[86].mxu0 %vm364_vm0, %v18107_v27 }
0x1980   :  { %14381 = vmatpush1.bf16.msra.mxu1 %v20259_v9  ;;  %14389 = vmatpush1.bf16.msra.mxu0 %v20260_v33  ;;  %v20308_v33 = vld [vmem:[#allocation77_spill] sm:$0xff] }
0x1981   :  { %4847 = vmatprep.mubr.f32.mxu1 %v20101_v51  ;;  %4924 = vmatprep.mubr.f32.mxu0 %v20101_v51 }
0x1982   :  { %14383 = vmatprep.subr.bf16.mxu1 %v20261_v18  ;;  %14391 = vmatprep.subr.bf16.mxu0 %v20262_v31  ;;  %v20289_v31 = vld [vmem:[#allocation58_spill] sm:$0xff]  ;;  %v20307_v18 = vld [vmem:[#allocation76_spill] sm:$0xff] }
0x1983   :  { %11448 = vmatmul.mubr.msk.f32.gmra.mrb[88].mxu1 %vm364_vm0, %v18115_v40  ;;  %11450 = vmatmul.mubr.msk.f32.gmra.mrb[88].mxu0 %vm364_vm0, %v18115_v40 }
0x1984   :  { %14385 = vmatpush1.bf16.msra.mxu1 %v20263_v50  ;;  %14393 = vmatpush1.bf16.msra.mxu0 %v20264_v32  ;;  %v20287_v32 = vld [vmem:[#allocation56_spill] sm:$0xff]  ;;  %v20288_v50 = vld [vmem:[#allocation57_spill] sm:$0xff] }
0x1985   :  { %4995 = vmatprep.mubr.f32.mxu1 %v20101_v51  ;;  %5072 = vmatprep.mubr.f32.mxu0 %v20101_v51 }
0x1986   :  { %14395 = vmatprep.subr.bf16.mxu1 %v20265_v15  ;;  %14403 = vmatprep.subr.bf16.mxu0 %v20266_v56  ;;  %v20281_v56 = vld [vmem:[#allocation50_spill] sm:$0xff]  ;;  %v20282_v15 = vld [vmem:[#allocation51_spill] sm:$0xff] }
0x1987   :  { %11451 = vmatmul.mubr.msk.f32.vlgmr.msra.gmra.mrb[90].mxu1 %vm364_vm0, %v18107_v27  ;;  %11453 = vmatmul.mubr.msk.f32.vlgmr.msra.gmra.mrb[90].mxu0 %vm364_vm0, %v18107_v27 }
0x1988   :  { %14397 = vmatpush1.bf16.msra.mxu1 %v20267_v14  ;;  %14405 = vmatpush1.bf16.msra.mxu0 %v20268_v25  ;;  %v20273_v25 = vld [vmem:[#allocation42_spill] sm:$0xff]  ;;  %v20274_v14 = vld [vmem:[#allocation43_spill] sm:$0xff] }
0x1989   :  { %5001 = vmatprep.mubr.f32.mxu1 %v20101_v51  ;;  %5078 = vmatprep.mubr.f32.mxu0 %v20101_v51 }
0x198a   :  { %14399 = vmatprep.subr.bf16.mxu1 %v20269_v58  ;;  %14407 = vmatprep.subr.bf16.mxu0 %v20270_v38  ;;  %v20277_v38 = vld [vmem:[#allocation46_spill] sm:$0xff]  ;;  %v20278_v58 = vld [vmem:[#allocation47_spill] sm:$0xff] }
0x198b   :  { %11452 = vmatmul.mubr.msk.f32.gmra.mrb[92].mxu1 %vm364_vm0, %v18115_v40  ;;  %11454 = vmatmul.mubr.msk.f32.gmra.mrb[92].mxu0 %vm364_vm0, %v18115_v40 }
0x198c   :  { %14401 = vmatpush1.bf16.msra.mxu1 %v20271_v63  ;;  %14409 = vmatpush1.bf16.msra.mxu0 %v20272_v53  ;;  %v20275_v63 = vld [vmem:[#allocation44_spill] sm:$0xff]  ;;  %v20276_v53 = vld [vmem:[#allocation45_spill] sm:$0xff] }
0x198d   :  { %5149 = vmatprep.mubr.f32.mxu1 %v20101_v51  ;;  %5226 = vmatprep.mubr.f32.mxu0 %v20101_v51 }
0x198e   :  { %14411 = vmatprep.subr.bf16.mxu1 %v20273_v25  ;;  %14443 = vmatprep.subr.bf16.mxu0 %v20274_v14  ;;  %v20279_v14 = vld [vmem:[#allocation48_spill] sm:$0xff]  ;;  %v20280_v25 = vld [vmem:[#allocation49_spill] sm:$0xff] }
0x198f   :  { %11455 = vmatmul.mubr.msk.f32.vlgmr.msra.gmra.mrb[94].mxu1 %vm364_vm0, %v18107_v27  ;;  %11457 = vmatmul.mubr.msk.f32.vlgmr.msra.gmra.mrb[94].mxu0 %vm364_vm0, %v18107_v27 }
0x1990   :  { %5155 = vmatprep.mubr.f32.mxu1 %v20101_v51  ;;  %5232 = vmatprep.mubr.f32.mxu0 %v20101_v51 }
0x1991   :  { %14413 = vmatpush3.bf16.msra.mxu1 %v20275_v63  ;;  %14445 = vmatpush3.bf16.msra.mxu0 %v20276_v53  ;;  %v20283_v63 = vld [vmem:[#allocation52_spill] sm:$0xff]  ;;  %v20284_v53 = vld [vmem:[#allocation53_spill] sm:$0xff] }
0x1992   :  { %14415 = vmatprep.subr.bf16.mxu1 %v20277_v38  ;;  %14447 = vmatprep.subr.bf16.mxu0 %v20278_v58  ;;  %v20285_v38 = vld [vmem:[#allocation54_spill] sm:$0xff]  ;;  %v20286_v58 = vld [vmem:[#allocation55_spill] sm:$0xff] }
0x1993   :  { %11456 = vmatmul.mubr.msk.f32.gmra.mrb[96].mxu1 %vm364_vm0, %v18115_v40  ;;  %11458 = vmatmul.mubr.msk.f32.gmra.mrb[96].mxu0 %vm364_vm0, %v18115_v40 }
0x1995   :  { %14417 = vmatpush3.bf16.msra.mxu1 %v20279_v14  ;;  %14449 = vmatpush3.bf16.msra.mxu0 %v20280_v25  ;;  %v20290_v14 = vld [vmem:[#allocation59_spill] sm:$0xff]  ;;  %v20291_v25 = vld [vmem:[#allocation60_spill] sm:$0xff] }
0x1996   :  { %14419 = vmatprep.subr.bf16.mxu1 %v20281_v56  ;;  %14451 = vmatprep.subr.bf16.mxu0 %v20282_v15  ;;  %v20292_v56 = vld [vmem:[#allocation61_spill] sm:$0xff]  ;;  %v20293_v15 = vld [vmem:[#allocation62_spill] sm:$0xff] }
0x1999   :  { %14421 = vmatpush3.bf16.msra.mxu1 %v20283_v63  ;;  %14453 = vmatpush3.bf16.msra.mxu0 %v20284_v53  ;;  %v20294_v63 = vld [vmem:[#allocation63_spill] sm:$0xff]  ;;  %v20295_v53 = vld [vmem:[#allocation64_spill] sm:$0xff] }
0x199a   :  { %14423 = vmatprep.subr.bf16.mxu1 %v20285_v38  ;;  %14455 = vmatprep.subr.bf16.mxu0 %v20286_v58  ;;  %v20296_v38 = vld [vmem:[#allocation65_spill] sm:$0xff]  ;;  %v20297_v58 = vld [vmem:[#allocation66_spill] sm:$0xff] }
0x199d   :  { %14425 = vmatpush3.bf16.msra.mxu1 %v20287_v32  ;;  %14457 = vmatpush3.bf16.msra.mxu0 %v20288_v50  ;;  %v20298_v32 = vld [vmem:[#allocation67_spill] sm:$0xff]  ;;  %v20299_v50 = vld [vmem:[#allocation68_spill] sm:$0xff] }
0x199e   :  { %14427 = vmatprep.subr.bf16.mxu1 %v20289_v31  ;;  %14459 = vmatprep.subr.bf16.mxu0 %v20290_v14  ;;  %v20300_v31 = vld [vmem:[#allocation69_spill] sm:$0xff]  ;;  %v20301_v14 = vld [vmem:[#allocation70_spill] sm:$0xff] }
0x19a1   :  { %14429 = vmatpush3.bf16.msra.mxu1 %v20291_v25  ;;  %14461 = vmatpush3.bf16.msra.mxu0 %v20292_v56  ;;  %v20302_v25 = vld [vmem:[#allocation71_spill] sm:$0xff]  ;;  %v20303_v56 = vld [vmem:[#allocation72_spill] sm:$0xff] }
0x19a2   :  { %14431 = vmatprep.subr.bf16.mxu1 %v20293_v15  ;;  %14463 = vmatprep.subr.bf16.mxu0 %v20294_v63  ;;  %v20304_v15 = vld [vmem:[#allocation73_spill] sm:$0xff]  ;;  %v20305_v63 = vld [vmem:[#allocation74_spill] sm:$0xff] }
0x19a5   :  { %14433 = vmatpush3.bf16.msra.mxu1 %v20295_v53  ;;  %14465 = vmatpush3.bf16.msra.mxu0 %v20296_v38  ;;  %v20306_v53 = vld [vmem:[#allocation75_spill] sm:$0xff] }
0x19a6   :  { %14435 = vmatprep.subr.bf16.mxu1 %v20297_v58  ;;  %14467 = vmatprep.subr.bf16.mxu0 %v20298_v32 }
0x19a9   :  { %14437 = vmatpush3.bf16.msra.mxu1 %v20299_v50  ;;  %14469 = vmatpush3.bf16.msra.mxu0 %v20300_v31 }
0x19aa   :  { %14439 = vmatprep.subr.bf16.mxu1 %v20301_v14  ;;  %14471 = vmatprep.subr.bf16.mxu0 %v20302_v25 }
0x19ad   :  { %14441 = vmatpush3.bf16.msra.mxu1 %v20303_v56  ;;  %14473 = vmatpush3.bf16.msra.mxu0 %v20304_v15 }
0x19ae   :  { %14475 = vmatprep.subr.bf16.mxu1 %v20305_v63  ;;  %14507 = vmatprep.subr.bf16.mxu0 %v20306_v53 }
0x1a4a   :  { %v4689_v38 = vpop.f32.mrb[82].mxu1  ;;  %v4766_v58 = vpop.f32.mrb[82].mxu0 }
0x1a4b   :  { %v4690_v32 = vadd.f32 %v4689_v38, %v20307_v18  ;;  %v4767_v50 = vadd.f32 %v4766_v58, %v20308_v33  ;;  %v4691_v9 = vpop.f32.mrb[83].mxu1  ;;  %v4768_v31 = vpop.f32.mrb[83].mxu0 }
0x1a4c   :  { %v4692_v14 = vadd.f32 %v4691_v9, %v20309_v10  ;;  %v4769_v25 = vadd.f32 %v4768_v31, %v20310_v62 }
0x1a4d   :  { %v5239_v52 = vmax.f32 %v4690_v32, 0.0  ;;  %v5241_v63 = vmax.f32 %v4767_v50, 0.0  ;;  %v20312_v32 = vld [vmem:[#allocation81_spill] sm:$0xff] }
0x1a4e   :  { %v5240_v21 = vmax.f32 %v4692_v14, 0.0  ;;  %v5242_v56 = vmax.f32 %v4769_v25, 0.0  ;;  %v4695_v23 = vpop.f32.mrb[84].mxu1  ;;  %v4772_v15 = vpop.f32.mrb[84].mxu0  ;;  %v20311_v14 = vld [vmem:[#allocation80_spill] sm:$0xff] }
0x1a4f   :  { %v4696_v53 = vadd.f32 %v4695_v23, %v20307_v18  ;;  %v4773_v6 = vadd.f32 %v4772_v15, %v20308_v33  ;;  %v4697_v0 = vpop.f32.mrb[85].mxu1  ;;  %v4774_v38 = vpop.f32.mrb[85].mxu0 }
0x1a50   :  { %v4698_v58 = vadd.f32 %v4697_v0, %v20309_v10  ;;  %v4775_v44 = vadd.f32 %v4774_v38, %v20310_v62  ;;  %5335 = vmatprep.mubr.f32.mxu1 %v5240_v21  ;;  %5410 = vmatprep.mubr.f32.mxu0 %v5242_v56  ;;  %v20314_v0 = vld [vmem:[#allocation84_spill] sm:$0xff] }
0x1a51   :  { %5336 = vmatmul.mubr.f32.vlgmr.msra.gmra.mrb[98].mxu1 %v5239_v52  ;;  %5411 = vmatmul.mubr.f32.vlgmr.msra.gmra.mrb[98].mxu0 %v5241_v63  ;;  %v5255_v25 = vmax.f32 %v4696_v53, 0.0  ;;  %v5257_v15 = vmax.f32 %v4773_v6, 0.0  ;;  %v20315_v63 = vld [vmem:[#allocation86_spill] sm:$0xff]  ;;  %v20316_v53 = vld [vmem:[#allocation87_spill] sm:$0xff]  ;;  %v20329_v10 = vld [vmem:[#allocation100_spill] sm:$0xff] }
0x1a52   :  { %v5256_v9 = vmax.f32 %v4698_v58, 0.0  ;;  %v5258_v31 = vmax.f32 %v4775_v44, 0.0  ;;  %14477 = vmatpush3.bf16.msra.mxu1 %v20311_v14  ;;  %14509 = vmatpush3.bf16.msra.mxu0 %v20312_v32  ;;  %v4843_v50 = vpop.f32.mrb[86].mxu1  ;;  %v4920_v23 = vpop.f32.mrb[86].mxu0  ;;  %v20317_v32 = vld [vmem:[#allocation88_spill] sm:$0xff]  ;;  %v20327_v14 = vld [vmem:[#allocation98_spill] sm:$0xff] }
0x1a53   :  { %v4845_v33 = vpop.f32.mrb[87].mxu1  ;;  %v4922_v18 = vpop.f32.mrb[87].mxu0  ;;  %14479 = vmatprep.subr.bf16.mxu1 %v20313_v35  ;;  %14511 = vmatprep.subr.bf16.mxu0 %v20314_v0  ;;  %v20318_v0 = vld [vmem:[#allocation89_spill] sm:$0xff] }
0x1a54   :  { %v4846_v21 = vadd.f32 %v4845_v33, %v20164_v39  ;;  %v4923_v52 = vadd.f32 %v4922_v18, %v20165_v36  ;;  %5340 = vmatprep.mubr.f32.mxu1 %v5256_v9  ;;  %5415 = vmatprep.mubr.f32.mxu0 %v5258_v31  ;;  %v20319_v33 = vld [vmem:[#allocation90_spill] sm:$0xff]  ;;  %v20320_v18 = vld [vmem:[#allocation91_spill] sm:$0xff] }
0x1a55   :  { %5341 = vmatmul.mubr.f32.gmra.mrb[100].mxu1 %v5255_v25  ;;  %5416 = vmatmul.mubr.f32.gmra.mrb[100].mxu0 %v5257_v15 }
0x1a56   :  { %v5244_v44 = vmax.f32 %v4846_v21, 0.0  ;;  %v5246_v56 = vmax.f32 %v4923_v52, 0.0  ;;  %14481 = vmatpush3.bf16.msra.mxu1 %v20315_v63  ;;  %14513 = vmatpush3.bf16.msra.mxu0 %v20316_v53  ;;  %v4849_v6 = vpop.f32.mrb[88].mxu1  ;;  %v4926_v38 = vpop.f32.mrb[88].mxu0  ;;  %v20321_v21 = vld [vmem:[#allocation92_spill] sm:$0xff]  ;;  %v20322_v52 = vld [vmem:[#allocation93_spill] sm:$0xff] }
0x1a57   :  { %v4851_v58 = vpop.f32.mrb[89].mxu1  ;;  %v4928_v35 = vpop.f32.mrb[89].mxu0  ;;  %14483 = vmatprep.subr.bf16.mxu1 %v20317_v32  ;;  %14515 = vmatprep.subr.bf16.mxu0 %v20318_v0  ;;  %v20323_v53 = vld [vmem:[#allocation94_spill] sm:$0xff]  ;;  %v20324_v32 = vld [vmem:[#allocation95_spill] sm:$0xff]  ;;  %v20325_v0 = vld [vmem:[#allocation96_spill] sm:$0xff] }
0x1a58   :  { %5485 = vmatprep.mubr.f32.mxu1 %v5244_v44  ;;  %5560 = vmatprep.mubr.f32.mxu0 %v5246_v56  ;;  %v20326_v63 = vld [vmem:[#allocation97_spill] sm:$0xff]  ;;  %v4852_v1 = vadd.f32 %v4851_v58, %v20164_v39  ;;  %v4929_v12 = vadd.f32 %v4928_v35, %v20165_v36 }
0x1a5a   :  { %14485 = vmatpush3.bf16.msra.mxu1 %v20319_v33  ;;  %14517 = vmatpush3.bf16.msra.mxu0 %v20320_v18  ;;  %v18233_v9 = vpop.f32.mrb[90].mxu1  ;;  %v18235_v31 = vpop.f32.mrb[90].mxu0 }
0x1a5b   :  { %v4999_v25 = vpop.f32.mrb[91].mxu1  ;;  %v5076_v15 = vpop.f32.mrb[91].mxu0  ;;  %14487 = vmatprep.subr.bf16.mxu1 %v20321_v21  ;;  %14519 = vmatprep.subr.bf16.mxu0 %v20322_v52  ;;  %v20328_v21 = vld [vmem:[#allocation99_spill] sm:$0xff] }
0x1a5c   :  { %v5000_v58 = vadd.f32 %v4999_v25, %v17050_v11  ;;  %v5077_v35 = vadd.f32 %v5076_v15, %v17055_v54  ;;  %v20346_v25 = vld [vmem:[#allocation127_spill] sm:$0xff]  ;;  %v20347_v15 = vld [vmem:[#allocation129_spill] sm:$0xff] }
0x1a5e   :  { %14489 = vmatpush3.bf16.msra.mxu1 %v20323_v53  ;;  %14521 = vmatpush3.bf16.msra.mxu0 %v20324_v32  ;;  %v18241_v44 = vpop.f32.mrb[92].mxu1  ;;  %v18243_v56 = vpop.f32.mrb[92].mxu0 }
0x1a5f   :  { %v18245_v33 = vpop.f32.mrb[93].mxu1  ;;  %v18247_v18 = vpop.f32.mrb[93].mxu0  ;;  %14491 = vmatprep.subr.bf16.mxu1 %v20325_v0  ;;  %14523 = vmatprep.subr.bf16.mxu0 %v20326_v63  ;;  %v20332_v0 = vld [vmem:[#allocation103_spill] sm:$0xff] }
0x1a62   :  { %14493 = vmatpush3.bf16.msra.mxu1 %v20327_v14  ;;  %14525 = vmatpush3.bf16.msra.mxu0 %v20328_v21  ;;  %v18253_v52 = vpop.f32.mrb[94].mxu1  ;;  %v18255_v53 = vpop.f32.mrb[94].mxu0 }
0x1a63   :  { %v18257_v32 = vpop.f32.mrb[95].mxu1  ;;  %v18259_v62 = vpop.f32.mrb[95].mxu0  ;;  %14495 = vmatprep.subr.bf16.mxu1 %v20329_v10  ;;  %14527 = vmatprep.subr.bf16.mxu0 %v20330_v57  ;;  %v20335_v10 = vld [vmem:[#allocation107_spill] sm:$0xff]  ;;  %v20336_v57 = vld [vmem:[#allocation109_spill] sm:$0xff] }
0x1a66   :  { %14497 = vmatpush3.bf16.msra.mxu1 %v20331_v42  ;;  %14529 = vmatpush3.bf16.msra.mxu0 %v20332_v0  ;;  %v18265_v63 = vpop.f32.mrb[96].mxu1  ;;  %v18267_v14 = vpop.f32.mrb[96].mxu0  ;;  %v4844_v42 = vadd.f32 %v4843_v50, %v16947_v19  ;;  %v4921_v0 = vadd.f32 %v4920_v23, %v16971_v22  ;;  %v4927_v50 = vadd.f32 %v4926_v38, %v16971_v22  ;;  %v5260_v23 = vmax.f32 %v4852_v1, 0.0  ;;  %v20340_v1 = vld [vmem:[#allocation121_spill] sm:$0xff] }
0x1a67   :  { %v18269_v21 = vpop.f32.mrb[97].mxu1  ;;  %v18271_v48 = vpop.f32.mrb[97].mxu0  ;;  %14499 = vmatprep.subr.bf16.mxu1 %v20184_v47  ;;  %14531 = vmatprep.subr.bf16.mxu0 %v20333_v28  ;;  %v20338_v47 = vld [vmem:[#allocation111_spill] sm:$0xff]  ;;  %v5250_v38 = vmax.f32 %v5077_v35, 0.0  ;;  %v20351_v35 = vld [vmem:[#allocation134_spill] sm:$0xff] }
0x1a68   :  { %v5243_v28 = vmax.f32 %v4844_v42, 0.0 }
0x1a6a   :  { %14501 = vmatpush3.bf16.msra.mxu1 %v20334_v17  ;;  %14533 = vmatpush3.bf16.msra.mxu0 %v20335_v10  ;;  %v5245_v17 = vmax.f32 %v4921_v0, 0.0  ;;  %v4850_v10 = vadd.f32 %v4849_v6, %v16947_v19  ;;  %v5261_v0 = vmax.f32 %v4927_v50, 0.0  ;;  %v5248_v6 = vmax.f32 %v5000_v58, 0.0  ;;  %v20348_v50 = vld [vmem:[#allocation130_spill] sm:$0xff]  ;;  %v20350_v58 = vld [vmem:[#allocation132_spill] sm:$0xff] }
0x1a6b   :  { %14503 = vmatprep.subr.bf16.mxu1 %v20188_v37  ;;  %14535 = vmatprep.subr.bf16.mxu0 %v20336_v57  ;;  %v5262_v57 = vmax.f32 %v4929_v12, 0.0  ;;  %v20341_v12 = vld [vmem:[#allocation122_spill] sm:$0xff] }
0x1a6c   :  { %v5259_v42 = vmax.f32 %v4850_v10, 0.0  ;;  %v20345_v10 = vld [vmem:[#allocation126_spill] sm:$0xff] }
0x1a6e   :  { %14505 = vmatpush3.bf16.msra.mxu1 %v20337_v2  ;;  %14537 = vmatpush3.bf16.msra.mxu0 %v20338_v47 }
0x1a6f   :  { %14539 = vmatprep.subr.bf16.mxu1 %v20339_v61  ;;  %14571 = vmatprep.subr.bf16.mxu0 %v17032_v43 }
0x1a71   :  { %5486 = vmatmul.mubr.f32.vlgmr.msra.gmra.mrb[102].mxu1 %v5243_v28  ;;  %5561 = vmatmul.mubr.f32.vlgmr.msra.gmra.mrb[102].mxu0 %v5245_v17  ;;  %v20342_v17 = vld [vmem:[#allocation123_spill] sm:$0xff]  ;;  %v20343_v28 = vld [vmem:[#allocation124_spill] sm:$0xff] }
0x1a72   :  { %5490 = vmatprep.mubr.f32.mxu1 %v5260_v23  ;;  %5565 = vmatprep.mubr.f32.mxu0 %v5262_v57  ;;  %v20344_v57 = vld [vmem:[#allocation125_spill] sm:$0xff]  ;;  %v20349_v23 = vld [vmem:[#allocation131_spill] sm:$0xff] }
0x1a73   :  { %14541 = vmatpush3.bf16.msra.mxu1 %v20190_v13  ;;  %14573 = vmatpush3.bf16.msra.mxu0 %v20191_v55 }
0x1a74   :  { %14543 = vmatprep.subr.bf16.mxu1 %v20192_v59  ;;  %14575 = vmatprep.subr.bf16.mxu0 %v20193_v7 }
0x1a75   :  { %5491 = vmatmul.mubr.f32.gmra.mrb[104].mxu1 %v5259_v42  ;;  %5566 = vmatmul.mubr.f32.gmra.mrb[104].mxu0 %v5261_v0  ;;  %v20352_v42 = vld [vmem:[#allocation136_spill] sm:$0xff]  ;;  %v20353_v0 = vld [vmem:[#allocation138_spill] sm:$0xff] }
0x1a76   :  { %5635 = vmatprep.mubr.f32.mxu1 %v5248_v6  ;;  %5710 = vmatprep.mubr.f32.mxu0 %v5250_v38  ;;  %v20354_v6 = vld [vmem:[#allocation139_spill] sm:$0xff]  ;;  %v4998_v38 = vadd.f32 %v18233_v9, %v17284_v60  ;;  %v5004_v9 = vadd.f32 %v18241_v44, %v17284_v60 }
0x1a77   :  { %14545 = vmatpush3.bf16.msra.mxu1 %v20194_v24  ;;  %14577 = vmatpush3.bf16.msra.mxu0 %v20195_v20 }
0x1a78   :  { %14547 = vmatprep.subr.bf16.mxu1 %v20196_v16  ;;  %14579 = vmatprep.subr.bf16.mxu0 %v20197_v26  ;;  %v5263_v44 = vmax.f32 %v5004_v9, 0.0  ;;  %v20365_v9 = vld [vmem:[#allocation158_spill] sm:$0xff] }
0x1a7b   :  { %14549 = vmatpush3.bf16.msra.mxu1 %v20340_v1  ;;  %14581 = vmatpush3.bf16.msra.mxu0 %v20341_v12 }
0x1a7c   :  { %14551 = vmatprep.subr.bf16.mxu1 %v20342_v17  ;;  %14583 = vmatprep.subr.bf16.mxu0 %v20343_v28 }
0x1a7f   :  { %14553 = vmatpush3.bf16.msra.mxu1 %v20344_v57  ;;  %14585 = vmatpush3.bf16.msra.mxu0 %v20345_v10 }
0x1a80   :  { %14555 = vmatprep.subr.bf16.mxu1 %v20346_v25  ;;  %14587 = vmatprep.subr.bf16.mxu0 %v20205_v3 }
0x1a83   :  { %14557 = vmatpush3.bf16.msra.mxu1 %v20347_v15  ;;  %14589 = vmatpush3.bf16.msra.mxu0 %v20348_v50 }
0x1a84   :  { %14559 = vmatprep.subr.bf16.mxu1 %v20349_v23  ;;  %14591 = vmatprep.subr.bf16.mxu0 %v20350_v58  ;;  %v5075_v23 = vadd.f32 %v18235_v31, %v17304_v29  ;;  %v20355_v58 = vld [vmem:[#allocation142_spill] sm:$0xff]  ;;  %v5081_v31 = vadd.f32 %v18243_v56, %v17304_v29 }
0x1a85   :  { %v20357_v56 = vld [vmem:[#allocation150_spill] sm:$0xff] }
0x1a87   :  { %14561 = vmatpush3.bf16.msra.mxu1 %v20210_v30  ;;  %14593 = vmatpush3.bf16.msra.mxu0 %v20351_v35  ;;  %v5006_v35 = vadd.f32 %v18245_v33, %v17050_v11 }
0x1a88   :  { %14563 = vmatprep.subr.bf16.mxu1 %v20212_v49  ;;  %14595 = vmatprep.subr.bf16.mxu0 %v20352_v42  ;;  %v5083_v42 = vadd.f32 %v18247_v18, %v17055_v54  ;;  %v5249_v49 = vmax.f32 %v5075_v23, 0.0  ;;  %v5154_v18 = vadd.f32 %v18257_v32, %v17374_v34  ;;  %v5265_v23 = vmax.f32 %v5081_v31, 0.0  ;;  %v20362_v32 = vld [vmem:[#allocation155_spill] sm:$0xff]  ;;  %v20367_v31 = vld [vmem:[#allocation160_spill] sm:$0xff] }
0x1a89   :  { %v5264_v33 = vmax.f32 %v5006_v35, 0.0  ;;  %v20358_v35 = vld [vmem:[#allocation151_spill] sm:$0xff] }
0x1a8b   :  { %14565 = vmatpush3.bf16.msra.mxu1 %v20353_v0  ;;  %14597 = vmatpush3.bf16.msra.mxu0 %v20354_v6  ;;  %v20356_v0 = vld [vmem:[#allocation144_spill] sm:$0xff]  ;;  %v5247_v6 = vmax.f32 %v4998_v38, 0.0  ;;  %v5252_v38 = vmax.f32 %v5154_v18, 0.0  ;;  %v20369_v18 = vld [vmem:[#allocation162_spill] sm:$0xff] }
0x1a8c   :  { %14567 = vmatprep.subr.bf16.mxu1 %v20216_v5  ;;  %14599 = vmatprep.subr.bf16.mxu0 %v20355_v58  ;;  %v5266_v58 = vmax.f32 %v5083_v42, 0.0  ;;  %v20359_v42 = vld [vmem:[#allocation152_spill] sm:$0xff] }
0x1a8f   :  { %14569 = vmatpush3.bf16.msra.mxu1 %v17335_v4  ;;  %14601 = vmatpush3.bf16.msra.mxu0 %v20356_v0  ;;  %v5231_v0 = vadd.f32 %v18259_v62, %v17379_v41  ;;  %v20360_v62 = vld [vmem:[#allocation153_spill] sm:$0xff] }
0x1a90   :  { %14603 = vmatprep.subr.bf16.mxu1 %v17339_v46  ;;  %14635 = vmatprep.subr.bf16.mxu0 %v17356_v8 }
0x1a91   :  { %v5254_v8 = vmax.f32 %v5231_v0, 0.0  ;;  %v20366_v0 = vld [vmem:[#allocation159_spill] sm:$0xff] }
0x1a92   :  { %5636 = vmatmul.mubr.f32.vlgmr.msra.gmra.mrb[106].mxu1 %v5247_v6  ;;  %5711 = vmatmul.mubr.f32.vlgmr.msra.gmra.mrb[106].mxu0 %v5249_v49  ;;  %v20361_v49 = vld [vmem:[#allocation154_spill] sm:$0xff]  ;;  %v20364_v6 = vld [vmem:[#allocation157_spill] sm:$0xff] }
0x1a93   :  { %5640 = vmatprep.mubr.f32.mxu1 %v5264_v33  ;;  %5715 = vmatprep.mubr.f32.mxu0 %v5266_v58  ;;  %v20363_v58 = vld [vmem:[#allocation156_spill] sm:$0xff]  ;;  %v20368_v33 = vld [vmem:[#allocation161_spill] sm:$0xff] }
0x1a94   :  { %14605 = vmatpush3.bf16.msra.mxu1 %v17381_v45  ;;  %14637 = vmatpush3.bf16.msra.mxu0 %v20357_v56 }
0x1a95   :  { %14607 = vmatprep.subr.bf16.mxu1 %v20358_v35  ;;  %14639 = vmatprep.subr.bf16.mxu0 %v20359_v42 }
0x1a96   :  { %5641 = vmatmul.mubr.f32.gmra.mrb[108].mxu1 %v5263_v44  ;;  %5716 = vmatmul.mubr.f32.gmra.mrb[108].mxu0 %v5265_v23  ;;  %v20371_v44 = vld [vmem:[#allocation164_spill] sm:$0xff]  ;;  %v20372_v23 = vld [vmem:[#allocation165_spill] sm:$0xff] }
0x1a97   :  { %5785 = vmatprep.mubr.f32.mxu1 %v5252_v38  ;;  %5860 = vmatprep.mubr.f32.mxu0 %v5254_v8  ;;  %v20370_v8 = vld [vmem:[#allocation163_spill] sm:$0xff]  ;;  %v20373_v38 = vld [vmem:[#allocation166_spill] sm:$0xff] }
0x1a98   :  { %14609 = vmatpush3.bf16.msra.mxu1 %v20360_v62  ;;  %14641 = vmatpush3.bf16.msra.mxu0 %v20361_v49 }
0x1a99   :  { %14611 = vmatprep.subr.bf16.mxu1 %v20362_v32  ;;  %14643 = vmatprep.subr.bf16.mxu0 %v20363_v58  ;;  %v20374_v58 = vld [vmem:[#allocation167_spill] sm:$0xff]  ;;  %v20384_v32 = vld [vmem:[#allocation177_spill] sm:$0xff] }
0x1a9c   :  { %14613 = vmatpush3.bf16.msra.mxu1 %v20364_v6  ;;  %14645 = vmatpush3.bf16.msra.mxu0 %v20365_v9  ;;  %v20375_v6 = vld [vmem:[#allocation168_spill] sm:$0xff]  ;;  %v20376_v9 = vld [vmem:[#allocation169_spill] sm:$0xff] }
0x1a9d   :  { %14615 = vmatprep.subr.bf16.mxu1 %v20366_v0  ;;  %14647 = vmatprep.subr.bf16.mxu0 %v20367_v31  ;;  %v20377_v0 = vld [vmem:[#allocation170_spill] sm:$0xff]  ;;  %v20378_v31 = vld [vmem:[#allocation171_spill] sm:$0xff] }
0x1aa0   :  { %14617 = vmatpush3.bf16.msra.mxu1 %v20368_v33  ;;  %14649 = vmatpush3.bf16.msra.mxu0 %v20369_v18  ;;  %v20379_v33 = vld [vmem:[#allocation172_spill] sm:$0xff]  ;;  %v20380_v18 = vld [vmem:[#allocation174_spill] sm:$0xff] }
0x1aa1   :  { %14619 = vmatprep.subr.bf16.mxu1 %v20370_v8  ;;  %14651 = vmatprep.subr.bf16.mxu0 %v20371_v44  ;;  %v20381_v8 = vld [vmem:[#allocation175_spill] sm:$0xff]  ;;  %v20382_v44 = vld [vmem:[#allocation173_spill] sm:$0xff] }
0x1aa4   :  { %14621 = vmatpush3.bf16.msra.mxu1 %v20372_v23  ;;  %14653 = vmatpush3.bf16.msra.mxu0 %v20373_v38  ;;  %v5152_v23 = vadd.f32 %v18253_v52, %v20382_v44  ;;  %v20383_v38 = vld [vmem:[#allocation176_spill] sm:$0xff]  ;;  %v5158_v52 = vadd.f32 %v18265_v63, %v20382_v44 }
0x1aa5   :  { %14623 = vmatprep.subr.bf16.mxu1 %v20374_v58  ;;  %14655 = vmatprep.subr.bf16.mxu0 %v20375_v6  ;;  %v5229_v58 = vadd.f32 %v18255_v53, %v20383_v38  ;;  %v20385_v6 = vld [vmem:[#allocation178_spill] sm:$0xff]  ;;  %v5235_v53 = vadd.f32 %v18267_v14, %v20383_v38 }
0x1aa8   :  { %14625 = vmatpush3.bf16.msra.mxu1 %v20376_v9  ;;  %14657 = vmatpush3.bf16.msra.mxu0 %v20377_v0  ;;  %v5160_v0 = vadd.f32 %v18269_v21, %v17374_v34  ;;  %v5253_v9 = vmax.f32 %v5229_v58, 0.0  ;;  %v20389_v58 = vld [vmem:[#allocation9_spill] sm:$0xff] }
0x1aa9   :  { %14627 = vmatprep.subr.bf16.mxu1 %v20378_v31  ;;  %14659 = vmatprep.subr.bf16.mxu0 %v20379_v33  ;;  %v5237_v33 = vadd.f32 %v18271_v48, %v17379_v41  ;;  %v20386_v31 = vld [vmem:[#allocation179_spill] sm:$0xff]  ;;  %v5267_v48 = vmax.f32 %v5158_v52, 0.0 }
0x1aaa   :  { %v5268_v21 = vmax.f32 %v5160_v0, 0.0 }
0x1aac   :  { %14629 = vmatpush3.bf16.msra.mxu1 %v20380_v18  ;;  %14661 = vmatpush3.bf16.msra.mxu0 %v20381_v8  ;;  %v20387_v18 = vld [vmem:[#allocation180_spill] sm:$0xff]  ;;  %v5251_v8 = vmax.f32 %v5152_v23, 0.0 }
0x1aad   :  { %14631 = vmatprep.subr.bf16.mxu1 %v20384_v32  ;;  %14663 = vmatprep.subr.bf16.mxu0 %v20385_v6  ;;  %v20388_v32 = vld [vmem:[#allocation8_spill] sm:$0xff]  ;;  %v5270_v6 = vmax.f32 %v5237_v33, 0.0 }
0x1ab0   :  { %14633 = vmatpush3.bf16.msra.mxu1 %v20386_v31  ;;  %14665 = vmatpush3.bf16.msra.mxu0 %v20387_v18  ;;  %v5269_v18 = vmax.f32 %v5235_v53, 0.0 }
0x1ab1   :  { %14667 = vmatprep.subr.bf16.mxu1 %v20388_v32  ;;  %13585 = vmatprep.subr.mxu0 %v20101_v51 }
0x1ab3   :  { %5786 = vmatmul.mubr.f32.vlgmr.msra.gmra.mrb[110].mxu1 %v5251_v8  ;;  %5861 = vmatmul.mubr.f32.vlgmr.msra.gmra.mrb[110].mxu0 %v5253_v9  ;;  %v15763_v8 = vld [vmem:[%s19511_s3 + $0x2] ss:$0 sm:$0xff] }
0x1ab4   :  { %5790 = vmatprep.mubr.f32.mxu1 %v5268_v21  ;;  %5865 = vmatprep.mubr.f32.mxu0 %v5270_v6 }
0x1ab5   :  { %14669 = vmatpush3.bf16.msra.mxu1 %v20388_v32 }
0x1ab6   :  { %14671 = vmatprep.subr.bf16.mxu1 %v20389_v58 }
0x1ab7   :  { %5791 = vmatmul.mubr.f32.gmra.mrb[112].mxu1 %v5267_v48  ;;  %5866 = vmatmul.mubr.f32.gmra.mrb[112].mxu0 %v5269_v18 }
0x1ab8   :  { %13587 = vmatprep.mubr.msk.f32.mxu0 %vm15833_vm1, %v20101_v51 }
0x1ab9   :  { %14673 = vmatpush3.bf16.msra.mxu1 %v20389_v58 }
0x1aba   :  { %13590 = vmatprep.subr.mxu1 %v20101_v51 }
0x1b24   :  { %v12231_v14 = vpop.f32.mrb[98].mxu1  ;;  %v12269_v63 = vpop.f32.mrb[98].mxu0 }
0x1b25   :  { %v12232_v9 = vpop.f32.mrb[99].mxu1  ;;  %v12270_v0 = vpop.f32.mrb[99].mxu0 }
0x1b26   :  { %v12233_v6 = vadd.f32 %v12232_v9, %v12231_v14  ;;  %v12271_v33 = vadd.f32 %v12270_v0, %v12269_v63 }
0x1b28   :  { %v5338_v23 = vadd.f32 %v15763_v8, %v12233_v6  ;;  %v12234_v52 = vpop.f32.mrb[100].mxu1  ;;  %v12272_v18 = vpop.f32.mrb[100].mxu0 }
0x1b29   :  { %v12235_v53 = vpop.f32.mrb[101].mxu1  ;;  %v12273_v21 = vpop.f32.mrb[101].mxu0 }
0x1b2a   :  { %v5413_v48 = vadd.f32 %v12271_v33, %v5338_v23  ;;  %v12236_v32 = vadd.f32 %v12235_v53, %v12234_v52  ;;  %v12274_v58 = vadd.f32 %v12273_v21, %v12272_v18 }
0x1b2c   :  { %v5343_v31 = vadd.f32 %v15763_v8, %v12236_v32 }
0x1b2e   :  { %v5418_v38 = vadd.f32 %v12274_v58, %v5343_v31 }
0x1b44   :  { %v12307_v44 = vpop.f32.mrb[102].mxu1  ;;  %v12345_v49 = vpop.f32.mrb[102].mxu0 }
0x1b45   :  { %v12308_v62 = vpop.f32.mrb[103].mxu1  ;;  %v12346_v42 = vpop.f32.mrb[103].mxu0 }
0x1b46   :  { %v12309_v14 = vadd.f32 %v12308_v62, %v12307_v44  ;;  %v12347_v63 = vadd.f32 %v12346_v42, %v12345_v49 }
0x1b48   :  { %v5488_v9 = vadd.f32 %v12309_v14, %v5413_v48  ;;  %v12310_v0 = vpop.f32.mrb[104].mxu1  ;;  %v12348_v35 = vpop.f32.mrb[104].mxu0 }
0x1b49   :  { %v12311_v56 = vpop.f32.mrb[105].mxu1  ;;  %v12349_v6 = vpop.f32.mrb[105].mxu0 }
0x1b4a   :  { %v5563_v45 = vadd.f32 %v12347_v63, %v5488_v9  ;;  %v12312_v41 = vadd.f32 %v12311_v56, %v12310_v0  ;;  %v12350_v34 = vadd.f32 %v12349_v6, %v12348_v35 }
0x1b4c   :  { %v5493_v46 = vadd.f32 %v12312_v41, %v5418_v38 }
0x1b4e   :  { %v5568_v33 = vadd.f32 %v12350_v34, %v5493_v46 }
0x1b65   :  { %v12383_v23 = vpop.f32.mrb[106].mxu1  ;;  %v12421_v52 = vpop.f32.mrb[106].mxu0 }
0x1b66   :  { %v12384_v32 = vpop.f32.mrb[107].mxu1  ;;  %v12422_v31 = vpop.f32.mrb[107].mxu0 }
0x1b67   :  { %v12385_v58 = vadd.f32 %v12384_v32, %v12383_v23  ;;  %v12423_v8 = vadd.f32 %v12422_v31, %v12421_v52 }
0x1b69   :  { %v5638_v18 = vadd.f32 %v12385_v58, %v5563_v45  ;;  %v12386_v53 = vpop.f32.mrb[108].mxu1  ;;  %v12424_v62 = vpop.f32.mrb[108].mxu0 }
0x1b6a   :  { %v12387_v42 = vpop.f32.mrb[109].mxu1  ;;  %v12425_v49 = vpop.f32.mrb[109].mxu0 }
0x1b6b   :  { %v5713_v44 = vadd.f32 %v12423_v8, %v5638_v18  ;;  %v12388_v21 = vadd.f32 %v12387_v42, %v12386_v53  ;;  %v12426_v48 = vadd.f32 %v12425_v49, %v12424_v62 }
0x1b6d   :  { %v5643_v14 = vadd.f32 %v12388_v21, %v5568_v33 }
0x1b6f   :  { %v5718_v63 = vadd.f32 %v12426_v48, %v5643_v14 }
0x1b86   :  { %v12459_v56 = vpop.f32.mrb[110].mxu1  ;;  %v12497_v35 = vpop.f32.mrb[110].mxu0 }
0x1b87   :  { %v12460_v41 = vpop.f32.mrb[111].mxu1  ;;  %v12498_v46 = vpop.f32.mrb[111].mxu0 }
0x1b88   :  { %v12461_v34 = vadd.f32 %v12460_v41, %v12459_v56  ;;  %v12499_v38 = vadd.f32 %v12498_v46, %v12497_v35 }
0x1b8a   :  { %v5788_v9 = vadd.f32 %v12461_v34, %v5713_v44  ;;  %v12462_v0 = vpop.f32.mrb[112].mxu1  ;;  %v12500_v6 = vpop.f32.mrb[112].mxu0 }
0x1b8b   :  { %v12463_v23 = vpop.f32.mrb[113].mxu1  ;;  %v12501_v45 = vpop.f32.mrb[113].mxu0 }
0x1b8c   :  { %v5863_v52 = vadd.f32 %v12499_v38, %v5788_v9  ;;  %v12464_v32 = vadd.f32 %v12463_v23, %v12462_v0  ;;  %v12502_v31 = vadd.f32 %v12501_v45, %v12500_v6  ;;  %v15764_v23 = vld [vmem:[%s19511_s3 + $0x3] ss:$0 sm:$0xff] }
0x1b8e   :  { %v5793_v58 = vadd.f32 %v12464_v32, %v5718_v63  ;;  %v5871_v8 = vadd.f32 %v5863_v52, %v18107_v27 }
0x1b90   :  { %v5868_v18 = vadd.f32 %v12502_v31, %v5793_v58  ;;  %v5873_v33 = vsel %vm364_vm0, %v5871_v8, 0.0  ;;  %v15765_v31 = vld [vmem:[%s19511_s3 + $0x4] ss:$0 sm:$0xff] }
0x1b91   :  { %5874 = vadd.xlane.f32.xlu0 %v5873_v33 }
0x1b92   :  { %v5872_v53 = vadd.f32 %v5868_v18, %v18115_v40 }
0x1b94   :  { %v5876_v62 = vsel %vm364_vm0, %v5872_v53, 0.0 }
0x1b95   :  { %5877 = vadd.xlane.f32.xlu1 %v5876_v62 }
0x1c1e   :  { %v5875_v42 = vpop.xlane.xlu0 %5874 }
0x1c1f   :  { %v5879_v49 = vmul.f32 0.03125, %v5875_v42 }
0x1c21   :  { %v5881_v44 = vsub.f32 %v5871_v8, %v5879_v49 }
0x1c22   :  { %v5878_v21 = vpop.xlane.xlu1 %5877 }
0x1c23   :  { %v5880_v48 = vmul.f32 0.03125, %v5878_v21  ;;  %v5883_v14 = vmul.f32 %v5881_v44, %v5881_v44 }
0x1c25   :  { %v5882_v56 = vsub.f32 %v5872_v53, %v5880_v48  ;;  %v5885_v63 = vsel %vm364_vm0, %v5883_v14, 0.0 }
0x1c26   :  { %5886 = vadd.xlane.f32.xlu0 %v5885_v63 }
0x1c27   :  { %v5884_v27 = vmul.f32 %v5882_v56, %v5882_v56 }
0x1c29   :  { %v5888_v35 = vsel %vm364_vm0, %v5884_v27, 0.0 }
0x1c2a   :  { %5889 = vadd.xlane.f32.xlu1 %v5888_v35 }
0x1cb3   :  { %v5887_v41 = vpop.xlane.xlu0 %5886 }
0x1cb4   :  { %v5891_v46 = vmul.f32 0.03125, %v5887_v41 }
0x1cb6   :  { %v5893_v40 = vadd.f32 1e-05, %v5891_v46 }
0x1cb7   :  { %v5890_v34 = vpop.xlane.xlu1 %5889 }
0x1cb8   :  { %15702 = vrsqrt.f32 %v5893_v40  ;;  %v5892_v38 = vmul.f32 0.03125, %v5890_v34 }
0x1cba   :  { %v5894_v9 = vadd.f32 1e-05, %v5892_v38 }
0x1cbc   :  { %15704 = vrsqrt.f32 %v5894_v9 }
0x1cc2   :  { %v15703_v0 = vpop.eup %15702 }
0x1cc3   :  { %v5897_v6 = vmul.f32 %v15703_v0, %v5881_v44 }
0x1cc5   :  { %v5899_v45 = vmul.f32 %v15764_v23, %v5897_v6 }
0x1cc6   :  { %v15705_v52 = vpop.eup %15704 }
0x1cc7   :  { %v5898_v32 = vmul.f32 %v15705_v52, %v5882_v56  ;;  %v18404_v58 = vadd.f32 %v15765_v31, %v5899_v45 }
0x1cc9   :  { %v5900_v8 = vmul.f32 %v15764_v23, %v5898_v32  ;;  %13582 = vmatprep.mubr.msk.f32.mxu1 %vm364_vm0, %v18404_v58  ;;  %v20390_v32 = vld [vmem:[#allocation10_spill] sm:$0xff] }
0x1ccb   :  { %v18408_v18 = vadd.f32 %v15765_v31, %v5900_v8  ;;  %v15766_v31 = vld [vmem:[%s19510_s2] sm:$0xf] }
0x1ccd   :  { %13583 = vmatmul.mubr.msk.f32.vlgmr.msra.gmra.mrb[114].mxu1 %vm364_vm0, %v18408_v18 }
0x1cce   :  { %13592 = vmatprep.mubr.msk.f32.mxu1 %vm15833_vm1, %v20101_v51 }
0x1da0   :  { %v13584_v33 = vpop.f32.mrb[114].mxu1 }
0x1da1   :  { %6065 = vrot.lane.b32.xlu1 %v13584_v33, %s15834_s16  ;;  %v5978_v53 = vpop.f32.mrb[115].mxu1 }
0x1da2   :  { %5988 = vrot.lane.b32.xlu0 %v5978_v53, %s15834_s16 }
0x1e13   :  { %v6066_v62 = vpop.permute.xlu1 %6065 }
0x1e14   :  { %13591 = vmatpush3.xpose.msk.msra.mxu1 %vm449_vm2, %v6066_v62  ;;  %v5989_v42 = vpop.permute.xlu0 %5988 }
0x1e15   :  { %13586 = vmatpush3.xpose.msk.msra.mxu0 %vm449_vm2, %v5989_v42  ;;  %13600 = vmatprep.subr.mxu1 %v20101_v51  ;;  %v20391_v42 = vld [vmem:[#allocation12_spill] sm:$0xff] }
0x1e16   :  { %13595 = vmatprep.subr.mxu0 %v20101_v51 }
0x1e17   :  { %13593 = vmatmul.mubr.msk.f32.vlgmr.msra.gmra.mrb[116].mxu1 %vm449_vm2, %v13584_v33 }
0x1e18   :  { %13588 = vmatmul.mubr.msk.f32.vlgmr.msra.gmra.mrb[114].mxu0 %vm449_vm2, %v5978_v53  ;;  %13602 = vmatprep.mubr.msk.f32.mxu1 %vm15833_vm1, %v20101_v51 }
0x1e19   :  { %13597 = vmatprep.mubr.msk.f32.mxu0 %vm15833_vm1, %v20101_v51 }
0x1eea   :  { %v6137_v49 = vpop.f32.mrb[116].mxu1 }
0x1eeb   :  { %v6060_v44 = vpop.f32.mrb[114].mxu0  ;;  %v13594_v21 = vpop.f32.mrb[117].mxu1  ;;  %v6144_v48 = vsel %vm601_vm3, %v6137_v49, -inf }
0x1eec   :  { %v13589_v14 = vpop.f32.mrb[115].mxu0  ;;  %6145 = vmax.xlane.f32.xlu0 %v6144_v48  ;;  %v6141_v56 = vsel %vm601_vm3, %v6060_v44, -inf  ;;  %v20394_v21 = vld [vmem:[#allocation16_spill] sm:$0xff]  ;;  %v20395_v48 = vld [vmem:[#allocation18_spill] sm:$0xff] }
0x1eed   :  { %6142 = vmax.xlane.f32.xlu1 %v6141_v56 }
0x1f79   :  { %v6146_v63 = vpop.xlane.xlu0 %6145 }
0x1f7a   :  { %v6148_v27 = vsub.f32 %v6137_v49, %v6146_v63  ;;  %v6143_v35 = vpop.xlane.xlu1 %6142  ;;  %v20392_v49 = vld [vmem:[#allocation14_spill] sm:$0xff] }
0x1f7b   :  { %v6147_v41 = vsub.f32 %v6060_v44, %v6143_v35  ;;  %v20393_v44 = vld [vmem:[#allocation11_spill] sm:$0xff]  ;;  %v20396_v35 = vld [vmem:[#allocation13_spill] sm:$0xff] }
0x1f7c   :  { %v6151_v46 = vmul.f32 1.442695, %v6148_v27 }
0x1f7d   :  { %v6149_v40 = vmul.f32 1.442695, %v6147_v41  ;;  %v20397_v41 = vld [vmem:[#allocation15_spill] sm:$0xff] }
0x1f7e   :  { %15706 = vpow2.f32 %v6151_v46  ;;  %v20398_v46 = vld [vmem:[#allocation17_spill] sm:$0xff] }
0x1f7f   :  { %15708 = vpow2.f32 %v6149_v40  ;;  %v20399_v40 = vld [vmem:[#allocation19_spill] sm:$0xff] }
0x1f88   :  { %v15707_v34 = vpop.eup %15706 }
0x1f89   :  { %v15709_v38 = vpop.eup %15708  ;;  %v6156_v9 = vsel %vm601_vm3, %v15707_v34, 0.0 }
0x1f8a   :  { %6157 = vadd.xlane.f32.xlu1 %v6156_v9  ;;  %v6153_v0 = vsel %vm601_vm3, %v15709_v38, 0.0 }
0x1f8b   :  { %6154 = vadd.xlane.f32.xlu0 %v6153_v0 }
0x1f9b   :  { %6239 = vrot.lane.b32.xlu1 %v13584_v33, %s15835_s0 }
0x1fa1   :  { %6163 = vrot.lane.b32.xlu0 %v5978_v53, %s15835_s0 }
0x2017   :  { %v6158_v6 = vpop.xlane.xlu1 %6157 }
0x2018   :  { %15710 = vrcp.f32 %v6158_v6  ;;  %v6155_v23 = vpop.xlane.xlu0 %6154 }
0x2019   :  { %15712 = vrcp.f32 %v6155_v23 }
0x201b   :  { %v6240_v45 = vpop.permute.xlu1 %6239 }
0x201c   :  { %13601 = vmatpush3.msra.mxu1 %v6240_v45  ;;  %v6164_v52 = vpop.permute.xlu0 %6163 }
0x201d   :  { %13596 = vmatpush3.msra.mxu0 %v6164_v52  ;;  %14675 = vmatprep.subr.bf16.mxu1 %v20390_v32  ;;  %v20485_v32 = vld [vmem:[#allocation104_spill] sm:$0xff] }
0x201e   :  { %13605 = vmatprep.subr.msk.mxu0 %vm782_vm4, %v15766_v31 }
0x2022   :  { %v15711_v8 = vpop.eup %15710 }
0x2023   :  { %v15713_v33 = vpop.eup %15712  ;;  %v6162_v62 = vmul.f32 %v15711_v8, %v15707_v34 }
0x2024   :  { %v6161_v53 = vmul.f32 %v15713_v33, %v15709_v38 }
0x2025   :  { %7716 = vst.msk [vmem:[#allocation4 + $0x38] sm:$0xff] %vm601_vm3, %v6162_v62  ;;  %13603 = vmatmul.mubr.msk.f32.vlgmr.msra.gmra.mrb[118].mxu1 %vm601_vm3, %v6162_v62 }
0x2026   :  { %7715 = vst.msk [vmem:[#allocation4 + $0x30] sm:$0xff] %vm601_vm3, %v6161_v53  ;;  %13598 = vmatmul.mubr.msk.f32.vlgmr.msra.gmra.mrb[116].mxu0 %vm601_vm3, %v6161_v53  ;;  %14677 = vmatpush1.bf16.msra.mxu1 %v20391_v42 }
0x2027   :  { %13606 = vmatpush3.msk.msra.mxu0 %vm782_vm4, %v15766_v31  ;;  %14679 = vmatprep.subr.bf16.mxu1 %v20392_v49  ;;  %v20482_v49 = vld [vmem:[#allocation102_spill] sm:$0xff] }
0x2028   :  { %14683 = vmatprep.subr.bf16.mxu0 %v20393_v44  ;;  %6498 = vmatprep.mubr.f32.mxu1 %v20101_v51  ;;  %v20481_v44 = vld [vmem:[#allocation101_spill] sm:$0xff] }
0x202a   :  { %14681 = vmatpush1.bf16.msra.mxu1 %v20394_v21  ;;  %v20464_v21 = vld [vmem:[#allocation83_spill] sm:$0xff] }
0x202b   :  { %14691 = vmatprep.subr.bf16.mxu1 %v20395_v48 }
0x20f8   :  { %v6311_v14 = vpop.f32.mrb[118].mxu1 }
0x20f9   :  { %v6235_v56 = vpop.f32.mrb[116].mxu0  ;;  %v13604_v63 = vpop.f32.mrb[119].mxu1 }
0x20fa   :  { %v13599_v27 = vpop.f32.mrb[117].mxu0  ;;  %13607 = vmatprep.mubr.msk.f32.mxu0 %vm449_vm2, %v6235_v56 }
0x20fb   :  { %13608 = vmatmul.mubr.msk.f32.vlgmr.msra.gmra.mrb[118].mxu0 %vm449_vm2, %v6311_v14 }
0x20fc   :  { %14685 = vmatpush1.bf16.msra.mxu0 %v20396_v35  ;;  %6575 = vmatprep.mubr.f32.mxu0 %v20101_v51 }
0x20fd   :  { %14687 = vmatprep.subr.bf16.mxu0 %v20397_v41 }
0x2100   :  { %14689 = vmatpush1.bf16.msra.mxu0 %v20398_v46 }
0x2101   :  { %14699 = vmatprep.subr.bf16.mxu0 %v20399_v40 }
0x21ce   :  { %v13609_v34 = vpop.f32.mrb[118].mxu0 }
0x21cf   :  { %v6397_v38 = vadd.f32 %v13609_v34, %v18408_v18  ;;  %v6387_v9 = vpop.f32.mrb[119].mxu0 }
0x21d0   :  { %v6396_v0 = vadd.f32 %v6387_v9, %v18404_v58 }
0x21d1   :  { %v6401_v6 = vsel %vm364_vm0, %v6397_v38, 0.0 }
0x21d2   :  { %6402 = vadd.xlane.f32.xlu0 %v6401_v6  ;;  %v6398_v23 = vsel %vm364_vm0, %v6396_v0, 0.0 }
0x21d3   :  { %6399 = vadd.xlane.f32.xlu1 %v6398_v23 }
0x225f   :  { %v6403_v45 = vpop.xlane.xlu0 %6402 }
0x2260   :  { %v6405_v52 = vmul.f32 0.03125, %v6403_v45  ;;  %v6400_v31 = vpop.xlane.xlu1 %6399 }
0x2261   :  { %v6404_v8 = vmul.f32 0.03125, %v6400_v31 }
0x2262   :  { %v6407_v33 = vsub.f32 %v6397_v38, %v6405_v52  ;;  %v15767_v52 = vld [vmem:[%s19511_s3] ss:$0 sm:$0xff] }
0x2263   :  { %v6406_v62 = vsub.f32 %v6396_v0, %v6404_v8 }
0x2264   :  { %v6409_v53 = vmul.f32 %v6407_v33, %v6407_v33 }
0x2265   :  { %v6408_v14 = vmul.f32 %v6406_v62, %v6406_v62 }
0x2266   :  { %v6413_v56 = vsel %vm364_vm0, %v6409_v53, 0.0  ;;  %v15768_v53 = vld [vmem:[%s19511_s3 + $0x1] ss:$0 sm:$0xff] }
0x2267   :  { %6414 = vadd.xlane.f32.xlu1 %v6413_v56  ;;  %v6410_v18 = vsel %vm364_vm0, %v6408_v14, 0.0 }
0x2268   :  { %6411 = vadd.xlane.f32.xlu0 %v6410_v18  ;;  %v20404_v18 = vld [vmem:[#allocation22_spill] sm:$0xff] }
0x22f4   :  { %v6415_v58 = vpop.xlane.xlu1 %6414 }
0x22f5   :  { %v6417_v63 = vmul.f32 0.03125, %v6415_v58  ;;  %v6412_v27 = vpop.xlane.xlu0 %6411  ;;  %v20405_v58 = vld [vmem:[#allocation23_spill] sm:$0xff] }
0x22f6   :  { %v6416_v34 = vmul.f32 0.03125, %v6412_v27  ;;  %v20407_v27 = vld [vmem:[#allocation25_spill] sm:$0xff] }
0x22f7   :  { %v6419_v9 = vadd.f32 1e-05, %v6417_v63  ;;  %v20406_v63 = vld [vmem:[#allocation24_spill] sm:$0xff] }
0x22f8   :  { %v6418_v6 = vadd.f32 1e-05, %v6416_v34  ;;  %v20408_v34 = vld [vmem:[#allocation26_spill] sm:$0xff] }
0x22f9   :  { %15714 = vrsqrt.f32 %v6419_v9  ;;  %v20409_v9 = vld [vmem:[#allocation27_spill] sm:$0xff] }
0x22fa   :  { %15716 = vrsqrt.f32 %v6418_v6  ;;  %v20410_v6 = vld [vmem:[#allocation28_spill] sm:$0xff] }
0x2303   :  { %v15715_v23 = vpop.eup %15714 }
0x2304   :  { %v15717_v45 = vpop.eup %15716  ;;  %v6423_v38 = vmul.f32 %v15715_v23, %v6407_v33  ;;  %v20401_v33 = vld [vmem:[#allocation20_spill] sm:$0xff]  ;;  %v20411_v23 = vld [vmem:[#allocation29_spill] sm:$0xff] }
0x2305   :  { %v6422_v0 = vmul.f32 %v15717_v45, %v6406_v62  ;;  %v20402_v62 = vld [vmem:[#allocation21_spill] sm:$0xff]  ;;  %v20412_v45 = vld [vmem:[#allocation30_spill] sm:$0xff] }
0x2306   :  { %v6425_v8 = vmul.f32 %v15767_v52, %v6423_v38  ;;  %v20413_v38 = vld [vmem:[#allocation31_spill] sm:$0xff] }
0x2307   :  { %v6424_v31 = vmul.f32 %v15767_v52, %v6422_v0  ;;  %v20414_v0 = vld [vmem:[#allocation32_spill] sm:$0xff]  ;;  %v20415_v52 = vld [vmem:[#allocation33_spill] sm:$0xff] }
0x2308   :  { %v18475_v56 = vadd.f32 %v15768_v53, %v6425_v8  ;;  %v20417_v8 = vld [vmem:[#allocation35_spill] sm:$0xff] }
0x2309   :  { %v18467_v14 = vadd.f32 %v15768_v53, %v6424_v31  ;;  %v20416_v31 = vld [vmem:[#allocation34_spill] sm:$0xff]  ;;  %v20418_v53 = vld [vmem:[#allocation36_spill] sm:$0xff] }
0x230a   :  { %20403 = vst [vmem:[#allocation85_spill] sm:$0xff] %v18475_v56 }
0x230b   :  { %20400 = vst [vmem:[#allocation82_spill] sm:$0xff] %v18467_v14  ;;  %11470 = vmatmul.mubr.msk.f32.vlgmr.msra.gmra.mrb[120].mxu1 %vm364_vm0, %v18467_v14  ;;  %11472 = vmatmul.mubr.msk.f32.vlgmr.msra.gmra.mrb[120].mxu0 %vm364_vm0, %v18467_v14 }
0x230c   :  { %14693 = vmatpush1.bf16.msra.mxu1 %v20401_v33  ;;  %14701 = vmatpush1.bf16.msra.mxu0 %v20402_v62  ;;  %v20461_v62 = vld [vmem:[#allocation79_spill] sm:$0xff] }
0x230d   :  { %6504 = vmatprep.mubr.f32.mxu1 %v20101_v51  ;;  %6581 = vmatprep.mubr.f32.mxu0 %v20101_v51 }
0x230e   :  { %14695 = vmatprep.subr.bf16.mxu1 %v20404_v18  ;;  %14703 = vmatprep.subr.bf16.mxu0 %v20405_v58  ;;  %v20460_v18 = vld [vmem:[#allocation78_spill] sm:$0xff] }
0x230f   :  { %11471 = vmatmul.mubr.msk.f32.gmra.mrb[122].mxu1 %vm364_vm0, %v18475_v56  ;;  %11473 = vmatmul.mubr.msk.f32.gmra.mrb[122].mxu0 %vm364_vm0, %v18475_v56 }
0x2310   :  { %14697 = vmatpush1.bf16.msra.mxu1 %v20406_v63  ;;  %14705 = vmatpush1.bf16.msra.mxu0 %v20407_v27  ;;  %v20458_v27 = vld [vmem:[#allocation76_spill] sm:$0xff]  ;;  %v20459_v63 = vld [vmem:[#allocation77_spill] sm:$0xff] }
0x2311   :  { %6652 = vmatprep.mubr.f32.mxu1 %v20101_v51  ;;  %6729 = vmatprep.mubr.f32.mxu0 %v20101_v51 }
0x2312   :  { %14707 = vmatprep.subr.bf16.mxu1 %v20408_v34  ;;  %14715 = vmatprep.subr.bf16.mxu0 %v20409_v9  ;;  %v20439_v9 = vld [vmem:[#allocation57_spill] sm:$0xff]  ;;  %v20440_v34 = vld [vmem:[#allocation58_spill] sm:$0xff] }
0x2313   :  { %11474 = vmatmul.mubr.msk.f32.vlgmr.msra.gmra.mrb[124].mxu1 %vm364_vm0, %v18467_v14  ;;  %11476 = vmatmul.mubr.msk.f32.vlgmr.msra.gmra.mrb[124].mxu0 %vm364_vm0, %v18467_v14 }
0x2314   :  { %14709 = vmatpush1.bf16.msra.mxu1 %v20410_v6  ;;  %14717 = vmatpush1.bf16.msra.mxu0 %v20411_v23  ;;  %v20433_v23 = vld [vmem:[#allocation51_spill] sm:$0xff]  ;;  %v20438_v6 = vld [vmem:[#allocation56_spill] sm:$0xff] }
0x2315   :  { %6658 = vmatprep.mubr.f32.mxu1 %v20101_v51  ;;  %6735 = vmatprep.mubr.f32.mxu0 %v20101_v51 }
0x2316   :  { %14711 = vmatprep.subr.bf16.mxu1 %v20412_v45  ;;  %14719 = vmatprep.subr.bf16.mxu0 %v20413_v38  ;;  %v20419_v38 = vld [vmem:[#allocation37_spill] sm:$0xff]  ;;  %v20432_v45 = vld [vmem:[#allocation50_spill] sm:$0xff] }
0x2317   :  { %11475 = vmatmul.mubr.msk.f32.gmra.mrb[126].mxu1 %vm364_vm0, %v18475_v56  ;;  %11477 = vmatmul.mubr.msk.f32.gmra.mrb[126].mxu0 %vm364_vm0, %v18475_v56 }
0x2318   :  { %14713 = vmatpush1.bf16.msra.mxu1 %v20414_v0  ;;  %14721 = vmatpush1.bf16.msra.mxu0 %v20415_v52  ;;  %v20420_v52 = vld [vmem:[#allocation38_spill] sm:$0xff]  ;;  %v20421_v0 = vld [vmem:[#allocation39_spill] sm:$0xff] }
0x2319   :  { %6806 = vmatprep.mubr.f32.mxu1 %v20101_v51  ;;  %6883 = vmatprep.mubr.f32.mxu0 %v20101_v51 }
0x231a   :  { %14723 = vmatprep.subr.bf16.mxu1 %v20416_v31  ;;  %14731 = vmatprep.subr.bf16.mxu0 %v20417_v8  ;;  %v20422_v8 = vld [vmem:[#allocation40_spill] sm:$0xff]  ;;  %v20423_v31 = vld [vmem:[#allocation41_spill] sm:$0xff] }
0x231b   :  { %11478 = vmatmul.mubr.msk.f32.vlgmr.msra.gmra.mrb[128].mxu1 %vm364_vm0, %v18467_v14  ;;  %11480 = vmatmul.mubr.msk.f32.vlgmr.msra.gmra.mrb[128].mxu0 %vm364_vm0, %v18467_v14 }
0x231c   :  { %14725 = vmatpush1.bf16.msra.mxu1 %v20418_v53  ;;  %14733 = vmatpush1.bf16.msra.mxu0 %v20419_v38  ;;  %v20424_v38 = vld [vmem:[#allocation42_spill] sm:$0xff]  ;;  %v20425_v53 = vld [vmem:[#allocation43_spill] sm:$0xff] }
0x231d   :  { %6812 = vmatprep.mubr.f32.mxu1 %v20101_v51  ;;  %6889 = vmatprep.mubr.f32.mxu0 %v20101_v51 }
0x231e   :  { %14727 = vmatprep.subr.bf16.mxu1 %v20420_v52  ;;  %14735 = vmatprep.subr.bf16.mxu0 %v20421_v0  ;;  %v20428_v0 = vld [vmem:[#allocation46_spill] sm:$0xff]  ;;  %v20429_v52 = vld [vmem:[#allocation47_spill] sm:$0xff] }
0x231f   :  { %11479 = vmatmul.mubr.msk.f32.gmra.mrb[130].mxu1 %vm364_vm0, %v18475_v56  ;;  %11481 = vmatmul.mubr.msk.f32.gmra.mrb[130].mxu0 %vm364_vm0, %v18475_v56 }
0x2320   :  { %14729 = vmatpush1.bf16.msra.mxu1 %v20422_v8  ;;  %14737 = vmatpush1.bf16.msra.mxu0 %v20423_v31  ;;  %v20426_v8 = vld [vmem:[#allocation44_spill] sm:$0xff]  ;;  %v20427_v31 = vld [vmem:[#allocation45_spill] sm:$0xff] }
0x2321   :  { %6960 = vmatprep.mubr.f32.mxu1 %v20101_v51  ;;  %7037 = vmatprep.mubr.f32.mxu0 %v20101_v51 }
0x2322   :  { %14739 = vmatprep.subr.bf16.mxu1 %v20424_v38  ;;  %14771 = vmatprep.subr.bf16.mxu0 %v20425_v53  ;;  %v20430_v53 = vld [vmem:[#allocation48_spill] sm:$0xff]  ;;  %v20431_v38 = vld [vmem:[#allocation49_spill] sm:$0xff] }
0x2323   :  { %11482 = vmatmul.mubr.msk.f32.vlgmr.msra.gmra.mrb[132].mxu1 %vm364_vm0, %v18467_v14  ;;  %11484 = vmatmul.mubr.msk.f32.vlgmr.msra.gmra.mrb[132].mxu0 %vm364_vm0, %v18467_v14  ;;  %v20487_v14 = vld [vmem:[#allocation106_spill] sm:$0xff] }
0x2324   :  { %6966 = vmatprep.mubr.f32.mxu1 %v20101_v51  ;;  %7043 = vmatprep.mubr.f32.mxu0 %v20101_v51 }
0x2325   :  { %14741 = vmatpush3.bf16.msra.mxu1 %v20426_v8  ;;  %14773 = vmatpush3.bf16.msra.mxu0 %v20427_v31  ;;  %v20434_v8 = vld [vmem:[#allocation52_spill] sm:$0xff]  ;;  %v20435_v31 = vld [vmem:[#allocation53_spill] sm:$0xff] }
0x2326   :  { %14743 = vmatprep.subr.bf16.mxu1 %v20428_v0  ;;  %14775 = vmatprep.subr.bf16.mxu0 %v20429_v52  ;;  %v20436_v0 = vld [vmem:[#allocation54_spill] sm:$0xff]  ;;  %v20437_v52 = vld [vmem:[#allocation55_spill] sm:$0xff] }
0x2327   :  { %11483 = vmatmul.mubr.msk.f32.gmra.mrb[134].mxu1 %vm364_vm0, %v18475_v56  ;;  %11485 = vmatmul.mubr.msk.f32.gmra.mrb[134].mxu0 %vm364_vm0, %v18475_v56  ;;  %v20486_v56 = vld [vmem:[#allocation105_spill] sm:$0xff] }
0x2329   :  { %14745 = vmatpush3.bf16.msra.mxu1 %v20430_v53  ;;  %14777 = vmatpush3.bf16.msra.mxu0 %v20431_v38  ;;  %v20441_v53 = vld [vmem:[#allocation59_spill] sm:$0xff]  ;;  %v20442_v38 = vld [vmem:[#allocation60_spill] sm:$0xff] }
0x232a   :  { %14747 = vmatprep.subr.bf16.mxu1 %v20432_v45  ;;  %14779 = vmatprep.subr.bf16.mxu0 %v20433_v23  ;;  %v20443_v45 = vld [vmem:[#allocation61_spill] sm:$0xff]  ;;  %v20444_v23 = vld [vmem:[#allocation62_spill] sm:$0xff] }
0x232d   :  { %14749 = vmatpush3.bf16.msra.mxu1 %v20434_v8  ;;  %14781 = vmatpush3.bf16.msra.mxu0 %v20435_v31  ;;  %v20445_v8 = vld [vmem:[#allocation63_spill] sm:$0xff]  ;;  %v20446_v31 = vld [vmem:[#allocation64_spill] sm:$0xff] }
0x232e   :  { %14751 = vmatprep.subr.bf16.mxu1 %v20436_v0  ;;  %14783 = vmatprep.subr.bf16.mxu0 %v20437_v52  ;;  %v20447_v0 = vld [vmem:[#allocation65_spill] sm:$0xff]  ;;  %v20448_v52 = vld [vmem:[#allocation66_spill] sm:$0xff] }
0x2331   :  { %14753 = vmatpush3.bf16.msra.mxu1 %v20438_v6  ;;  %14785 = vmatpush3.bf16.msra.mxu0 %v20439_v9  ;;  %v20449_v6 = vld [vmem:[#allocation67_spill] sm:$0xff]  ;;  %v20450_v9 = vld [vmem:[#allocation68_spill] sm:$0xff] }
0x2332   :  { %14755 = vmatprep.subr.bf16.mxu1 %v20440_v34  ;;  %14787 = vmatprep.subr.bf16.mxu0 %v20441_v53  ;;  %v20451_v34 = vld [vmem:[#allocation69_spill] sm:$0xff]  ;;  %v20452_v53 = vld [vmem:[#allocation70_spill] sm:$0xff] }
0x2335   :  { %14757 = vmatpush3.bf16.msra.mxu1 %v20442_v38  ;;  %14789 = vmatpush3.bf16.msra.mxu0 %v20443_v45  ;;  %v20453_v38 = vld [vmem:[#allocation71_spill] sm:$0xff]  ;;  %v20454_v45 = vld [vmem:[#allocation72_spill] sm:$0xff] }
0x2336   :  { %14759 = vmatprep.subr.bf16.mxu1 %v20444_v23  ;;  %14791 = vmatprep.subr.bf16.mxu0 %v20445_v8  ;;  %v20455_v23 = vld [vmem:[#allocation73_spill] sm:$0xff]  ;;  %v20456_v8 = vld [vmem:[#allocation74_spill] sm:$0xff] }
0x2339   :  { %14761 = vmatpush3.bf16.msra.mxu1 %v20446_v31  ;;  %14793 = vmatpush3.bf16.msra.mxu0 %v20447_v0  ;;  %v20457_v31 = vld [vmem:[#allocation75_spill] sm:$0xff] }
0x233a   :  { %14763 = vmatprep.subr.bf16.mxu1 %v20448_v52  ;;  %14795 = vmatprep.subr.bf16.mxu0 %v20449_v6 }
0x233d   :  { %14765 = vmatpush3.bf16.msra.mxu1 %v20450_v9  ;;  %14797 = vmatpush3.bf16.msra.mxu0 %v20451_v34 }
0x233e   :  { %14767 = vmatprep.subr.bf16.mxu1 %v20452_v53  ;;  %14799 = vmatprep.subr.bf16.mxu0 %v20453_v38 }
0x2341   :  { %14769 = vmatpush3.bf16.msra.mxu1 %v20454_v45  ;;  %14801 = vmatpush3.bf16.msra.mxu0 %v20455_v23 }
0x2342   :  { %14803 = vmatprep.subr.bf16.mxu1 %v20456_v8  ;;  %14835 = vmatprep.subr.bf16.mxu0 %v20457_v31 }
0x23de   :  { %v6500_v0 = vpop.f32.mrb[120].mxu1  ;;  %v6577_v52 = vpop.f32.mrb[120].mxu0 }
0x23df   :  { %v6501_v6 = vadd.f32 %v6500_v0, %v20458_v27  ;;  %v6578_v9 = vadd.f32 %v6577_v52, %v20459_v63  ;;  %v6502_v58 = vpop.f32.mrb[121].mxu1  ;;  %v6579_v34 = vpop.f32.mrb[121].mxu0 }
0x23e0   :  { %v6503_v53 = vadd.f32 %v6502_v58, %v20460_v18  ;;  %v6580_v38 = vadd.f32 %v6579_v34, %v20461_v62 }
0x23e1   :  { %v7050_v46 = vmax.f32 %v6501_v6, 0.0  ;;  %v7052_v8 = vmax.f32 %v6578_v9, 0.0  ;;  %v20463_v6 = vld [vmem:[#allocation81_spill] sm:$0xff] }
0x23e2   :  { %v7051_v33 = vmax.f32 %v6503_v53, 0.0  ;;  %v7053_v45 = vmax.f32 %v6580_v38, 0.0  ;;  %v6506_v40 = vpop.f32.mrb[122].mxu1  ;;  %v6583_v23 = vpop.f32.mrb[122].mxu0  ;;  %v20462_v38 = vld [vmem:[#allocation80_spill] sm:$0xff] }
0x23e3   :  { %v6507_v31 = vadd.f32 %v6506_v40, %v20458_v27  ;;  %v6584_v41 = vadd.f32 %v6583_v23, %v20459_v63  ;;  %v6508_v35 = vpop.f32.mrb[123].mxu1  ;;  %v6585_v0 = vpop.f32.mrb[123].mxu0 }
0x23e4   :  { %v6509_v52 = vadd.f32 %v6508_v35, %v20460_v18  ;;  %v6586_v48 = vadd.f32 %v6585_v0, %v20461_v62  ;;  %7146 = vmatprep.mubr.f32.mxu1 %v7051_v33  ;;  %7221 = vmatprep.mubr.f32.mxu0 %v7053_v45  ;;  %v20465_v35 = vld [vmem:[#allocation84_spill] sm:$0xff] }
0x23e5   :  { %7147 = vmatmul.mubr.f32.vlgmr.msra.gmra.mrb[136].mxu1 %v7050_v46  ;;  %7222 = vmatmul.mubr.f32.vlgmr.msra.gmra.mrb[136].mxu0 %v7052_v8  ;;  %v7066_v53 = vmax.f32 %v6507_v31, 0.0  ;;  %v7068_v23 = vmax.f32 %v6584_v41, 0.0  ;;  %v20466_v8 = vld [vmem:[#allocation86_spill] sm:$0xff]  ;;  %v20467_v31 = vld [vmem:[#allocation87_spill] sm:$0xff]  ;;  %v20480_v18 = vld [vmem:[#allocation100_spill] sm:$0xff] }
0x23e6   :  { %v7067_v58 = vmax.f32 %v6509_v52, 0.0  ;;  %v7069_v34 = vmax.f32 %v6586_v48, 0.0  ;;  %14805 = vmatpush3.bf16.msra.mxu1 %v20462_v38  ;;  %14837 = vmatpush3.bf16.msra.mxu0 %v20463_v6  ;;  %v6654_v9 = vpop.f32.mrb[124].mxu1  ;;  %v6731_v40 = vpop.f32.mrb[124].mxu0  ;;  %v20468_v6 = vld [vmem:[#allocation88_spill] sm:$0xff]  ;;  %v20478_v38 = vld [vmem:[#allocation98_spill] sm:$0xff] }
0x23e7   :  { %v6656_v63 = vpop.f32.mrb[125].mxu1  ;;  %v6733_v27 = vpop.f32.mrb[125].mxu0  ;;  %14807 = vmatprep.subr.bf16.mxu1 %v20464_v21  ;;  %14839 = vmatprep.subr.bf16.mxu0 %v20465_v35  ;;  %v20469_v35 = vld [vmem:[#allocation89_spill] sm:$0xff] }
0x23e8   :  { %v6657_v33 = vadd.f32 %v6656_v63, %v20164_v39  ;;  %v6734_v46 = vadd.f32 %v6733_v27, %v20165_v36  ;;  %7151 = vmatprep.mubr.f32.mxu1 %v7067_v58  ;;  %7226 = vmatprep.mubr.f32.mxu0 %v7069_v34  ;;  %v20470_v63 = vld [vmem:[#allocation90_spill] sm:$0xff]  ;;  %v20471_v27 = vld [vmem:[#allocation91_spill] sm:$0xff] }
0x23e9   :  { %7152 = vmatmul.mubr.f32.gmra.mrb[138].mxu1 %v7066_v53  ;;  %7227 = vmatmul.mubr.f32.gmra.mrb[138].mxu0 %v7068_v23 }
0x23ea   :  { %v7055_v48 = vmax.f32 %v6657_v33, 0.0  ;;  %v7057_v45 = vmax.f32 %v6734_v46, 0.0  ;;  %14809 = vmatpush3.bf16.msra.mxu1 %v20466_v8  ;;  %14841 = vmatpush3.bf16.msra.mxu0 %v20467_v31  ;;  %v6660_v41 = vpop.f32.mrb[126].mxu1  ;;  %v6737_v0 = vpop.f32.mrb[126].mxu0  ;;  %v20472_v33 = vld [vmem:[#allocation92_spill] sm:$0xff]  ;;  %v20473_v46 = vld [vmem:[#allocation93_spill] sm:$0xff] }
0x23eb   :  { %v6662_v52 = vpop.f32.mrb[127].mxu1  ;;  %v6739_v21 = vpop.f32.mrb[127].mxu0  ;;  %14811 = vmatprep.subr.bf16.mxu1 %v20468_v6  ;;  %14843 = vmatprep.subr.bf16.mxu0 %v20469_v35  ;;  %v20474_v31 = vld [vmem:[#allocation94_spill] sm:$0xff]  ;;  %v20475_v6 = vld [vmem:[#allocation95_spill] sm:$0xff]  ;;  %v20476_v35 = vld [vmem:[#allocation96_spill] sm:$0xff] }
0x23ec   :  { %7296 = vmatprep.mubr.f32.mxu1 %v7055_v48  ;;  %7371 = vmatprep.mubr.f32.mxu0 %v7057_v45  ;;  %v20477_v8 = vld [vmem:[#allocation97_spill] sm:$0xff]  ;;  %v6663_v51 = vadd.f32 %v6662_v52, %v20164_v39 }
0x23ee   :  { %14813 = vmatpush3.bf16.msra.mxu1 %v20470_v63  ;;  %14845 = vmatpush3.bf16.msra.mxu0 %v20471_v27  ;;  %v18593_v58 = vpop.f32.mrb[128].mxu1  ;;  %v18595_v34 = vpop.f32.mrb[128].mxu0 }
0x23ef   :  { %v6810_v53 = vpop.f32.mrb[129].mxu1  ;;  %v6887_v23 = vpop.f32.mrb[129].mxu0  ;;  %14815 = vmatprep.subr.bf16.mxu1 %v20472_v33  ;;  %14847 = vmatprep.subr.bf16.mxu0 %v20473_v46  ;;  %v20479_v33 = vld [vmem:[#allocation99_spill] sm:$0xff] }
0x23f0   :  { %v6811_v52 = vadd.f32 %v6810_v53, %v17050_v11  ;;  %v20496_v53 = vld [vmem:[#allocation139_spill] sm:$0xff] }
0x23f2   :  { %14817 = vmatpush3.bf16.msra.mxu1 %v20474_v31  ;;  %14849 = vmatpush3.bf16.msra.mxu0 %v20475_v6  ;;  %v18601_v48 = vpop.f32.mrb[130].mxu1  ;;  %v18603_v45 = vpop.f32.mrb[130].mxu0 }
0x23f3   :  { %v18605_v63 = vpop.f32.mrb[131].mxu1  ;;  %v18607_v27 = vpop.f32.mrb[131].mxu0  ;;  %14819 = vmatprep.subr.bf16.mxu1 %v20476_v35  ;;  %14851 = vmatprep.subr.bf16.mxu0 %v20477_v8  ;;  %v20483_v35 = vld [vmem:[#allocation103_spill] sm:$0xff] }
0x23f6   :  { %14821 = vmatpush3.bf16.msra.mxu1 %v20478_v38  ;;  %14853 = vmatpush3.bf16.msra.mxu0 %v20479_v33  ;;  %v18613_v46 = vpop.f32.mrb[132].mxu1  ;;  %v18615_v31 = vpop.f32.mrb[132].mxu0 }
0x23f7   :  { %v18617_v6 = vpop.f32.mrb[133].mxu1  ;;  %v18619_v62 = vpop.f32.mrb[133].mxu0  ;;  %14823 = vmatprep.subr.bf16.mxu1 %v20480_v18  ;;  %14855 = vmatprep.subr.bf16.mxu0 %v20481_v44  ;;  %v20488_v18 = vld [vmem:[#allocation107_spill] sm:$0xff]  ;;  %v20489_v44 = vld [vmem:[#allocation109_spill] sm:$0xff] }
0x23fa   :  { %14825 = vmatpush3.bf16.msra.mxu1 %v20482_v49  ;;  %14857 = vmatpush3.bf16.msra.mxu0 %v20483_v35  ;;  %v18625_v8 = vpop.f32.mrb[134].mxu1  ;;  %v18627_v38 = vpop.f32.mrb[134].mxu0  ;;  %v6655_v49 = vadd.f32 %v6654_v9, %v16947_v19  ;;  %v6732_v35 = vadd.f32 %v6731_v40, %v16971_v22  ;;  %v6738_v9 = vadd.f32 %v6737_v0, %v16971_v22  ;;  %v7071_v40 = vmax.f32 %v6663_v51, 0.0  ;;  %v20490_v51 = vld [vmem:[#allocation131_spill] sm:$0xff] }
0x23fb   :  { %20484 = vst [vmem:[#allocation108_spill] sm:$0xff] %v18627_v38  ;;  %v18629_v33 = vpop.f32.mrb[135].mxu1  ;;  %v18631_v42 = vpop.f32.mrb[135].mxu0  ;;  %14827 = vmatprep.subr.bf16.mxu1 %v20485_v32  ;;  %14859 = vmatprep.subr.bf16.mxu0 %v20486_v56  ;;  %v6740_v38 = vadd.f32 %v6739_v21, %v20165_v36  ;;  %v6888_v21 = vadd.f32 %v6887_v23, %v17055_v54 }
0x23fc   :  { %v7054_v56 = vmax.f32 %v6655_v49, 0.0  ;;  %v6809_v23 = vadd.f32 %v18593_v58, %v17284_v60  ;;  %v6815_v58 = vadd.f32 %v18601_v48, %v17284_v60 }
0x23fd   :  { %v7061_v0 = vmax.f32 %v6888_v21, 0.0  ;;  %v6894_v21 = vadd.f32 %v18607_v27, %v17055_v54 }
0x23fe   :  { %14829 = vmatpush3.bf16.msra.mxu1 %v20487_v14  ;;  %14861 = vmatpush3.bf16.msra.mxu0 %v20488_v18  ;;  %v7056_v14 = vmax.f32 %v6732_v35, 0.0  ;;  %v6661_v18 = vadd.f32 %v6660_v41, %v16947_v19  ;;  %v7072_v35 = vmax.f32 %v6738_v9, 0.0  ;;  %v7059_v41 = vmax.f32 %v6811_v52, 0.0 }
0x23ff   :  { %14831 = vmatprep.subr.bf16.mxu1 %v20188_v37  ;;  %14863 = vmatprep.subr.bf16.mxu0 %v20489_v44  ;;  %v7073_v44 = vmax.f32 %v6740_v38, 0.0  ;;  %v20495_v38 = vld [vmem:[#allocation138_spill] sm:$0xff]  ;;  %v6886_v9 = vadd.f32 %v18595_v34, %v17304_v29  ;;  %v6817_v52 = vadd.f32 %v18605_v63, %v17050_v11  ;;  %v6892_v34 = vadd.f32 %v18603_v45, %v17304_v29 }
0x2400   :  { %v7070_v49 = vmax.f32 %v6661_v18, 0.0  ;;  %v20494_v18 = vld [vmem:[#allocation136_spill] sm:$0xff]  ;;  %v7074_v48 = vmax.f32 %v6815_v58, 0.0  ;;  %v20504_v45 = vld [vmem:[#allocation150_spill] sm:$0xff] }
0x2401   :  { %v7075_v63 = vmax.f32 %v6817_v52, 0.0  ;;  %v20505_v52 = vld [vmem:[#allocation151_spill] sm:$0xff]  ;;  %v20512_v58 = vld [vmem:[#allocation158_spill] sm:$0xff] }
0x2402   :  { %14833 = vmatpush3.bf16.msra.mxu1 %v20337_v2  ;;  %14865 = vmatpush3.bf16.msra.mxu0 %v20338_v47 }
0x2403   :  { %14867 = vmatprep.subr.bf16.mxu1 %v20339_v61  ;;  %14899 = vmatprep.subr.bf16.mxu0 %v17032_v43 }
0x2405   :  { %7297 = vmatmul.mubr.f32.vlgmr.msra.gmra.mrb[140].mxu1 %v7054_v56  ;;  %7372 = vmatmul.mubr.f32.vlgmr.msra.gmra.mrb[140].mxu0 %v7056_v14  ;;  %v20492_v14 = vld [vmem:[#allocation134_spill] sm:$0xff]  ;;  %v20493_v56 = vld [vmem:[#allocation135_spill] sm:$0xff] }
0x2406   :  { %7301 = vmatprep.mubr.f32.mxu1 %v7071_v40  ;;  %7376 = vmatprep.mubr.f32.mxu0 %v7073_v44  ;;  %v20491_v44 = vld [vmem:[#allocation132_spill] sm:$0xff]  ;;  %v20497_v40 = vld [vmem:[#allocation142_spill] sm:$0xff] }
0x2407   :  { %14869 = vmatpush3.bf16.msra.mxu1 %v20190_v13  ;;  %14901 = vmatpush3.bf16.msra.mxu0 %v20191_v55 }
0x2408   :  { %14871 = vmatprep.subr.bf16.mxu1 %v20192_v59  ;;  %14903 = vmatprep.subr.bf16.mxu0 %v20193_v7 }
0x2409   :  { %7302 = vmatmul.mubr.f32.gmra.mrb[142].mxu1 %v7070_v49  ;;  %7377 = vmatmul.mubr.f32.gmra.mrb[142].mxu0 %v7072_v35  ;;  %v20498_v49 = vld [vmem:[#allocation144_spill] sm:$0xff]  ;;  %v7058_v35 = vmax.f32 %v6809_v23, 0.0  ;;  %v7076_v23 = vmax.f32 %v6892_v34, 0.0 }
0x240a   :  { %7446 = vmatprep.mubr.f32.mxu1 %v7059_v41  ;;  %7521 = vmatprep.mubr.f32.mxu0 %v7061_v0  ;;  %v7060_v41 = vmax.f32 %v6886_v9, 0.0  ;;  %v20499_v0 = vld [vmem:[#allocation145_spill] sm:$0xff]  ;;  %v20514_v34 = vld [vmem:[#allocation160_spill] sm:$0xff] }
0x240b   :  { %14873 = vmatpush3.bf16.msra.mxu1 %v20194_v24  ;;  %14905 = vmatpush3.bf16.msra.mxu0 %v20195_v20  ;;  %v20503_v9 = vld [vmem:[#allocation149_spill] sm:$0xff] }
0x240c   :  { %14875 = vmatprep.subr.bf16.mxu1 %v20196_v16  ;;  %14907 = vmatprep.subr.bf16.mxu0 %v20197_v26 }
0x240f   :  { %14877 = vmatpush3.bf16.msra.mxu1 %v20340_v1  ;;  %14909 = vmatpush3.bf16.msra.mxu0 %v20341_v12 }
0x2410   :  { %14879 = vmatprep.subr.bf16.mxu1 %v20342_v17  ;;  %14911 = vmatprep.subr.bf16.mxu0 %v20343_v28 }
0x2413   :  { %14881 = vmatpush3.bf16.msra.mxu1 %v20344_v57  ;;  %14913 = vmatpush3.bf16.msra.mxu0 %v20345_v10 }
0x2414   :  { %14883 = vmatprep.subr.bf16.mxu1 %v20346_v25  ;;  %14915 = vmatprep.subr.bf16.mxu0 %v20205_v3 }
0x2417   :  { %14885 = vmatpush3.bf16.msra.mxu1 %v20347_v15  ;;  %14917 = vmatpush3.bf16.msra.mxu0 %v20348_v50 }
0x2418   :  { %14887 = vmatprep.subr.bf16.mxu1 %v20490_v51  ;;  %14919 = vmatprep.subr.bf16.mxu0 %v20491_v44 }
0x241b   :  { %14889 = vmatpush3.bf16.msra.mxu1 %v20210_v30  ;;  %14921 = vmatpush3.bf16.msra.mxu0 %v20492_v14 }
0x241c   :  { %14891 = vmatprep.subr.bf16.mxu1 %v20493_v56  ;;  %14923 = vmatprep.subr.bf16.mxu0 %v20494_v18 }
0x241f   :  { %14893 = vmatpush3.bf16.msra.mxu1 %v20495_v38  ;;  %14925 = vmatpush3.bf16.msra.mxu0 %v20496_v53  ;;  %v20501_v53 = vld [vmem:[#allocation147_spill] sm:$0xff] }
0x2420   :  { %14895 = vmatprep.subr.bf16.mxu1 %v20216_v5  ;;  %14927 = vmatprep.subr.bf16.mxu0 %v20497_v40  ;;  %v20500_v40 = vld [vmem:[#allocation146_spill] sm:$0xff]  ;;  %v7077_v5 = vmax.f32 %v6894_v21, 0.0  ;;  %v6965_v27 = vadd.f32 %v18617_v6, %v20501_v53  ;;  %v20506_v21 = vld [vmem:[#allocation152_spill] sm:$0xff] }
0x2421   :  { %v20508_v6 = vld [vmem:[#allocation154_spill] sm:$0xff] }
0x2423   :  { %14897 = vmatpush3.bf16.msra.mxu1 %v17335_v4  ;;  %14929 = vmatpush3.bf16.msra.mxu0 %v20498_v49  ;;  %v20502_v4 = vld [vmem:[#allocation148_spill] sm:$0xff] }
0x2424   :  { %14931 = vmatprep.subr.bf16.mxu1 %v20499_v0  ;;  %14963 = vmatprep.subr.bf16.mxu0 %v20500_v40  ;;  %v7042_v49 = vadd.f32 %v18619_v62, %v20502_v4  ;;  %v7063_v0 = vmax.f32 %v6965_v27, 0.0  ;;  %v20507_v62 = vld [vmem:[#allocation153_spill] sm:$0xff]  ;;  %v20518_v27 = vld [vmem:[#allocation164_spill] sm:$0xff] }
0x2426   :  { %7447 = vmatmul.mubr.f32.vlgmr.msra.gmra.mrb[144].mxu1 %v7058_v35  ;;  %7522 = vmatmul.mubr.f32.vlgmr.msra.gmra.mrb[144].mxu0 %v7060_v41  ;;  %v7065_v40 = vmax.f32 %v7042_v49, 0.0  ;;  %v20510_v35 = vld [vmem:[#allocation156_spill] sm:$0xff]  ;;  %v20511_v41 = vld [vmem:[#allocation157_spill] sm:$0xff]  ;;  %v20513_v49 = vld [vmem:[#allocation159_spill] sm:$0xff] }
0x2427   :  { %7451 = vmatprep.mubr.f32.mxu1 %v7075_v63  ;;  %7526 = vmatprep.mubr.f32.mxu0 %v7077_v5  ;;  %v20509_v5 = vld [vmem:[#allocation155_spill] sm:$0xff]  ;;  %v20515_v63 = vld [vmem:[#allocation161_spill] sm:$0xff] }
0x2428   :  { %14933 = vmatpush3.bf16.msra.mxu1 %v20503_v9  ;;  %14965 = vmatpush3.bf16.msra.mxu0 %v20504_v45 }
0x2429   :  { %14935 = vmatprep.subr.bf16.mxu1 %v20505_v52  ;;  %14967 = vmatprep.subr.bf16.mxu0 %v20506_v21 }
0x242a   :  { %7452 = vmatmul.mubr.f32.gmra.mrb[146].mxu1 %v7074_v48  ;;  %7527 = vmatmul.mubr.f32.gmra.mrb[146].mxu0 %v7076_v23  ;;  %v20519_v48 = vld [vmem:[#allocation165_spill] sm:$0xff]  ;;  %v20520_v23 = vld [vmem:[#allocation166_spill] sm:$0xff] }
0x242b   :  { %7596 = vmatprep.mubr.f32.mxu1 %v7063_v0  ;;  %7671 = vmatprep.mubr.f32.mxu0 %v7065_v40  ;;  %v20516_v0 = vld [vmem:[#allocation162_spill] sm:$0xff]  ;;  %v20517_v40 = vld [vmem:[#allocation163_spill] sm:$0xff] }
0x242c   :  { %14937 = vmatpush3.bf16.msra.mxu1 %v20507_v62  ;;  %14969 = vmatpush3.bf16.msra.mxu0 %v20508_v6  ;;  %v20536_v6 = vld [vmem:[#allocation8_spill] sm:$0xff] }
0x242d   :  { %14939 = vmatprep.subr.bf16.mxu1 %v20509_v5  ;;  %14971 = vmatprep.subr.bf16.mxu0 %v20510_v35  ;;  %v20521_v35 = vld [vmem:[#allocation167_spill] sm:$0xff]  ;;  %v20531_v5 = vld [vmem:[#allocation177_spill] sm:$0xff] }
0x2430   :  { %14941 = vmatpush3.bf16.msra.mxu1 %v20511_v41  ;;  %14973 = vmatpush3.bf16.msra.mxu0 %v20512_v58  ;;  %v20522_v41 = vld [vmem:[#allocation168_spill] sm:$0xff]  ;;  %v20523_v58 = vld [vmem:[#allocation169_spill] sm:$0xff] }
0x2431   :  { %14943 = vmatprep.subr.bf16.mxu1 %v20513_v49  ;;  %14975 = vmatprep.subr.bf16.mxu0 %v20514_v34  ;;  %v20524_v49 = vld [vmem:[#allocation170_spill] sm:$0xff]  ;;  %v20525_v34 = vld [vmem:[#allocation171_spill] sm:$0xff] }
0x2434   :  { %14945 = vmatpush3.bf16.msra.mxu1 %v20515_v63  ;;  %14977 = vmatpush3.bf16.msra.mxu0 %v20516_v0  ;;  %v20526_v63 = vld [vmem:[#allocation172_spill] sm:$0xff]  ;;  %v20527_v0 = vld [vmem:[#allocation174_spill] sm:$0xff] }
0x2435   :  { %14947 = vmatprep.subr.bf16.mxu1 %v20517_v40  ;;  %14979 = vmatprep.subr.bf16.mxu0 %v20518_v27  ;;  %v20528_v40 = vld [vmem:[#allocation175_spill] sm:$0xff]  ;;  %v20529_v27 = vld [vmem:[#allocation173_spill] sm:$0xff] }
0x2438   :  { %14949 = vmatpush3.bf16.msra.mxu1 %v20519_v48  ;;  %14981 = vmatpush3.bf16.msra.mxu0 %v20520_v23  ;;  %v6963_v48 = vadd.f32 %v18613_v46, %v20529_v27  ;;  %v20530_v23 = vld [vmem:[#allocation176_spill] sm:$0xff]  ;;  %v6969_v46 = vadd.f32 %v18625_v8, %v20529_v27 }
0x2439   :  { %14951 = vmatprep.subr.bf16.mxu1 %v20521_v35  ;;  %14983 = vmatprep.subr.bf16.mxu0 %v20522_v41  ;;  %v7040_v35 = vadd.f32 %v18615_v31, %v20530_v23  ;;  %v20532_v41 = vld [vmem:[#allocation178_spill] sm:$0xff]  ;;  %v20535_v31 = vld [vmem:[#allocation108_spill] sm:$0xff] }
0x243c   :  { %14953 = vmatpush3.bf16.msra.mxu1 %v20523_v58  ;;  %14985 = vmatpush3.bf16.msra.mxu0 %v20524_v49  ;;  %v6971_v49 = vadd.f32 %v18629_v33, %v20501_v53  ;;  %v7064_v58 = vmax.f32 %v7040_v35, 0.0  ;;  %v20538_v35 = vld [vmem:[#allocation9_spill] sm:$0xff] }
0x243d   :  { %14955 = vmatprep.subr.bf16.mxu1 %v20525_v34  ;;  %14987 = vmatprep.subr.bf16.mxu0 %v20526_v63  ;;  %v7048_v63 = vadd.f32 %v18631_v42, %v20502_v4  ;;  %v20533_v34 = vld [vmem:[#allocation179_spill] sm:$0xff]  ;;  %v7078_v42 = vmax.f32 %v6969_v46, 0.0 }
0x243e   :  { %v7079_v33 = vmax.f32 %v6971_v49, 0.0 }
0x243f   :  { %v7081_v62 = vmax.f32 %v7048_v63, 0.0 }
0x2440   :  { %14957 = vmatpush3.bf16.msra.mxu1 %v20527_v0  ;;  %14989 = vmatpush3.bf16.msra.mxu0 %v20528_v40  ;;  %v20534_v0 = vld [vmem:[#allocation180_spill] sm:$0xff]  ;;  %v7062_v40 = vmax.f32 %v6963_v48, 0.0 }
0x2441   :  { %14959 = vmatprep.subr.bf16.mxu1 %v20531_v5  ;;  %14991 = vmatprep.subr.bf16.mxu0 %v20532_v41  ;;  %v7046_v5 = vadd.f32 %v20535_v31, %v20530_v23  ;;  %v20537_v41 = vmov 0.0  }
0x2444   :  { %14961 = vmatpush3.bf16.msra.mxu1 %v20533_v34  ;;  %14993 = vmatpush3.bf16.msra.mxu0 %v20534_v0  ;;  %v7080_v0 = vmax.f32 %v7046_v5, 0.0  ;;  %v15769_v5 = vld [vmem:[%s19511_s3 + $0x2] ss:$0 sm:$0xff] }
0x2445   :  { %14995 = vmatprep.subr.bf16.mxu1 %v20536_v6  ;;  %13621 = vmatprep.subr.mxu0 %v20537_v41 }
0x2447   :  { %7597 = vmatmul.mubr.f32.vlgmr.msra.gmra.mrb[148].mxu1 %v7062_v40  ;;  %7672 = vmatmul.mubr.f32.vlgmr.msra.gmra.mrb[148].mxu0 %v7064_v58 }
0x2448   :  { %7601 = vmatprep.mubr.f32.mxu1 %v7079_v33  ;;  %7676 = vmatprep.mubr.f32.mxu0 %v7081_v62 }
0x2449   :  { %14997 = vmatpush3.bf16.msra.mxu1 %v20536_v6 }
0x244a   :  { %14999 = vmatprep.subr.bf16.mxu1 %v20538_v35 }
0x244b   :  { %7602 = vmatmul.mubr.f32.gmra.mrb[150].mxu1 %v7078_v42  ;;  %7677 = vmatmul.mubr.f32.gmra.mrb[150].mxu0 %v7080_v0 }
0x244c   :  { %13623 = vmatprep.mubr.msk.f32.mxu0 %vm15833_vm1, %v20537_v41 }
0x244d   :  { %15001 = vmatpush3.bf16.msra.mxu1 %v20538_v35 }
0x244e   :  { %13626 = vmatprep.subr.mxu1 %v20537_v41 }
0x24b8   :  { %v12552_v8 = vpop.f32.mrb[136].mxu1  ;;  %v12590_v49 = vpop.f32.mrb[136].mxu0 }
0x24b9   :  { %v12553_v58 = vpop.f32.mrb[137].mxu1  ;;  %v12591_v63 = vpop.f32.mrb[137].mxu0 }
0x24ba   :  { %v12554_v62 = vadd.f32 %v12553_v58, %v12552_v8  ;;  %v12592_v40 = vadd.f32 %v12591_v63, %v12590_v49 }
0x24bc   :  { %v7149_v48 = vadd.f32 %v15769_v5, %v12554_v62  ;;  %v12555_v46 = vpop.f32.mrb[138].mxu1  ;;  %v12593_v0 = vpop.f32.mrb[138].mxu0 }
0x24bd   :  { %v12556_v31 = vpop.f32.mrb[139].mxu1  ;;  %v12594_v33 = vpop.f32.mrb[139].mxu0 }
0x24be   :  { %v7224_v42 = vadd.f32 %v12592_v40, %v7149_v48  ;;  %v12557_v6 = vadd.f32 %v12556_v31, %v12555_v46  ;;  %v12595_v35 = vadd.f32 %v12594_v33, %v12593_v0 }
0x24c0   :  { %v7154_v34 = vadd.f32 %v15769_v5, %v12557_v6 }
0x24c2   :  { %v7229_v23 = vadd.f32 %v12595_v35, %v7154_v34 }
0x24d8   :  { %v12628_v27 = vpop.f32.mrb[140].mxu1  ;;  %v12666_v21 = vpop.f32.mrb[140].mxu0 }
0x24d9   :  { %v12629_v52 = vpop.f32.mrb[141].mxu1  ;;  %v12667_v45 = vpop.f32.mrb[141].mxu0 }
0x24da   :  { %v12630_v8 = vadd.f32 %v12629_v52, %v12628_v27  ;;  %v12668_v49 = vadd.f32 %v12667_v45, %v12666_v21 }
0x24dc   :  { %v7299_v58 = vadd.f32 %v12630_v8, %v7224_v42  ;;  %v12631_v63 = vpop.f32.mrb[142].mxu1  ;;  %v12669_v9 = vpop.f32.mrb[142].mxu0 }
0x24dd   :  { %v12632_v4 = vpop.f32.mrb[143].mxu1  ;;  %v12670_v62 = vpop.f32.mrb[143].mxu0 }
0x24de   :  { %v7374_v53 = vadd.f32 %v12668_v49, %v7299_v58  ;;  %v12633_v29 = vadd.f32 %v12632_v4, %v12631_v63  ;;  %v12671_v60 = vadd.f32 %v12670_v62, %v12669_v9 }
0x24e0   :  { %v7304_v38 = vadd.f32 %v12633_v29, %v7229_v23 }
0x24e2   :  { %v7379_v40 = vadd.f32 %v12671_v60, %v7304_v38 }
0x24f9   :  { %v12704_v48 = vpop.f32.mrb[144].mxu1  ;;  %v12742_v46 = vpop.f32.mrb[144].mxu0 }
0x24fa   :  { %v12705_v6 = vpop.f32.mrb[145].mxu1  ;;  %v12743_v34 = vpop.f32.mrb[145].mxu0 }
0x24fb   :  { %v12706_v35 = vadd.f32 %v12705_v6, %v12704_v48  ;;  %v12744_v5 = vadd.f32 %v12743_v34, %v12742_v46 }
0x24fd   :  { %v7449_v0 = vadd.f32 %v12706_v35, %v7374_v53  ;;  %v12707_v31 = vpop.f32.mrb[146].mxu1  ;;  %v12745_v52 = vpop.f32.mrb[146].mxu0 }
0x24fe   :  { %v12708_v45 = vpop.f32.mrb[147].mxu1  ;;  %v12746_v21 = vpop.f32.mrb[147].mxu0 }
0x24ff   :  { %v7524_v27 = vadd.f32 %v12744_v5, %v7449_v0  ;;  %v12709_v33 = vadd.f32 %v12708_v45, %v12707_v31  ;;  %v12747_v42 = vadd.f32 %v12746_v21, %v12745_v52  ;;  %v20539_v5 = vld [vmem:[#allocation82_spill] sm:$0xff]  ;;  %v20540_v52 = vld [vmem:[#allocation85_spill] sm:$0xff] }
0x2501   :  { %v7454_v8 = vadd.f32 %v12709_v33, %v7379_v40 }
0x2503   :  { %v7529_v49 = vadd.f32 %v12747_v42, %v7454_v8 }
0x251a   :  { %v12780_v4 = vpop.f32.mrb[148].mxu1  ;;  %v12818_v9 = vpop.f32.mrb[148].mxu0 }
0x251b   :  { %v12781_v29 = vpop.f32.mrb[149].mxu1  ;;  %v12819_v60 = vpop.f32.mrb[149].mxu0 }
0x251c   :  { %v12782_v38 = vadd.f32 %v12781_v29, %v12780_v4  ;;  %v12820_v23 = vadd.f32 %v12819_v60, %v12818_v9 }
0x251e   :  { %v7599_v58 = vadd.f32 %v12782_v38, %v7524_v27  ;;  %v12783_v63 = vpop.f32.mrb[150].mxu1  ;;  %v12821_v62 = vpop.f32.mrb[150].mxu0 }
0x251f   :  { %v12784_v48 = vpop.f32.mrb[151].mxu1  ;;  %v12822_v53 = vpop.f32.mrb[151].mxu0 }
0x2520   :  { %v7674_v46 = vadd.f32 %v12820_v23, %v7599_v58  ;;  %v12785_v6 = vadd.f32 %v12784_v48, %v12783_v63  ;;  %v12823_v34 = vadd.f32 %v12822_v53, %v12821_v62 }
0x2522   :  { %v7604_v35 = vadd.f32 %v12785_v6, %v7529_v49  ;;  %v7682_v0 = vadd.f32 %v7674_v46, %v20539_v5 }
0x2524   :  { %v7679_v31 = vadd.f32 %v12823_v34, %v7604_v35  ;;  %v7684_v40 = vsel %vm364_vm0, %v7682_v0, 0.0  ;;  %v15770_v34 = vld [vmem:[%s19511_s3 + $0x3] ss:$0 sm:$0xff] }
0x2525   :  { %7685 = vadd.xlane.f32.xlu0 %v7684_v40 }
0x2526   :  { %v7683_v45 = vadd.f32 %v7679_v31, %v20540_v52  ;;  %v15771_v31 = vld [vmem:[%s19511_s3 + $0x4] ss:$0 sm:$0xff] }
0x2528   :  { %v7687_v21 = vsel %vm364_vm0, %v7683_v45, 0.0 }
0x2529   :  { %7688 = vadd.xlane.f32.xlu1 %v7687_v21 }
0x25b2   :  { %v7686_v27 = vpop.xlane.xlu0 %7685 }
0x25b3   :  { %v7690_v33 = vmul.f32 0.03125, %v7686_v27 }
0x25b5   :  { %v7692_v42 = vsub.f32 %v7682_v0, %v7690_v33 }
0x25b6   :  { %v7689_v8 = vpop.xlane.xlu1 %7688 }
0x25b7   :  { %v7691_v4 = vmul.f32 0.03125, %v7689_v8  ;;  %v7694_v9 = vmul.f32 %v7692_v42, %v7692_v42 }
0x25b9   :  { %v7693_v29 = vsub.f32 %v7683_v45, %v7691_v4  ;;  %v7696_v49 = vsel %vm364_vm0, %v7694_v9, 0.0 }
0x25ba   :  { %7697 = vadd.xlane.f32.xlu0 %v7696_v49 }
0x25bb   :  { %v7695_v60 = vmul.f32 %v7693_v29, %v7693_v29 }
0x25bd   :  { %v7699_v38 = vsel %vm364_vm0, %v7695_v60, 0.0 }
0x25be   :  { %7700 = vadd.xlane.f32.xlu1 %v7699_v38 }
0x2647   :  { %v7698_v23 = vpop.xlane.xlu0 %7697 }
0x2648   :  { %v7702_v58 = vmul.f32 0.03125, %v7698_v23 }
0x264a   :  { %v7704_v63 = vadd.f32 1e-05, %v7702_v58 }
0x264b   :  { %v7701_v62 = vpop.xlane.xlu1 %7700 }
0x264c   :  { %15718 = vrsqrt.f32 %v7704_v63  ;;  %v7703_v48 = vmul.f32 0.03125, %v7701_v62 }
0x264e   :  { %v7705_v53 = vadd.f32 1e-05, %v7703_v48 }
0x2650   :  { %15720 = vrsqrt.f32 %v7705_v53 }
0x2656   :  { %v15719_v46 = vpop.eup %15718 }
0x2657   :  { %v7708_v6 = vmul.f32 %v15719_v46, %v7692_v42 }
0x2659   :  { %v7710_v35 = vmul.f32 %v15770_v34, %v7708_v6 }
0x265a   :  { %v15721_v5 = vpop.eup %15720 }
0x265b   :  { %v7709_v0 = vmul.f32 %v15721_v5, %v7693_v29  ;;  %v18764_v40 = vadd.f32 %v15771_v31, %v7710_v35 }
0x265d   :  { %v7711_v52 = vmul.f32 %v15770_v34, %v7709_v0  ;;  %13618 = vmatprep.mubr.msk.f32.mxu1 %vm364_vm0, %v18764_v40 }
0x265f   :  { %v18768_v45 = vadd.f32 %v15771_v31, %v7711_v52  ;;  %v20541_v52 = vld [vmem:[#allocation10_spill] sm:$0xff] }
0x2661   :  { %13619 = vmatmul.mubr.msk.f32.vlgmr.msra.gmra.mrb[152].mxu1 %vm364_vm0, %v18768_v45 }
0x2662   :  { %13628 = vmatprep.mubr.msk.f32.mxu1 %vm15833_vm1, %v20537_v41 }
0x2734   :  { %v13620_v21 = vpop.f32.mrb[152].mxu1 }
0x2735   :  { %7876 = vrot.lane.b32.xlu1 %v13620_v21, %s15834_s16  ;;  %v7789_v27 = vpop.f32.mrb[153].mxu1 }
0x2736   :  { %7799 = vrot.lane.b32.xlu0 %v7789_v27, %s15834_s16 }
0x27a7   :  { %v7877_v33 = vpop.permute.xlu1 %7876 }
0x27a8   :  { %13627 = vmatpush3.xpose.msk.msra.mxu1 %vm449_vm2, %v7877_v33  ;;  %v7800_v42 = vpop.permute.xlu0 %7799  ;;  %v15772_v33 = vld [vmem:[%s19510_s2] sm:$0xf] }
0x27a9   :  { %13622 = vmatpush3.xpose.msk.msra.mxu0 %vm449_vm2, %v7800_v42  ;;  %13636 = vmatprep.subr.mxu1 %v20537_v41 }
0x27aa   :  { %13631 = vmatprep.subr.mxu0 %v20537_v41 }
0x27ab   :  { %13629 = vmatmul.mubr.msk.f32.vlgmr.msra.gmra.mrb[154].mxu1 %vm449_vm2, %v13620_v21 }
0x27ac   :  { %13624 = vmatmul.mubr.msk.f32.vlgmr.msra.gmra.mrb[152].mxu0 %vm449_vm2, %v7789_v27  ;;  %13638 = vmatprep.mubr.msk.f32.mxu1 %vm15833_vm1, %v20537_v41 }
0x27ad   :  { %13633 = vmatprep.mubr.msk.f32.mxu0 %vm15833_vm1, %v20537_v41 }
0x287e   :  { %v7948_v8 = vpop.f32.mrb[154].mxu1 }
0x287f   :  { %v7871_v4 = vpop.f32.mrb[152].mxu0  ;;  %v13630_v9 = vpop.f32.mrb[155].mxu1  ;;  %v7955_v29 = vsel %vm601_vm3, %v7948_v8, -inf }
0x2880   :  { %v13625_v49 = vpop.f32.mrb[153].mxu0  ;;  %7956 = vmax.xlane.f32.xlu0 %v7955_v29  ;;  %v7952_v60 = vsel %vm601_vm3, %v7871_v4, -inf  ;;  %v20543_v9 = vld [vmem:[#allocation14_spill] sm:$0xff]  ;;  %v20544_v29 = vld [vmem:[#allocation11_spill] sm:$0xff] }
0x2881   :  { %7953 = vmax.xlane.f32.xlu1 %v7952_v60  ;;  %v20545_v49 = vld [vmem:[#allocation16_spill] sm:$0xff]  ;;  %v20546_v60 = vld [vmem:[#allocation18_spill] sm:$0xff] }
0x290d   :  { %v7957_v38 = vpop.xlane.xlu0 %7956 }
0x290e   :  { %v7959_v23 = vsub.f32 %v7948_v8, %v7957_v38  ;;  %v7954_v58 = vpop.xlane.xlu1 %7953 }
0x290f   :  { %v7958_v63 = vsub.f32 %v7871_v4, %v7954_v58  ;;  %v20542_v4 = vld [vmem:[#allocation12_spill] sm:$0xff] }
0x2910   :  { %v7962_v62 = vmul.f32 1.442695, %v7959_v23 }
0x2911   :  { %v7960_v48 = vmul.f32 1.442695, %v7958_v63 }
0x2912   :  { %15722 = vpow2.f32 %v7962_v62  ;;  %v20547_v62 = vld [vmem:[#allocation13_spill] sm:$0xff] }
0x2913   :  { %15724 = vpow2.f32 %v7960_v48  ;;  %v20548_v48 = vld [vmem:[#allocation15_spill] sm:$0xff] }
0x291c   :  { %v15723_v53 = vpop.eup %15722 }
0x291d   :  { %v15725_v46 = vpop.eup %15724  ;;  %v7967_v6 = vsel %vm601_vm3, %v15723_v53, 0.0 }
0x291e   :  { %7968 = vadd.xlane.f32.xlu1 %v7967_v6  ;;  %v7964_v34 = vsel %vm601_vm3, %v15725_v46, 0.0 }
0x291f   :  { %7965 = vadd.xlane.f32.xlu0 %v7964_v34 }
0x292f   :  { %8050 = vrot.lane.b32.xlu1 %v13620_v21, %s15835_s0 }
0x2935   :  { %7974 = vrot.lane.b32.xlu0 %v7789_v27, %s15835_s0 }
0x29ab   :  { %v7969_v35 = vpop.xlane.xlu1 %7968 }
0x29ac   :  { %15726 = vrcp.f32 %v7969_v35  ;;  %v7966_v5 = vpop.xlane.xlu0 %7965 }
0x29ad   :  { %15728 = vrcp.f32 %v7966_v5 }
0x29af   :  { %v8051_v0 = vpop.permute.xlu1 %8050 }
0x29b0   :  { %13637 = vmatpush3.msra.mxu1 %v8051_v0  ;;  %v7975_v31 = vpop.permute.xlu0 %7974 }
0x29b1   :  { %13632 = vmatpush3.msra.mxu0 %v7975_v31  ;;  %15003 = vmatprep.subr.bf16.mxu1 %v20541_v52  ;;  %v20633_v52 = vld [vmem:[#allocation102_spill] sm:$0xff] }
0x29b2   :  { %13641 = vmatprep.subr.msk.mxu0 %vm782_vm4, %v15772_v33 }
0x29b6   :  { %v15727_v42 = vpop.eup %15726 }
0x29b7   :  { %v15729_v21 = vpop.eup %15728  ;;  %v7973_v8 = vmul.f32 %v15727_v42, %v15723_v53  ;;  %v20549_v53 = vld [vmem:[#allocation17_spill] sm:$0xff] }
0x29b8   :  { %v7972_v27 = vmul.f32 %v15729_v21, %v15725_v46  ;;  %v20550_v46 = vld [vmem:[#allocation19_spill] sm:$0xff] }
0x29b9   :  { %9527 = vst.msk [vmem:[#allocation4 + $0x48] sm:$0xff] %vm601_vm3, %v7973_v8  ;;  %13639 = vmatmul.mubr.msk.f32.vlgmr.msra.gmra.mrb[156].mxu1 %vm601_vm3, %v7973_v8 }
0x29ba   :  { %9526 = vst.msk [vmem:[#allocation4 + $0x40] sm:$0xff] %vm601_vm3, %v7972_v27  ;;  %13634 = vmatmul.mubr.msk.f32.vlgmr.msra.gmra.mrb[154].mxu0 %vm601_vm3, %v7972_v27  ;;  %15005 = vmatpush1.bf16.msra.mxu1 %v20542_v4  ;;  %v20632_v4 = vld [vmem:[#allocation101_spill] sm:$0xff] }
0x29bb   :  { %13642 = vmatpush3.msk.msra.mxu0 %vm782_vm4, %v15772_v33  ;;  %15007 = vmatprep.subr.bf16.mxu1 %v20543_v9  ;;  %v20615_v9 = vld [vmem:[#allocation83_spill] sm:$0xff] }
0x29bc   :  { %15011 = vmatprep.subr.bf16.mxu0 %v20544_v29  ;;  %8309 = vmatprep.mubr.f32.mxu1 %v20537_v41 }
0x29be   :  { %15009 = vmatpush1.bf16.msra.mxu1 %v20545_v49 }
0x29bf   :  { %15019 = vmatprep.subr.bf16.mxu1 %v20546_v60 }
0x2a8c   :  { %v8122_v38 = vpop.f32.mrb[156].mxu1 }
0x2a8d   :  { %v8046_v23 = vpop.f32.mrb[154].mxu0  ;;  %v13640_v58 = vpop.f32.mrb[157].mxu1 }
0x2a8e   :  { %v13635_v63 = vpop.f32.mrb[155].mxu0  ;;  %13643 = vmatprep.mubr.msk.f32.mxu0 %vm449_vm2, %v8046_v23 }
0x2a8f   :  { %13644 = vmatmul.mubr.msk.f32.vlgmr.msra.gmra.mrb[156].mxu0 %vm449_vm2, %v8122_v38 }
0x2a90   :  { %15013 = vmatpush1.bf16.msra.mxu0 %v20547_v62  ;;  %8386 = vmatprep.mubr.f32.mxu0 %v20537_v41 }
0x2a91   :  { %15015 = vmatprep.subr.bf16.mxu0 %v20548_v48 }
0x2a94   :  { %15017 = vmatpush1.bf16.msra.mxu0 %v20549_v53 }
0x2a95   :  { %15027 = vmatprep.subr.bf16.mxu0 %v20550_v46 }
0x2b62   :  { %v13645_v6 = vpop.f32.mrb[156].mxu0 }
0x2b63   :  { %v8208_v34 = vadd.f32 %v13645_v6, %v18768_v45  ;;  %v8198_v35 = vpop.f32.mrb[157].mxu0 }
0x2b64   :  { %v8207_v5 = vadd.f32 %v8198_v35, %v18764_v40 }
0x2b65   :  { %v8212_v0 = vsel %vm364_vm0, %v8208_v34, 0.0 }
0x2b66   :  { %8213 = vadd.xlane.f32.xlu0 %v8212_v0  ;;  %v8209_v31 = vsel %vm364_vm0, %v8207_v5, 0.0 }
0x2b67   :  { %8210 = vadd.xlane.f32.xlu1 %v8209_v31 }
0x2bf3   :  { %v8214_v33 = vpop.xlane.xlu0 %8213 }
0x2bf4   :  { %v8216_v42 = vmul.f32 0.03125, %v8214_v33  ;;  %v8211_v21 = vpop.xlane.xlu1 %8210 }
0x2bf5   :  { %v8215_v8 = vmul.f32 0.03125, %v8211_v21 }
0x2bf6   :  { %v8218_v27 = vsub.f32 %v8208_v34, %v8216_v42  ;;  %v15773_v42 = vld [vmem:[%s19511_s3] ss:$0 sm:$0xff] }
0x2bf7   :  { %v8217_v38 = vsub.f32 %v8207_v5, %v8215_v8 }
0x2bf8   :  { %v8220_v23 = vmul.f32 %v8218_v27, %v8218_v27 }
0x2bf9   :  { %v8219_v58 = vmul.f32 %v8217_v38, %v8217_v38 }
0x2bfa   :  { %v8224_v63 = vsel %vm364_vm0, %v8220_v23, 0.0 }
0x2bfb   :  { %8225 = vadd.xlane.f32.xlu1 %v8224_v63  ;;  %v8221_v45 = vsel %vm364_vm0, %v8219_v58, 0.0  ;;  %v15774_v58 = vld [vmem:[%s19511_s3 + $0x1] ss:$0 sm:$0xff] }
0x2bfc   :  { %8222 = vadd.xlane.f32.xlu0 %v8221_v45  ;;  %v20555_v45 = vld [vmem:[#allocation22_spill] sm:$0xff] }
0x2c88   :  { %v8226_v40 = vpop.xlane.xlu1 %8225 }
0x2c89   :  { %v8228_v6 = vmul.f32 0.03125, %v8226_v40  ;;  %v8223_v35 = vpop.xlane.xlu0 %8222  ;;  %v20556_v40 = vld [vmem:[#allocation23_spill] sm:$0xff] }
0x2c8a   :  { %v8227_v0 = vmul.f32 0.03125, %v8223_v35  ;;  %v20558_v35 = vld [vmem:[#allocation25_spill] sm:$0xff] }
0x2c8b   :  { %v8230_v46 = vadd.f32 1e-05, %v8228_v6  ;;  %v20557_v6 = vld [vmem:[#allocation24_spill] sm:$0xff] }
0x2c8c   :  { %v8229_v31 = vadd.f32 1e-05, %v8227_v0  ;;  %v20559_v0 = vld [vmem:[#allocation26_spill] sm:$0xff] }
0x2c8d   :  { %15730 = vrsqrt.f32 %v8230_v46  ;;  %v20552_v46 = vld [vmem:[#allocation20_spill] sm:$0xff] }
0x2c8e   :  { %15732 = vrsqrt.f32 %v8229_v31  ;;  %v20560_v31 = vld [vmem:[#allocation27_spill] sm:$0xff] }
0x2c97   :  { %v15731_v33 = vpop.eup %15730 }
0x2c98   :  { %v15733_v21 = vpop.eup %15732  ;;  %v8234_v34 = vmul.f32 %v15731_v33, %v8218_v27  ;;  %v20553_v27 = vld [vmem:[#allocation21_spill] sm:$0xff]  ;;  %v20561_v33 = vld [vmem:[#allocation28_spill] sm:$0xff] }
0x2c99   :  { %v8233_v5 = vmul.f32 %v15733_v21, %v8217_v38  ;;  %v20562_v21 = vld [vmem:[#allocation29_spill] sm:$0xff] }
0x2c9a   :  { %v8236_v23 = vmul.f32 %v15773_v42, %v8234_v34  ;;  %v20563_v34 = vld [vmem:[#allocation30_spill] sm:$0xff] }
0x2c9b   :  { %v8235_v8 = vmul.f32 %v15773_v42, %v8233_v5  ;;  %v20564_v5 = vld [vmem:[#allocation31_spill] sm:$0xff]  ;;  %v20565_v42 = vld [vmem:[#allocation32_spill] sm:$0xff] }
0x2c9c   :  { %v18835_v38 = vadd.f32 %v15774_v58, %v8236_v23  ;;  %v20567_v23 = vld [vmem:[#allocation34_spill] sm:$0xff] }
0x2c9d   :  { %v18827_v63 = vadd.f32 %v15774_v58, %v8235_v8  ;;  %v20566_v8 = vld [vmem:[#allocation33_spill] sm:$0xff]  ;;  %v20568_v58 = vld [vmem:[#allocation35_spill] sm:$0xff] }
0x2c9e   :  { %20554 = vst [vmem:[#allocation114_spill] sm:$0xff] %v18835_v38 }
0x2c9f   :  { %20551 = vst [vmem:[#allocation113_spill] sm:$0xff] %v18827_v63  ;;  %11497 = vmatmul.mubr.msk.f32.vlgmr.msra.gmra.mrb[158].mxu1 %vm364_vm0, %v18827_v63  ;;  %11499 = vmatmul.mubr.msk.f32.vlgmr.msra.gmra.mrb[158].mxu0 %vm364_vm0, %v18827_v63 }
0x2ca0   :  { %15021 = vmatpush1.bf16.msra.mxu1 %v20552_v46  ;;  %15029 = vmatpush1.bf16.msra.mxu0 %v20553_v27  ;;  %v20611_v27 = vld [vmem:[#allocation78_spill] sm:$0xff]  ;;  %v20612_v46 = vld [vmem:[#allocation79_spill] sm:$0xff] }
0x2ca1   :  { %8315 = vmatprep.mubr.f32.mxu1 %v20537_v41  ;;  %8392 = vmatprep.mubr.f32.mxu0 %v20537_v41 }
0x2ca2   :  { %15023 = vmatprep.subr.bf16.mxu1 %v20555_v45  ;;  %15031 = vmatprep.subr.bf16.mxu0 %v20556_v40  ;;  %v20610_v40 = vld [vmem:[#allocation77_spill] sm:$0xff] }
0x2ca3   :  { %11498 = vmatmul.mubr.msk.f32.gmra.mrb[160].mxu1 %vm364_vm0, %v18835_v38  ;;  %11500 = vmatmul.mubr.msk.f32.gmra.mrb[160].mxu0 %vm364_vm0, %v18835_v38 }
0x2ca4   :  { %15025 = vmatpush1.bf16.msra.mxu1 %v20557_v6  ;;  %15033 = vmatpush1.bf16.msra.mxu0 %v20558_v35  ;;  %v20591_v35 = vld [vmem:[#allocation58_spill] sm:$0xff]  ;;  %v20609_v6 = vld [vmem:[#allocation76_spill] sm:$0xff] }
0x2ca5   :  { %8463 = vmatprep.mubr.f32.mxu1 %v20537_v41  ;;  %8540 = vmatprep.mubr.f32.mxu0 %v20537_v41 }
0x2ca6   :  { %15035 = vmatprep.subr.bf16.mxu1 %v20559_v0  ;;  %15043 = vmatprep.subr.bf16.mxu0 %v20560_v31  ;;  %v20589_v31 = vld [vmem:[#allocation56_spill] sm:$0xff]  ;;  %v20590_v0 = vld [vmem:[#allocation57_spill] sm:$0xff] }
0x2ca7   :  { %11501 = vmatmul.mubr.msk.f32.vlgmr.msra.gmra.mrb[162].mxu1 %vm364_vm0, %v18827_v63  ;;  %11503 = vmatmul.mubr.msk.f32.vlgmr.msra.gmra.mrb[162].mxu0 %vm364_vm0, %v18827_v63 }
0x2ca8   :  { %15037 = vmatpush1.bf16.msra.mxu1 %v20561_v33  ;;  %15045 = vmatpush1.bf16.msra.mxu0 %v20562_v21  ;;  %v20583_v21 = vld [vmem:[#allocation50_spill] sm:$0xff]  ;;  %v20584_v33 = vld [vmem:[#allocation51_spill] sm:$0xff] }
0x2ca9   :  { %8469 = vmatprep.mubr.f32.mxu1 %v20537_v41  ;;  %8546 = vmatprep.mubr.f32.mxu0 %v20537_v41 }
0x2caa   :  { %15039 = vmatprep.subr.bf16.mxu1 %v20563_v34  ;;  %15047 = vmatprep.subr.bf16.mxu0 %v20564_v5  ;;  %v20569_v5 = vld [vmem:[#allocation36_spill] sm:$0xff]  ;;  %v20570_v34 = vld [vmem:[#allocation37_spill] sm:$0xff] }
0x2cab   :  { %11502 = vmatmul.mubr.msk.f32.gmra.mrb[164].mxu1 %vm364_vm0, %v18835_v38  ;;  %11504 = vmatmul.mubr.msk.f32.gmra.mrb[164].mxu0 %vm364_vm0, %v18835_v38 }
0x2cac   :  { %15041 = vmatpush1.bf16.msra.mxu1 %v20565_v42  ;;  %15049 = vmatpush1.bf16.msra.mxu0 %v20566_v8  ;;  %v20571_v8 = vld [vmem:[#allocation38_spill] sm:$0xff]  ;;  %v20572_v42 = vld [vmem:[#allocation39_spill] sm:$0xff] }
0x2cad   :  { %8617 = vmatprep.mubr.f32.mxu1 %v20537_v41  ;;  %8694 = vmatprep.mubr.f32.mxu0 %v20537_v41 }
0x2cae   :  { %15051 = vmatprep.subr.bf16.mxu1 %v20567_v23  ;;  %15059 = vmatprep.subr.bf16.mxu0 %v20568_v58  ;;  %v20573_v58 = vld [vmem:[#allocation40_spill] sm:$0xff]  ;;  %v20574_v23 = vld [vmem:[#allocation41_spill] sm:$0xff] }
0x2caf   :  { %11505 = vmatmul.mubr.msk.f32.vlgmr.msra.gmra.mrb[166].mxu1 %vm364_vm0, %v18827_v63  ;;  %11507 = vmatmul.mubr.msk.f32.vlgmr.msra.gmra.mrb[166].mxu0 %vm364_vm0, %v18827_v63 }
0x2cb0   :  { %15053 = vmatpush1.bf16.msra.mxu1 %v20569_v5  ;;  %15061 = vmatpush1.bf16.msra.mxu0 %v20570_v34  ;;  %v20575_v34 = vld [vmem:[#allocation42_spill] sm:$0xff]  ;;  %v20576_v5 = vld [vmem:[#allocation43_spill] sm:$0xff] }
0x2cb1   :  { %8623 = vmatprep.mubr.f32.mxu1 %v20537_v41  ;;  %8700 = vmatprep.mubr.f32.mxu0 %v20537_v41 }
0x2cb2   :  { %15055 = vmatprep.subr.bf16.mxu1 %v20571_v8  ;;  %15063 = vmatprep.subr.bf16.mxu0 %v20572_v42  ;;  %v20579_v42 = vld [vmem:[#allocation46_spill] sm:$0xff]  ;;  %v20580_v8 = vld [vmem:[#allocation47_spill] sm:$0xff] }
0x2cb3   :  { %11506 = vmatmul.mubr.msk.f32.gmra.mrb[168].mxu1 %vm364_vm0, %v18835_v38  ;;  %11508 = vmatmul.mubr.msk.f32.gmra.mrb[168].mxu0 %vm364_vm0, %v18835_v38 }
0x2cb4   :  { %15057 = vmatpush1.bf16.msra.mxu1 %v20573_v58  ;;  %15065 = vmatpush1.bf16.msra.mxu0 %v20574_v23  ;;  %v20577_v58 = vld [vmem:[#allocation44_spill] sm:$0xff]  ;;  %v20578_v23 = vld [vmem:[#allocation45_spill] sm:$0xff] }
0x2cb5   :  { %8771 = vmatprep.mubr.f32.mxu1 %v20537_v41  ;;  %8848 = vmatprep.mubr.f32.mxu0 %v20537_v41 }
0x2cb6   :  { %15067 = vmatprep.subr.bf16.mxu1 %v20575_v34  ;;  %15099 = vmatprep.subr.bf16.mxu0 %v20576_v5  ;;  %v20581_v5 = vld [vmem:[#allocation48_spill] sm:$0xff]  ;;  %v20582_v34 = vld [vmem:[#allocation49_spill] sm:$0xff] }
0x2cb7   :  { %11509 = vmatmul.mubr.msk.f32.vlgmr.msra.gmra.mrb[170].mxu1 %vm364_vm0, %v18827_v63  ;;  %11511 = vmatmul.mubr.msk.f32.vlgmr.msra.gmra.mrb[170].mxu0 %vm364_vm0, %v18827_v63  ;;  %v20637_v63 = vld [vmem:[#allocation105_spill] sm:$0xff] }
0x2cb8   :  { %8777 = vmatprep.mubr.f32.mxu1 %v20537_v41  ;;  %8854 = vmatprep.mubr.f32.mxu0 %v20537_v41  ;;  %v20638_v41 = vld [vmem:[#allocation106_spill] sm:$0xff] }
0x2cb9   :  { %15069 = vmatpush3.bf16.msra.mxu1 %v20577_v58  ;;  %15101 = vmatpush3.bf16.msra.mxu0 %v20578_v23  ;;  %v20585_v58 = vld [vmem:[#allocation52_spill] sm:$0xff]  ;;  %v20586_v23 = vld [vmem:[#allocation53_spill] sm:$0xff] }
0x2cba   :  { %15071 = vmatprep.subr.bf16.mxu1 %v20579_v42  ;;  %15103 = vmatprep.subr.bf16.mxu0 %v20580_v8  ;;  %v20587_v42 = vld [vmem:[#allocation54_spill] sm:$0xff]  ;;  %v20588_v8 = vld [vmem:[#allocation55_spill] sm:$0xff] }
0x2cbb   :  { %11510 = vmatmul.mubr.msk.f32.gmra.mrb[172].mxu1 %vm364_vm0, %v18835_v38  ;;  %11512 = vmatmul.mubr.msk.f32.gmra.mrb[172].mxu0 %vm364_vm0, %v18835_v38 }
0x2cbd   :  { %15073 = vmatpush3.bf16.msra.mxu1 %v20581_v5  ;;  %15105 = vmatpush3.bf16.msra.mxu0 %v20582_v34  ;;  %v20592_v5 = vld [vmem:[#allocation59_spill] sm:$0xff]  ;;  %v20593_v34 = vld [vmem:[#allocation60_spill] sm:$0xff] }
0x2cbe   :  { %15075 = vmatprep.subr.bf16.mxu1 %v20583_v21  ;;  %15107 = vmatprep.subr.bf16.mxu0 %v20584_v33  ;;  %v20594_v21 = vld [vmem:[#allocation61_spill] sm:$0xff]  ;;  %v20595_v33 = vld [vmem:[#allocation62_spill] sm:$0xff] }
0x2cc1   :  { %15077 = vmatpush3.bf16.msra.mxu1 %v20585_v58  ;;  %15109 = vmatpush3.bf16.msra.mxu0 %v20586_v23  ;;  %v20596_v58 = vld [vmem:[#allocation63_spill] sm:$0xff]  ;;  %v20597_v23 = vld [vmem:[#allocation64_spill] sm:$0xff] }
0x2cc2   :  { %15079 = vmatprep.subr.bf16.mxu1 %v20587_v42  ;;  %15111 = vmatprep.subr.bf16.mxu0 %v20588_v8  ;;  %v20598_v42 = vld [vmem:[#allocation65_spill] sm:$0xff]  ;;  %v20599_v8 = vld [vmem:[#allocation66_spill] sm:$0xff] }
0x2cc5   :  { %15081 = vmatpush3.bf16.msra.mxu1 %v20589_v31  ;;  %15113 = vmatpush3.bf16.msra.mxu0 %v20590_v0  ;;  %v20600_v31 = vld [vmem:[#allocation67_spill] sm:$0xff]  ;;  %v20601_v0 = vld [vmem:[#allocation68_spill] sm:$0xff] }
0x2cc6   :  { %15083 = vmatprep.subr.bf16.mxu1 %v20591_v35  ;;  %15115 = vmatprep.subr.bf16.mxu0 %v20592_v5  ;;  %v20602_v35 = vld [vmem:[#allocation69_spill] sm:$0xff]  ;;  %v20603_v5 = vld [vmem:[#allocation70_spill] sm:$0xff] }
0x2cc9   :  { %15085 = vmatpush3.bf16.msra.mxu1 %v20593_v34  ;;  %15117 = vmatpush3.bf16.msra.mxu0 %v20594_v21  ;;  %v20604_v34 = vld [vmem:[#allocation71_spill] sm:$0xff]  ;;  %v20605_v21 = vld [vmem:[#allocation72_spill] sm:$0xff] }
0x2cca   :  { %15087 = vmatprep.subr.bf16.mxu1 %v20595_v33  ;;  %15119 = vmatprep.subr.bf16.mxu0 %v20596_v58  ;;  %v20606_v33 = vld [vmem:[#allocation73_spill] sm:$0xff]  ;;  %v20607_v58 = vld [vmem:[#allocation74_spill] sm:$0xff] }
0x2ccd   :  { %15089 = vmatpush3.bf16.msra.mxu1 %v20597_v23  ;;  %15121 = vmatpush3.bf16.msra.mxu0 %v20598_v42  ;;  %v20608_v23 = vld [vmem:[#allocation75_spill] sm:$0xff] }
0x2cce   :  { %15091 = vmatprep.subr.bf16.mxu1 %v20599_v8  ;;  %15123 = vmatprep.subr.bf16.mxu0 %v20600_v31 }
0x2cd1   :  { %15093 = vmatpush3.bf16.msra.mxu1 %v20601_v0  ;;  %15125 = vmatpush3.bf16.msra.mxu0 %v20602_v35 }
0x2cd2   :  { %15095 = vmatprep.subr.bf16.mxu1 %v20603_v5  ;;  %15127 = vmatprep.subr.bf16.mxu0 %v20604_v34 }
0x2cd5   :  { %15097 = vmatpush3.bf16.msra.mxu1 %v20605_v21  ;;  %15129 = vmatpush3.bf16.msra.mxu0 %v20606_v33 }
0x2cd6   :  { %15131 = vmatprep.subr.bf16.mxu1 %v20607_v58  ;;  %15163 = vmatprep.subr.bf16.mxu0 %v20608_v23 }
0x2d72   :  { %v8311_v42 = vpop.f32.mrb[158].mxu1  ;;  %v8388_v8 = vpop.f32.mrb[158].mxu0 }
0x2d73   :  { %v8312_v31 = vadd.f32 %v8311_v42, %v20609_v6  ;;  %v8389_v0 = vadd.f32 %v8388_v8, %v20610_v40  ;;  %v8313_v45 = vpop.f32.mrb[159].mxu1  ;;  %v8390_v35 = vpop.f32.mrb[159].mxu0 }
0x2d74   :  { %v8314_v5 = vadd.f32 %v8313_v45, %v20611_v27  ;;  %v8391_v34 = vadd.f32 %v8390_v35, %v20612_v46 }
0x2d75   :  { %v8861_v62 = vmax.f32 %v8312_v31, 0.0  ;;  %v8863_v58 = vmax.f32 %v8389_v0, 0.0  ;;  %v20614_v31 = vld [vmem:[#allocation81_spill] sm:$0xff] }
0x2d76   :  { %v8862_v53 = vmax.f32 %v8314_v5, 0.0  ;;  %v8864_v21 = vmax.f32 %v8391_v34, 0.0  ;;  %v8317_v48 = vpop.f32.mrb[160].mxu1  ;;  %v8394_v33 = vpop.f32.mrb[160].mxu0  ;;  %v20613_v34 = vld [vmem:[#allocation80_spill] sm:$0xff] }
0x2d77   :  { %v8318_v23 = vadd.f32 %v8317_v48, %v20609_v6  ;;  %v8395_v60 = vadd.f32 %v8394_v33, %v20610_v40  ;;  %v8319_v49 = vpop.f32.mrb[161].mxu1  ;;  %v8396_v42 = vpop.f32.mrb[161].mxu0 }
0x2d78   :  { %v8320_v8 = vadd.f32 %v8319_v49, %v20611_v27  ;;  %v8397_v29 = vadd.f32 %v8396_v42, %v20612_v46  ;;  %8957 = vmatprep.mubr.f32.mxu1 %v8862_v53  ;;  %9032 = vmatprep.mubr.f32.mxu0 %v8864_v21  ;;  %v20616_v49 = vld [vmem:[#allocation84_spill] sm:$0xff] }
0x2d79   :  { %8958 = vmatmul.mubr.f32.vlgmr.msra.gmra.mrb[174].mxu1 %v8861_v62  ;;  %9033 = vmatmul.mubr.f32.vlgmr.msra.gmra.mrb[174].mxu0 %v8863_v58  ;;  %v8877_v5 = vmax.f32 %v8318_v23, 0.0  ;;  %v8879_v33 = vmax.f32 %v8395_v60, 0.0  ;;  %v20617_v58 = vld [vmem:[#allocation86_spill] sm:$0xff]  ;;  %v20618_v23 = vld [vmem:[#allocation87_spill] sm:$0xff]  ;;  %v20631_v27 = vld [vmem:[#allocation100_spill] sm:$0xff] }
0x2d7a   :  { %v8878_v45 = vmax.f32 %v8320_v8, 0.0  ;;  %v8880_v35 = vmax.f32 %v8397_v29, 0.0  ;;  %15133 = vmatpush3.bf16.msra.mxu1 %v20613_v34  ;;  %15165 = vmatpush3.bf16.msra.mxu0 %v20614_v31  ;;  %v8465_v0 = vpop.f32.mrb[162].mxu1  ;;  %v8542_v48 = vpop.f32.mrb[162].mxu0  ;;  %v20619_v31 = vld [vmem:[#allocation88_spill] sm:$0xff]  ;;  %v20629_v34 = vld [vmem:[#allocation98_spill] sm:$0xff] }
0x2d7b   :  { %v8467_v40 = vpop.f32.mrb[163].mxu1  ;;  %v8544_v6 = vpop.f32.mrb[163].mxu0  ;;  %15135 = vmatprep.subr.bf16.mxu1 %v20615_v9  ;;  %15167 = vmatprep.subr.bf16.mxu0 %v20616_v49  ;;  %v20620_v49 = vld [vmem:[#allocation89_spill] sm:$0xff] }
0x2d7c   :  { %v8468_v53 = vadd.f32 %v8467_v40, %v20164_v39  ;;  %v8545_v62 = vadd.f32 %v8544_v6, %v20165_v36  ;;  %8962 = vmatprep.mubr.f32.mxu1 %v8878_v45  ;;  %9037 = vmatprep.mubr.f32.mxu0 %v8880_v35  ;;  %v20621_v40 = vld [vmem:[#allocation90_spill] sm:$0xff]  ;;  %v20622_v6 = vld [vmem:[#allocation91_spill] sm:$0xff] }
0x2d7d   :  { %8963 = vmatmul.mubr.f32.gmra.mrb[176].mxu1 %v8877_v5  ;;  %9038 = vmatmul.mubr.f32.gmra.mrb[176].mxu0 %v8879_v33 }
0x2d7e   :  { %v8866_v29 = vmax.f32 %v8468_v53, 0.0  ;;  %v8868_v21 = vmax.f32 %v8545_v62, 0.0  ;;  %15137 = vmatpush3.bf16.msra.mxu1 %v20617_v58  ;;  %15169 = vmatpush3.bf16.msra.mxu0 %v20618_v23  ;;  %v8471_v60 = vpop.f32.mrb[164].mxu1  ;;  %v8548_v42 = vpop.f32.mrb[164].mxu0  ;;  %v20623_v53 = vld [vmem:[#allocation92_spill] sm:$0xff]  ;;  %v20624_v62 = vld [vmem:[#allocation93_spill] sm:$0xff] }
0x2d7f   :  { %v8473_v8 = vpop.f32.mrb[165].mxu1  ;;  %v8550_v9 = vpop.f32.mrb[165].mxu0  ;;  %15139 = vmatprep.subr.bf16.mxu1 %v20619_v31  ;;  %15171 = vmatprep.subr.bf16.mxu0 %v20620_v49  ;;  %v20625_v23 = vld [vmem:[#allocation94_spill] sm:$0xff]  ;;  %v20626_v31 = vld [vmem:[#allocation95_spill] sm:$0xff]  ;;  %v20627_v49 = vld [vmem:[#allocation96_spill] sm:$0xff] }
0x2d80   :  { %9107 = vmatprep.mubr.f32.mxu1 %v8866_v29  ;;  %9182 = vmatprep.mubr.f32.mxu0 %v8868_v21  ;;  %v20628_v58 = vld [vmem:[#allocation97_spill] sm:$0xff] }
0x2d82   :  { %15141 = vmatpush3.bf16.msra.mxu1 %v20621_v40  ;;  %15173 = vmatpush3.bf16.msra.mxu0 %v20622_v6  ;;  %v18953_v45 = vpop.f32.mrb[166].mxu1  ;;  %v18955_v35 = vpop.f32.mrb[166].mxu0 }
0x2d83   :  { %v8621_v5 = vpop.f32.mrb[167].mxu1  ;;  %v8698_v33 = vpop.f32.mrb[167].mxu0  ;;  %15143 = vmatprep.subr.bf16.mxu1 %v20623_v53  ;;  %15175 = vmatprep.subr.bf16.mxu0 %v20624_v62  ;;  %v20630_v53 = vld [vmem:[#allocation99_spill] sm:$0xff] }
0x2d86   :  { %15145 = vmatpush3.bf16.msra.mxu1 %v20625_v23  ;;  %15177 = vmatpush3.bf16.msra.mxu0 %v20626_v31  ;;  %v18961_v29 = vpop.f32.mrb[168].mxu1  ;;  %v18963_v21 = vpop.f32.mrb[168].mxu0 }
0x2d87   :  { %v18965_v40 = vpop.f32.mrb[169].mxu1  ;;  %v18967_v6 = vpop.f32.mrb[169].mxu0  ;;  %15147 = vmatprep.subr.bf16.mxu1 %v20627_v49  ;;  %15179 = vmatprep.subr.bf16.mxu0 %v20628_v58  ;;  %v20634_v49 = vld [vmem:[#allocation103_spill] sm:$0xff] }
0x2d8a   :  { %15149 = vmatpush3.bf16.msra.mxu1 %v20629_v34  ;;  %15181 = vmatpush3.bf16.msra.mxu0 %v20630_v53  ;;  %v18973_v62 = vpop.f32.mrb[170].mxu1  ;;  %v18975_v23 = vpop.f32.mrb[170].mxu0 }
0x2d8b   :  { %v18977_v31 = vpop.f32.mrb[171].mxu1  ;;  %v18979_v46 = vpop.f32.mrb[171].mxu0  ;;  %15151 = vmatprep.subr.bf16.mxu1 %v20631_v27  ;;  %15183 = vmatprep.subr.bf16.mxu0 %v20632_v4  ;;  %v20639_v27 = vld [vmem:[#allocation107_spill] sm:$0xff]  ;;  %v20640_v4 = vld [vmem:[#allocation109_spill] sm:$0xff] }
0x2d8e   :  { %15153 = vmatpush3.bf16.msra.mxu1 %v20633_v52  ;;  %15185 = vmatpush3.bf16.msra.mxu0 %v20634_v49  ;;  %v18985_v58 = vpop.f32.mrb[172].mxu1  ;;  %v18987_v34 = vpop.f32.mrb[172].mxu0  ;;  %v8466_v52 = vadd.f32 %v8465_v0, %v16947_v19  ;;  %v8543_v49 = vadd.f32 %v8542_v48, %v16971_v22  ;;  %v8549_v0 = vadd.f32 %v8548_v42, %v16971_v22 }
0x2d8f   :  { %20635 = vst [vmem:[#allocation115_spill] sm:$0xff] %v18985_v58  ;;  %20636 = vst [vmem:[#allocation116_spill] sm:$0xff] %v18987_v34  ;;  %v18989_v53 = vpop.f32.mrb[173].mxu1  ;;  %v18991_v38 = vpop.f32.mrb[173].mxu0  ;;  %15155 = vmatprep.subr.bf16.mxu1 %v20485_v32  ;;  %15187 = vmatprep.subr.bf16.mxu0 %v20637_v63  ;;  %v8474_v34 = vadd.f32 %v8473_v8, %v20164_v39  ;;  %v8551_v58 = vadd.f32 %v8550_v9, %v20165_v36 }
0x2d90   :  { %v8865_v63 = vmax.f32 %v8466_v52, 0.0  ;;  %v8622_v8 = vadd.f32 %v8621_v5, %v17050_v11  ;;  %v8699_v9 = vadd.f32 %v8698_v33, %v17055_v54  ;;  %v20645_v5 = vld [vmem:[#allocation141_spill] sm:$0xff]  ;;  %v20646_v33 = vld [vmem:[#allocation142_spill] sm:$0xff] }
0x2d91   :  { %v8882_v48 = vmax.f32 %v8474_v34, 0.0  ;;  %v20644_v34 = vld [vmem:[#allocation140_spill] sm:$0xff] }
0x2d92   :  { %15157 = vmatpush3.bf16.msra.mxu1 %v20638_v41  ;;  %15189 = vmatpush3.bf16.msra.mxu0 %v20639_v27  ;;  %v8867_v41 = vmax.f32 %v8543_v49, 0.0  ;;  %v8472_v27 = vadd.f32 %v8471_v60, %v16947_v19  ;;  %v8883_v49 = vmax.f32 %v8549_v0, 0.0  ;;  %v8870_v60 = vmax.f32 %v8622_v8, 0.0  ;;  %v20647_v8 = vld [vmem:[#allocation143_spill] sm:$0xff] }
0x2d93   :  { %15159 = vmatprep.subr.bf16.mxu1 %v20188_v37  ;;  %15191 = vmatprep.subr.bf16.mxu0 %v20640_v4  ;;  %v8884_v4 = vmax.f32 %v8551_v58, 0.0  ;;  %v8872_v42 = vmax.f32 %v8699_v9, 0.0  ;;  %v8697_v58 = vadd.f32 %v18955_v35, %v20644_v34  ;;  %v8628_v0 = vadd.f32 %v18965_v40, %v17050_v11  ;;  %v20648_v9 = vld [vmem:[#allocation144_spill] sm:$0xff] }
0x2d94   :  { %v8881_v52 = vmax.f32 %v8472_v27, 0.0  ;;  %v8703_v35 = vadd.f32 %v18963_v21, %v20644_v34  ;;  %v20654_v21 = vld [vmem:[#allocation150_spill] sm:$0xff] }
0x2d95   :  { %v8886_v40 = vmax.f32 %v8628_v0, 0.0  ;;  %v20655_v0 = vld [vmem:[#allocation151_spill] sm:$0xff] }
0x2d96   :  { %15161 = vmatpush3.bf16.msra.mxu1 %v20337_v2  ;;  %15193 = vmatpush3.bf16.msra.mxu0 %v20338_v47 }
0x2d97   :  { %15195 = vmatprep.subr.bf16.mxu1 %v20339_v61  ;;  %15227 = vmatprep.subr.bf16.mxu0 %v17032_v43 }
0x2d99   :  { %9108 = vmatmul.mubr.f32.vlgmr.msra.gmra.mrb[178].mxu1 %v8865_v63  ;;  %9183 = vmatmul.mubr.f32.vlgmr.msra.gmra.mrb[178].mxu0 %v8867_v41  ;;  %v20641_v41 = vld [vmem:[#allocation138_spill] sm:$0xff]  ;;  %v20643_v63 = vld [vmem:[#allocation137_spill] sm:$0xff] }
0x2d9a   :  { %9112 = vmatprep.mubr.f32.mxu1 %v8882_v48  ;;  %9187 = vmatprep.mubr.f32.mxu0 %v8884_v4  ;;  %v20642_v4 = vld [vmem:[#allocation139_spill] sm:$0xff]  ;;  %v8620_v27 = vadd.f32 %v18953_v45, %v20643_v63  ;;  %v8705_v48 = vadd.f32 %v18967_v6, %v17055_v54  ;;  %v8626_v45 = vadd.f32 %v18961_v29, %v20643_v63 }
0x2d9b   :  { %15197 = vmatpush3.bf16.msra.mxu1 %v20190_v13  ;;  %15229 = vmatpush3.bf16.msra.mxu0 %v20191_v55 }
0x2d9c   :  { %15199 = vmatprep.subr.bf16.mxu1 %v20192_v59  ;;  %15231 = vmatprep.subr.bf16.mxu0 %v20193_v7  ;;  %v8885_v29 = vmax.f32 %v8626_v45, 0.0  ;;  %v20662_v45 = vld [vmem:[#allocation158_spill] sm:$0xff] }
0x2d9d   :  { %9113 = vmatmul.mubr.f32.gmra.mrb[180].mxu1 %v8881_v52  ;;  %9188 = vmatmul.mubr.f32.gmra.mrb[180].mxu0 %v8883_v49  ;;  %v8869_v52 = vmax.f32 %v8620_v27, 0.0  ;;  %v8871_v49 = vmax.f32 %v8697_v58, 0.0  ;;  %v8887_v27 = vmax.f32 %v8703_v35, 0.0  ;;  %v20653_v58 = vld [vmem:[#allocation149_spill] sm:$0xff]  ;;  %v20664_v35 = vld [vmem:[#allocation160_spill] sm:$0xff] }
0x2d9e   :  { %9257 = vmatprep.mubr.f32.mxu1 %v8870_v60  ;;  %9332 = vmatprep.mubr.f32.mxu0 %v8872_v42  ;;  %v20649_v60 = vld [vmem:[#allocation145_spill] sm:$0xff]  ;;  %v20650_v42 = vld [vmem:[#allocation146_spill] sm:$0xff] }
0x2d9f   :  { %15201 = vmatpush3.bf16.msra.mxu1 %v20194_v24  ;;  %15233 = vmatpush3.bf16.msra.mxu0 %v20195_v20 }
0x2da0   :  { %15203 = vmatprep.subr.bf16.mxu1 %v20196_v16  ;;  %15235 = vmatprep.subr.bf16.mxu0 %v20197_v26 }
0x2da3   :  { %15205 = vmatpush3.bf16.msra.mxu1 %v20340_v1  ;;  %15237 = vmatpush3.bf16.msra.mxu0 %v20341_v12 }
0x2da4   :  { %15207 = vmatprep.subr.bf16.mxu1 %v20342_v17  ;;  %15239 = vmatprep.subr.bf16.mxu0 %v20343_v28 }
0x2da7   :  { %15209 = vmatpush3.bf16.msra.mxu1 %v20344_v57  ;;  %15241 = vmatpush3.bf16.msra.mxu0 %v20345_v10 }
0x2da8   :  { %15211 = vmatprep.subr.bf16.mxu1 %v20346_v25  ;;  %15243 = vmatprep.subr.bf16.mxu0 %v20205_v3 }
0x2dab   :  { %15213 = vmatpush3.bf16.msra.mxu1 %v20347_v15  ;;  %15245 = vmatpush3.bf16.msra.mxu0 %v20348_v50 }
0x2dac   :  { %15215 = vmatprep.subr.bf16.mxu1 %v20490_v51  ;;  %15247 = vmatprep.subr.bf16.mxu0 %v20491_v44 }
0x2daf   :  { %15217 = vmatpush3.bf16.msra.mxu1 %v20210_v30  ;;  %15249 = vmatpush3.bf16.msra.mxu0 %v20492_v14 }
0x2db0   :  { %15219 = vmatprep.subr.bf16.mxu1 %v20493_v56  ;;  %15251 = vmatprep.subr.bf16.mxu0 %v20494_v18 }
0x2db3   :  { %15221 = vmatpush3.bf16.msra.mxu1 %v20641_v41  ;;  %15253 = vmatpush3.bf16.msra.mxu0 %v20642_v4 }
0x2db4   :  { %15223 = vmatprep.subr.bf16.mxu1 %v20645_v5  ;;  %15255 = vmatprep.subr.bf16.mxu0 %v20646_v33  ;;  %v8888_v33 = vmax.f32 %v8705_v48, 0.0  ;;  %v20651_v5 = vld [vmem:[#allocation147_spill] sm:$0xff]  ;;  %v20656_v48 = vld [vmem:[#allocation152_spill] sm:$0xff] }
0x2db5   :  { %v8776_v6 = vadd.f32 %v18977_v31, %v20651_v5  ;;  %v20658_v31 = vld [vmem:[#allocation154_spill] sm:$0xff] }
0x2db7   :  { %15225 = vmatpush3.bf16.msra.mxu1 %v20647_v8  ;;  %15257 = vmatpush3.bf16.msra.mxu0 %v20648_v9  ;;  %v20652_v8 = vld [vmem:[#allocation148_spill] sm:$0xff] }
0x2db8   :  { %15259 = vmatprep.subr.bf16.mxu1 %v20649_v60  ;;  %15291 = vmatprep.subr.bf16.mxu0 %v20650_v42  ;;  %v8853_v9 = vadd.f32 %v18979_v46, %v20652_v8  ;;  %v8874_v60 = vmax.f32 %v8776_v6, 0.0  ;;  %v20657_v46 = vld [vmem:[#allocation153_spill] sm:$0xff]  ;;  %v20668_v6 = vld [vmem:[#allocation164_spill] sm:$0xff] }
0x2dba   :  { %9258 = vmatmul.mubr.f32.vlgmr.msra.gmra.mrb[182].mxu1 %v8869_v52  ;;  %9333 = vmatmul.mubr.f32.vlgmr.msra.gmra.mrb[182].mxu0 %v8871_v49  ;;  %v8876_v42 = vmax.f32 %v8853_v9, 0.0  ;;  %v20660_v52 = vld [vmem:[#allocation156_spill] sm:$0xff]  ;;  %v20661_v49 = vld [vmem:[#allocation157_spill] sm:$0xff]  ;;  %v20663_v9 = vld [vmem:[#allocation159_spill] sm:$0xff] }
0x2dbb   :  { %9262 = vmatprep.mubr.f32.mxu1 %v8886_v40  ;;  %9337 = vmatprep.mubr.f32.mxu0 %v8888_v33  ;;  %v20659_v33 = vld [vmem:[#allocation155_spill] sm:$0xff]  ;;  %v20665_v40 = vld [vmem:[#allocation161_spill] sm:$0xff] }
0x2dbc   :  { %15261 = vmatpush3.bf16.msra.mxu1 %v20653_v58  ;;  %15293 = vmatpush3.bf16.msra.mxu0 %v20654_v21 }
0x2dbd   :  { %15263 = vmatprep.subr.bf16.mxu1 %v20655_v0  ;;  %15295 = vmatprep.subr.bf16.mxu0 %v20656_v48 }
0x2dbe   :  { %9263 = vmatmul.mubr.f32.gmra.mrb[184].mxu1 %v8885_v29  ;;  %9338 = vmatmul.mubr.f32.gmra.mrb[184].mxu0 %v8887_v27  ;;  %v20669_v29 = vld [vmem:[#allocation165_spill] sm:$0xff]  ;;  %v20670_v27 = vld [vmem:[#allocation166_spill] sm:$0xff] }
0x2dbf   :  { %9407 = vmatprep.mubr.f32.mxu1 %v8874_v60  ;;  %9482 = vmatprep.mubr.f32.mxu0 %v8876_v42  ;;  %v20666_v60 = vld [vmem:[#allocation162_spill] sm:$0xff]  ;;  %v20667_v42 = vld [vmem:[#allocation163_spill] sm:$0xff] }
0x2dc0   :  { %15265 = vmatpush3.bf16.msra.mxu1 %v20657_v46  ;;  %15297 = vmatpush3.bf16.msra.mxu0 %v20658_v31  ;;  %v20687_v46 = vld [vmem:[#allocation8_spill] sm:$0xff] }
0x2dc1   :  { %15267 = vmatprep.subr.bf16.mxu1 %v20659_v33  ;;  %15299 = vmatprep.subr.bf16.mxu0 %v20660_v52  ;;  %v20671_v52 = vld [vmem:[#allocation167_spill] sm:$0xff]  ;;  %v20681_v33 = vld [vmem:[#allocation177_spill] sm:$0xff] }
0x2dc4   :  { %15269 = vmatpush3.bf16.msra.mxu1 %v20661_v49  ;;  %15301 = vmatpush3.bf16.msra.mxu0 %v20662_v45  ;;  %v20672_v49 = vld [vmem:[#allocation168_spill] sm:$0xff]  ;;  %v20673_v45 = vld [vmem:[#allocation169_spill] sm:$0xff] }
0x2dc5   :  { %15271 = vmatprep.subr.bf16.mxu1 %v20663_v9  ;;  %15303 = vmatprep.subr.bf16.mxu0 %v20664_v35  ;;  %v20674_v9 = vld [vmem:[#allocation170_spill] sm:$0xff]  ;;  %v20675_v35 = vld [vmem:[#allocation171_spill] sm:$0xff] }
0x2dc8   :  { %15273 = vmatpush3.bf16.msra.mxu1 %v20665_v40  ;;  %15305 = vmatpush3.bf16.msra.mxu0 %v20666_v60  ;;  %v20676_v40 = vld [vmem:[#allocation172_spill] sm:$0xff]  ;;  %v20677_v60 = vld [vmem:[#allocation174_spill] sm:$0xff] }
0x2dc9   :  { %15275 = vmatprep.subr.bf16.mxu1 %v20667_v42  ;;  %15307 = vmatprep.subr.bf16.mxu0 %v20668_v6  ;;  %v20678_v42 = vld [vmem:[#allocation175_spill] sm:$0xff]  ;;  %v20679_v6 = vld [vmem:[#allocation173_spill] sm:$0xff] }
0x2dcc   :  { %15277 = vmatpush3.bf16.msra.mxu1 %v20669_v29  ;;  %15309 = vmatpush3.bf16.msra.mxu0 %v20670_v27  ;;  %v8774_v29 = vadd.f32 %v18973_v62, %v20679_v6  ;;  %v20680_v27 = vld [vmem:[#allocation176_spill] sm:$0xff]  ;;  %v20685_v62 = vld [vmem:[#allocation115_spill] sm:$0xff] }
0x2dcd   :  { %15279 = vmatprep.subr.bf16.mxu1 %v20671_v52  ;;  %15311 = vmatprep.subr.bf16.mxu0 %v20672_v49  ;;  %v8851_v52 = vadd.f32 %v18975_v23, %v20680_v27  ;;  %v20682_v49 = vld [vmem:[#allocation178_spill] sm:$0xff]  ;;  %v8780_v31 = vadd.f32 %v20685_v62, %v20679_v6  ;;  %v20686_v23 = vld [vmem:[#allocation116_spill] sm:$0xff] }
0x2dd0   :  { %15281 = vmatpush3.bf16.msra.mxu1 %v20673_v45  ;;  %15313 = vmatpush3.bf16.msra.mxu0 %v20674_v9  ;;  %v8782_v9 = vadd.f32 %v18989_v53, %v20651_v5  ;;  %v8875_v45 = vmax.f32 %v8851_v52, 0.0  ;;  %v20689_v52 = vld [vmem:[#allocation9_spill] sm:$0xff] }
0x2dd1   :  { %15283 = vmatprep.subr.bf16.mxu1 %v20675_v35  ;;  %15315 = vmatprep.subr.bf16.mxu0 %v20676_v40  ;;  %v8859_v40 = vadd.f32 %v18991_v38, %v20652_v8  ;;  %v20683_v35 = vld [vmem:[#allocation179_spill] sm:$0xff]  ;;  %v8889_v38 = vmax.f32 %v8780_v31, 0.0 }
0x2dd2   :  { %v8890_v53 = vmax.f32 %v8782_v9, 0.0 }
0x2dd3   :  { %v8892_v48 = vmax.f32 %v8859_v40, 0.0 }
0x2dd4   :  { %15285 = vmatpush3.bf16.msra.mxu1 %v20677_v60  ;;  %15317 = vmatpush3.bf16.msra.mxu0 %v20678_v42  ;;  %v20684_v60 = vld [vmem:[#allocation180_spill] sm:$0xff]  ;;  %v8873_v42 = vmax.f32 %v8774_v29, 0.0 }
0x2dd5   :  { %15287 = vmatprep.subr.bf16.mxu1 %v20681_v33  ;;  %15319 = vmatprep.subr.bf16.mxu0 %v20682_v49  ;;  %v8857_v33 = vadd.f32 %v20686_v23, %v20680_v27  ;;  %v20688_v49 = vmov 0.0  }
0x2dd8   :  { %15289 = vmatpush3.bf16.msra.mxu1 %v20683_v35  ;;  %15321 = vmatpush3.bf16.msra.mxu0 %v20684_v60  ;;  %v8891_v60 = vmax.f32 %v8857_v33, 0.0 }
0x2dd9   :  { %15323 = vmatprep.subr.bf16.mxu1 %v20687_v46  ;;  %13657 = vmatprep.subr.mxu0 %v20688_v49 }
0x2ddb   :  { %9408 = vmatmul.mubr.f32.vlgmr.msra.gmra.mrb[186].mxu1 %v8873_v42  ;;  %9483 = vmatmul.mubr.f32.vlgmr.msra.gmra.mrb[186].mxu0 %v8875_v45 }
0x2ddc   :  { %9412 = vmatprep.mubr.f32.mxu1 %v8890_v53  ;;  %9487 = vmatprep.mubr.f32.mxu0 %v8892_v48 }
0x2ddd   :  { %15325 = vmatpush3.bf16.msra.mxu1 %v20687_v46  ;;  %v15775_v46 = vld [vmem:[%s19511_s3 + $0x2] ss:$0 sm:$0xff] }
0x2dde   :  { %15327 = vmatprep.subr.bf16.mxu1 %v20689_v52 }
0x2ddf   :  { %9413 = vmatmul.mubr.f32.gmra.mrb[188].mxu1 %v8889_v38  ;;  %9488 = vmatmul.mubr.f32.gmra.mrb[188].mxu0 %v8891_v60 }
0x2de0   :  { %13659 = vmatprep.mubr.msk.f32.mxu0 %vm15833_vm1, %v20688_v49 }
0x2de1   :  { %15329 = vmatpush3.bf16.msra.mxu1 %v20689_v52 }
0x2de2   :  { %13662 = vmatprep.subr.mxu1 %v20688_v49 }
0x2e4c   :  { %v12873_v9 = vpop.f32.mrb[174].mxu1  ;;  %v12911_v40 = vpop.f32.mrb[174].mxu0 }
0x2e4d   :  { %v12874_v45 = vpop.f32.mrb[175].mxu1  ;;  %v12912_v42 = vpop.f32.mrb[175].mxu0 }
0x2e4e   :  { %v12875_v48 = vadd.f32 %v12874_v45, %v12873_v9  ;;  %v12913_v31 = vadd.f32 %v12912_v42, %v12911_v40 }
0x2e50   :  { %v8960_v33 = vadd.f32 %v15775_v46, %v12875_v48  ;;  %v12876_v29 = vpop.f32.mrb[176].mxu1  ;;  %v12914_v60 = vpop.f32.mrb[176].mxu0 }
0x2e51   :  { %v12877_v62 = vpop.f32.mrb[177].mxu1  ;;  %v12915_v23 = vpop.f32.mrb[177].mxu0 }
0x2e52   :  { %v9035_v53 = vadd.f32 %v12913_v31, %v8960_v33  ;;  %v12878_v38 = vadd.f32 %v12877_v62, %v12876_v29  ;;  %v12916_v52 = vadd.f32 %v12915_v23, %v12914_v60 }
0x2e54   :  { %v8965_v35 = vadd.f32 %v15775_v46, %v12878_v38 }
0x2e56   :  { %v9040_v27 = vadd.f32 %v12916_v52, %v8965_v35 }
0x2e6c   :  { %v12949_v6 = vpop.f32.mrb[178].mxu1  ;;  %v12987_v0 = vpop.f32.mrb[178].mxu0 }
0x2e6d   :  { %v12950_v21 = vpop.f32.mrb[179].mxu1  ;;  %v12988_v58 = vpop.f32.mrb[179].mxu0 }
0x2e6e   :  { %v12951_v9 = vadd.f32 %v12950_v21, %v12949_v6  ;;  %v12989_v40 = vadd.f32 %v12988_v58, %v12987_v0 }
0x2e70   :  { %v9110_v45 = vadd.f32 %v12951_v9, %v9035_v53  ;;  %v12952_v42 = vpop.f32.mrb[180].mxu1  ;;  %v12990_v8 = vpop.f32.mrb[180].mxu0 }
0x2e71   :  { %v12953_v5 = vpop.f32.mrb[181].mxu1  ;;  %v12991_v48 = vpop.f32.mrb[181].mxu0 }
0x2e72   :  { %v9185_v34 = vadd.f32 %v12989_v40, %v9110_v45  ;;  %v12954_v63 = vadd.f32 %v12953_v5, %v12952_v42  ;;  %v12992_v4 = vadd.f32 %v12991_v48, %v12990_v8 }
0x2e74   :  { %v9115_v41 = vadd.f32 %v12954_v63, %v9040_v27 }
0x2e76   :  { %v9190_v31 = vadd.f32 %v12992_v4, %v9115_v41 }
0x2e8d   :  { %v13025_v33 = vpop.f32.mrb[182].mxu1  ;;  %v13063_v29 = vpop.f32.mrb[182].mxu0 }
0x2e8e   :  { %v13026_v46 = vpop.f32.mrb[183].mxu1  ;;  %v13064_v35 = vpop.f32.mrb[183].mxu0 }
0x2e8f   :  { %v13027_v60 = vadd.f32 %v13026_v46, %v13025_v33  ;;  %v13065_v62 = vadd.f32 %v13064_v35, %v13063_v29 }
0x2e91   :  { %v9260_v23 = vadd.f32 %v13027_v60, %v9185_v34  ;;  %v13028_v38 = vpop.f32.mrb[184].mxu1  ;;  %v13066_v21 = vpop.f32.mrb[184].mxu0 }
0x2e92   :  { %v13029_v58 = vpop.f32.mrb[185].mxu1  ;;  %v13067_v0 = vpop.f32.mrb[185].mxu0 }
0x2e93   :  { %v9335_v6 = vadd.f32 %v13065_v62, %v9260_v23  ;;  %v13030_v53 = vadd.f32 %v13029_v58, %v13028_v38  ;;  %v13068_v52 = vadd.f32 %v13067_v0, %v13066_v21  ;;  %v20690_v62 = vld [vmem:[#allocation113_spill] sm:$0xff]  ;;  %v20691_v21 = vld [vmem:[#allocation114_spill] sm:$0xff] }
0x2e95   :  { %v9265_v9 = vadd.f32 %v13030_v53, %v9190_v31 }
0x2e97   :  { %v9340_v40 = vadd.f32 %v13068_v52, %v9265_v9 }
0x2eae   :  { %v13101_v5 = vpop.f32.mrb[186].mxu1  ;;  %v13139_v8 = vpop.f32.mrb[186].mxu0 }
0x2eaf   :  { %v13102_v63 = vpop.f32.mrb[187].mxu1  ;;  %v13140_v41 = vpop.f32.mrb[187].mxu0 }
0x2eb0   :  { %v13103_v4 = vadd.f32 %v13102_v63, %v13101_v5  ;;  %v13141_v27 = vadd.f32 %v13140_v41, %v13139_v8 }
0x2eb2   :  { %v9410_v45 = vadd.f32 %v13103_v4, %v9335_v6  ;;  %v13104_v42 = vpop.f32.mrb[188].mxu1  ;;  %v13142_v48 = vpop.f32.mrb[188].mxu0 }
0x2eb3   :  { %v13105_v33 = vpop.f32.mrb[189].mxu1  ;;  %v13143_v34 = vpop.f32.mrb[189].mxu0 }
0x2eb4   :  { %v9485_v29 = vadd.f32 %v13141_v27, %v9410_v45  ;;  %v13106_v46 = vadd.f32 %v13105_v33, %v13104_v42  ;;  %v13144_v35 = vadd.f32 %v13143_v34, %v13142_v48 }
0x2eb6   :  { %v9415_v60 = vadd.f32 %v13106_v46, %v9340_v40  ;;  %v9493_v23 = vadd.f32 %v9485_v29, %v20690_v62 }
0x2eb8   :  { %v9490_v38 = vadd.f32 %v13144_v35, %v9415_v60  ;;  %v9495_v31 = vsel %vm364_vm0, %v9493_v23, 0.0  ;;  %v15776_v35 = vld [vmem:[%s19511_s3 + $0x3] ss:$0 sm:$0xff] }
0x2eb9   :  { %9496 = vadd.xlane.f32.xlu0 %v9495_v31 }
0x2eba   :  { %v9494_v58 = vadd.f32 %v9490_v38, %v20691_v21  ;;  %v15777_v38 = vld [vmem:[%s19511_s3 + $0x4] ss:$0 sm:$0xff] }
0x2ebc   :  { %v9498_v0 = vsel %vm364_vm0, %v9494_v58, 0.0 }
0x2ebd   :  { %9499 = vadd.xlane.f32.xlu1 %v9498_v0 }
0x2f46   :  { %v9497_v6 = vpop.xlane.xlu0 %9496 }
0x2f47   :  { %v9501_v53 = vmul.f32 0.03125, %v9497_v6 }
0x2f49   :  { %v9503_v52 = vsub.f32 %v9493_v23, %v9501_v53 }
0x2f4a   :  { %v9500_v9 = vpop.xlane.xlu1 %9499 }
0x2f4b   :  { %v9502_v5 = vmul.f32 0.03125, %v9500_v9  ;;  %v9505_v8 = vmul.f32 %v9503_v52, %v9503_v52 }
0x2f4d   :  { %v9504_v63 = vsub.f32 %v9494_v58, %v9502_v5  ;;  %v9507_v40 = vsel %vm364_vm0, %v9505_v8, 0.0 }
0x2f4e   :  { %9508 = vadd.xlane.f32.xlu0 %v9507_v40 }
0x2f4f   :  { %v9506_v41 = vmul.f32 %v9504_v63, %v9504_v63 }
0x2f51   :  { %v9510_v4 = vsel %vm364_vm0, %v9506_v41, 0.0 }
0x2f52   :  { %9511 = vadd.xlane.f32.xlu1 %v9510_v4 }
0x2fdb   :  { %v9509_v27 = vpop.xlane.xlu0 %9508 }
0x2fdc   :  { %v9513_v45 = vmul.f32 0.03125, %v9509_v27 }
0x2fde   :  { %v9515_v42 = vadd.f32 1e-05, %v9513_v45 }
0x2fdf   :  { %v9512_v48 = vpop.xlane.xlu1 %9511 }
0x2fe0   :  { %15734 = vrsqrt.f32 %v9515_v42  ;;  %v9514_v33 = vmul.f32 0.03125, %v9512_v48 }
0x2fe2   :  { %v9516_v34 = vadd.f32 1e-05, %v9514_v33 }
0x2fe4   :  { %15736 = vrsqrt.f32 %v9516_v34 }
0x2fea   :  { %v15735_v29 = vpop.eup %15734 }
0x2feb   :  { %v9519_v46 = vmul.f32 %v15735_v29, %v9503_v52 }
0x2fed   :  { %v9521_v60 = vmul.f32 %v15776_v35, %v9519_v46 }
0x2fee   :  { %v15737_v62 = vpop.eup %15736 }
0x2fef   :  { %v9520_v23 = vmul.f32 %v15737_v62, %v9504_v63  ;;  %v19124_v31 = vadd.f32 %v15777_v38, %v9521_v60 }
0x2ff1   :  { %v9522_v21 = vmul.f32 %v15776_v35, %v9520_v23  ;;  %13654 = vmatprep.mubr.msk.f32.mxu1 %vm364_vm0, %v19124_v31 }
0x2ff3   :  { %v19128_v58 = vadd.f32 %v15777_v38, %v9522_v21  ;;  %v20692_v21 = vld [vmem:[#allocation10_spill] sm:$0xff] }
0x2ff5   :  { %13655 = vmatmul.mubr.msk.f32.vlgmr.msra.gmra.mrb[190].mxu1 %vm364_vm0, %v19128_v58 }
0x2ff6   :  { %13664 = vmatprep.mubr.msk.f32.mxu1 %vm15833_vm1, %v20688_v49 }
0x30c8   :  { %v13656_v0 = vpop.f32.mrb[190].mxu1 }
0x30c9   :  { %9687 = vrot.lane.b32.xlu1 %v13656_v0, %s15834_s16  ;;  %v9600_v6 = vpop.f32.mrb[191].mxu1 }
0x30ca   :  { %9610 = vrot.lane.b32.xlu0 %v9600_v6, %s15834_s16 }
0x313b   :  { %v9688_v53 = vpop.permute.xlu1 %9687 }
0x313c   :  { %13663 = vmatpush3.xpose.msk.msra.mxu1 %vm449_vm2, %v9688_v53  ;;  %v9611_v52 = vpop.permute.xlu0 %9610  ;;  %v15778_v53 = vld [vmem:[%s19510_s2] sm:$0xf] }
0x313d   :  { %13658 = vmatpush3.xpose.msk.msra.mxu0 %vm449_vm2, %v9611_v52  ;;  %13672 = vmatprep.subr.mxu1 %v20688_v49 }
0x313e   :  { %13667 = vmatprep.subr.mxu0 %v20688_v49 }
0x313f   :  { %13665 = vmatmul.mubr.msk.f32.vlgmr.msra.gmra.mrb[192].mxu1 %vm449_vm2, %v13656_v0 }
0x3140   :  { %13660 = vmatmul.mubr.msk.f32.vlgmr.msra.gmra.mrb[190].mxu0 %vm449_vm2, %v9600_v6  ;;  %13674 = vmatprep.mubr.msk.f32.mxu1 %vm15833_vm1, %v20688_v49 }
0x3141   :  { %13669 = vmatprep.mubr.msk.f32.mxu0 %vm15833_vm1, %v20688_v49 }
0x3212   :  { %v9759_v9 = vpop.f32.mrb[192].mxu1 }
0x3213   :  { %v9682_v5 = vpop.f32.mrb[190].mxu0  ;;  %v13666_v8 = vpop.f32.mrb[193].mxu1  ;;  %v9766_v63 = vsel %vm601_vm3, %v9759_v9, -inf }
0x3214   :  { %v13661_v40 = vpop.f32.mrb[191].mxu0  ;;  %9767 = vmax.xlane.f32.xlu0 %v9766_v63  ;;  %v9763_v41 = vsel %vm601_vm3, %v9682_v5, -inf  ;;  %v20694_v8 = vld [vmem:[#allocation14_spill] sm:$0xff]  ;;  %v20695_v63 = vld [vmem:[#allocation11_spill] sm:$0xff] }
0x3215   :  { %9764 = vmax.xlane.f32.xlu1 %v9763_v41  ;;  %v20696_v40 = vld [vmem:[#allocation16_spill] sm:$0xff]  ;;  %v20697_v41 = vld [vmem:[#allocation18_spill] sm:$0xff] }
0x32a1   :  { %v9768_v4 = vpop.xlane.xlu0 %9767 }
0x32a2   :  { %v9770_v27 = vsub.f32 %v9759_v9, %v9768_v4  ;;  %v9765_v45 = vpop.xlane.xlu1 %9764 }
0x32a3   :  { %v9769_v42 = vsub.f32 %v9682_v5, %v9765_v45  ;;  %v20693_v5 = vld [vmem:[#allocation12_spill] sm:$0xff] }
0x32a4   :  { %v9773_v48 = vmul.f32 1.442695, %v9770_v27 }
0x32a5   :  { %v9771_v33 = vmul.f32 1.442695, %v9769_v42 }
0x32a6   :  { %15738 = vpow2.f32 %v9773_v48  ;;  %v20698_v48 = vld [vmem:[#allocation13_spill] sm:$0xff] }
0x32a7   :  { %15740 = vpow2.f32 %v9771_v33  ;;  %v20699_v33 = vld [vmem:[#allocation15_spill] sm:$0xff] }
0x32b0   :  { %v15739_v34 = vpop.eup %15738 }
0x32b1   :  { %v15741_v29 = vpop.eup %15740  ;;  %v9778_v46 = vsel %vm601_vm3, %v15739_v34, 0.0 }
0x32b2   :  { %9779 = vadd.xlane.f32.xlu1 %v9778_v46  ;;  %v9775_v35 = vsel %vm601_vm3, %v15741_v29, 0.0 }
0x32b3   :  { %9776 = vadd.xlane.f32.xlu0 %v9775_v35 }
0x32c3   :  { %9861 = vrot.lane.b32.xlu1 %v13656_v0, %s15835_s0 }
0x32c9   :  { %9785 = vrot.lane.b32.xlu0 %v9600_v6, %s15835_s0 }
0x333f   :  { %v9780_v60 = vpop.xlane.xlu1 %9779 }
0x3340   :  { %15742 = vrcp.f32 %v9780_v60  ;;  %v9777_v62 = vpop.xlane.xlu0 %9776 }
0x3341   :  { %15744 = vrcp.f32 %v9777_v62 }
0x3343   :  { %v9862_v23 = vpop.permute.xlu1 %9861 }
0x3344   :  { %13673 = vmatpush3.msra.mxu1 %v9862_v23  ;;  %v9786_v38 = vpop.permute.xlu0 %9785 }
0x3345   :  { %13668 = vmatpush3.msra.mxu0 %v9786_v38  ;;  %15331 = vmatprep.subr.bf16.mxu1 %v20692_v21 }
0x3346   :  { %13677 = vmatprep.subr.msk.mxu0 %vm782_vm4, %v15778_v53 }
0x334a   :  { %v15743_v52 = vpop.eup %15742 }
0x334b   :  { %v15745_v0 = vpop.eup %15744  ;;  %v9784_v9 = vmul.f32 %v15743_v52, %v15739_v34  ;;  %v20700_v34 = vld [vmem:[#allocation17_spill] sm:$0xff] }
0x334c   :  { %v9783_v6 = vmul.f32 %v15745_v0, %v15741_v29  ;;  %v20701_v29 = vld [vmem:[#allocation19_spill] sm:$0xff] }
0x334d   :  { %11338 = vst.msk [vmem:[#allocation4 + $0x58] sm:$0xff] %vm601_vm3, %v9784_v9  ;;  %13675 = vmatmul.mubr.msk.f32.vlgmr.msra.gmra.mrb[194].mxu1 %vm601_vm3, %v9784_v9 }
0x334e   :  { %11337 = vst.msk [vmem:[#allocation4 + $0x50] sm:$0xff] %vm601_vm3, %v9783_v6  ;;  %13670 = vmatmul.mubr.msk.f32.vlgmr.msra.gmra.mrb[192].mxu0 %vm601_vm3, %v9783_v6  ;;  %15333 = vmatpush1.bf16.msra.mxu1 %v20693_v5 }
0x334f   :  { %13678 = vmatpush3.msk.msra.mxu0 %vm782_vm4, %v15778_v53  ;;  %15335 = vmatprep.subr.bf16.mxu1 %v20694_v8 }
0x3350   :  { %15339 = vmatprep.subr.bf16.mxu0 %v20695_v63  ;;  %10120 = vmatprep.mubr.f32.mxu1 %v20688_v49 }
0x3352   :  { %15337 = vmatpush1.bf16.msra.mxu1 %v20696_v40 }
0x3353   :  { %15347 = vmatprep.subr.bf16.mxu1 %v20697_v41 }
0x3420   :  { %v9933_v4 = vpop.f32.mrb[194].mxu1 }
0x3421   :  { %v9857_v27 = vpop.f32.mrb[192].mxu0  ;;  %v13676_v45 = vpop.f32.mrb[195].mxu1 }
0x3422   :  { %v13671_v42 = vpop.f32.mrb[193].mxu0  ;;  %13679 = vmatprep.mubr.msk.f32.mxu0 %vm449_vm2, %v9857_v27 }
0x3423   :  { %13680 = vmatmul.mubr.msk.f32.vlgmr.msra.gmra.mrb[194].mxu0 %vm449_vm2, %v9933_v4 }
0x3424   :  { %15341 = vmatpush1.bf16.msra.mxu0 %v20698_v48  ;;  %10197 = vmatprep.mubr.f32.mxu0 %v20688_v49 }
0x3425   :  { %15343 = vmatprep.subr.bf16.mxu0 %v20699_v33 }
0x3428   :  { %15345 = vmatpush1.bf16.msra.mxu0 %v20700_v34 }
0x3429   :  { %15355 = vmatprep.subr.bf16.mxu0 %v20701_v29  ;;  %v15779_v29 = vld [vmem:[%s19511_s3] ss:$0 sm:$0xff] }
0x34f6   :  { %v13681_v46 = vpop.f32.mrb[194].mxu0 }
0x34f7   :  { %v10019_v35 = vadd.f32 %v13681_v46, %v19128_v58  ;;  %v10009_v60 = vpop.f32.mrb[195].mxu0 }
0x34f8   :  { %v10018_v62 = vadd.f32 %v10009_v60, %v19124_v31  ;;  %v15780_v60 = vld [vmem:[%s19511_s3 + $0x1] ss:$0 sm:$0xff] }
0x34f9   :  { %v10023_v23 = vsel %vm364_vm0, %v10019_v35, 0.0 }
0x34fa   :  { %10024 = vadd.xlane.f32.xlu0 %v10023_v23  ;;  %v10020_v38 = vsel %vm364_vm0, %v10018_v62, 0.0  ;;  %v20703_v23 = vld [vmem:[#allocation20_spill] sm:$0xff] }
0x34fb   :  { %10021 = vadd.xlane.f32.xlu1 %v10020_v38  ;;  %v20704_v38 = vld [vmem:[#allocation21_spill] sm:$0xff] }
0x3587   :  { %v10025_v21 = vpop.xlane.xlu0 %10024 }
0x3588   :  { %v10027_v53 = vmul.f32 0.03125, %v10025_v21  ;;  %v10022_v52 = vpop.xlane.xlu1 %10021 }
0x3589   :  { %v10026_v0 = vmul.f32 0.03125, %v10022_v52  ;;  %v20707_v52 = vld [vmem:[#allocation23_spill] sm:$0xff] }
0x358a   :  { %v10029_v9 = vsub.f32 %v10019_v35, %v10027_v53  ;;  %v20706_v53 = vld [vmem:[#allocation22_spill] sm:$0xff] }
0x358b   :  { %v10028_v6 = vsub.f32 %v10018_v62, %v10026_v0  ;;  %v20708_v0 = vld [vmem:[#allocation24_spill] sm:$0xff] }
0x358c   :  { %v10031_v5 = vmul.f32 %v10029_v9, %v10029_v9 }
0x358d   :  { %v10030_v8 = vmul.f32 %v10028_v6, %v10028_v6 }
0x358e   :  { %v10035_v63 = vsel %vm364_vm0, %v10031_v5, 0.0  ;;  %v20711_v5 = vld [vmem:[#allocation27_spill] sm:$0xff] }
0x358f   :  { %10036 = vadd.xlane.f32.xlu1 %v10035_v63  ;;  %v10032_v58 = vsel %vm364_vm0, %v10030_v8, 0.0  ;;  %v20712_v8 = vld [vmem:[#allocation28_spill] sm:$0xff]  ;;  %v20713_v63 = vld [vmem:[#allocation29_spill] sm:$0xff] }
0x3590   :  { %10033 = vadd.xlane.f32.xlu0 %v10032_v58  ;;  %v20714_v58 = vld [vmem:[#allocation30_spill] sm:$0xff] }
0x361c   :  { %v10037_v31 = vpop.xlane.xlu1 %10036 }
0x361d   :  { %v10039_v40 = vmul.f32 0.03125, %v10037_v31  ;;  %v10034_v41 = vpop.xlane.xlu0 %10033  ;;  %v20715_v31 = vld [vmem:[#allocation31_spill] sm:$0xff] }
0x361e   :  { %v10038_v4 = vmul.f32 0.03125, %v10034_v41  ;;  %v20717_v41 = vld [vmem:[#allocation33_spill] sm:$0xff] }
0x361f   :  { %v10041_v27 = vadd.f32 1e-05, %v10039_v40  ;;  %v20716_v40 = vld [vmem:[#allocation32_spill] sm:$0xff] }
0x3620   :  { %v10040_v45 = vadd.f32 1e-05, %v10038_v4  ;;  %v20718_v4 = vld [vmem:[#allocation34_spill] sm:$0xff] }
0x3621   :  { %15746 = vrsqrt.f32 %v10041_v27  ;;  %v20719_v27 = vld [vmem:[#allocation35_spill] sm:$0xff] }
0x3622   :  { %15748 = vrsqrt.f32 %v10040_v45  ;;  %v20720_v45 = vld [vmem:[#allocation36_spill] sm:$0xff] }
0x362b   :  { %v15747_v42 = vpop.eup %15746 }
0x362c   :  { %v15749_v48 = vpop.eup %15748  ;;  %v10045_v33 = vmul.f32 %v15747_v42, %v10029_v9  ;;  %v20709_v9 = vld [vmem:[#allocation25_spill] sm:$0xff] }
0x362d   :  { %v10044_v34 = vmul.f32 %v15749_v48, %v10028_v6  ;;  %v20710_v6 = vld [vmem:[#allocation26_spill] sm:$0xff]  ;;  %v20721_v42 = vld [vmem:[#allocation37_spill] sm:$0xff] }
0x362e   :  { %v10047_v35 = vmul.f32 %v15779_v29, %v10045_v33  ;;  %v20722_v48 = vld [vmem:[#allocation38_spill] sm:$0xff]  ;;  %v20723_v33 = vld [vmem:[#allocation39_spill] sm:$0xff] }
0x362f   :  { %v10046_v46 = vmul.f32 %v15779_v29, %v10044_v34  ;;  %v20724_v34 = vld [vmem:[#allocation40_spill] sm:$0xff]  ;;  %v20725_v29 = vld [vmem:[#allocation41_spill] sm:$0xff] }
0x3630   :  { %v19195_v21 = vadd.f32 %v15780_v60, %v10047_v35  ;;  %v20727_v35 = vld [vmem:[#allocation43_spill] sm:$0xff] }
0x3631   :  { %v19187_v62 = vadd.f32 %v15780_v60, %v10046_v46  ;;  %v20726_v46 = vld [vmem:[#allocation42_spill] sm:$0xff]  ;;  %v20728_v60 = vld [vmem:[#allocation44_spill] sm:$0xff] }
0x3632   :  { %20705 = vst [vmem:[#allocation118_spill] sm:$0xff] %v19195_v21 }
0x3633   :  { %20702 = vst [vmem:[#allocation117_spill] sm:$0xff] %v19187_v62  ;;  %11524 = vmatmul.mubr.msk.f32.vlgmr.msra.gmra.mrb[196].mxu1 %vm364_vm0, %v19187_v62  ;;  %11526 = vmatmul.mubr.msk.f32.vlgmr.msra.gmra.mrb[196].mxu0 %vm364_vm0, %v19187_v62 }
0x3634   :  { %15349 = vmatpush1.bf16.msra.mxu1 %v20703_v23  ;;  %15357 = vmatpush1.bf16.msra.mxu0 %v20704_v38  ;;  %v20729_v23 = vld [vmem:[#allocation45_spill] sm:$0xff]  ;;  %v20730_v38 = vld [vmem:[#allocation46_spill] sm:$0xff] }
0x3635   :  { %10126 = vmatprep.mubr.f32.mxu1 %v20688_v49  ;;  %10203 = vmatprep.mubr.f32.mxu0 %v20688_v49 }
0x3636   :  { %15351 = vmatprep.subr.bf16.mxu1 %v20706_v53  ;;  %15359 = vmatprep.subr.bf16.mxu0 %v20707_v52  ;;  %v20731_v53 = vld [vmem:[#allocation47_spill] sm:$0xff]  ;;  %v20732_v52 = vld [vmem:[#allocation48_spill] sm:$0xff] }
0x3637   :  { %11525 = vmatmul.mubr.msk.f32.gmra.mrb[198].mxu1 %vm364_vm0, %v19195_v21  ;;  %11527 = vmatmul.mubr.msk.f32.gmra.mrb[198].mxu0 %vm364_vm0, %v19195_v21 }
0x3638   :  { %15353 = vmatpush1.bf16.msra.mxu1 %v20708_v0  ;;  %15361 = vmatpush1.bf16.msra.mxu0 %v20709_v9  ;;  %v20733_v0 = vld [vmem:[#allocation49_spill] sm:$0xff]  ;;  %v20734_v9 = vld [vmem:[#allocation50_spill] sm:$0xff] }
0x3639   :  { %10274 = vmatprep.mubr.f32.mxu1 %v20688_v49  ;;  %10351 = vmatprep.mubr.f32.mxu0 %v20688_v49 }
0x363a   :  { %15363 = vmatprep.subr.bf16.mxu1 %v20710_v6  ;;  %15371 = vmatprep.subr.bf16.mxu0 %v20711_v5  ;;  %v20736_v6 = vld [vmem:[#allocation52_spill] sm:$0xff]  ;;  %v20737_v5 = vld [vmem:[#allocation53_spill] sm:$0xff] }
0x363b   :  { %11528 = vmatmul.mubr.msk.f32.vlgmr.msra.gmra.mrb[200].mxu1 %vm364_vm0, %v19187_v62  ;;  %11530 = vmatmul.mubr.msk.f32.vlgmr.msra.gmra.mrb[200].mxu0 %vm364_vm0, %v19187_v62 }
0x363c   :  { %15365 = vmatpush1.bf16.msra.mxu1 %v20712_v8  ;;  %15373 = vmatpush1.bf16.msra.mxu0 %v20713_v63  ;;  %v20738_v8 = vld [vmem:[#allocation54_spill] sm:$0xff]  ;;  %v20739_v63 = vld [vmem:[#allocation55_spill] sm:$0xff] }
0x363d   :  { %10280 = vmatprep.mubr.f32.mxu1 %v20688_v49  ;;  %10357 = vmatprep.mubr.f32.mxu0 %v20688_v49 }
0x363e   :  { %15367 = vmatprep.subr.bf16.mxu1 %v20714_v58  ;;  %15375 = vmatprep.subr.bf16.mxu0 %v20715_v31  ;;  %v20740_v58 = vld [vmem:[#allocation56_spill] sm:$0xff]  ;;  %v20741_v31 = vld [vmem:[#allocation57_spill] sm:$0xff] }
0x363f   :  { %11529 = vmatmul.mubr.msk.f32.gmra.mrb[202].mxu1 %vm364_vm0, %v19195_v21  ;;  %11531 = vmatmul.mubr.msk.f32.gmra.mrb[202].mxu0 %vm364_vm0, %v19195_v21 }
0x3640   :  { %15369 = vmatpush1.bf16.msra.mxu1 %v20716_v40  ;;  %15377 = vmatpush1.bf16.msra.mxu0 %v20717_v41  ;;  %v20742_v40 = vld [vmem:[#allocation58_spill] sm:$0xff]  ;;  %v20743_v41 = vld [vmem:[#allocation59_spill] sm:$0xff] }
0x3641   :  { %10428 = vmatprep.mubr.f32.mxu1 %v20688_v49  ;;  %10505 = vmatprep.mubr.f32.mxu0 %v20688_v49 }
0x3642   :  { %15379 = vmatprep.subr.bf16.mxu1 %v20718_v4  ;;  %15387 = vmatprep.subr.bf16.mxu0 %v20719_v27  ;;  %v20744_v4 = vld [vmem:[#allocation60_spill] sm:$0xff]  ;;  %v20745_v27 = vld [vmem:[#allocation61_spill] sm:$0xff] }
0x3643   :  { %11532 = vmatmul.mubr.msk.f32.vlgmr.msra.gmra.mrb[204].mxu1 %vm364_vm0, %v19187_v62  ;;  %11534 = vmatmul.mubr.msk.f32.vlgmr.msra.gmra.mrb[204].mxu0 %vm364_vm0, %v19187_v62 }
0x3644   :  { %15381 = vmatpush1.bf16.msra.mxu1 %v20720_v45  ;;  %15389 = vmatpush1.bf16.msra.mxu0 %v20721_v42  ;;  %v20746_v45 = vld [vmem:[#allocation62_spill] sm:$0xff]  ;;  %v20747_v42 = vld [vmem:[#allocation63_spill] sm:$0xff] }
0x3645   :  { %10434 = vmatprep.mubr.f32.mxu1 %v20688_v49  ;;  %10511 = vmatprep.mubr.f32.mxu0 %v20688_v49 }
0x3646   :  { %15383 = vmatprep.subr.bf16.mxu1 %v20722_v48  ;;  %15391 = vmatprep.subr.bf16.mxu0 %v20723_v33  ;;  %v20748_v48 = vld [vmem:[#allocation64_spill] sm:$0xff]  ;;  %v20749_v33 = vld [vmem:[#allocation65_spill] sm:$0xff] }
0x3647   :  { %11533 = vmatmul.mubr.msk.f32.gmra.mrb[206].mxu1 %vm364_vm0, %v19195_v21  ;;  %11535 = vmatmul.mubr.msk.f32.gmra.mrb[206].mxu0 %vm364_vm0, %v19195_v21 }
0x3648   :  { %15385 = vmatpush1.bf16.msra.mxu1 %v20724_v34  ;;  %15393 = vmatpush1.bf16.msra.mxu0 %v20725_v29  ;;  %v20750_v34 = vld [vmem:[#allocation66_spill] sm:$0xff]  ;;  %v20751_v29 = vld [vmem:[#allocation67_spill] sm:$0xff] }
0x3649   :  { %10582 = vmatprep.mubr.f32.mxu1 %v20688_v49  ;;  %10659 = vmatprep.mubr.f32.mxu0 %v20688_v49 }
0x364a   :  { %15395 = vmatprep.subr.bf16.mxu1 %v20726_v46  ;;  %15427 = vmatprep.subr.bf16.mxu0 %v20727_v35  ;;  %v20752_v46 = vld [vmem:[#allocation68_spill] sm:$0xff]  ;;  %v20753_v35 = vld [vmem:[#allocation69_spill] sm:$0xff] }
0x364b   :  { %11536 = vmatmul.mubr.msk.f32.vlgmr.msra.gmra.mrb[208].mxu1 %vm364_vm0, %v19187_v62  ;;  %11538 = vmatmul.mubr.msk.f32.vlgmr.msra.gmra.mrb[208].mxu0 %vm364_vm0, %v19187_v62  ;;  %v20789_v62 = vld [vmem:[#allocation106_spill] sm:$0xff] }
0x364c   :  { %10588 = vmatprep.mubr.f32.mxu1 %v20688_v49  ;;  %10665 = vmatprep.mubr.f32.mxu0 %v20688_v49  ;;  %v20735_v49 = vld [vmem:[#allocation51_spill] sm:$0xff] }
0x364d   :  { %15397 = vmatpush3.bf16.msra.mxu1 %v20728_v60  ;;  %15429 = vmatpush3.bf16.msra.mxu0 %v20729_v23  ;;  %v20754_v60 = vld [vmem:[#allocation70_spill] sm:$0xff]  ;;  %v20755_v23 = vld [vmem:[#allocation71_spill] sm:$0xff] }
0x364e   :  { %15399 = vmatprep.subr.bf16.mxu1 %v20730_v38  ;;  %15431 = vmatprep.subr.bf16.mxu0 %v20731_v53  ;;  %v20756_v38 = vld [vmem:[#allocation72_spill] sm:$0xff]  ;;  %v20757_v53 = vld [vmem:[#allocation73_spill] sm:$0xff] }
0x364f   :  { %11537 = vmatmul.mubr.msk.f32.gmra.mrb[210].mxu1 %vm364_vm0, %v19195_v21  ;;  %11539 = vmatmul.mubr.msk.f32.gmra.mrb[210].mxu0 %vm364_vm0, %v19195_v21  ;;  %v20788_v21 = vld [vmem:[#allocation105_spill] sm:$0xff] }
0x3651   :  { %15401 = vmatpush3.bf16.msra.mxu1 %v20732_v52  ;;  %15433 = vmatpush3.bf16.msra.mxu0 %v20733_v0  ;;  %v20758_v52 = vld [vmem:[#allocation74_spill] sm:$0xff]  ;;  %v20759_v0 = vld [vmem:[#allocation75_spill] sm:$0xff] }
0x3652   :  { %15403 = vmatprep.subr.bf16.mxu1 %v20734_v9  ;;  %15435 = vmatprep.subr.bf16.mxu0 %v20735_v49 }
0x3655   :  { %15405 = vmatpush3.bf16.msra.mxu1 %v20736_v6  ;;  %15437 = vmatpush3.bf16.msra.mxu0 %v20737_v5  ;;  %v20760_v6 = vld [vmem:[#allocation76_spill] sm:$0xff] }
0x3656   :  { %15407 = vmatprep.subr.bf16.mxu1 %v20738_v8  ;;  %15439 = vmatprep.subr.bf16.mxu0 %v20739_v63  ;;  %v20761_v8 = vld [vmem:[#allocation77_spill] sm:$0xff] }
0x3659   :  { %15409 = vmatpush3.bf16.msra.mxu1 %v20740_v58  ;;  %15441 = vmatpush3.bf16.msra.mxu0 %v20741_v31 }
0x365a   :  { %15411 = vmatprep.subr.bf16.mxu1 %v20742_v40  ;;  %15443 = vmatprep.subr.bf16.mxu0 %v20743_v41  ;;  %v20762_v40 = vld [vmem:[#allocation78_spill] sm:$0xff] }
0x365d   :  { %15413 = vmatpush3.bf16.msra.mxu1 %v20744_v4  ;;  %15445 = vmatpush3.bf16.msra.mxu0 %v20745_v27  ;;  %v20763_v4 = vld [vmem:[#allocation79_spill] sm:$0xff] }
0x365e   :  { %15415 = vmatprep.subr.bf16.mxu1 %v20746_v45  ;;  %15447 = vmatprep.subr.bf16.mxu0 %v20747_v42 }
0x3661   :  { %15417 = vmatpush3.bf16.msra.mxu1 %v20748_v48  ;;  %15449 = vmatpush3.bf16.msra.mxu0 %v20749_v33 }
0x3662   :  { %15419 = vmatprep.subr.bf16.mxu1 %v20750_v34  ;;  %15451 = vmatprep.subr.bf16.mxu0 %v20751_v29 }
0x3665   :  { %15421 = vmatpush3.bf16.msra.mxu1 %v20752_v46  ;;  %15453 = vmatpush3.bf16.msra.mxu0 %v20753_v35 }
0x3666   :  { %15423 = vmatprep.subr.bf16.mxu1 %v20754_v60  ;;  %15455 = vmatprep.subr.bf16.mxu0 %v20755_v23 }
0x3669   :  { %15425 = vmatpush3.bf16.msra.mxu1 %v20756_v38  ;;  %15457 = vmatpush3.bf16.msra.mxu0 %v20757_v53 }
0x366a   :  { %15459 = vmatprep.subr.bf16.mxu1 %v20758_v52  ;;  %15491 = vmatprep.subr.bf16.mxu0 %v20759_v0 }
0x3706   :  { %v10122_v9 = vpop.f32.mrb[196].mxu1  ;;  %v10199_v49 = vpop.f32.mrb[196].mxu0 }
0x3707   :  { %v10123_v5 = vadd.f32 %v10122_v9, %v20760_v6  ;;  %v10200_v63 = vadd.f32 %v10199_v49, %v20761_v8  ;;  %v10124_v58 = vpop.f32.mrb[197].mxu1  ;;  %v10201_v31 = vpop.f32.mrb[197].mxu0  ;;  %v20764_v9 = vld [vmem:[#allocation80_spill] sm:$0xff]  ;;  %v20765_v49 = vld [vmem:[#allocation81_spill] sm:$0xff] }
0x3708   :  { %v10125_v41 = vadd.f32 %v10124_v58, %v20762_v40  ;;  %v10202_v27 = vadd.f32 %v10201_v31, %v20763_v4 }
0x3709   :  { %v10672_v34 = vmax.f32 %v10123_v5, 0.0  ;;  %v10674_v29 = vmax.f32 %v10200_v63, 0.0 }
0x370a   :  { %v10673_v45 = vmax.f32 %v10125_v41, 0.0  ;;  %v10675_v42 = vmax.f32 %v10202_v27, 0.0  ;;  %v10128_v48 = vpop.f32.mrb[198].mxu1  ;;  %v10205_v33 = vpop.f32.mrb[198].mxu0  ;;  %v20766_v41 = vld [vmem:[#allocation83_spill] sm:$0xff] }
0x370b   :  { %v10129_v46 = vadd.f32 %v10128_v48, %v20760_v6  ;;  %v10206_v35 = vadd.f32 %v10205_v33, %v20761_v8  ;;  %v10130_v60 = vpop.f32.mrb[199].mxu1  ;;  %v10207_v23 = vpop.f32.mrb[199].mxu0  ;;  %v20768_v48 = vld [vmem:[#allocation86_spill] sm:$0xff]  ;;  %v20769_v33 = vld [vmem:[#allocation87_spill] sm:$0xff] }
0x370c   :  { %v10131_v38 = vadd.f32 %v10130_v60, %v20762_v40  ;;  %v10208_v53 = vadd.f32 %v10207_v23, %v20763_v4  ;;  %10768 = vmatprep.mubr.f32.mxu1 %v10673_v45  ;;  %10843 = vmatprep.mubr.f32.mxu0 %v10675_v42  ;;  %v20767_v40 = vld [vmem:[#allocation84_spill] sm:$0xff]  ;;  %v20771_v23 = vld [vmem:[#allocation89_spill] sm:$0xff] }
0x370d   :  { %10769 = vmatmul.mubr.f32.vlgmr.msra.gmra.mrb[212].mxu1 %v10672_v34  ;;  %10844 = vmatmul.mubr.f32.vlgmr.msra.gmra.mrb[212].mxu0 %v10674_v29  ;;  %v10688_v63 = vmax.f32 %v10129_v46, 0.0  ;;  %v10690_v8 = vmax.f32 %v10206_v35, 0.0  ;;  %v20770_v60 = vld [vmem:[#allocation88_spill] sm:$0xff] }
0x370e   :  { %v10689_v52 = vmax.f32 %v10131_v38, 0.0  ;;  %v10691_v0 = vmax.f32 %v10208_v53, 0.0  ;;  %15461 = vmatpush3.bf16.msra.mxu1 %v20764_v9  ;;  %15493 = vmatpush3.bf16.msra.mxu0 %v20765_v49  ;;  %v10276_v5 = vpop.f32.mrb[200].mxu1  ;;  %v10353_v6 = vpop.f32.mrb[200].mxu0  ;;  %v20772_v38 = vld [vmem:[#allocation90_spill] sm:$0xff]  ;;  %v20773_v53 = vld [vmem:[#allocation91_spill] sm:$0xff] }
0x370f   :  { %v10278_v58 = vpop.f32.mrb[201].mxu1  ;;  %v10355_v31 = vpop.f32.mrb[201].mxu0  ;;  %15463 = vmatprep.subr.bf16.mxu1 %v20766_v41  ;;  %15495 = vmatprep.subr.bf16.mxu0 %v20767_v40 }
0x3710   :  { %v10279_v4 = vadd.f32 %v10278_v58, %v20164_v39  ;;  %v10356_v27 = vadd.f32 %v10355_v31, %v20165_v36  ;;  %10773 = vmatprep.mubr.f32.mxu1 %v10689_v52  ;;  %10848 = vmatprep.mubr.f32.mxu0 %v10691_v0  ;;  %v20776_v58 = vld [vmem:[#allocation94_spill] sm:$0xff]  ;;  %v20777_v31 = vld [vmem:[#allocation95_spill] sm:$0xff] }
0x3711   :  { %10774 = vmatmul.mubr.f32.gmra.mrb[214].mxu1 %v10688_v63  ;;  %10849 = vmatmul.mubr.f32.gmra.mrb[214].mxu0 %v10690_v8  ;;  %v20774_v63 = vld [vmem:[#allocation92_spill] sm:$0xff]  ;;  %v20775_v8 = vld [vmem:[#allocation93_spill] sm:$0xff] }
0x3712   :  { %v10677_v45 = vmax.f32 %v10279_v4, 0.0  ;;  %v10679_v42 = vmax.f32 %v10356_v27, 0.0  ;;  %15465 = vmatpush3.bf16.msra.mxu1 %v20768_v48  ;;  %15497 = vmatpush3.bf16.msra.mxu0 %v20769_v33  ;;  %v10282_v34 = vpop.f32.mrb[202].mxu1  ;;  %v10359_v29 = vpop.f32.mrb[202].mxu0  ;;  %v20780_v48 = vld [vmem:[#allocation98_spill] sm:$0xff]  ;;  %v20781_v33 = vld [vmem:[#allocation99_spill] sm:$0xff] }
0x3713   :  { %v10284_v46 = vpop.f32.mrb[203].mxu1  ;;  %v10361_v35 = vpop.f32.mrb[203].mxu0  ;;  %15467 = vmatprep.subr.bf16.mxu1 %v20770_v60  ;;  %15499 = vmatprep.subr.bf16.mxu0 %v20771_v23 }
0x3714   :  { %10918 = vmatprep.mubr.f32.mxu1 %v10677_v45  ;;  %10993 = vmatprep.mubr.f32.mxu0 %v10679_v42  ;;  %v20778_v45 = vld [vmem:[#allocation96_spill] sm:$0xff]  ;;  %v20779_v42 = vld [vmem:[#allocation97_spill] sm:$0xff] }
0x3716   :  { %15469 = vmatpush3.bf16.msra.mxu1 %v20772_v38  ;;  %15501 = vmatpush3.bf16.msra.mxu0 %v20773_v53  ;;  %v19313_v52 = vpop.f32.mrb[204].mxu1  ;;  %v19315_v0 = vpop.f32.mrb[204].mxu0 }
0x3717   :  { %v10432_v9 = vpop.f32.mrb[205].mxu1  ;;  %v10509_v49 = vpop.f32.mrb[205].mxu0  ;;  %15471 = vmatprep.subr.bf16.mxu1 %v20774_v63  ;;  %15503 = vmatprep.subr.bf16.mxu0 %v20775_v8  ;;  %v20782_v63 = vld [vmem:[#allocation100_spill] sm:$0xff]  ;;  %v20783_v8 = vld [vmem:[#allocation101_spill] sm:$0xff] }
0x371a   :  { %15473 = vmatpush3.bf16.msra.mxu1 %v20776_v58  ;;  %15505 = vmatpush3.bf16.msra.mxu0 %v20777_v31  ;;  %v19321_v41 = vpop.f32.mrb[206].mxu1  ;;  %v19323_v40 = vpop.f32.mrb[206].mxu0  ;;  %v20784_v58 = vld [vmem:[#allocation102_spill] sm:$0xff]  ;;  %v20785_v31 = vld [vmem:[#allocation103_spill] sm:$0xff] }
0x371b   :  { %v19325_v4 = vpop.f32.mrb[207].mxu1  ;;  %v19327_v27 = vpop.f32.mrb[207].mxu0  ;;  %15475 = vmatprep.subr.bf16.mxu1 %v20778_v45  ;;  %15507 = vmatprep.subr.bf16.mxu0 %v20779_v42 }
0x371e   :  { %15477 = vmatpush3.bf16.msra.mxu1 %v20780_v48  ;;  %15509 = vmatpush3.bf16.msra.mxu0 %v20781_v33  ;;  %v19333_v60 = vpop.f32.mrb[208].mxu1  ;;  %v19335_v23 = vpop.f32.mrb[208].mxu0 }
0x371f   :  { %v19337_v38 = vpop.f32.mrb[209].mxu1  ;;  %v19339_v53 = vpop.f32.mrb[209].mxu0  ;;  %15479 = vmatprep.subr.bf16.mxu1 %v20782_v63  ;;  %15511 = vmatprep.subr.bf16.mxu0 %v20783_v8  ;;  %v20790_v63 = vld [vmem:[#allocation107_spill] sm:$0xff]  ;;  %v10277_v8 = vadd.f32 %v10276_v5, %v16947_v19  ;;  %v10360_v5 = vadd.f32 %v10359_v29, %v16971_v22 }
0x3722   :  { %15481 = vmatpush3.bf16.msra.mxu1 %v20784_v58  ;;  %15513 = vmatpush3.bf16.msra.mxu0 %v20785_v31  ;;  %v19345_v45 = vpop.f32.mrb[210].mxu1  ;;  %v19347_v42 = vpop.f32.mrb[210].mxu0  ;;  %v10354_v58 = vadd.f32 %v10353_v6, %v16971_v22  ;;  %v20791_v31 = vld [vmem:[#allocation109_spill] sm:$0xff] }
0x3723   :  { %20786 = vst [vmem:[#allocation119_spill] sm:$0xff] %v19345_v45  ;;  %20787 = vst [vmem:[#allocation120_spill] sm:$0xff] %v19347_v42  ;;  %v19349_v48 = vpop.f32.mrb[211].mxu1  ;;  %v19351_v33 = vpop.f32.mrb[211].mxu0  ;;  %15483 = vmatprep.subr.bf16.mxu1 %v20485_v32  ;;  %15515 = vmatprep.subr.bf16.mxu0 %v20788_v21  ;;  %v10285_v42 = vadd.f32 %v10284_v46, %v20164_v39  ;;  %v10362_v45 = vadd.f32 %v10361_v35, %v20165_v36  ;;  %v10676_v32 = vmax.f32 %v10277_v8, 0.0  ;;  %v20806_v46 = vld [vmem:[#allocation151_spill] sm:$0xff] }
0x3724   :  { %v10283_v21 = vadd.f32 %v10282_v34, %v16947_v19  ;;  %v10433_v39 = vadd.f32 %v10432_v9, %v17050_v11  ;;  %v10510_v36 = vadd.f32 %v10509_v49, %v17055_v54  ;;  %v20794_v19 = vld [vmem:[#allocation137_spill] sm:$0xff]  ;;  %v20807_v35 = vld [vmem:[#allocation152_spill] sm:$0xff]  ;;  %v20810_v9 = vld [vmem:[#allocation155_spill] sm:$0xff] }
0x3725   :  { %v10695_v6 = vmax.f32 %v10362_v45, 0.0  ;;  %v20811_v49 = vld [vmem:[#allocation156_spill] sm:$0xff]  ;;  %v20818_v45 = vld [vmem:[#allocation163_spill] sm:$0xff]  ;;  %v20821_v8 = vld [vmem:[#allocation166_spill] sm:$0xff] }
0x3726   :  { %15485 = vmatpush3.bf16.msra.mxu1 %v20789_v62  ;;  %15517 = vmatpush3.bf16.msra.mxu0 %v20790_v63  ;;  %v10678_v62 = vmax.f32 %v10354_v58, 0.0  ;;  %v10681_v22 = vmax.f32 %v10433_v39, 0.0  ;;  %v20820_v63 = vld [vmem:[#allocation165_spill] sm:$0xff]  ;;  %v20822_v58 = vld [vmem:[#allocation167_spill] sm:$0xff] }
0x3727   :  { %15487 = vmatprep.subr.bf16.mxu1 %v20188_v37  ;;  %15519 = vmatprep.subr.bf16.mxu0 %v20791_v31  ;;  %v10693_v37 = vmax.f32 %v10285_v42, 0.0  ;;  %v20819_v42 = vld [vmem:[#allocation164_spill] sm:$0xff]  ;;  %v20830_v39 = vld [vmem:[#allocation173_spill] sm:$0xff] }
0x3728   :  { %v20823_v31 = vld [vmem:[#allocation168_spill] sm:$0xff] }
0x372a   :  { %15489 = vmatpush3.bf16.msra.mxu1 %v20337_v2  ;;  %15521 = vmatpush3.bf16.msra.mxu0 %v20338_v47  ;;  %v10692_v2 = vmax.f32 %v10283_v21, 0.0  ;;  %v10694_v47 = vmax.f32 %v10360_v5, 0.0  ;;  %v20826_v21 = vld [vmem:[#allocation171_spill] sm:$0xff]  ;;  %v20827_v5 = vld [vmem:[#allocation172_spill] sm:$0xff] }
0x372b   :  { %15523 = vmatprep.subr.bf16.mxu1 %v20339_v61  ;;  %15555 = vmatprep.subr.bf16.mxu0 %v17032_v43  ;;  %v10683_v61 = vmax.f32 %v10510_v36, 0.0  ;;  %v10431_v43 = vadd.f32 %v19313_v52, %v20794_v19  ;;  %v20808_v52 = vld [vmem:[#allocation153_spill] sm:$0xff]  ;;  %v10585_v36 = vadd.f32 %v19333_v60, %v20830_v39  ;;  %v20836_v60 = vld [vmem:[#allocation119_spill] sm:$0xff] }
0x372d   :  { %10919 = vmatmul.mubr.f32.vlgmr.msra.gmra.mrb[216].mxu1 %v10676_v32  ;;  %10994 = vmatmul.mubr.f32.vlgmr.msra.gmra.mrb[216].mxu0 %v10678_v62  ;;  %v20824_v32 = vld [vmem:[#allocation169_spill] sm:$0xff]  ;;  %v20825_v62 = vld [vmem:[#allocation170_spill] sm:$0xff] }
0x372e   :  { %10923 = vmatprep.mubr.f32.mxu1 %v10693_v37  ;;  %10998 = vmatprep.mubr.f32.mxu0 %v10695_v6  ;;  %v20828_v37 = vld [vmem:[#allocation174_spill] sm:$0xff]  ;;  %v20829_v6 = vld [vmem:[#allocation175_spill] sm:$0xff] }
0x372f   :  { %15525 = vmatpush3.bf16.msra.mxu1 %v20190_v13  ;;  %15557 = vmatpush3.bf16.msra.mxu0 %v20191_v55  ;;  %v20792_v13 = vld [vmem:[#allocation138_spill] sm:$0xff]  ;;  %v20795_v55 = vld [vmem:[#allocation140_spill] sm:$0xff] }
0x3730   :  { %15527 = vmatprep.subr.bf16.mxu1 %v20192_v59  ;;  %15559 = vmatprep.subr.bf16.mxu0 %v20193_v7  ;;  %v20793_v59 = vld [vmem:[#allocation139_spill] sm:$0xff]  ;;  %v10508_v7 = vadd.f32 %v19315_v0, %v20795_v55  ;;  %v20809_v0 = vld [vmem:[#allocation154_spill] sm:$0xff] }
0x3731   :  { %10924 = vmatmul.mubr.f32.gmra.mrb[218].mxu1 %v10692_v2  ;;  %10999 = vmatmul.mubr.f32.gmra.mrb[218].mxu0 %v10694_v47  ;;  %v20831_v2 = vld [vmem:[#allocation176_spill] sm:$0xff] }
0x3732   :  { %11068 = vmatprep.mubr.f32.mxu1 %v10681_v22  ;;  %11143 = vmatprep.mubr.f32.mxu0 %v10683_v61  ;;  %v10662_v47 = vadd.f32 %v19335_v23, %v20831_v2  ;;  %v20832_v22 = vld [vmem:[#allocation177_spill] sm:$0xff]  ;;  %v20833_v61 = vld [vmem:[#allocation178_spill] sm:$0xff]  ;;  %v20837_v23 = vld [vmem:[#allocation120_spill] sm:$0xff] }
0x3733   :  { %15529 = vmatpush3.bf16.msra.mxu1 %v20194_v24  ;;  %15561 = vmatpush3.bf16.msra.mxu0 %v20195_v20  ;;  %v20796_v24 = vld [vmem:[#allocation141_spill] sm:$0xff]  ;;  %v20797_v20 = vld [vmem:[#allocation142_spill] sm:$0xff] }
0x3734   :  { %15531 = vmatprep.subr.bf16.mxu1 %v20196_v16  ;;  %15563 = vmatprep.subr.bf16.mxu0 %v20197_v26  ;;  %v10439_v16 = vadd.f32 %v19325_v4, %v17050_v11  ;;  %v10516_v26 = vadd.f32 %v19327_v27, %v17055_v54  ;;  %v20814_v4 = vld [vmem:[#allocation159_spill] sm:$0xff]  ;;  %v20815_v27 = vld [vmem:[#allocation160_spill] sm:$0xff] }
0x3736   :  { %v10697_v11 = vmax.f32 %v10439_v16, 0.0 }
0x3737   :  { %15533 = vmatpush3.bf16.msra.mxu1 %v20340_v1  ;;  %15565 = vmatpush3.bf16.msra.mxu0 %v20341_v12  ;;  %v10680_v1 = vmax.f32 %v10431_v43, 0.0  ;;  %v10682_v12 = vmax.f32 %v10508_v7, 0.0  ;;  %v20835_v43 = vld [vmem:[#allocation180_spill] sm:$0xff]  ;;  %v10686_v7 = vmax.f32 %v10662_v47, 0.0 }
0x3738   :  { %15535 = vmatprep.subr.bf16.mxu1 %v20342_v17  ;;  %15567 = vmatprep.subr.bf16.mxu0 %v20343_v28  ;;  %v10437_v17 = vadd.f32 %v19321_v41, %v20794_v19  ;;  %v10514_v28 = vadd.f32 %v19323_v40, %v20795_v55  ;;  %v20812_v41 = vld [vmem:[#allocation157_spill] sm:$0xff]  ;;  %v20813_v40 = vld [vmem:[#allocation158_spill] sm:$0xff]  ;;  %v20834_v19 = vld [vmem:[#allocation179_spill] sm:$0xff]  ;;  %v10684_v55 = vmax.f32 %v10585_v36, 0.0 }
0x373b   :  { %15537 = vmatpush3.bf16.msra.mxu1 %v20344_v57  ;;  %15569 = vmatpush3.bf16.msra.mxu0 %v20345_v10  ;;  %v20800_v57 = vld [vmem:[#allocation145_spill] sm:$0xff]  ;;  %v20801_v10 = vld [vmem:[#allocation146_spill] sm:$0xff] }
0x373c   :  { %15539 = vmatprep.subr.bf16.mxu1 %v20346_v25  ;;  %15571 = vmatprep.subr.bf16.mxu0 %v20205_v3  ;;  %v20799_v3 = vld [vmem:[#allocation144_spill] sm:$0xff]  ;;  %v10699_v25 = vmax.f32 %v10516_v26, 0.0 }
0x373f   :  { %15541 = vmatpush3.bf16.msra.mxu1 %v20347_v15  ;;  %15573 = vmatpush3.bf16.msra.mxu0 %v20348_v50  ;;  %v20802_v15 = vld [vmem:[#allocation147_spill] sm:$0xff]  ;;  %v20803_v50 = vld [vmem:[#allocation148_spill] sm:$0xff] }
0x3740   :  { %15543 = vmatprep.subr.bf16.mxu1 %v20490_v51  ;;  %15575 = vmatprep.subr.bf16.mxu0 %v20491_v44  ;;  %v10587_v54 = vadd.f32 %v19337_v38, %v20802_v15  ;;  %v10664_v51 = vadd.f32 %v19339_v53, %v20803_v50  ;;  %v10696_v44 = vmax.f32 %v10437_v17, 0.0  ;;  %v20816_v38 = vld [vmem:[#allocation161_spill] sm:$0xff]  ;;  %v20817_v53 = vld [vmem:[#allocation162_spill] sm:$0xff] }
0x3742   :  { %v10685_v34 = vmax.f32 %v10587_v54, 0.0  ;;  %v10687_v29 = vmax.f32 %v10664_v51, 0.0 }
0x3743   :  { %15545 = vmatpush3.bf16.msra.mxu1 %v20210_v30  ;;  %15577 = vmatpush3.bf16.msra.mxu0 %v20492_v14  ;;  %v20798_v30 = vld [vmem:[#allocation143_spill] sm:$0xff]  ;;  %v10698_v14 = vmax.f32 %v10514_v28, 0.0 }
0x3744   :  { %15547 = vmatprep.subr.bf16.mxu1 %v20493_v56  ;;  %15579 = vmatprep.subr.bf16.mxu0 %v20494_v18  ;;  %v20804_v56 = vld [vmem:[#allocation149_spill] sm:$0xff]  ;;  %v20805_v18 = vld [vmem:[#allocation150_spill] sm:$0xff] }
0x3747   :  { %15549 = vmatpush3.bf16.msra.mxu1 %v20792_v13  ;;  %15581 = vmatpush3.bf16.msra.mxu0 %v20793_v59  ;;  %v10593_v13 = vadd.f32 %v19349_v48, %v20802_v15  ;;  %v10670_v59 = vadd.f32 %v19351_v33, %v20803_v50 }
0x3748   :  { %15551 = vmatprep.subr.bf16.mxu1 %v20796_v24  ;;  %15583 = vmatprep.subr.bf16.mxu0 %v20797_v20  ;;  %v10591_v24 = vadd.f32 %v20836_v60, %v20830_v39  ;;  %v10668_v20 = vadd.f32 %v20837_v23, %v20831_v2 }
0x3749   :  { %v10701_v16 = vmax.f32 %v10593_v13, 0.0  ;;  %v10703_v26 = vmax.f32 %v10670_v59, 0.0 }
0x374a   :  { %v10700_v48 = vmax.f32 %v10591_v24, 0.0  ;;  %v10702_v33 = vmax.f32 %v10668_v20, 0.0 }
0x374b   :  { %15553 = vmatpush3.bf16.msra.mxu1 %v20798_v30  ;;  %15585 = vmatpush3.bf16.msra.mxu0 %v20799_v3 }
0x374c   :  { %15587 = vmatprep.subr.bf16.mxu1 %v20800_v57  ;;  %15619 = vmatprep.subr.bf16.mxu0 %v20801_v10  ;;  %v15781_v57 = vld [vmem:[%s19511_s3 + $0x2] ss:$0 sm:$0xff] }
0x374e   :  { %11069 = vmatmul.mubr.f32.vlgmr.msra.gmra.mrb[220].mxu1 %v10680_v1  ;;  %11144 = vmatmul.mubr.f32.vlgmr.msra.gmra.mrb[220].mxu0 %v10682_v12 }
0x374f   :  { %11073 = vmatprep.mubr.f32.mxu1 %v10697_v11  ;;  %11148 = vmatprep.mubr.f32.mxu0 %v10699_v25 }
0x3750   :  { %15589 = vmatpush3.bf16.msra.mxu1 %v20804_v56  ;;  %15621 = vmatpush3.bf16.msra.mxu0 %v20805_v18 }
0x3751   :  { %15591 = vmatprep.subr.bf16.mxu1 %v20806_v46  ;;  %15623 = vmatprep.subr.bf16.mxu0 %v20807_v35 }
0x3752   :  { %11074 = vmatmul.mubr.f32.gmra.mrb[222].mxu1 %v10696_v44  ;;  %11149 = vmatmul.mubr.f32.gmra.mrb[222].mxu0 %v10698_v14 }
0x3753   :  { %11218 = vmatprep.mubr.f32.mxu1 %v10685_v34  ;;  %11293 = vmatprep.mubr.f32.mxu0 %v10687_v29 }
0x3754   :  { %15593 = vmatpush3.bf16.msra.mxu1 %v20808_v52  ;;  %15625 = vmatpush3.bf16.msra.mxu0 %v20809_v0 }
0x3755   :  { %15595 = vmatprep.subr.bf16.mxu1 %v20810_v9  ;;  %15627 = vmatprep.subr.bf16.mxu0 %v20811_v49 }
0x3758   :  { %15597 = vmatpush3.bf16.msra.mxu1 %v20812_v41  ;;  %15629 = vmatpush3.bf16.msra.mxu0 %v20813_v40 }
0x3759   :  { %15599 = vmatprep.subr.bf16.mxu1 %v20814_v4  ;;  %15631 = vmatprep.subr.bf16.mxu0 %v20815_v27 }
0x375c   :  { %15601 = vmatpush3.bf16.msra.mxu1 %v20816_v38  ;;  %15633 = vmatpush3.bf16.msra.mxu0 %v20817_v53 }
0x375d   :  { %15603 = vmatprep.subr.bf16.mxu1 %v20818_v45  ;;  %15635 = vmatprep.subr.bf16.mxu0 %v20819_v42 }
0x3760   :  { %15605 = vmatpush3.bf16.msra.mxu1 %v20820_v63  ;;  %15637 = vmatpush3.bf16.msra.mxu0 %v20821_v8 }
0x3761   :  { %15607 = vmatprep.subr.bf16.mxu1 %v20822_v58  ;;  %15639 = vmatprep.subr.bf16.mxu0 %v20823_v31 }
0x3764   :  { %15609 = vmatpush3.bf16.msra.mxu1 %v20824_v32  ;;  %15641 = vmatpush3.bf16.msra.mxu0 %v20825_v62 }
0x3765   :  { %15611 = vmatprep.subr.bf16.mxu1 %v20826_v21  ;;  %15643 = vmatprep.subr.bf16.mxu0 %v20827_v5 }
0x3768   :  { %15613 = vmatpush3.bf16.msra.mxu1 %v20828_v37  ;;  %15645 = vmatpush3.bf16.msra.mxu0 %v20829_v6 }
0x3769   :  { %15615 = vmatprep.subr.bf16.mxu1 %v20832_v22  ;;  %15647 = vmatprep.subr.bf16.mxu0 %v20833_v61 }
0x376c   :  { %15617 = vmatpush3.bf16.msra.mxu1 %v20834_v19  ;;  %15649 = vmatpush3.bf16.msra.mxu0 %v20835_v43 }
0x376f   :  { %11219 = vmatmul.mubr.f32.vlgmr.msra.gmra.mrb[224].mxu1 %v10684_v55  ;;  %11294 = vmatmul.mubr.f32.vlgmr.msra.gmra.mrb[224].mxu0 %v10686_v7 }
0x3770   :  { %11223 = vmatprep.mubr.f32.mxu1 %v10701_v16  ;;  %11298 = vmatprep.mubr.f32.mxu0 %v10703_v26 }
0x3773   :  { %11224 = vmatmul.mubr.f32.gmra.mrb[226].mxu1 %v10700_v48  ;;  %11299 = vmatmul.mubr.f32.gmra.mrb[226].mxu0 %v10702_v33 }
0x37e0   :  { %v13194_v30 = vpop.f32.mrb[212].mxu1  ;;  %v13232_v3 = vpop.f32.mrb[212].mxu0 }
0x37e1   :  { %v13195_v1 = vpop.f32.mrb[213].mxu1  ;;  %v13233_v12 = vpop.f32.mrb[213].mxu0 }
0x37e2   :  { %v13196_v17 = vadd.f32 %v13195_v1, %v13194_v30  ;;  %v13234_v28 = vadd.f32 %v13233_v12, %v13232_v3  ;;  %v20838_v30 = vld [vmem:[#allocation117_spill] sm:$0xff] }
0x37e4   :  { %v10771_v10 = vadd.f32 %v15781_v57, %v13196_v17  ;;  %v13197_v11 = vpop.f32.mrb[214].mxu1  ;;  %v13235_v25 = vpop.f32.mrb[214].mxu0  ;;  %v20839_v17 = vld [vmem:[#allocation118_spill] sm:$0xff] }
0x37e5   :  { %v13198_v15 = vpop.f32.mrb[215].mxu1  ;;  %v13236_v54 = vpop.f32.mrb[215].mxu0 }
0x37e6   :  { %v10846_v50 = vadd.f32 %v13234_v28, %v10771_v10  ;;  %v13199_v51 = vadd.f32 %v13198_v15, %v13197_v11  ;;  %v13237_v44 = vadd.f32 %v13236_v54, %v13235_v25 }
0x37e8   :  { %v10776_v14 = vadd.f32 %v15781_v57, %v13199_v51 }
0x37ea   :  { %v10851_v56 = vadd.f32 %v13237_v44, %v10776_v14 }
0x3800   :  { %v13270_v18 = vpop.f32.mrb[216].mxu1  ;;  %v13308_v34 = vpop.f32.mrb[216].mxu0 }
0x3801   :  { %v13271_v29 = vpop.f32.mrb[217].mxu1  ;;  %v13309_v46 = vpop.f32.mrb[217].mxu0 }
0x3802   :  { %v13272_v35 = vadd.f32 %v13271_v29, %v13270_v18  ;;  %v13310_v52 = vadd.f32 %v13309_v46, %v13308_v34 }
0x3804   :  { %v10921_v0 = vadd.f32 %v13272_v35, %v10846_v50  ;;  %v13273_v9 = vpop.f32.mrb[218].mxu1  ;;  %v13311_v49 = vpop.f32.mrb[218].mxu0 }
0x3805   :  { %v13274_v41 = vpop.f32.mrb[219].mxu1  ;;  %v13312_v40 = vpop.f32.mrb[219].mxu0 }
0x3806   :  { %v10996_v4 = vadd.f32 %v13310_v52, %v10921_v0  ;;  %v13275_v27 = vadd.f32 %v13274_v41, %v13273_v9  ;;  %v13313_v38 = vadd.f32 %v13312_v40, %v13311_v49 }
0x3808   :  { %v10926_v53 = vadd.f32 %v13275_v27, %v10851_v56 }
0x380a   :  { %v11001_v45 = vadd.f32 %v13313_v38, %v10926_v53 }
0x3821   :  { %v13346_v42 = vpop.f32.mrb[220].mxu1  ;;  %v13384_v63 = vpop.f32.mrb[220].mxu0 }
0x3822   :  { %v13347_v8 = vpop.f32.mrb[221].mxu1  ;;  %v13385_v58 = vpop.f32.mrb[221].mxu0 }
0x3823   :  { %v13348_v31 = vadd.f32 %v13347_v8, %v13346_v42  ;;  %v13386_v32 = vadd.f32 %v13385_v58, %v13384_v63 }
0x3825   :  { %v11071_v62 = vadd.f32 %v13348_v31, %v10996_v4  ;;  %v13349_v21 = vpop.f32.mrb[222].mxu1  ;;  %v13387_v5 = vpop.f32.mrb[222].mxu0 }
0x3826   :  { %v13350_v37 = vpop.f32.mrb[223].mxu1  ;;  %v13388_v6 = vpop.f32.mrb[223].mxu0 }
0x3827   :  { %v11146_v39 = vadd.f32 %v13386_v32, %v11071_v62  ;;  %v13351_v36 = vadd.f32 %v13350_v37, %v13349_v21  ;;  %v13389_v2 = vadd.f32 %v13388_v6, %v13387_v5 }
0x3829   :  { %v11076_v47 = vadd.f32 %v13351_v36, %v11001_v45 }
0x382b   :  { %v11151_v22 = vadd.f32 %v13389_v2, %v11076_v47 }
0x3842   :  { %v13422_v61 = vpop.f32.mrb[224].mxu1  ;;  %v13460_v13 = vpop.f32.mrb[224].mxu0 }
0x3843   :  { %v13423_v59 = vpop.f32.mrb[225].mxu1  ;;  %v13461_v19 = vpop.f32.mrb[225].mxu0 }
0x3844   :  { %v13424_v43 = vadd.f32 %v13423_v59, %v13422_v61  ;;  %v13462_v55 = vadd.f32 %v13461_v19, %v13460_v13 }
0x3846   :  { %v11221_v7 = vadd.f32 %v13424_v43, %v11146_v39  ;;  %v13425_v60 = vpop.f32.mrb[226].mxu1  ;;  %v13463_v24 = vpop.f32.mrb[226].mxu0 }
0x3847   :  { %v13426_v23 = vpop.f32.mrb[227].mxu1  ;;  %v13464_v20 = vpop.f32.mrb[227].mxu0 }
0x3848   :  { %v11296_v16 = vadd.f32 %v13462_v55, %v11221_v7  ;;  %v13427_v26 = vadd.f32 %v13426_v23, %v13425_v60  ;;  %v13465_v48 = vadd.f32 %v13464_v20, %v13463_v24 }
0x384a   :  { %v11226_v33 = vadd.f32 %v13427_v26, %v11151_v22  ;;  %v11304_v3 = vadd.f32 %v11296_v16, %v20838_v30 }
0x384c   :  { %v11301_v1 = vadd.f32 %v13465_v48, %v11226_v33  ;;  %v11306_v12 = vsel %vm364_vm0, %v11304_v3, 0.0 }
0x384d   :  { %11307 = vadd.xlane.f32.xlu0 %v11306_v12 }
0x384e   :  { %v11305_v28 = vadd.f32 %v11301_v1, %v20839_v17 }
0x3850   :  { %v11309_v57 = vsel %vm364_vm0, %v11305_v28, 0.0 }
0x3851   :  { %11310 = vadd.xlane.f32.xlu1 %v11309_v57 }
0x38da   :  { %v11308_v10 = vpop.xlane.xlu0 %11307 }
0x38db   :  { %v11312_v11 = vmul.f32 0.03125, %v11308_v10 }
0x38dd   :  { %v11314_v25 = vsub.f32 %v11304_v3, %v11312_v11 }
0x38de   :  { %v11311_v15 = vpop.xlane.xlu1 %11310 }
0x38df   :  { %v11313_v54 = vmul.f32 0.03125, %v11311_v15  ;;  %v11316_v50 = vmul.f32 %v11314_v25, %v11314_v25 }
0x38e1   :  { %v11315_v51 = vsub.f32 %v11305_v28, %v11313_v54  ;;  %v11318_v44 = vsel %vm364_vm0, %v11316_v50, 0.0 }
0x38e2   :  { %11319 = vadd.xlane.f32.xlu0 %v11318_v44 }
0x38e3   :  { %v11317_v14 = vmul.f32 %v11315_v51, %v11315_v51 }
0x38e5   :  { %v11321_v56 = vsel %vm364_vm0, %v11317_v14, 0.0 }
0x38e6   :  { %11322 = vadd.xlane.f32.xlu1 %v11321_v56 }
0x38e7   :  { %15795 = shalt.err (!%p15792_p4)
}
0x38e8   :  { %s15796_s30 = scalar_lea.hbm %s19516_s8, 1536 }
0x38e9   :  { %p15797_p5 = scmp.ne.s32.totalorder %s19516_s8, %s15796_s30  ;;  %p15800_p6 = scmp.lt.u32.totalorder %s15796_s30, %s19516_s8 }
0x38eb   :  { %p15802_p7 = pnand %p15800_p6, %p15797_p5 }
0x38ed   :  { %15805 = shalt.err (!%p15802_p7)
}
0x38ee   :  { %s15837_s13 = smov 128   ;;  %s15838_s14 = smov 8   ;;  %v15782_v49 = vld [vmem:[%s19511_s3 + $0x3] ss:$0 sm:$0xff]  ;;  %v15783_v27 = vld [vmem:[%s19511_s3 + $0x4] ss:$0 sm:$0xff] }
0x38ef   :  { %11364 = dma.vmem_to_hbm [thread:$0]  %s11359_s26, 1536, %s19516_s8, [#allocation5], %s15837_s13, %s15837_s13, %s15838_s14  }
0x38f0   :  { %s15839_s8 = smov [#allocation2]  }
0x38f1   :  { %s11346_s19 = sshll.u32 %s15839_s8, 4  ;;  %s11347_s19 = int_to_ptr.vmem [resolvable:$true] %s11346_s19 }
0x38f2   :  { %s15806_s20 = scalar_lea.vmem %s11347_s19, 256  ;;  %p15811_p9 = scmp.lt.s32.totalorder %s11347_s19, %s11347_s19 }
0x38f3   :  { %p15807_p8 = scmp.ne.s32.totalorder %s11347_s19, %s15806_s20  ;;  %p15812_p10 = scmp.lt.s32.totalorder %s15806_s20, %s15806_s20 }
0x38f5   :  { %p15813_p11 = por %p15812_p10, %p15811_p9 }
0x38f7   :  { %p15814_p12 = pnand %p15813_p11, %p15807_p8 }
0x396f   :  { %v11320_v18 = vpop.xlane.xlu0 %11319 }
0x3970   :  { %v11324_v34 = vmul.f32 0.03125, %v11320_v18 }
0x3972   :  { %v11326_v29 = vadd.f32 1e-05, %v11324_v34 }
0x3973   :  { %v11323_v46 = vpop.xlane.xlu1 %11322 }
0x3974   :  { %15750 = vrsqrt.f32 %v11326_v29  ;;  %v11325_v35 = vmul.f32 0.03125, %v11323_v46 }
0x3976   :  { %v11327_v52 = vadd.f32 1e-05, %v11325_v35 }
0x3978   :  { %15752 = vrsqrt.f32 %v11327_v52 }
0x397e   :  { %v15751_v0 = vpop.eup %15750 }
0x397f   :  { %v11330_v9 = vmul.f32 %v15751_v0, %v11314_v25 }
0x3981   :  { %v11332_v41 = vmul.f32 %v15782_v49, %v11330_v9 }
0x3982   :  { %v15753_v40 = vpop.eup %15752 }
0x3983   :  { %v11331_v4 = vmul.f32 %v15753_v40, %v11315_v51  ;;  %v11334_v38 = vadd.f32 %v15783_v27, %v11332_v41 }
0x3985   :  { %v11333_v53 = vmul.f32 %v15782_v49, %v11331_v4  ;;  %11339 = vst.msk [vmem:[#allocation2] sm:$0xff] %vm364_vm0, %v11334_v38 }
0x3987   :  { %v11335_v45 = vadd.f32 %v15783_v27, %v11333_v53 }
0x3989   :  { %11340 = vst.msk [vmem:[#allocation2 + $0x8] sm:$0xff] %vm364_vm0, %v11335_v45 }
0x398a   :  { %15817 = shalt.err (!%p15814_p12)
}
0x398b   :  { %s15818_s3 = scalar_lea.hbm %s19515_s7, 256 }
0x398c   :  { %p15819_p13 = scmp.ne.s32.totalorder %s19515_s7, %s15818_s3  ;;  %p15822_p0 = scmp.lt.u32.totalorder %s15818_s3, %s19515_s7 }
0x398e   :  { %p15824_p1 = pnand %p15822_p0, %p15819_p13 }
0x3990   :  { %15827 = shalt.err (!%p15824_p1)
}
0x3991   :  { %11352 = dma.vmem_to_hbm [thread:$0]  %s11347_s19, 256, %s19515_s7, [#allocation3], %s15837_s13, %s15837_s13, %s15838_s14  }
0x3992   :  { %15828 = dma.done.wait [#allocation3], 256  }
0x3993   :  { %15829 = vsyncadd [#allocation3], 4294967040 }
0x3994   :  { %15830 = dma.done.wait [#allocation5], 1536  }
0x3995   :  { %15831 = vsyncadd [#allocation5], 4294965760 }
0x3996   :  { %11371 = vsyncpa [#allocation3], 1 }
0x3997   :  { %11372 = vsyncpa [#allocation5], 1 }

</bundles_post_ra>
